<compile_context>
chip_gen: v6e
topology: v6e:2x2x1
jax: 0.10.0
libtpu: 0.0.40
codegen_flags: <defaults>
</compile_context>

<pallas_src>
import functools
import math

import numpy as np
import jax
import jax.numpy as jnp
from jax.experimental import pallas as pl
from jax.experimental.pallas import tpu as pltpu


# Order of the stacked per-layer weights fed to the kernel.
W_NAMES = (
    "wqkv_s", "bqkv_s", "wo_s", "bo_s",
    "ln1_g", "ln1_b",
    "wc1", "bc1", "wkv_c", "bkv_c",
    "wq_c", "bq_c", "wo_c", "bo_c",
    "ln2_g", "ln2_b",
    "wff1", "bff1", "wff2", "bff2",
    "ln3_g", "ln3_b",
)


# ----------------------------- kernel helpers -----------------------------

def _leaky_relu(v, slope=0.2):
    return jnp.where(v >= 0, v, slope * v)


def _bn_norm(v, eps=1e-5):
    # BatchNorm2d (training mode, fresh module): normalize per channel over all
    # rows (B*H*W) with biased variance; gamma/beta are folded into the next
    # 1x1 conv at init, so only the data-dependent part remains here.
    # Centered two-pass variance (avoids E[x^2]-E[x]^2 cancellation).
    inv_n = 1.0 / v.shape[0]
    mean = jnp.sum(v, axis=0, keepdims=True) * inv_n
    c = v - mean
    var = jnp.sum(c * c, axis=0, keepdims=True) * inv_n
    return c * jax.lax.rsqrt(var + eps)


def _layernorm(v, gamma, beta, eps=1e-6):
    # AddNorm uses nn.LayerNorm(d_model, eps=1e-6)
    mean = jnp.mean(v, axis=-1, keepdims=True)
    c = v - mean
    var = jnp.mean(c * c, axis=-1, keepdims=True)
    return c * jax.lax.rsqrt(var + eps) * gamma + beta


def _dot(a, w):
    # bf16 MXU operands, f32 accumulation; elementwise math stays f32.
    return jnp.dot(a.astype(w.dtype), w, preferred_element_type=jnp.float32)


def _mha_proj(q, k, v, wo, num_heads):
    # q: (B, Sq, C) bf16; k, v: (B, Sk, C) bf16; wo: (C, C) bf16.
    # 1/sqrt(dh) is folded into q; key biases were dropped (softmax shift inv.).
    # Output projection is applied per head and accumulated, so head contexts
    # never need a channel concatenate / lane relayout.
    B, Sq, C = q.shape
    dh = C // num_heads
    out = None
    for h in range(num_heads):                 # static 4-way unroll
        sl = slice(h * dh, (h + 1) * dh)
        s = jnp.einsum('bqd,bkd->bqk', q[..., sl], k[..., sl],
                       preferred_element_type=jnp.float32)
        m = jnp.max(s, axis=-1, keepdims=True)
        e = jnp.exp(s - m)
        p = e * pl.reciprocal(jnp.sum(e, axis=-1, keepdims=True), approx=True)
        ctx = jnp.einsum('bqk,bkd->bqd', p.astype(jnp.bfloat16), v[..., sl],
                         preferred_element_type=jnp.float32)
        contrib = jnp.dot(ctx.reshape(B * Sq, dh).astype(jnp.bfloat16),
                          wo[sl, :], preferred_element_type=jnp.float32)
        out = contrib if out is None else out + contrib
    return out                                 # (B*Sq, C) f32


# --------------------------- fused decoder kernel ---------------------------

def decoder_kernel(x_ref, enc_ref, pe_ref,
                   wqkv_s_ref, bqkv_s_ref, wo_s_ref, bo_s_ref,
                   ln1_g_ref, ln1_b_ref,
                   wc1_ref, bc1_ref, wkv_c_ref, bkv_c_ref,
                   wq_c_ref, bq_c_ref, wo_c_ref, bo_c_ref,
                   ln2_g_ref, ln2_b_ref,
                   wff1_ref, bff1_ref, wff2_ref, bff2_ref,
                   ln3_g_ref, ln3_b_ref,
                   pool_ref, wcls_ref, bcls_ref,
                   logits_ref,
                   x_scr,
                   *, batch, seq_x, seq_e, num_heads, num_layers):
    l = pl.program_id(0)
    C = pe_ref.shape[-1]

    # persistent activation: load the kernel input only on the first layer
    @pl.when(l == 0)
    def _():
        x_scr[...] = x_ref[...]

    x_in = x_scr[...]

    # --- PositionalEncoding2D: (S, C) pe broadcast over batch row-slabs ---
    x_pe = (x_in.reshape(batch, seq_x, C) + pe_ref[...]).reshape(batch * seq_x, C)

    # --- self attention: fused QKV, scale folded into Q, key bias dropped ---
    qkv = (_dot(x_pe, wqkv_s_ref[...]) + bqkv_s_ref[...]).astype(jnp.bfloat16)
    q = qkv[:, :C].reshape(batch, seq_x, C)
    k = qkv[:, C:2 * C].reshape(batch, seq_x, C)
    v = qkv[:, 2 * C:].reshape(batch, seq_x, C)
    sa = _mha_proj(q, k, v, wo_s_ref[...], num_heads) + bo_s_ref[...]
    h1 = _layernorm(x_pe + sa, ln1_g_ref[...], ln1_b_ref[...])          # addnorm1

    # --- encoder-memory path: cross_cnn1 (BN1 affine folded into conv),
    #     cross_cnn2 conv + BN2 affine folded into the cross-attn K/V weight ---
    e = _leaky_relu(enc_ref[...])
    e = _bn_norm(e)
    e = _dot(e, wc1_ref[...]) + bc1_ref[...]
    e = _leaky_relu(e)
    e = _bn_norm(e)
    kv = (_dot(e, wkv_c_ref[...]) + bkv_c_ref[...]).astype(jnp.bfloat16)
    kc = kv[:, :C].reshape(batch, seq_e, C)
    vc = kv[:, C:].reshape(batch, seq_e, C)

    # --- cross attention: query = addnorm1 output, key/value = processed enc ---
    qc = (_dot(h1, wq_c_ref[...]) + bq_c_ref[...]).astype(jnp.bfloat16)
    qc = qc.reshape(batch, seq_x, C)
    ca = _mha_proj(qc, kc, vc, wo_c_ref[...], num_heads) + bo_c_ref[...]
    h2 = _layernorm(h1 + ca, ln2_g_ref[...], ln2_b_ref[...])            # addnorm2

    # --- feed forward: 1x1 conv C->4C, ReLU, 1x1 conv 4C->C ---
    f = _dot(h2, wff1_ref[...]) + bff1_ref[...]
    f = jnp.maximum(f, 0.0)
    f = _dot(f, wff2_ref[...]) + bff2_ref[...]
    out = _layernorm(h2 + f, ln3_g_ref[...], ln3_b_ref[...])            # addnorm3

    x_scr[...] = out

    # --- head: block-diag pooling matrix + (128-lane padded) classifier ---
    # Cheap enough (~0.5 MFLOP) to compute unconditionally; only the store is
    # gated so logits are written exactly once, on the last layer iteration.
    pooled = jnp.dot(pool_ref[...], out, preferred_element_type=jnp.float32)
    logits = jnp.dot(pooled, wcls_ref[...],
                     preferred_element_type=jnp.float32) + bcls_ref[...]

    @pl.when(l == num_layers - 1)
    def _():
        logits_ref[...] = logits


# ------------------------------ wrappers -----------------------------------

def decoder_fused(x2, enc2, pe, stacked, pool_big, wcls_pad, bcls_pad, *,
                  batch, seq_x, seq_e, num_heads, num_layers):
    Nx, C = x2.shape
    rows_out = pool_big.shape[0]          # batch * seq_len
    lanes_out = wcls_pad.shape[1]         # 128-lane padded classes

    inputs = ([x2, enc2, pe]
              + [stacked[n] for n in W_NAMES]
              + [pool_big, wcls_pad, bcls_pad])

    def const_spec(a):
        nd = a.ndim
        return pl.BlockSpec(a.shape, lambda l, _nd=nd: (0,) * _nd)

    def layer_spec(a):
        # leading L axis squeezed away; index_map streams layer l's weights
        return pl.BlockSpec((None,) + tuple(a.shape[1:]), lambda l: (l, 0, 0))

    in_specs = ([const_spec(x2), const_spec(enc2), const_spec(pe)]
                + [layer_spec(stacked[n]) for n in W_NAMES]
                + [const_spec(pool_big), const_spec(wcls_pad),
                   const_spec(bcls_pad)])

    kernel = functools.partial(decoder_kernel, batch=batch, seq_x=seq_x,
                               seq_e=seq_e, num_heads=num_heads,
                               num_layers=num_layers)

    return pl.pallas_call(
        kernel,
        out_shape=jax.ShapeDtypeStruct((rows_out, lanes_out), jnp.float32),
        grid_spec=pltpu.PrefetchScalarGridSpec(
            num_scalar_prefetch=0,
            grid=(num_layers,),
            in_specs=in_specs,
            out_specs=pl.BlockSpec((rows_out, lanes_out), lambda l: (0, 0)),
            scratch_shapes=[pltpu.VMEM((Nx, C), jnp.float32)]),
        compiler_params=pltpu.CompilerParams(
            dimension_semantics=("arbitrary",)),
    )(*inputs)


def decoder_forward(x_nchw, enc_nchw, pe_tokens, stacked, pool_big,
                    wcls_pad, bcls_pad, *, num_heads, num_layers,
                    num_classes, seq_out):
    B, C, H, W = x_nchw.shape
    Be, Ce, He, We = enc_nchw.shape
    S, Se = H * W, He * We
    # NCHW -> token-major (B*S, C) layout (pure layout glue)
    x2 = jnp.transpose(x_nchw, (0, 2, 3, 1)).reshape(B * S, C)
    enc2 = jnp.transpose(enc_nchw, (0, 2, 3, 1)).reshape(Be * Se, Ce)
    logits_pad = decoder_fused(x2, enc2, pe_tokens, stacked, pool_big,
                               wcls_pad, bcls_pad,
                               batch=B, seq_x=S, seq_e=Se,
                               num_heads=num_heads, num_layers=num_layers)
    return logits_pad[:, :num_classes].reshape(B, seq_out, num_classes)


# --------------------- deterministic parameter / buffer init ---------------

def make_pe_tokens(d_model, height, width):
    assert d_model % 4 == 0
    pe = np.zeros((d_model, height, width), dtype=np.float32)
    y_pos = np.arange(height, dtype=np.float32)[:, None].repeat(width, axis=1)
    x_pos = np.arange(width, dtype=np.float32)[None, :].repeat(height, axis=0)
    div_term = np.exp(np.arange(0, d_model // 2, 2, dtype=np.float32)
                      * -(np.log(10000.0) / (d_model // 2)))
    pe[0::4] = np.sin(y_pos[None] * div_term[:, None, None])
    pe[1::4] = np.cos(y_pos[None] * div_term[:, None, None])
    pe[2::4] = np.sin(x_pos[None] * div_term[:, None, None])
    pe[3::4] = np.cos(x_pos[None] * div_term[:, None, None])
    # (C, H, W) -> (H*W, C); token s = h*W + w (matches torch permute/reshape)
    return jnp.asarray(pe.transpose(1, 2, 0).reshape(height * width, d_model))


def make_pool_matrix_big(height, width, out_w, batch):
    # AdaptiveAvgPool2d((1, out_w)) as a block-diagonal (B*out_w, B*H*W) matrix
    # so pooling over all batches is a single lane-dense 2-D MXU matmul.
    S = height * width
    P = np.zeros((out_w, S), dtype=np.float32)
    for j in range(out_w):
        w0 = (j * width) // out_w
        w1 = -(-((j + 1) * width) // out_w)      # ceil
        for h in range(height):
            P[j, h * width + w0:h * width + w1] = 1.0 / (height * (w1 - w0))
    big = np.zeros((batch * out_w, batch * S), dtype=np.float32)
    for b in range(batch):
        big[b * out_w:(b + 1) * out_w, b * S:(b + 1) * S] = P
    return jnp.asarray(big)


def init_layer_params(key, d_model, num_heads):
    dh = d_model // num_heads
    scale = 1.0 / math.sqrt(dh)            # softmax scale, folded into Q
    init_s = 1.0 / math.sqrt(d_model)
    ks = jax.random.split(key, 16)

    def nrm(k, shape):
        return jax.random.normal(k, shape, jnp.float32) * init_s

    ones = jnp.ones((1, d_model), jnp.float32)
    zeros = jnp.zeros((1, d_model), jnp.float32)

    # BatchNorm affine of a fresh torch module (gamma=1, beta=0); folded below
    # into the following 1x1 convs (valid: affine is the last op of BN).
    bn1_g = jnp.ones((d_model,), jnp.float32)
    bn1_b = jnp.zeros((d_model,), jnp.float32)
    bn2_g = jnp.ones((d_model,), jnp.float32)
    bn2_b = jnp.zeros((d_model,), jnp.float32)

    # --- self attention (nn.MultiheadAttention), torch stores (out, in) ---
    in_w = nrm(ks[0], (3 * d_model, d_model))
    in_b = nrm(ks[1], (3 * d_model,))
    wq, wk, wv = (in_w[i * d_model:(i + 1) * d_model].T for i in range(3))
    bq, bk, bv = (in_b[i * d_model:(i + 1) * d_model] for i in range(3))
    wqkv_s = jnp.concatenate([wq * scale, wk, wv], axis=1).astype(jnp.bfloat16)
    bqkv_s = jnp.concatenate([bq * scale, jnp.zeros_like(bk), bv])[None, :]
    wo_s = nrm(ks[2], (d_model, d_model)).T.astype(jnp.bfloat16)
    bo_s = nrm(ks[3], (d_model,))[None, :]

    # --- cross_cnn1 conv (BN1 affine folded in) ---
    wc1_raw = nrm(ks[4], (d_model, d_model)).T
    bc1_raw = nrm(ks[5], (d_model,))
    wc1 = (bn1_g[:, None] * wc1_raw).astype(jnp.bfloat16)
    bc1 = (bn1_b @ wc1_raw + bc1_raw)[None, :]

    # --- cross_cnn2 conv (folded into cross-attn K/V, together with BN2 affine) ---
    wc2 = nrm(ks[6], (d_model, d_model)).T
    bc2 = nrm(ks[7], (d_model,))

    # --- cross attention ---
    cin_w = nrm(ks[8], (3 * d_model, d_model))
    cin_b = nrm(ks[9], (3 * d_model,))
    wq_c, wk_c, wv_c = (cin_w[i * d_model:(i + 1) * d_model].T for i in range(3))
    bq_c, bk_c, bv_c = (cin_b[i * d_model:(i + 1) * d_model] for i in range(3))
    wkv_cat = jnp.concatenate([wk_c, wv_c], axis=1)                  # (C, 2C)
    wkv_c = (bn2_g[:, None] * (wc2 @ wkv_cat)).astype(jnp.bfloat16)  # fold conv2+BN2
    bkv_c = ((bn2_b @ wc2 + bc2) @ wkv_cat
             + jnp.concatenate([jnp.zeros_like(bk_c), bv_c]))[None, :]
    wq_c_f = (wq_c * scale).astype(jnp.bfloat16)
    bq_c_f = (bq_c * scale)[None, :]
    wo_c = nrm(ks[10], (d_model, d_model)).T.astype(jnp.bfloat16)
    bo_c = nrm(ks[11], (d_model,))[None, :]

    # --- feed forward: conv1x1 C->4C, ReLU, conv1x1 4C->C ---
    wff1 = nrm(ks[12], (4 * d_model, d_model)).T.astype(jnp.bfloat16)
    bff1 = nrm(ks[13], (4 * d_model,))[None, :]
    wff2 = nrm(ks[14], (d_model, 4 * d_model)).T.astype(jnp.bfloat16)
    bff2 = nrm(ks[15], (d_model,))[None, :]

    return dict(
        wqkv_s=wqkv_s, bqkv_s=bqkv_s, wo_s=wo_s, bo_s=bo_s,
        ln1_g=ones, ln1_b=zeros,
        wc1=wc1, bc1=bc1, wkv_c=wkv_c, bkv_c=bkv_c,
        wq_c=wq_c_f, bq_c=bq_c_f, wo_c=wo_c, bo_c=bo_c,
        ln2_g=ones, ln2_b=zeros,
        wff1=wff1, bff1=bff1, wff2=wff2, bff2=bff2,
        ln3_g=ones, ln3_b=zeros,
    )


# --------------------------------- main -------------------------------------

if __name__ == "__main__":
    # small but lane-dense shapes: d_model multiple of 128 keeps every VPU op
    # and store full-width
    d_model, nhead, height, width = 128, 4, 8, 8
    num_layers, num_classes, seq_len, batch = 2, 36, 8, 2

    key = jax.random.PRNGKey(0)
    kx, ke, kcw, kcb, *lkeys = jax.random.split(key, num_layers + 4)
    x = jax.random.normal(kx, (batch, d_model, height, width), jnp.float32)
    encoder_out = jax.random.normal(ke, (batch, d_model, height, width),
                                    jnp.float32)

    layer_params = [init_layer_params(k, d_model, nhead) for k in lkeys]
    # stack per-layer weights along a leading L axis for the layer-grid pipeline
    stacked = {n: jnp.stack([lp[n] for lp in layer_params]) for n in W_NAMES}

    pe_tokens = make_pe_tokens(d_model, height, width)
    pool_big = make_pool_matrix_big(height, width, seq_len, batch)

    wcls = (jax.random.normal(kcw, (num_classes, d_model), jnp.float32)
            / math.sqrt(d_model)).T                       # (C, num_classes)
    bcls = (jax.random.normal(kcb, (num_classes,), jnp.float32)
            / math.sqrt(d_model))
    # pad classifier to 128 output lanes -> unmasked full-width store in-kernel
    pad = (-num_classes) % 128
    wcls_pad = jnp.pad(wcls, ((0, 0), (0, pad)))
    bcls_pad = jnp.pad(bcls, ((0, pad)))[None, :]

    fwd = jax.jit(functools.partial(decoder_forward, num_heads=nhead,
                                    num_layers=num_layers,
                                    num_classes=num_classes, seq_out=seq_len))
    logits = fwd(x, encoder_out, pe_tokens, stacked, pool_big, wcls_pad, bcls_pad)
    jax.block_until_ready(logits)

    assert logits.shape == (batch, seq_len, num_classes), logits.shape
    assert logits.dtype == jnp.float32
    assert bool(jnp.all(jnp.isfinite(logits)))
    print("KERNEL_OK")
</pallas_src>

<mosaic_0001>
module attributes {stable_mosaic.version = 11 : i64} {
  func.func @decoder_kernel(%arg0: i32, %arg1: memref<128x128xf32, #tpu.memory_space<vmem>>, %arg2: memref<128x128xf32, #tpu.memory_space<vmem>>, %arg3: memref<64x128xf32, #tpu.memory_space<vmem>>, %arg4: memref<1x128x384xbf16, #tpu.memory_space<vmem>>, %arg5: memref<1x1x384xf32, #tpu.memory_space<vmem>>, %arg6: memref<1x128x128xbf16, #tpu.memory_space<vmem>>, %arg7: memref<1x1x128xf32, #tpu.memory_space<vmem>>, %arg8: memref<1x1x128xf32, #tpu.memory_space<vmem>>, %arg9: memref<1x1x128xf32, #tpu.memory_space<vmem>>, %arg10: memref<1x128x128xbf16, #tpu.memory_space<vmem>>, %arg11: memref<1x1x128xf32, #tpu.memory_space<vmem>>, %arg12: memref<1x128x256xbf16, #tpu.memory_space<vmem>>, %arg13: memref<1x1x256xf32, #tpu.memory_space<vmem>>, %arg14: memref<1x128x128xbf16, #tpu.memory_space<vmem>>, %arg15: memref<1x1x128xf32, #tpu.memory_space<vmem>>, %arg16: memref<1x128x128xbf16, #tpu.memory_space<vmem>>, %arg17: memref<1x1x128xf32, #tpu.memory_space<vmem>>, %arg18: memref<1x1x128xf32, #tpu.memory_space<vmem>>, %arg19: memref<1x1x128xf32, #tpu.memory_space<vmem>>, %arg20: memref<1x128x512xbf16, #tpu.memory_space<vmem>>, %arg21: memref<1x1x512xf32, #tpu.memory_space<vmem>>, %arg22: memref<1x512x128xbf16, #tpu.memory_space<vmem>>, %arg23: memref<1x1x128xf32, #tpu.memory_space<vmem>>, %arg24: memref<1x1x128xf32, #tpu.memory_space<vmem>>, %arg25: memref<1x1x128xf32, #tpu.memory_space<vmem>>, %arg26: memref<16x128xf32, #tpu.memory_space<vmem>>, %arg27: memref<128x128xf32, #tpu.memory_space<vmem>>, %arg28: memref<1x128xf32, #tpu.memory_space<vmem>>, %arg29: memref<16x128xf32, #tpu.memory_space<vmem>>, %arg30: memref<128x128xf32, #tpu.memory_space<vmem>>) attributes {dimension_semantics = [#tpu.dimension_semantics<arbitrary>], iteration_bounds = array<i64: 2>, scalar_prefetch = 0 : i64, scratch_operands = 1 : i64, tpu.core_type = #tpu.core_type<tc>, window_params = [{pipeline_mode = #tpu.pipeline_mode<synchronous>, transform_indices = @transform_0, window_bounds = array<i64: 128, 128>}, {pipeline_mode = #tpu.pipeline_mode<synchronous>, transform_indices = @transform_1, window_bounds = array<i64: 128, 128>}, {pipeline_mode = #tpu.pipeline_mode<synchronous>, transform_indices = @transform_2, window_bounds = array<i64: 64, 128>}, {transform_indices = @transform_3, window_bounds = array<i64: 1, 128, 384>}, {transform_indices = @transform_4, window_bounds = array<i64: 1, 1, 384>}, {transform_indices = @transform_5, window_bounds = array<i64: 1, 128, 128>}, {transform_indices = @transform_6, window_bounds = array<i64: 1, 1, 128>}, {transform_indices = @transform_7, window_bounds = array<i64: 1, 1, 128>}, {transform_indices = @transform_8, window_bounds = array<i64: 1, 1, 128>}, {transform_indices = @transform_9, window_bounds = array<i64: 1, 128, 128>}, {transform_indices = @transform_10, window_bounds = array<i64: 1, 1, 128>}, {transform_indices = @transform_11, window_bounds = array<i64: 1, 128, 256>}, {transform_indices = @transform_12, window_bounds = array<i64: 1, 1, 256>}, {transform_indices = @transform_13, window_bounds = array<i64: 1, 128, 128>}, {transform_indices = @transform_14, window_bounds = array<i64: 1, 1, 128>}, {transform_indices = @transform_15, window_bounds = array<i64: 1, 128, 128>}, {transform_indices = @transform_16, window_bounds = array<i64: 1, 1, 128>}, {transform_indices = @transform_17, window_bounds = array<i64: 1, 1, 128>}, {transform_indices = @transform_18, window_bounds = array<i64: 1, 1, 128>}, {transform_indices = @transform_19, window_bounds = array<i64: 1, 128, 512>}, {transform_indices = @transform_20, window_bounds = array<i64: 1, 1, 512>}, {transform_indices = @transform_21, window_bounds = array<i64: 1, 512, 128>}, {transform_indices = @transform_22, window_bounds = array<i64: 1, 1, 128>}, {transform_indices = @transform_23, window_bounds = array<i64: 1, 1, 128>}, {transform_indices = @transform_24, window_bounds = array<i64: 1, 1, 128>}, {pipeline_mode = #tpu.pipeline_mode<synchronous>, transform_indices = @transform_25, window_bounds = array<i64: 16, 128>}, {pipeline_mode = #tpu.pipeline_mode<synchronous>, transform_indices = @transform_26, window_bounds = array<i64: 128, 128>}, {pipeline_mode = #tpu.pipeline_mode<synchronous>, transform_indices = @transform_27, window_bounds = array<i64: 1, 128>}, {pipeline_mode = #tpu.pipeline_mode<synchronous>, transform_indices = @transform_28, window_bounds = array<i64: 16, 128>}]} {
    %c0_i32 = arith.constant 0 : i32
    %0 = arith.cmpi eq, %arg0, %c0_i32 : i32
    %1 = arith.extui %0 : i1 to i32
    %c0_i32_0 = arith.constant 0 : i32
    %2 = arith.cmpi ne, %1, %c0_i32_0 : i32
    scf.if %2 {
      %c0_158 = arith.constant 0 : index
      %c0_159 = arith.constant 0 : index
      %381 = vector.load %arg1[%c0_158, %c0_159] : memref<128x128xf32, #tpu.memory_space<vmem>>, vector<128x128xf32>
      %c0_160 = arith.constant 0 : index
      %c0_161 = arith.constant 0 : index
      %382 = vector.load %arg30[%c0_160, %c0_161] : memref<128x128xf32, #tpu.memory_space<vmem>>, vector<128x128xf32>
      tpu.vector_store %arg30[%c0_160, %c0_161], %381 {strides = array<i32>} : memref<128x128xf32, #tpu.memory_space<vmem>>, vector<128x128xf32>,
    } else {
    }
    %c0 = arith.constant 0 : index
    %c0_1 = arith.constant 0 : index
    %3 = vector.load %arg30[%c0, %c0_1] : memref<128x128xf32, #tpu.memory_space<vmem>>, vector<128x128xf32>
    %4 = vector.shape_cast %3 : vector<128x128xf32> to vector<2x64x128xf32>
    %c0_2 = arith.constant 0 : index
    %c0_3 = arith.constant 0 : index
    %5 = vector.load %arg3[%c0_2, %c0_3] : memref<64x128xf32, #tpu.memory_space<vmem>>, vector<64x128xf32>
    %6 = vector.shape_cast %5 : vector<64x128xf32> to vector<1x64x128xf32>
    %7 = vector.broadcast %6 : vector<1x64x128xf32> to vector<2x64x128xf32>
    %8 = arith.addf %4, %7 : vector<2x64x128xf32>
    %9 = vector.shape_cast %8 : vector<2x64x128xf32> to vector<128x128xf32>
    %c0_4 = arith.constant 0 : index
    %c0_5 = arith.constant 0 : index
    %c0_6 = arith.constant 0 : index
    %10 = vector.load %arg4[%c0_4, %c0_5, %c0_6] : memref<1x128x384xbf16, #tpu.memory_space<vmem>>, vector<1x128x384xbf16>
    %11 = vector.shape_cast %10 : vector<1x128x384xbf16> to vector<128x384xbf16>
    %12 = arith.truncf %9 : vector<128x128xf32> to vector<128x128xbf16>
    %cst = arith.constant dense<0.000000e+00> : vector<128x384xf32>
    %13 = tpu.matmul %12, %11, %cst {dimension_numbers = #tpu.dot_dimension_numbers<[1], [0], [0], [1], [0, 0, 1, 1], [], []>} : vector<128x128xbf16>, vector<128x384xbf16>, vector<128x384xf32> -> vector<128x384xf32>
    %c0_7 = arith.constant 0 : index
    %c0_8 = arith.constant 0 : index
    %c0_9 = arith.constant 0 : index
    %14 = vector.load %arg5[%c0_7, %c0_8, %c0_9] : memref<1x1x384xf32, #tpu.memory_space<vmem>>, vector<1x1x384xf32>
    %15 = vector.shape_cast %14 : vector<1x1x384xf32> to vector<1x384xf32>
    %16 = vector.broadcast %15 : vector<1x384xf32> to vector<128x384xf32>
    %17 = arith.addf %13, %16 : vector<128x384xf32>
    %18 = arith.truncf %17 : vector<128x384xf32> to vector<128x384xbf16>
    %19 = vector.extract_strided_slice %18 {offsets = [0, 0], sizes = [128, 128], strides = [1, 1]} : vector<128x384xbf16> to vector<128x128xbf16>
    %20 = vector.shape_cast %19 : vector<128x128xbf16> to vector<2x64x128xbf16>
    %21 = vector.extract_strided_slice %18 {offsets = [0, 128], sizes = [128, 128], strides = [1, 1]} : vector<128x384xbf16> to vector<128x128xbf16>
    %22 = vector.shape_cast %21 : vector<128x128xbf16> to vector<2x64x128xbf16>
    %23 = vector.extract_strided_slice %18 {offsets = [0, 256], sizes = [128, 128], strides = [1, 1]} : vector<128x384xbf16> to vector<128x128xbf16>
    %24 = vector.shape_cast %23 : vector<128x128xbf16> to vector<2x64x128xbf16>
    %c0_10 = arith.constant 0 : index
    %c0_11 = arith.constant 0 : index
    %c0_12 = arith.constant 0 : index
    %25 = vector.load %arg6[%c0_10, %c0_11, %c0_12] : memref<1x128x128xbf16, #tpu.memory_space<vmem>>, vector<1x128x128xbf16>
    %26 = vector.shape_cast %25 : vector<1x128x128xbf16> to vector<128x128xbf16>
    %27 = vector.extract_strided_slice %20 {offsets = [0, 0, 0], sizes = [2, 64, 32], strides = [1, 1, 1]} : vector<2x64x128xbf16> to vector<2x64x32xbf16>
    %28 = vector.extract_strided_slice %22 {offsets = [0, 0, 0], sizes = [2, 64, 32], strides = [1, 1, 1]} : vector<2x64x128xbf16> to vector<2x64x32xbf16>
    "tpu.trace_start"() <{level = 10 : i32, message = "bqd,bkd->bqk"}> : () -> ()
    %cst_13 = arith.constant dense<0.000000e+00> : vector<2x64x64xf32>
    %29 = tpu.matmul %27, %28, %cst_13 {dimension_numbers = #tpu.dot_dimension_numbers<[2], [2], [1], [1], [0, 0, 0, 1, 1, 1], [0], [0]>} : vector<2x64x32xbf16>, vector<2x64x32xbf16>, vector<2x64x64xf32> -> vector<2x64x64xf32>
    "tpu.trace_stop"() : () -> ()
    %cst_14 = arith.constant dense<0xFF800000> : vector<2x64xf32>
    %30 = vector.multi_reduction <maximumf>, %29, %cst_14 [2] : vector<2x64x64xf32> to vector<2x64xf32>
    %31 = vector.shape_cast %30 : vector<2x64xf32> to vector<2x64x1xf32>
    %32 = vector.broadcast %31 : vector<2x64x1xf32> to vector<2x64x64xf32>
    %33 = arith.subf %29, %32 : vector<2x64x64xf32>
    %34 = math.exp %33 : vector<2x64x64xf32>
    %cst_15 = arith.constant dense<0.000000e+00> : vector<2x64xf32>
    %35 = vector.multi_reduction <add>, %34, %cst_15 [2] : vector<2x64x64xf32> to vector<2x64xf32>
    %36 = vector.shape_cast %35 : vector<2x64xf32> to vector<2x64x1xf32>
    %37 = tpu.reciprocal %36 {approx = true} : vector<2x64x1xf32> -> vector<2x64x1xf32>
    %38 = vector.broadcast %37 : vector<2x64x1xf32> to vector<2x64x64xf32>
    %39 = arith.mulf %34, %38 : vector<2x64x64xf32>
    %40 = arith.truncf %39 : vector<2x64x64xf32> to vector<2x64x64xbf16>
    %41 = vector.extract_strided_slice %24 {offsets = [0, 0, 0], sizes = [2, 64, 32], strides = [1, 1, 1]} : vector<2x64x128xbf16> to vector<2x64x32xbf16>
    "tpu.trace_start"() <{level = 10 : i32, message = "bqk,bkd->bqd"}> : () -> ()
    %cst_16 = arith.constant dense<0.000000e+00> : vector<2x64x32xf32>
    %42 = tpu.matmul %40, %41, %cst_16 {dimension_numbers = #tpu.dot_dimension_numbers<[2], [1], [1], [2], [0, 0, 0, 1, 1, 2], [0], [0]>} : vector<2x64x64xbf16>, vector<2x64x32xbf16>, vector<2x64x32xf32> -> vector<2x64x32xf32>
    "tpu.trace_stop"() : () -> ()
    %43 = vector.shape_cast %42 : vector<2x64x32xf32> to vector<128x32xf32>
    %44 = arith.truncf %43 : vector<128x32xf32> to vector<128x32xbf16>
    %45 = vector.extract_strided_slice %26 {offsets = [0, 0], sizes = [32, 128], strides = [1, 1]} : vector<128x128xbf16> to vector<32x128xbf16>
    %cst_17 = arith.constant dense<0.000000e+00> : vector<128x128xf32>
    %46 = tpu.matmul %44, %45, %cst_17 {dimension_numbers = #tpu.dot_dimension_numbers<[1], [0], [0], [1], [0, 0, 1, 1], [], []>} : vector<128x32xbf16>, vector<32x128xbf16>, vector<128x128xf32> -> vector<128x128xf32>
    %47 = vector.extract_strided_slice %20 {offsets = [0, 0, 32], sizes = [2, 64, 32], strides = [1, 1, 1]} : vector<2x64x128xbf16> to vector<2x64x32xbf16>
    %48 = vector.extract_strided_slice %22 {offsets = [0, 0, 32], sizes = [2, 64, 32], strides = [1, 1, 1]} : vector<2x64x128xbf16> to vector<2x64x32xbf16>
    "tpu.trace_start"() <{level = 10 : i32, message = "bqd,bkd->bqk"}> : () -> ()
    %cst_18 = arith.constant dense<0.000000e+00> : vector<2x64x64xf32>
    %49 = tpu.matmul %47, %48, %cst_18 {dimension_numbers = #tpu.dot_dimension_numbers<[2], [2], [1], [1], [0, 0, 0, 1, 1, 1], [0], [0]>} : vector<2x64x32xbf16>, vector<2x64x32xbf16>, vector<2x64x64xf32> -> vector<2x64x64xf32>
    "tpu.trace_stop"() : () -> ()
    %cst_19 = arith.constant dense<0xFF800000> : vector<2x64xf32>
    %50 = vector.multi_reduction <maximumf>, %49, %cst_19 [2] : vector<2x64x64xf32> to vector<2x64xf32>
    %51 = vector.shape_cast %50 : vector<2x64xf32> to vector<2x64x1xf32>
    %52 = vector.broadcast %51 : vector<2x64x1xf32> to vector<2x64x64xf32>
    %53 = arith.subf %49, %52 : vector<2x64x64xf32>
    %54 = math.exp %53 : vector<2x64x64xf32>
    %cst_20 = arith.constant dense<0.000000e+00> : vector<2x64xf32>
    %55 = vector.multi_reduction <add>, %54, %cst_20 [2] : vector<2x64x64xf32> to vector<2x64xf32>
    %56 = vector.shape_cast %55 : vector<2x64xf32> to vector<2x64x1xf32>
    %57 = tpu.reciprocal %56 {approx = true} : vector<2x64x1xf32> -> vector<2x64x1xf32>
    %58 = vector.broadcast %57 : vector<2x64x1xf32> to vector<2x64x64xf32>
    %59 = arith.mulf %54, %58 : vector<2x64x64xf32>
    %60 = arith.truncf %59 : vector<2x64x64xf32> to vector<2x64x64xbf16>
    %61 = vector.extract_strided_slice %24 {offsets = [0, 0, 32], sizes = [2, 64, 32], strides = [1, 1, 1]} : vector<2x64x128xbf16> to vector<2x64x32xbf16>
    "tpu.trace_start"() <{level = 10 : i32, message = "bqk,bkd->bqd"}> : () -> ()
    %cst_21 = arith.constant dense<0.000000e+00> : vector<2x64x32xf32>
    %62 = tpu.matmul %60, %61, %cst_21 {dimension_numbers = #tpu.dot_dimension_numbers<[2], [1], [1], [2], [0, 0, 0, 1, 1, 2], [0], [0]>} : vector<2x64x64xbf16>, vector<2x64x32xbf16>, vector<2x64x32xf32> -> vector<2x64x32xf32>
    "tpu.trace_stop"() : () -> ()
    %63 = vector.shape_cast %62 : vector<2x64x32xf32> to vector<128x32xf32>
    %64 = arith.truncf %63 : vector<128x32xf32> to vector<128x32xbf16>
    %65 = vector.extract_strided_slice %26 {offsets = [32, 0], sizes = [32, 128], strides = [1, 1]} : vector<128x128xbf16> to vector<32x128xbf16>
    %cst_22 = arith.constant dense<0.000000e+00> : vector<128x128xf32>
    %66 = tpu.matmul %64, %65, %cst_22 {dimension_numbers = #tpu.dot_dimension_numbers<[1], [0], [0], [1], [0, 0, 1, 1], [], []>} : vector<128x32xbf16>, vector<32x128xbf16>, vector<128x128xf32> -> vector<128x128xf32>
    %67 = arith.addf %46, %66 : vector<128x128xf32>
    %68 = vector.extract_strided_slice %20 {offsets = [0, 0, 64], sizes = [2, 64, 32], strides = [1, 1, 1]} : vector<2x64x128xbf16> to vector<2x64x32xbf16>
    %69 = vector.extract_strided_slice %22 {offsets = [0, 0, 64], sizes = [2, 64, 32], strides = [1, 1, 1]} : vector<2x64x128xbf16> to vector<2x64x32xbf16>
    "tpu.trace_start"() <{level = 10 : i32, message = "bqd,bkd->bqk"}> : () -> ()
    %cst_23 = arith.constant dense<0.000000e+00> : vector<2x64x64xf32>
    %70 = tpu.matmul %68, %69, %cst_23 {dimension_numbers = #tpu.dot_dimension_numbers<[2], [2], [1], [1], [0, 0, 0, 1, 1, 1], [0], [0]>} : vector<2x64x32xbf16>, vector<2x64x32xbf16>, vector<2x64x64xf32> -> vector<2x64x64xf32>
    "tpu.trace_stop"() : () -> ()
    %cst_24 = arith.constant dense<0xFF800000> : vector<2x64xf32>
    %71 = vector.multi_reduction <maximumf>, %70, %cst_24 [2] : vector<2x64x64xf32> to vector<2x64xf32>
    %72 = vector.shape_cast %71 : vector<2x64xf32> to vector<2x64x1xf32>
    %73 = vector.broadcast %72 : vector<2x64x1xf32> to vector<2x64x64xf32>
    %74 = arith.subf %70, %73 : vector<2x64x64xf32>
    %75 = math.exp %74 : vector<2x64x64xf32>
    %cst_25 = arith.constant dense<0.000000e+00> : vector<2x64xf32>
    %76 = vector.multi_reduction <add>, %75, %cst_25 [2] : vector<2x64x64xf32> to vector<2x64xf32>
    %77 = vector.shape_cast %76 : vector<2x64xf32> to vector<2x64x1xf32>
    %78 = tpu.reciprocal %77 {approx = true} : vector<2x64x1xf32> -> vector<2x64x1xf32>
    %79 = vector.broadcast %78 : vector<2x64x1xf32> to vector<2x64x64xf32>
    %80 = arith.mulf %75, %79 : vector<2x64x64xf32>
    %81 = arith.truncf %80 : vector<2x64x64xf32> to vector<2x64x64xbf16>
    %82 = vector.extract_strided_slice %24 {offsets = [0, 0, 64], sizes = [2, 64, 32], strides = [1, 1, 1]} : vector<2x64x128xbf16> to vector<2x64x32xbf16>
    "tpu.trace_start"() <{level = 10 : i32, message = "bqk,bkd->bqd"}> : () -> ()
    %cst_26 = arith.constant dense<0.000000e+00> : vector<2x64x32xf32>
    %83 = tpu.matmul %81, %82, %cst_26 {dimension_numbers = #tpu.dot_dimension_numbers<[2], [1], [1], [2], [0, 0, 0, 1, 1, 2], [0], [0]>} : vector<2x64x64xbf16>, vector<2x64x32xbf16>, vector<2x64x32xf32> -> vector<2x64x32xf32>
    "tpu.trace_stop"() : () -> ()
    %84 = vector.shape_cast %83 : vector<2x64x32xf32> to vector<128x32xf32>
    %85 = arith.truncf %84 : vector<128x32xf32> to vector<128x32xbf16>
    %86 = vector.extract_strided_slice %26 {offsets = [64, 0], sizes = [32, 128], strides = [1, 1]} : vector<128x128xbf16> to vector<32x128xbf16>
    %cst_27 = arith.constant dense<0.000000e+00> : vector<128x128xf32>
    %87 = tpu.matmul %85, %86, %cst_27 {dimension_numbers = #tpu.dot_dimension_numbers<[1], [0], [0], [1], [0, 0, 1, 1], [], []>} : vector<128x32xbf16>, vector<32x128xbf16>, vector<128x128xf32> -> vector<128x128xf32>
    %88 = arith.addf %67, %87 : vector<128x128xf32>
    %89 = vector.extract_strided_slice %20 {offsets = [0, 0, 96], sizes = [2, 64, 32], strides = [1, 1, 1]} : vector<2x64x128xbf16> to vector<2x64x32xbf16>
    %90 = vector.extract_strided_slice %22 {offsets = [0, 0, 96], sizes = [2, 64, 32], strides = [1, 1, 1]} : vector<2x64x128xbf16> to vector<2x64x32xbf16>
    "tpu.trace_start"() <{level = 10 : i32, message = "bqd,bkd->bqk"}> : () -> ()
    %cst_28 = arith.constant dense<0.000000e+00> : vector<2x64x64xf32>
    %91 = tpu.matmul %89, %90, %cst_28 {dimension_numbers = #tpu.dot_dimension_numbers<[2], [2], [1], [1], [0, 0, 0, 1, 1, 1], [0], [0]>} : vector<2x64x32xbf16>, vector<2x64x32xbf16>, vector<2x64x64xf32> -> vector<2x64x64xf32>
    "tpu.trace_stop"() : () -> ()
    %cst_29 = arith.constant dense<0xFF800000> : vector<2x64xf32>
    %92 = vector.multi_reduction <maximumf>, %91, %cst_29 [2] : vector<2x64x64xf32> to vector<2x64xf32>
    %93 = vector.shape_cast %92 : vector<2x64xf32> to vector<2x64x1xf32>
    %94 = vector.broadcast %93 : vector<2x64x1xf32> to vector<2x64x64xf32>
    %95 = arith.subf %91, %94 : vector<2x64x64xf32>
    %96 = math.exp %95 : vector<2x64x64xf32>
    %cst_30 = arith.constant dense<0.000000e+00> : vector<2x64xf32>
    %97 = vector.multi_reduction <add>, %96, %cst_30 [2] : vector<2x64x64xf32> to vector<2x64xf32>
    %98 = vector.shape_cast %97 : vector<2x64xf32> to vector<2x64x1xf32>
    %99 = tpu.reciprocal %98 {approx = true} : vector<2x64x1xf32> -> vector<2x64x1xf32>
    %100 = vector.broadcast %99 : vector<2x64x1xf32> to vector<2x64x64xf32>
    %101 = arith.mulf %96, %100 : vector<2x64x64xf32>
    %102 = arith.truncf %101 : vector<2x64x64xf32> to vector<2x64x64xbf16>
    %103 = vector.extract_strided_slice %24 {offsets = [0, 0, 96], sizes = [2, 64, 32], strides = [1, 1, 1]} : vector<2x64x128xbf16> to vector<2x64x32xbf16>
    "tpu.trace_start"() <{level = 10 : i32, message = "bqk,bkd->bqd"}> : () -> ()
    %cst_31 = arith.constant dense<0.000000e+00> : vector<2x64x32xf32>
    %104 = tpu.matmul %102, %103, %cst_31 {dimension_numbers = #tpu.dot_dimension_numbers<[2], [1], [1], [2], [0, 0, 0, 1, 1, 2], [0], [0]>} : vector<2x64x64xbf16>, vector<2x64x32xbf16>, vector<2x64x32xf32> -> vector<2x64x32xf32>
    "tpu.trace_stop"() : () -> ()
    %105 = vector.shape_cast %104 : vector<2x64x32xf32> to vector<128x32xf32>
    %106 = arith.truncf %105 : vector<128x32xf32> to vector<128x32xbf16>
    %107 = vector.extract_strided_slice %26 {offsets = [96, 0], sizes = [32, 128], strides = [1, 1]} : vector<128x128xbf16> to vector<32x128xbf16>
    %cst_32 = arith.constant dense<0.000000e+00> : vector<128x128xf32>
    %108 = tpu.matmul %106, %107, %cst_32 {dimension_numbers = #tpu.dot_dimension_numbers<[1], [0], [0], [1], [0, 0, 1, 1], [], []>} : vector<128x32xbf16>, vector<32x128xbf16>, vector<128x128xf32> -> vector<128x128xf32>
    %109 = arith.addf %88, %108 : vector<128x128xf32>
    %c0_33 = arith.constant 0 : index
    %c0_34 = arith.constant 0 : index
    %c0_35 = arith.constant 0 : index
    %110 = vector.load %arg7[%c0_33, %c0_34, %c0_35] : memref<1x1x128xf32, #tpu.memory_space<vmem>>, vector<1x1x128xf32>
    %111 = vector.shape_cast %110 : vector<1x1x128xf32> to vector<1x128xf32>
    %112 = vector.broadcast %111 : vector<1x128xf32> to vector<128x128xf32>
    %113 = arith.addf %109, %112 : vector<128x128xf32>
    %114 = arith.addf %9, %113 : vector<128x128xf32>
    %c0_36 = arith.constant 0 : index
    %c0_37 = arith.constant 0 : index
    %c0_38 = arith.constant 0 : index
    %115 = vector.load %arg8[%c0_36, %c0_37, %c0_38] : memref<1x1x128xf32, #tpu.memory_space<vmem>>, vector<1x1x128xf32>
    %116 = vector.shape_cast %115 : vector<1x1x128xf32> to vector<1x128xf32>
    %c0_39 = arith.constant 0 : index
    %c0_40 = arith.constant 0 : index
    %c0_41 = arith.constant 0 : index
    %117 = vector.load %arg9[%c0_39, %c0_40, %c0_41] : memref<1x1x128xf32, #tpu.memory_space<vmem>>, vector<1x1x128xf32>
    %118 = vector.shape_cast %117 : vector<1x1x128xf32> to vector<1x128xf32>
    %cst_42 = arith.constant dense<0.000000e+00> : vector<128xf32>
    %119 = vector.multi_reduction <add>, %114, %cst_42 [1] : vector<128x128xf32> to vector<128xf32>
    %120 = vector.shape_cast %119 : vector<128xf32> to vector<128x1xf32>
    %cst_43 = arith.constant 1.280000e+02 : f32
    %121 = vector.broadcast %cst_43 : f32 to vector<128x1xf32>
    %122 = arith.divf %120, %121 : vector<128x1xf32>
    %123 = vector.broadcast %122 : vector<128x1xf32> to vector<128x128xf32>
    %124 = arith.subf %114, %123 : vector<128x128xf32>
    %125 = arith.mulf %124, %124 : vector<128x128xf32>
    %cst_44 = arith.constant dense<0.000000e+00> : vector<128xf32>
    %126 = vector.multi_reduction <add>, %125, %cst_44 [1] : vector<128x128xf32> to vector<128xf32>
    %127 = vector.shape_cast %126 : vector<128xf32> to vector<128x1xf32>
    %cst_45 = arith.constant 1.280000e+02 : f32
    %128 = vector.broadcast %cst_45 : f32 to vector<128x1xf32>
    %129 = arith.divf %127, %128 : vector<128x1xf32>
    %cst_46 = arith.constant 9.99999997E-7 : f32
    %130 = vector.broadcast %cst_46 : f32 to vector<128x1xf32>
    %131 = arith.addf %129, %130 : vector<128x1xf32>
    %132 = math.rsqrt %131 : vector<128x1xf32>
    %133 = vector.broadcast %132 : vector<128x1xf32> to vector<128x128xf32>
    %134 = arith.mulf %124, %133 : vector<128x128xf32>
    %135 = vector.broadcast %116 : vector<1x128xf32> to vector<128x128xf32>
    %136 = arith.mulf %134, %135 : vector<128x128xf32>
    %137 = vector.broadcast %118 : vector<1x128xf32> to vector<128x128xf32>
    %138 = arith.addf %136, %137 : vector<128x128xf32>
    %c0_47 = arith.constant 0 : index
    %c0_48 = arith.constant 0 : index
    %139 = vector.load %arg2[%c0_47, %c0_48] : memref<128x128xf32, #tpu.memory_space<vmem>>, vector<128x128xf32>
    %cst_49 = arith.constant 0.000000e+00 : f32
    %140 = vector.broadcast %cst_49 : f32 to vector<128x128xf32>
    %141 = arith.cmpf oge, %139, %140 : vector<128x128xf32>
    %cst_50 = arith.constant 2.000000e-01 : f32
    %142 = vector.broadcast %cst_50 : f32 to vector<128x128xf32>
    %143 = arith.mulf %142, %139 : vector<128x128xf32>
    %144 = arith.select %141, %139, %143 : vector<128x128xi1>, vector<128x128xf32>
    %cst_51 = arith.constant dense<0.000000e+00> : vector<128xf32>
    %145 = vector.multi_reduction <add>, %144, %cst_51 [0] : vector<128x128xf32> to vector<128xf32>
    %146 = vector.shape_cast %145 : vector<128xf32> to vector<1x128xf32>
    %cst_52 = arith.constant 7.812500e-03 : f32
    %147 = vector.broadcast %cst_52 : f32 to vector<1x128xf32>
    %148 = arith.mulf %146, %147 : vector<1x128xf32>
    %149 = vector.broadcast %148 : vector<1x128xf32> to vector<128x128xf32>
    %150 = arith.subf %144, %149 : vector<128x128xf32>
    %151 = arith.mulf %150, %150 : vector<128x128xf32>
    %cst_53 = arith.constant dense<0.000000e+00> : vector<128xf32>
    %152 = vector.multi_reduction <add>, %151, %cst_53 [0] : vector<128x128xf32> to vector<128xf32>
    %153 = vector.shape_cast %152 : vector<128xf32> to vector<1x128xf32>
    %cst_54 = arith.constant 7.812500e-03 : f32
    %154 = vector.broadcast %cst_54 : f32 to vector<1x128xf32>
    %155 = arith.mulf %153, %154 : vector<1x128xf32>
    %cst_55 = arith.constant 9.99999974E-6 : f32
    %156 = vector.broadcast %cst_55 : f32 to vector<1x128xf32>
    %157 = arith.addf %155, %156 : vector<1x128xf32>
    %158 = math.rsqrt %157 : vector<1x128xf32>
    %159 = vector.broadcast %158 : vector<1x128xf32> to vector<128x128xf32>
    %160 = arith.mulf %150, %159 : vector<128x128xf32>
    %c0_56 = arith.constant 0 : index
    %c0_57 = arith.constant 0 : index
    %c0_58 = arith.constant 0 : index
    %161 = vector.load %arg10[%c0_56, %c0_57, %c0_58] : memref<1x128x128xbf16, #tpu.memory_space<vmem>>, vector<1x128x128xbf16>
    %162 = vector.shape_cast %161 : vector<1x128x128xbf16> to vector<128x128xbf16>
    %163 = arith.truncf %160 : vector<128x128xf32> to vector<128x128xbf16>
    %cst_59 = arith.constant dense<0.000000e+00> : vector<128x128xf32>
    %164 = tpu.matmul %163, %162, %cst_59 {dimension_numbers = #tpu.dot_dimension_numbers<[1], [0], [0], [1], [0, 0, 1, 1], [], []>} : vector<128x128xbf16>, vector<128x128xbf16>, vector<128x128xf32> -> vector<128x128xf32>
    %c0_60 = arith.constant 0 : index
    %c0_61 = arith.constant 0 : index
    %c0_62 = arith.constant 0 : index
    %165 = vector.load %arg11[%c0_60, %c0_61, %c0_62] : memref<1x1x128xf32, #tpu.memory_space<vmem>>, vector<1x1x128xf32>
    %166 = vector.shape_cast %165 : vector<1x1x128xf32> to vector<1x128xf32>
    %167 = vector.broadcast %166 : vector<1x128xf32> to vector<128x128xf32>
    %168 = arith.addf %164, %167 : vector<128x128xf32>
    %cst_63 = arith.constant 0.000000e+00 : f32
    %169 = vector.broadcast %cst_63 : f32 to vector<128x128xf32>
    %170 = arith.cmpf oge, %168, %169 : vector<128x128xf32>
    %cst_64 = arith.constant 2.000000e-01 : f32
    %171 = vector.broadcast %cst_64 : f32 to vector<128x128xf32>
    %172 = arith.mulf %171, %168 : vector<128x128xf32>
    %173 = arith.select %170, %168, %172 : vector<128x128xi1>, vector<128x128xf32>
    %cst_65 = arith.constant dense<0.000000e+00> : vector<128xf32>
    %174 = vector.multi_reduction <add>, %173, %cst_65 [0] : vector<128x128xf32> to vector<128xf32>
    %175 = vector.shape_cast %174 : vector<128xf32> to vector<1x128xf32>
    %cst_66 = arith.constant 7.812500e-03 : f32
    %176 = vector.broadcast %cst_66 : f32 to vector<1x128xf32>
    %177 = arith.mulf %175, %176 : vector<1x128xf32>
    %178 = vector.broadcast %177 : vector<1x128xf32> to vector<128x128xf32>
    %179 = arith.subf %173, %178 : vector<128x128xf32>
    %180 = arith.mulf %179, %179 : vector<128x128xf32>
    %cst_67 = arith.constant dense<0.000000e+00> : vector<128xf32>
    %181 = vector.multi_reduction <add>, %180, %cst_67 [0] : vector<128x128xf32> to vector<128xf32>
    %182 = vector.shape_cast %181 : vector<128xf32> to vector<1x128xf32>
    %cst_68 = arith.constant 7.812500e-03 : f32
    %183 = vector.broadcast %cst_68 : f32 to vector<1x128xf32>
    %184 = arith.mulf %182, %183 : vector<1x128xf32>
    %cst_69 = arith.constant 9.99999974E-6 : f32
    %185 = vector.broadcast %cst_69 : f32 to vector<1x128xf32>
    %186 = arith.addf %184, %185 : vector<1x128xf32>
    %187 = math.rsqrt %186 : vector<1x128xf32>
    %188 = vector.broadcast %187 : vector<1x128xf32> to vector<128x128xf32>
    %189 = arith.mulf %179, %188 : vector<128x128xf32>
    %c0_70 = arith.constant 0 : index
    %c0_71 = arith.constant 0 : index
    %c0_72 = arith.constant 0 : index
    %190 = vector.load %arg12[%c0_70, %c0_71, %c0_72] : memref<1x128x256xbf16, #tpu.memory_space<vmem>>, vector<1x128x256xbf16>
    %191 = vector.shape_cast %190 : vector<1x128x256xbf16> to vector<128x256xbf16>
    %192 = arith.truncf %189 : vector<128x128xf32> to vector<128x128xbf16>
    %cst_73 = arith.constant dense<0.000000e+00> : vector<128x256xf32>
    %193 = tpu.matmul %192, %191, %cst_73 {dimension_numbers = #tpu.dot_dimension_numbers<[1], [0], [0], [1], [0, 0, 1, 1], [], []>} : vector<128x128xbf16>, vector<128x256xbf16>, vector<128x256xf32> -> vector<128x256xf32>
    %c0_74 = arith.constant 0 : index
    %c0_75 = arith.constant 0 : index
    %c0_76 = arith.constant 0 : index
    %194 = vector.load %arg13[%c0_74, %c0_75, %c0_76] : memref<1x1x256xf32, #tpu.memory_space<vmem>>, vector<1x1x256xf32>
    %195 = vector.shape_cast %194 : vector<1x1x256xf32> to vector<1x256xf32>
    %196 = vector.broadcast %195 : vector<1x256xf32> to vector<128x256xf32>
    %197 = arith.addf %193, %196 : vector<128x256xf32>
    %198 = arith.truncf %197 : vector<128x256xf32> to vector<128x256xbf16>
    %199 = vector.extract_strided_slice %198 {offsets = [0, 0], sizes = [128, 128], strides = [1, 1]} : vector<128x256xbf16> to vector<128x128xbf16>
    %200 = vector.shape_cast %199 : vector<128x128xbf16> to vector<2x64x128xbf16>
    %201 = vector.extract_strided_slice %198 {offsets = [0, 128], sizes = [128, 128], strides = [1, 1]} : vector<128x256xbf16> to vector<128x128xbf16>
    %202 = vector.shape_cast %201 : vector<128x128xbf16> to vector<2x64x128xbf16>
    %c0_77 = arith.constant 0 : index
    %c0_78 = arith.constant 0 : index
    %c0_79 = arith.constant 0 : index
    %203 = vector.load %arg14[%c0_77, %c0_78, %c0_79] : memref<1x128x128xbf16, #tpu.memory_space<vmem>>, vector<1x128x128xbf16>
    %204 = vector.shape_cast %203 : vector<1x128x128xbf16> to vector<128x128xbf16>
    %205 = arith.truncf %138 : vector<128x128xf32> to vector<128x128xbf16>
    %cst_80 = arith.constant dense<0.000000e+00> : vector<128x128xf32>
    %206 = tpu.matmul %205, %204, %cst_80 {dimension_numbers = #tpu.dot_dimension_numbers<[1], [0], [0], [1], [0, 0, 1, 1], [], []>} : vector<128x128xbf16>, vector<128x128xbf16>, vector<128x128xf32> -> vector<128x128xf32>
    %c0_81 = arith.constant 0 : index
    %c0_82 = arith.constant 0 : index
    %c0_83 = arith.constant 0 : index
    %207 = vector.load %arg15[%c0_81, %c0_82, %c0_83] : memref<1x1x128xf32, #tpu.memory_space<vmem>>, vector<1x1x128xf32>
    %208 = vector.shape_cast %207 : vector<1x1x128xf32> to vector<1x128xf32>
    %209 = vector.broadcast %208 : vector<1x128xf32> to vector<128x128xf32>
    %210 = arith.addf %206, %209 : vector<128x128xf32>
    %211 = arith.truncf %210 : vector<128x128xf32> to vector<128x128xbf16>
    %212 = vector.shape_cast %211 : vector<128x128xbf16> to vector<2x64x128xbf16>
    %c0_84 = arith.constant 0 : index
    %c0_85 = arith.constant 0 : index
    %c0_86 = arith.constant 0 : index
    %213 = vector.load %arg16[%c0_84, %c0_85, %c0_86] : memref<1x128x128xbf16, #tpu.memory_space<vmem>>, vector<1x128x128xbf16>
    %214 = vector.shape_cast %213 : vector<1x128x128xbf16> to vector<128x128xbf16>
    %215 = vector.extract_strided_slice %212 {offsets = [0, 0, 0], sizes = [2, 64, 32], strides = [1, 1, 1]} : vector<2x64x128xbf16> to vector<2x64x32xbf16>
    %216 = vector.extract_strided_slice %200 {offsets = [0, 0, 0], sizes = [2, 64, 32], strides = [1, 1, 1]} : vector<2x64x128xbf16> to vector<2x64x32xbf16>
    "tpu.trace_start"() <{level = 10 : i32, message = "bqd,bkd->bqk"}> : () -> ()
    %cst_87 = arith.constant dense<0.000000e+00> : vector<2x64x64xf32>
    %217 = tpu.matmul %215, %216, %cst_87 {dimension_numbers = #tpu.dot_dimension_numbers<[2], [2], [1], [1], [0, 0, 0, 1, 1, 1], [0], [0]>} : vector<2x64x32xbf16>, vector<2x64x32xbf16>, vector<2x64x64xf32> -> vector<2x64x64xf32>
    "tpu.trace_stop"() : () -> ()
    %cst_88 = arith.constant dense<0xFF800000> : vector<2x64xf32>
    %218 = vector.multi_reduction <maximumf>, %217, %cst_88 [2] : vector<2x64x64xf32> to vector<2x64xf32>
    %219 = vector.shape_cast %218 : vector<2x64xf32> to vector<2x64x1xf32>
    %220 = vector.broadcast %219 : vector<2x64x1xf32> to vector<2x64x64xf32>
    %221 = arith.subf %217, %220 : vector<2x64x64xf32>
    %222 = math.exp %221 : vector<2x64x64xf32>
    %cst_89 = arith.constant dense<0.000000e+00> : vector<2x64xf32>
    %223 = vector.multi_reduction <add>, %222, %cst_89 [2] : vector<2x64x64xf32> to vector<2x64xf32>
    %224 = vector.shape_cast %223 : vector<2x64xf32> to vector<2x64x1xf32>
    %225 = tpu.reciprocal %224 {approx = true} : vector<2x64x1xf32> -> vector<2x64x1xf32>
    %226 = vector.broadcast %225 : vector<2x64x1xf32> to vector<2x64x64xf32>
    %227 = arith.mulf %222, %226 : vector<2x64x64xf32>
    %228 = arith.truncf %227 : vector<2x64x64xf32> to vector<2x64x64xbf16>
    %229 = vector.extract_strided_slice %202 {offsets = [0, 0, 0], sizes = [2, 64, 32], strides = [1, 1, 1]} : vector<2x64x128xbf16> to vector<2x64x32xbf16>
    "tpu.trace_start"() <{level = 10 : i32, message = "bqk,bkd->bqd"}> : () -> ()
    %cst_90 = arith.constant dense<0.000000e+00> : vector<2x64x32xf32>
    %230 = tpu.matmul %228, %229, %cst_90 {dimension_numbers = #tpu.dot_dimension_numbers<[2], [1], [1], [2], [0, 0, 0, 1, 1, 2], [0], [0]>} : vector<2x64x64xbf16>, vector<2x64x32xbf16>, vector<2x64x32xf32> -> vector<2x64x32xf32>
    "tpu.trace_stop"() : () -> ()
    %231 = vector.shape_cast %230 : vector<2x64x32xf32> to vector<128x32xf32>
    %232 = arith.truncf %231 : vector<128x32xf32> to vector<128x32xbf16>
    %233 = vector.extract_strided_slice %214 {offsets = [0, 0], sizes = [32, 128], strides = [1, 1]} : vector<128x128xbf16> to vector<32x128xbf16>
    %cst_91 = arith.constant dense<0.000000e+00> : vector<128x128xf32>
    %234 = tpu.matmul %232, %233, %cst_91 {dimension_numbers = #tpu.dot_dimension_numbers<[1], [0], [0], [1], [0, 0, 1, 1], [], []>} : vector<128x32xbf16>, vector<32x128xbf16>, vector<128x128xf32> -> vector<128x128xf32>
    %235 = vector.extract_strided_slice %212 {offsets = [0, 0, 32], sizes = [2, 64, 32], strides = [1, 1, 1]} : vector<2x64x128xbf16> to vector<2x64x32xbf16>
    %236 = vector.extract_strided_slice %200 {offsets = [0, 0, 32], sizes = [2, 64, 32], strides = [1, 1, 1]} : vector<2x64x128xbf16> to vector<2x64x32xbf16>
    "tpu.trace_start"() <{level = 10 : i32, message = "bqd,bkd->bqk"}> : () -> ()
    %cst_92 = arith.constant dense<0.000000e+00> : vector<2x64x64xf32>
    %237 = tpu.matmul %235, %236, %cst_92 {dimension_numbers = #tpu.dot_dimension_numbers<[2], [2], [1], [1], [0, 0, 0, 1, 1, 1], [0], [0]>} : vector<2x64x32xbf16>, vector<2x64x32xbf16>, vector<2x64x64xf32> -> vector<2x64x64xf32>
    "tpu.trace_stop"() : () -> ()
    %cst_93 = arith.constant dense<0xFF800000> : vector<2x64xf32>
    %238 = vector.multi_reduction <maximumf>, %237, %cst_93 [2] : vector<2x64x64xf32> to vector<2x64xf32>
    %239 = vector.shape_cast %238 : vector<2x64xf32> to vector<2x64x1xf32>
    %240 = vector.broadcast %239 : vector<2x64x1xf32> to vector<2x64x64xf32>
    %241 = arith.subf %237, %240 : vector<2x64x64xf32>
    %242 = math.exp %241 : vector<2x64x64xf32>
    %cst_94 = arith.constant dense<0.000000e+00> : vector<2x64xf32>
    %243 = vector.multi_reduction <add>, %242, %cst_94 [2] : vector<2x64x64xf32> to vector<2x64xf32>
    %244 = vector.shape_cast %243 : vector<2x64xf32> to vector<2x64x1xf32>
    %245 = tpu.reciprocal %244 {approx = true} : vector<2x64x1xf32> -> vector<2x64x1xf32>
    %246 = vector.broadcast %245 : vector<2x64x1xf32> to vector<2x64x64xf32>
    %247 = arith.mulf %242, %246 : vector<2x64x64xf32>
    %248 = arith.truncf %247 : vector<2x64x64xf32> to vector<2x64x64xbf16>
    %249 = vector.extract_strided_slice %202 {offsets = [0, 0, 32], sizes = [2, 64, 32], strides = [1, 1, 1]} : vector<2x64x128xbf16> to vector<2x64x32xbf16>
    "tpu.trace_start"() <{level = 10 : i32, message = "bqk,bkd->bqd"}> : () -> ()
    %cst_95 = arith.constant dense<0.000000e+00> : vector<2x64x32xf32>
    %250 = tpu.matmul %248, %249, %cst_95 {dimension_numbers = #tpu.dot_dimension_numbers<[2], [1], [1], [2], [0, 0, 0, 1, 1, 2], [0], [0]>} : vector<2x64x64xbf16>, vector<2x64x32xbf16>, vector<2x64x32xf32> -> vector<2x64x32xf32>
    "tpu.trace_stop"() : () -> ()
    %251 = vector.shape_cast %250 : vector<2x64x32xf32> to vector<128x32xf32>
    %252 = arith.truncf %251 : vector<128x32xf32> to vector<128x32xbf16>
    %253 = vector.extract_strided_slice %214 {offsets = [32, 0], sizes = [32, 128], strides = [1, 1]} : vector<128x128xbf16> to vector<32x128xbf16>
    %cst_96 = arith.constant dense<0.000000e+00> : vector<128x128xf32>
    %254 = tpu.matmul %252, %253, %cst_96 {dimension_numbers = #tpu.dot_dimension_numbers<[1], [0], [0], [1], [0, 0, 1, 1], [], []>} : vector<128x32xbf16>, vector<32x128xbf16>, vector<128x128xf32> -> vector<128x128xf32>
    %255 = arith.addf %234, %254 : vector<128x128xf32>
    %256 = vector.extract_strided_slice %212 {offsets = [0, 0, 64], sizes = [2, 64, 32], strides = [1, 1, 1]} : vector<2x64x128xbf16> to vector<2x64x32xbf16>
    %257 = vector.extract_strided_slice %200 {offsets = [0, 0, 64], sizes = [2, 64, 32], strides = [1, 1, 1]} : vector<2x64x128xbf16> to vector<2x64x32xbf16>
    "tpu.trace_start"() <{level = 10 : i32, message = "bqd,bkd->bqk"}> : () -> ()
    %cst_97 = arith.constant dense<0.000000e+00> : vector<2x64x64xf32>
    %258 = tpu.matmul %256, %257, %cst_97 {dimension_numbers = #tpu.dot_dimension_numbers<[2], [2], [1], [1], [0, 0, 0, 1, 1, 1], [0], [0]>} : vector<2x64x32xbf16>, vector<2x64x32xbf16>, vector<2x64x64xf32> -> vector<2x64x64xf32>
    "tpu.trace_stop"() : () -> ()
    %cst_98 = arith.constant dense<0xFF800000> : vector<2x64xf32>
    %259 = vector.multi_reduction <maximumf>, %258, %cst_98 [2] : vector<2x64x64xf32> to vector<2x64xf32>
    %260 = vector.shape_cast %259 : vector<2x64xf32> to vector<2x64x1xf32>
    %261 = vector.broadcast %260 : vector<2x64x1xf32> to vector<2x64x64xf32>
    %262 = arith.subf %258, %261 : vector<2x64x64xf32>
    %263 = math.exp %262 : vector<2x64x64xf32>
    %cst_99 = arith.constant dense<0.000000e+00> : vector<2x64xf32>
    %264 = vector.multi_reduction <add>, %263, %cst_99 [2] : vector<2x64x64xf32> to vector<2x64xf32>
    %265 = vector.shape_cast %264 : vector<2x64xf32> to vector<2x64x1xf32>
    %266 = tpu.reciprocal %265 {approx = true} : vector<2x64x1xf32> -> vector<2x64x1xf32>
    %267 = vector.broadcast %266 : vector<2x64x1xf32> to vector<2x64x64xf32>
    %268 = arith.mulf %263, %267 : vector<2x64x64xf32>
    %269 = arith.truncf %268 : vector<2x64x64xf32> to vector<2x64x64xbf16>
    %270 = vector.extract_strided_slice %202 {offsets = [0, 0, 64], sizes = [2, 64, 32], strides = [1, 1, 1]} : vector<2x64x128xbf16> to vector<2x64x32xbf16>
    "tpu.trace_start"() <{level = 10 : i32, message = "bqk,bkd->bqd"}> : () -> ()
    %cst_100 = arith.constant dense<0.000000e+00> : vector<2x64x32xf32>
    %271 = tpu.matmul %269, %270, %cst_100 {dimension_numbers = #tpu.dot_dimension_numbers<[2], [1], [1], [2], [0, 0, 0, 1, 1, 2], [0], [0]>} : vector<2x64x64xbf16>, vector<2x64x32xbf16>, vector<2x64x32xf32> -> vector<2x64x32xf32>
    "tpu.trace_stop"() : () -> ()
    %272 = vector.shape_cast %271 : vector<2x64x32xf32> to vector<128x32xf32>
    %273 = arith.truncf %272 : vector<128x32xf32> to vector<128x32xbf16>
    %274 = vector.extract_strided_slice %214 {offsets = [64, 0], sizes = [32, 128], strides = [1, 1]} : vector<128x128xbf16> to vector<32x128xbf16>
    %cst_101 = arith.constant dense<0.000000e+00> : vector<128x128xf32>
    %275 = tpu.matmul %273, %274, %cst_101 {dimension_numbers = #tpu.dot_dimension_numbers<[1], [0], [0], [1], [0, 0, 1, 1], [], []>} : vector<128x32xbf16>, vector<32x128xbf16>, vector<128x128xf32> -> vector<128x128xf32>
    %276 = arith.addf %255, %275 : vector<128x128xf32>
    %277 = vector.extract_strided_slice %212 {offsets = [0, 0, 96], sizes = [2, 64, 32], strides = [1, 1, 1]} : vector<2x64x128xbf16> to vector<2x64x32xbf16>
    %278 = vector.extract_strided_slice %200 {offsets = [0, 0, 96], sizes = [2, 64, 32], strides = [1, 1, 1]} : vector<2x64x128xbf16> to vector<2x64x32xbf16>
    "tpu.trace_start"() <{level = 10 : i32, message = "bqd,bkd->bqk"}> : () -> ()
    %cst_102 = arith.constant dense<0.000000e+00> : vector<2x64x64xf32>
    %279 = tpu.matmul %277, %278, %cst_102 {dimension_numbers = #tpu.dot_dimension_numbers<[2], [2], [1], [1], [0, 0, 0, 1, 1, 1], [0], [0]>} : vector<2x64x32xbf16>, vector<2x64x32xbf16>, vector<2x64x64xf32> -> vector<2x64x64xf32>
    "tpu.trace_stop"() : () -> ()
    %cst_103 = arith.constant dense<0xFF800000> : vector<2x64xf32>
    %280 = vector.multi_reduction <maximumf>, %279, %cst_103 [2] : vector<2x64x64xf32> to vector<2x64xf32>
    %281 = vector.shape_cast %280 : vector<2x64xf32> to vector<2x64x1xf32>
    %282 = vector.broadcast %281 : vector<2x64x1xf32> to vector<2x64x64xf32>
    %283 = arith.subf %279, %282 : vector<2x64x64xf32>
    %284 = math.exp %283 : vector<2x64x64xf32>
    %cst_104 = arith.constant dense<0.000000e+00> : vector<2x64xf32>
    %285 = vector.multi_reduction <add>, %284, %cst_104 [2] : vector<2x64x64xf32> to vector<2x64xf32>
    %286 = vector.shape_cast %285 : vector<2x64xf32> to vector<2x64x1xf32>
    %287 = tpu.reciprocal %286 {approx = true} : vector<2x64x1xf32> -> vector<2x64x1xf32>
    %288 = vector.broadcast %287 : vector<2x64x1xf32> to vector<2x64x64xf32>
    %289 = arith.mulf %284, %288 : vector<2x64x64xf32>
    %290 = arith.truncf %289 : vector<2x64x64xf32> to vector<2x64x64xbf16>
    %291 = vector.extract_strided_slice %202 {offsets = [0, 0, 96], sizes = [2, 64, 32], strides = [1, 1, 1]} : vector<2x64x128xbf16> to vector<2x64x32xbf16>
    "tpu.trace_start"() <{level = 10 : i32, message = "bqk,bkd->bqd"}> : () -> ()
    %cst_105 = arith.constant dense<0.000000e+00> : vector<2x64x32xf32>
    %292 = tpu.matmul %290, %291, %cst_105 {dimension_numbers = #tpu.dot_dimension_numbers<[2], [1], [1], [2], [0, 0, 0, 1, 1, 2], [0], [0]>} : vector<2x64x64xbf16>, vector<2x64x32xbf16>, vector<2x64x32xf32> -> vector<2x64x32xf32>
    "tpu.trace_stop"() : () -> ()
    %293 = vector.shape_cast %292 : vector<2x64x32xf32> to vector<128x32xf32>
    %294 = arith.truncf %293 : vector<128x32xf32> to vector<128x32xbf16>
    %295 = vector.extract_strided_slice %214 {offsets = [96, 0], sizes = [32, 128], strides = [1, 1]} : vector<128x128xbf16> to vector<32x128xbf16>
    %cst_106 = arith.constant dense<0.000000e+00> : vector<128x128xf32>
    %296 = tpu.matmul %294, %295, %cst_106 {dimension_numbers = #tpu.dot_dimension_numbers<[1], [0], [0], [1], [0, 0, 1, 1], [], []>} : vector<128x32xbf16>, vector<32x128xbf16>, vector<128x128xf32> -> vector<128x128xf32>
    %297 = arith.addf %276, %296 : vector<128x128xf32>
    %c0_107 = arith.constant 0 : index
    %c0_108 = arith.constant 0 : index
    %c0_109 = arith.constant 0 : index
    %298 = vector.load %arg17[%c0_107, %c0_108, %c0_109] : memref<1x1x128xf32, #tpu.memory_space<vmem>>, vector<1x1x128xf32>
    %299 = vector.shape_cast %298 : vector<1x1x128xf32> to vector<1x128xf32>
    %300 = vector.broadcast %299 : vector<1x128xf32> to vector<128x128xf32>
    %301 = arith.addf %297, %300 : vector<128x128xf32>
    %302 = arith.addf %138, %301 : vector<128x128xf32>
    %c0_110 = arith.constant 0 : index
    %c0_111 = arith.constant 0 : index
    %c0_112 = arith.constant 0 : index
    %303 = vector.load %arg18[%c0_110, %c0_111, %c0_112] : memref<1x1x128xf32, #tpu.memory_space<vmem>>, vector<1x1x128xf32>
    %304 = vector.shape_cast %303 : vector<1x1x128xf32> to vector<1x128xf32>
    %c0_113 = arith.constant 0 : index
    %c0_114 = arith.constant 0 : index
    %c0_115 = arith.constant 0 : index
    %305 = vector.load %arg19[%c0_113, %c0_114, %c0_115] : memref<1x1x128xf32, #tpu.memory_space<vmem>>, vector<1x1x128xf32>
    %306 = vector.shape_cast %305 : vector<1x1x128xf32> to vector<1x128xf32>
    %cst_116 = arith.constant dense<0.000000e+00> : vector<128xf32>
    %307 = vector.multi_reduction <add>, %302, %cst_116 [1] : vector<128x128xf32> to vector<128xf32>
    %308 = vector.shape_cast %307 : vector<128xf32> to vector<128x1xf32>
    %cst_117 = arith.constant 1.280000e+02 : f32
    %309 = vector.broadcast %cst_117 : f32 to vector<128x1xf32>
    %310 = arith.divf %308, %309 : vector<128x1xf32>
    %311 = vector.broadcast %310 : vector<128x1xf32> to vector<128x128xf32>
    %312 = arith.subf %302, %311 : vector<128x128xf32>
    %313 = arith.mulf %312, %312 : vector<128x128xf32>
    %cst_118 = arith.constant dense<0.000000e+00> : vector<128xf32>
    %314 = vector.multi_reduction <add>, %313, %cst_118 [1] : vector<128x128xf32> to vector<128xf32>
    %315 = vector.shape_cast %314 : vector<128xf32> to vector<128x1xf32>
    %cst_119 = arith.constant 1.280000e+02 : f32
    %316 = vector.broadcast %cst_119 : f32 to vector<128x1xf32>
    %317 = arith.divf %315, %316 : vector<128x1xf32>
    %cst_120 = arith.constant 9.99999997E-7 : f32
    %318 = vector.broadcast %cst_120 : f32 to vector<128x1xf32>
    %319 = arith.addf %317, %318 : vector<128x1xf32>
    %320 = math.rsqrt %319 : vector<128x1xf32>
    %321 = vector.broadcast %320 : vector<128x1xf32> to vector<128x128xf32>
    %322 = arith.mulf %312, %321 : vector<128x128xf32>
    %323 = vector.broadcast %304 : vector<1x128xf32> to vector<128x128xf32>
    %324 = arith.mulf %322, %323 : vector<128x128xf32>
    %325 = vector.broadcast %306 : vector<1x128xf32> to vector<128x128xf32>
    %326 = arith.addf %324, %325 : vector<128x128xf32>
    %c0_121 = arith.constant 0 : index
    %c0_122 = arith.constant 0 : index
    %c0_123 = arith.constant 0 : index
    %327 = vector.load %arg20[%c0_121, %c0_122, %c0_123] : memref<1x128x512xbf16, #tpu.memory_space<vmem>>, vector<1x128x512xbf16>
    %328 = vector.shape_cast %327 : vector<1x128x512xbf16> to vector<128x512xbf16>
    %329 = arith.truncf %326 : vector<128x128xf32> to vector<128x128xbf16>
    %cst_124 = arith.constant dense<0.000000e+00> : vector<128x512xf32>
    %330 = tpu.matmul %329, %328, %cst_124 {dimension_numbers = #tpu.dot_dimension_numbers<[1], [0], [0], [1], [0, 0, 1, 1], [], []>} : vector<128x128xbf16>, vector<128x512xbf16>, vector<128x512xf32> -> vector<128x512xf32>
    %c0_125 = arith.constant 0 : index
    %c0_126 = arith.constant 0 : index
    %c0_127 = arith.constant 0 : index
    %331 = vector.load %arg21[%c0_125, %c0_126, %c0_127] : memref<1x1x512xf32, #tpu.memory_space<vmem>>, vector<1x1x512xf32>
    %332 = vector.shape_cast %331 : vector<1x1x512xf32> to vector<1x512xf32>
    %333 = vector.broadcast %332 : vector<1x512xf32> to vector<128x512xf32>
    %334 = arith.addf %330, %333 : vector<128x512xf32>
    %cst_128 = arith.constant 0.000000e+00 : f32
    %335 = vector.broadcast %cst_128 : f32 to vector<128x512xf32>
    %336 = arith.maximumf %334, %335 : vector<128x512xf32>
    %c0_129 = arith.constant 0 : index
    %c0_130 = arith.constant 0 : index
    %c0_131 = arith.constant 0 : index
    %337 = vector.load %arg22[%c0_129, %c0_130, %c0_131] : memref<1x512x128xbf16, #tpu.memory_space<vmem>>, vector<1x512x128xbf16>
    %338 = vector.shape_cast %337 : vector<1x512x128xbf16> to vector<512x128xbf16>
    %339 = arith.truncf %336 : vector<128x512xf32> to vector<128x512xbf16>
    %cst_132 = arith.constant dense<0.000000e+00> : vector<128x128xf32>
    %340 = tpu.matmul %339, %338, %cst_132 {dimension_numbers = #tpu.dot_dimension_numbers<[1], [0], [0], [1], [0, 0, 1, 1], [], []>} : vector<128x512xbf16>, vector<512x128xbf16>, vector<128x128xf32> -> vector<128x128xf32>
    %c0_133 = arith.constant 0 : index
    %c0_134 = arith.constant 0 : index
    %c0_135 = arith.constant 0 : index
    %341 = vector.load %arg23[%c0_133, %c0_134, %c0_135] : memref<1x1x128xf32, #tpu.memory_space<vmem>>, vector<1x1x128xf32>
    %342 = vector.shape_cast %341 : vector<1x1x128xf32> to vector<1x128xf32>
    %343 = vector.broadcast %342 : vector<1x128xf32> to vector<128x128xf32>
    %344 = arith.addf %340, %343 : vector<128x128xf32>
    %345 = arith.addf %326, %344 : vector<128x128xf32>
    %c0_136 = arith.constant 0 : index
    %c0_137 = arith.constant 0 : index
    %c0_138 = arith.constant 0 : index
    %346 = vector.load %arg24[%c0_136, %c0_137, %c0_138] : memref<1x1x128xf32, #tpu.memory_space<vmem>>, vector<1x1x128xf32>
    %347 = vector.shape_cast %346 : vector<1x1x128xf32> to vector<1x128xf32>
    %c0_139 = arith.constant 0 : index
    %c0_140 = arith.constant 0 : index
    %c0_141 = arith.constant 0 : index
    %348 = vector.load %arg25[%c0_139, %c0_140, %c0_141] : memref<1x1x128xf32, #tpu.memory_space<vmem>>, vector<1x1x128xf32>
    %349 = vector.shape_cast %348 : vector<1x1x128xf32> to vector<1x128xf32>
    %cst_142 = arith.constant dense<0.000000e+00> : vector<128xf32>
    %350 = vector.multi_reduction <add>, %345, %cst_142 [1] : vector<128x128xf32> to vector<128xf32>
    %351 = vector.shape_cast %350 : vector<128xf32> to vector<128x1xf32>
    %cst_143 = arith.constant 1.280000e+02 : f32
    %352 = vector.broadcast %cst_143 : f32 to vector<128x1xf32>
    %353 = arith.divf %351, %352 : vector<128x1xf32>
    %354 = vector.broadcast %353 : vector<128x1xf32> to vector<128x128xf32>
    %355 = arith.subf %345, %354 : vector<128x128xf32>
    %356 = arith.mulf %355, %355 : vector<128x128xf32>
    %cst_144 = arith.constant dense<0.000000e+00> : vector<128xf32>
    %357 = vector.multi_reduction <add>, %356, %cst_144 [1] : vector<128x128xf32> to vector<128xf32>
    %358 = vector.shape_cast %357 : vector<128xf32> to vector<128x1xf32>
    %cst_145 = arith.constant 1.280000e+02 : f32
    %359 = vector.broadcast %cst_145 : f32 to vector<128x1xf32>
    %360 = arith.divf %358, %359 : vector<128x1xf32>
    %cst_146 = arith.constant 9.99999997E-7 : f32
    %361 = vector.broadcast %cst_146 : f32 to vector<128x1xf32>
    %362 = arith.addf %360, %361 : vector<128x1xf32>
    %363 = math.rsqrt %362 : vector<128x1xf32>
    %364 = vector.broadcast %363 : vector<128x1xf32> to vector<128x128xf32>
    %365 = arith.mulf %355, %364 : vector<128x128xf32>
    %366 = vector.broadcast %347 : vector<1x128xf32> to vector<128x128xf32>
    %367 = arith.mulf %365, %366 : vector<128x128xf32>
    %368 = vector.broadcast %349 : vector<1x128xf32> to vector<128x128xf32>
    %369 = arith.addf %367, %368 : vector<128x128xf32>
    %c0_147 = arith.constant 0 : index
    %c0_148 = arith.constant 0 : index
    %370 = vector.load %arg30[%c0_147, %c0_148] : memref<128x128xf32, #tpu.memory_space<vmem>>, vector<128x128xf32>
    tpu.vector_store %arg30[%c0_147, %c0_148], %369 {strides = array<i32>} : memref<128x128xf32, #tpu.memory_space<vmem>>, vector<128x128xf32>,
    %c0_149 = arith.constant 0 : index
    %c0_150 = arith.constant 0 : index
    %371 = vector.load %arg26[%c0_149, %c0_150] : memref<16x128xf32, #tpu.memory_space<vmem>>, vector<16x128xf32>
    %cst_151 = arith.constant dense<0.000000e+00> : vector<16x128xf32>
    %372 = tpu.matmul %371, %369, %cst_151 {dimension_numbers = #tpu.dot_dimension_numbers<[1], [0], [0], [1], [0, 0, 1, 1], [], []>} : vector<16x128xf32>, vector<128x128xf32>, vector<16x128xf32> -> vector<16x128xf32>
    %c0_152 = arith.constant 0 : index
    %c0_153 = arith.constant 0 : index
    %373 = vector.load %arg27[%c0_152, %c0_153] : memref<128x128xf32, #tpu.memory_space<vmem>>, vector<128x128xf32>
    %cst_154 = arith.constant dense<0.000000e+00> : vector<16x128xf32>
    %374 = tpu.matmul %372, %373, %cst_154 {dimension_numbers = #tpu.dot_dimension_numbers<[1], [0], [0], [1], [0, 0, 1, 1], [], []>} : vector<16x128xf32>, vector<128x128xf32>, vector<16x128xf32> -> vector<16x128xf32>
    %c0_155 = arith.constant 0 : index
    %c0_156 = arith.constant 0 : index
    %375 = vector.load %arg28[%c0_155, %c0_156] : memref<1x128xf32, #tpu.memory_space<vmem>>, vector<1x128xf32>
    %376 = vector.broadcast %375 : vector<1x128xf32> to vector<16x128xf32>
    %377 = arith.addf %374, %376 : vector<16x128xf32>
    %c1_i32 = arith.constant 1 : i32
    %378 = arith.cmpi eq, %arg0, %c1_i32 : i32
    %379 = arith.extui %378 : i1 to i32
    %c0_i32_157 = arith.constant 0 : i32
    %380 = arith.cmpi ne, %379, %c0_i32_157 : i32
    scf.if %380 {
      %c0_158 = arith.constant 0 : index
      %c0_159 = arith.constant 0 : index
      %381 = vector.load %arg29[%c0_158, %c0_159] : memref<16x128xf32, #tpu.memory_space<vmem>>, vector<16x128xf32>
      tpu.vector_store %arg29[%c0_158, %c0_159], %377 {strides = array<i32>} : memref<16x128xf32, #tpu.memory_space<vmem>>, vector<16x128xf32>,
    } else {
    }
    return
  }
  func.func @transform_0(%arg0: i32) -> (i32, i32) {
    %c0_i32 = arith.constant 0 : i32
    %c0_i32_0 = arith.constant 0 : i32
    %c0_i32_1 = arith.constant 0 : i32
    return %c0_i32, %c0_i32_0 : i32, i32
  }
  func.func @transform_1(%arg0: i32) -> (i32, i32) {
    %c0_i32 = arith.constant 0 : i32
    %c0_i32_0 = arith.constant 0 : i32
    %c0_i32_1 = arith.constant 0 : i32
    return %c0_i32, %c0_i32_0 : i32, i32
  }
  func.func @transform_2(%arg0: i32) -> (i32, i32) {
    %c0_i32 = arith.constant 0 : i32
    %c0_i32_0 = arith.constant 0 : i32
    %c0_i32_1 = arith.constant 0 : i32
    return %c0_i32, %c0_i32_0 : i32, i32
  }
  func.func @transform_3(%arg0: i32) -> (i32, i32, i32) {
    %c0_i32 = arith.constant 0 : i32
    %c0_i32_0 = arith.constant 0 : i32
    %c0_i32_1 = arith.constant 0 : i32
    return %arg0, %c0_i32, %c0_i32_0 : i32, i32, i32
  }
  func.func @transform_4(%arg0: i32) -> (i32, i32, i32) {
    %c0_i32 = arith.constant 0 : i32
    %c0_i32_0 = arith.constant 0 : i32
    %c0_i32_1 = arith.constant 0 : i32
    return %arg0, %c0_i32, %c0_i32_0 : i32, i32, i32
  }
  func.func @transform_5(%arg0: i32) -> (i32, i32, i32) {
    %c0_i32 = arith.constant 0 : i32
    %c0_i32_0 = arith.constant 0 : i32
    %c0_i32_1 = arith.constant 0 : i32
    return %arg0, %c0_i32, %c0_i32_0 : i32, i32, i32
  }
  func.func @transform_6(%arg0: i32) -> (i32, i32, i32) {
    %c0_i32 = arith.constant 0 : i32
    %c0_i32_0 = arith.constant 0 : i32
    %c0_i32_1 = arith.constant 0 : i32
    return %arg0, %c0_i32, %c0_i32_0 : i32, i32, i32
  }
  func.func @transform_7(%arg0: i32) -> (i32, i32, i32) {
    %c0_i32 = arith.constant 0 : i32
    %c0_i32_0 = arith.constant 0 : i32
    %c0_i32_1 = arith.constant 0 : i32
    return %arg0, %c0_i32, %c0_i32_0 : i32, i32, i32
  }
  func.func @transform_8(%arg0: i32) -> (i32, i32, i32) {
    %c0_i32 = arith.constant 0 : i32
    %c0_i32_0 = arith.constant 0 : i32
    %c0_i32_1 = arith.constant 0 : i32
    return %arg0, %c0_i32, %c0_i32_0 : i32, i32, i32
  }
  func.func @transform_9(%arg0: i32) -> (i32, i32, i32) {
    %c0_i32 = arith.constant 0 : i32
    %c0_i32_0 = arith.constant 0 : i32
    %c0_i32_1 = arith.constant 0 : i32
    return %arg0, %c0_i32, %c0_i32_0 : i32, i32, i32
  }
  func.func @transform_10(%arg0: i32) -> (i32, i32, i32) {
    %c0_i32 = arith.constant 0 : i32
    %c0_i32_0 = arith.constant 0 : i32
    %c0_i32_1 = arith.constant 0 : i32
    return %arg0, %c0_i32, %c0_i32_0 : i32, i32, i32
  }
  func.func @transform_11(%arg0: i32) -> (i32, i32, i32) {
    %c0_i32 = arith.constant 0 : i32
    %c0_i32_0 = arith.constant 0 : i32
    %c0_i32_1 = arith.constant 0 : i32
    return %arg0, %c0_i32, %c0_i32_0 : i32, i32, i32
  }
  func.func @transform_12(%arg0: i32) -> (i32, i32, i32) {
    %c0_i32 = arith.constant 0 : i32
    %c0_i32_0 = arith.constant 0 : i32
    %c0_i32_1 = arith.constant 0 : i32
    return %arg0, %c0_i32, %c0_i32_0 : i32, i32, i32
  }
  func.func @transform_13(%arg0: i32) -> (i32, i32, i32) {
    %c0_i32 = arith.constant 0 : i32
    %c0_i32_0 = arith.constant 0 : i32
    %c0_i32_1 = arith.constant 0 : i32
    return %arg0, %c0_i32, %c0_i32_0 : i32, i32, i32
  }
  func.func @transform_14(%arg0: i32) -> (i32, i32, i32) {
    %c0_i32 = arith.constant 0 : i32
    %c0_i32_0 = arith.constant 0 : i32
    %c0_i32_1 = arith.constant 0 : i32
    return %arg0, %c0_i32, %c0_i32_0 : i32, i32, i32
  }
  func.func @transform_15(%arg0: i32) -> (i32, i32, i32) {
    %c0_i32 = arith.constant 0 : i32
    %c0_i32_0 = arith.constant 0 : i32
    %c0_i32_1 = arith.constant 0 : i32
    return %arg0, %c0_i32, %c0_i32_0 : i32, i32, i32
  }
  func.func @transform_16(%arg0: i32) -> (i32, i32, i32) {
    %c0_i32 = arith.constant 0 : i32
    %c0_i32_0 = arith.constant 0 : i32
    %c0_i32_1 = arith.constant 0 : i32
    return %arg0, %c0_i32, %c0_i32_0 : i32, i32, i32
  }
  func.func @transform_17(%arg0: i32) -> (i32, i32, i32) {
    %c0_i32 = arith.constant 0 : i32
    %c0_i32_0 = arith.constant 0 : i32
    %c0_i32_1 = arith.constant 0 : i32
    return %arg0, %c0_i32, %c0_i32_0 : i32, i32, i32
  }
  func.func @transform_18(%arg0: i32) -> (i32, i32, i32) {
    %c0_i32 = arith.constant 0 : i32
    %c0_i32_0 = arith.constant 0 : i32
    %c0_i32_1 = arith.constant 0 : i32
    return %arg0, %c0_i32, %c0_i32_0 : i32, i32, i32
  }
  func.func @transform_19(%arg0: i32) -> (i32, i32, i32) {
    %c0_i32 = arith.constant 0 : i32
    %c0_i32_0 = arith.constant 0 : i32
    %c0_i32_1 = arith.constant 0 : i32
    return %arg0, %c0_i32, %c0_i32_0 : i32, i32, i32
  }
  func.func @transform_20(%arg0: i32) -> (i32, i32, i32) {
    %c0_i32 = arith.constant 0 : i32
    %c0_i32_0 = arith.constant 0 : i32
    %c0_i32_1 = arith.constant 0 : i32
    return %arg0, %c0_i32, %c0_i32_0 : i32, i32, i32
  }
  func.func @transform_21(%arg0: i32) -> (i32, i32, i32) {
    %c0_i32 = arith.constant 0 : i32
    %c0_i32_0 = arith.constant 0 : i32
    %c0_i32_1 = arith.constant 0 : i32
    return %arg0, %c0_i32, %c0_i32_0 : i32, i32, i32
  }
  func.func @transform_22(%arg0: i32) -> (i32, i32, i32) {
    %c0_i32 = arith.constant 0 : i32
    %c0_i32_0 = arith.constant 0 : i32
    %c0_i32_1 = arith.constant 0 : i32
    return %arg0, %c0_i32, %c0_i32_0 : i32, i32, i32
  }
  func.func @transform_23(%arg0: i32) -> (i32, i32, i32) {
    %c0_i32 = arith.constant 0 : i32
    %c0_i32_0 = arith.constant 0 : i32
    %c0_i32_1 = arith.constant 0 : i32
    return %arg0, %c0_i32, %c0_i32_0 : i32, i32, i32
  }
  func.func @transform_24(%arg0: i32) -> (i32, i32, i32) {
    %c0_i32 = arith.constant 0 : i32
    %c0_i32_0 = arith.constant 0 : i32
    %c0_i32_1 = arith.constant 0 : i32
    return %arg0, %c0_i32, %c0_i32_0 : i32, i32, i32
  }
  func.func @transform_25(%arg0: i32) -> (i32, i32) {
    %c0_i32 = arith.constant 0 : i32
    %c0_i32_0 = arith.constant 0 : i32
    %c0_i32_1 = arith.constant 0 : i32
    return %c0_i32, %c0_i32_0 : i32, i32
  }
  func.func @transform_26(%arg0: i32) -> (i32, i32) {
    %c0_i32 = arith.constant 0 : i32
    %c0_i32_0 = arith.constant 0 : i32
    %c0_i32_1 = arith.constant 0 : i32
    return %c0_i32, %c0_i32_0 : i32, i32
  }
  func.func @transform_27(%arg0: i32) -> (i32, i32) {
    %c0_i32 = arith.constant 0 : i32
    %c0_i32_0 = arith.constant 0 : i32
    %c0_i32_1 = arith.constant 0 : i32
    return %c0_i32, %c0_i32_0 : i32, i32
  }
  func.func @transform_28(%arg0: i32) -> (i32, i32) {
    %c0_i32 = arith.constant 0 : i32
    %c0_i32_0 = arith.constant 0 : i32
    %c0_i32_1 = arith.constant 0 : i32
    return %c0_i32, %c0_i32_0 : i32, i32
  }
}

</mosaic_0001>

<bundles_post_ra>
// kernel: decoder_forward.1
= control target key start
LH: loop header
LB: loop body
LE: loop exit
PB: predicated region body
PF: predicated region fallthrough
CT: control target
= control target key end

     0   :  { %s19365_s0 = inlined_call_operand.hbm [shape: f32[128,128], index: 0, kind: input, shape index: {}]   ;;  %s19366_s1 = inlined_call_operand.hbm [shape: f32[128,128], index: 1, kind: input, shape index: {}]   ;;  %s19367_s2 = inlined_call_operand.hbm [shape: f32[64,128], index: 2, kind: input, shape index: {}]   ;;  %s19368_s3 = inlined_call_operand.hbm [shape: bf16[2,128,384], index: 3, kind: input, shape index: {}]   ;;  %s19369_s4 = inlined_call_operand.vmem [shape: f32[2,1,384], index: 4, kind: input, shape index: {}]   ;;  %s19370_s5 = inlined_call_operand.hbm [shape: bf16[2,128,128], index: 5, kind: input, shape index: {}]   ;;  %s19371_s6 = inlined_call_operand.vmem [shape: f32[2,1,128], index: 6, kind: input, shape index: {}]   ;;  %s19372_s7 = inlined_call_operand.hbm [shape: f32[2,1,128], index: 7, kind: input, shape index: {}]   ;;  %s19373_s8 = inlined_call_operand.hbm [shape: f32[2,1,128], index: 8, kind: input, shape index: {}]   ;;  %s19374_s9 = inlined_call_operand.hbm [shape: bf16[2,128,128], index: 9, kind: input, shape index: {}]   ;;  %s19375_s10 = inlined_call_operand.hbm [shape: f32[2,1,128], index: 10, kind: input, shape index: {}]   ;;  %s19376_s11 = inlined_call_operand.hbm [shape: bf16[2,128,256], index: 11, kind: input, shape index: {}]   ;;  %s19377_s12 = inlined_call_operand.hbm [shape: f32[2,1,256], index: 12, kind: input, shape index: {}]   ;;  %s19378_s13 = inlined_call_operand.hbm [shape: bf16[2,128,128], index: 13, kind: input, shape index: {}]   ;;  %s19379_s14 = inlined_call_operand.hbm [shape: f32[2,1,128], index: 14, kind: input, shape index: {}]   ;;  %s19380_s15 = inlined_call_operand.hbm [shape: bf16[2,128,128], index: 15, kind: input, shape index: {}]   ;;  %s19381_s16 = inlined_call_operand.hbm [shape: f32[2,1,128], index: 16, kind: input, shape index: {}]   ;;  %s19382_s17 = inlined_call_operand.hbm [shape: f32[2,1,128], index: 17, kind: input, shape index: {}]   ;;  %s19383_s18 = inlined_call_operand.hbm [shape: f32[2,1,128], index: 18, kind: input, shape index: {}]   ;;  %s19384_s19 = inlined_call_operand.hbm [shape: bf16[2,128,512], index: 19, kind: input, shape index: {}]   ;;  %s19385_s20 = inlined_call_operand.vmem [shape: f32[2,1,512], index: 20, kind: input, shape index: {}]   ;;  %s19386_s21 = inlined_call_operand.hbm [shape: bf16[2,512,128], index: 21, kind: input, shape index: {}]   ;;  %s19387_s22 = inlined_call_operand.hbm [shape: f32[2,1,128], index: 22, kind: input, shape index: {}]   ;;  %s19388_s23 = inlined_call_operand.hbm [shape: f32[2,1,128], index: 23, kind: input, shape index: {}]   ;;  %s19389_s24 = inlined_call_operand.hbm [shape: f32[2,1,128], index: 24, kind: input, shape index: {}]   ;;  %s19390_s25 = inlined_call_operand.vmem [shape: f32[16,128], index: 25, kind: input, shape index: {}]   ;;  %s19391_s26 = inlined_call_operand.hbm [shape: f32[128,128], index: 26, kind: input, shape index: {}]   ;;  %s19392_s27 = inlined_call_operand.vmem [shape: f32[1,128], index: 27, kind: input, shape index: {}]   ;;  %s19393_s28 = inlined_call_operand.vmem [shape: f32[16,128], index: 28, kind: output, shape index: {}]  }
   0x1   :  { %19517 = sst [smem:[#allocation97_spill]] %s19365_s0 }
   0x2   :  { %19518 = sst [smem:[#allocation98_spill]] %s19366_s1 }
   0x3   :  { %19519 = sst [smem:[#allocation99_spill]] %s19367_s2 }
   0x4   :  { %19520 = sst [smem:[#allocation100_spill]] %s19368_s3 }
   0x5   :  { %19521 = sst [smem:[#allocation101_spill]] %s19369_s4 }
   0x6   :  { %19522 = sst [smem:[#allocation102_spill]] %s19370_s5 }
   0x7   :  { %19523 = sst [smem:[#allocation103_spill]] %s19371_s6 }
   0x8   :  { %19524 = sst [smem:[#allocation104_spill]] %s19372_s7 }
   0x9   :  { %19525 = sst [smem:[#allocation105_spill]] %s19373_s8 }
   0xa   :  { %19526 = sst [smem:[#allocation106_spill]] %s19374_s9 }
   0xb   :  { %19527 = sst [smem:[#allocation107_spill]] %s19375_s10 }
   0xc   :  { %19528 = sst [smem:[#allocation108_spill]] %s19376_s11 }
   0xd   :  { %19529 = sst [smem:[#allocation109_spill]] %s19377_s12 }
   0xe   :  { %19530 = sst [smem:[#allocation110_spill]] %s19378_s13 }
   0xf   :  { %19531 = sst [smem:[#allocation111_spill]] %s19379_s14 }
  0x10   :  { %19532 = sst [smem:[#allocation112_spill]] %s19380_s15 }
  0x11   :  { %19533 = sst [smem:[#allocation113_spill]] %s19382_s17 }
  0x12   :  { %19534 = sst [smem:[#allocation114_spill]] %s19384_s19 }
  0x13   :  { %19535 = sst [smem:[#allocation115_spill]] %s19385_s20 }
  0x14   :  { %19536 = sst [smem:[#allocation116_spill]] %s19387_s22 }
  0x15   :  { %19537 = sst [smem:[#allocation117_spill]] %s19388_s23 }
  0x16   :  { %19538 = sst [smem:[#allocation118_spill]] %s19389_s24 }
  0x17   :  { %19539 = sst [smem:[#allocation119_spill]] %s19390_s25 }
  0x18   :  { %19540 = sst [smem:[#allocation120_spill]] %s19391_s26 }
  0x19   :  { %19541 = sst [smem:[#allocation121_spill]] %s19392_s27 }
  0x1a   :  { %19542 = sst [smem:[#allocation122_spill]] %s19393_s28 }
  0x1b   :  { %33 = vsyncpa [#allocation4], 0 }
  0x1c   :  { %34 = vsyncpa [#allocation6], 0 }
  0x1d   :  { %35 = vsyncpa [#allocation9], 0 }
  0x1e   :  { %37 = vsyncpa [#allocation9 + $0x1], 0 }
  0x1f   :  { %38 = vsyncpa [#allocation12], 0 }
  0x20   :  { %40 = vsyncpa [#allocation12 + $0x1], 0 }
  0x21   :  { %41 = vsyncpa [#allocation15], 0 }
  0x22   :  { %43 = vsyncpa [#allocation15 + $0x1], 0 }
  0x23   :  { %44 = vsyncpa [#allocation18], 0 }
  0x24   :  { %46 = vsyncpa [#allocation18 + $0x1], 0 }
  0x25   :  { %47 = vsyncpa [#allocation21], 0 }
  0x26   :  { %49 = vsyncpa [#allocation21 + $0x1], 0 }
  0x27   :  { %50 = vsyncpa [#allocation24], 0 }
  0x28   :  { %52 = vsyncpa [#allocation24 + $0x1], 0 }
  0x29   :  { %53 = vsyncpa [#allocation27], 0 }
  0x2a   :  { %55 = vsyncpa [#allocation27 + $0x1], 0 }
  0x2b   :  { %56 = vsyncpa [#allocation30], 0 }
  0x2c   :  { %58 = vsyncpa [#allocation30 + $0x1], 0 }
  0x2d   :  { %59 = vsyncpa [#allocation33], 0 }
  0x2e   :  { %61 = vsyncpa [#allocation33 + $0x1], 0 }
  0x2f   :  { %62 = vsyncpa [#allocation36], 0 }
  0x30   :  { %64 = vsyncpa [#allocation36 + $0x1], 0  ;;  %s14786_s8 = smov 0   ;;  %s14788_s5 = smov 0  }
  0x31   :  { %s14790_s9 = smov 0   ;;  %s14792_s30 = smov 0  }
  0x32 LB: > { %19543 = sst [smem:[#allocation51_spill]] %s14594_s5  ;;  %s14805_s3 = sadd.s32 4294967295, %s14602_s30   ;;  %s14602_s30 = sphi %s14792_s30, %s19847_s30   ;;  %s14598_s9 = sphi %s14790_s9, %s19850_s9   ;;  %s14594_s5 = sphi %s14788_s5, %s19849_s5   ;;  %s14590_s8 = sphi %s14786_s8, %s19848_s8  }
  0x33   : > { %19544 = sst [smem:[#allocation52_spill]] %s14598_s9  ;;  %s14808_s6 = sadd.s32 1, %s14602_s30  }
  0x34   : > { %19545 = sst [smem:[#allocation53_spill]] %s14805_s3  ;;  %s137_s10 = ssub.s32 %s14602_s30, %s14808_s6 }
  0x35   : > { %19546 = sst [smem:[#allocation54_spill]] %s14808_s6  ;;  %s140_s0 = sadd.s32 1, %s14598_s9 }
  0x36   : > { %p138_p0 = scmp.eq.s32.totalorder %s137_s10, 0  ;;  %p147_p1 = scmp.ne.s32.totalorder %s14598_s9, %s14594_s5 }
  0x37   : > { %p148_p2 = scmp.eq.s32.totalorder %s14602_s30, 0  ;;  %p153_p3 = scmp.ne.s32.totalorder %s14594_s5, %s14590_s8 }
  0x38   : > { %s14818_s11 = scalar_select %p138_p0, %s14598_s9, %s140_s0  }
  0x39   : > { %p14820_p4 = por %p148_p2, %p147_p1  ;;  %p19409_p5 = scmp.eq.s32.totalorder %s14805_s3, 0 }
  0x3a   : > { %19547 = sst [smem:[#allocation55_spill]] %s14818_s11  ;;  %p11156_p6 = scmp.ge.s32.totalorder %s14602_s30, 1 }
  0x3b   : > { %p794_p7 = scmp.lt.s32.totalorder %s14602_s30, 3  ;;  %p14829_p8 = por %p19409_p5, %p153_p3 }
  0x3c   : > { %s14604_s12 = smov [#allocation5]   ;;  %s14605_s8 = smov [#allocation3]  }
  0x3d   : > { %s19549_s2 = scalar_select %p14829_p8, 1, 0 }
  0x3e   : > { %p14834_p10 = pnand %p11156_p6, %p794_p7  ;;  %s819_s1 = sshll.u32 %s14604_s12, 4  ;;  %s820_s1 = int_to_ptr.vmem [resolvable:$true] %s819_s1 }
  0x3f   : > { %19550 = sst [smem:[#allocation56_spill]] %s19549_s2  ;;  %s806_s10 = sshll.u32 %s14605_s8, 4  ;;  %s807_s10 = int_to_ptr.vmem [resolvable:$true] %s806_s10 }
  0x40   : > { %s19551_s7 = scalar_select %p14834_p10, 1, 0 }
  0x41   : > { %p13071_p11 = pneg %p14834_p10  ;;  %s14606_s0 = smov [#allocation7]  }
  0x42   : > { %19552 = sst [smem:[#allocation57_spill]] %s19551_s7  ;;  %s832_s11 = sshll.u32 %s14606_s0, 4  ;;  %s833_s11 = int_to_ptr.vmem [resolvable:$true] %s832_s11 }
  0x43   : > { %p14842_p12 = pnand %p13071_p11, %p19409_p5  ;;  %s13933_s6 = scalar_lea.vmem %s820_s1, 2048 }
  0x44   : > { %p13934_p0 = scmp.ne.s32.totalorder %s820_s1, %s13933_s6  ;;  %p13941_p3 = scmp.lt.s32.totalorder %s820_s1, %s820_s1 }
  0x45   : > { %p13924_p13 = pneg %p14842_p12  ;;  %p13942_p6 = scmp.lt.s32.totalorder %s13933_s6, %s13933_s6 }
  0x47   : > { %p13936_p1 = pnand %p13934_p0, %p13924_p13  ;;  %p13943_p7 = por %p13942_p6, %p13941_p3 }
  0x49   : > { %p13937_p2 = pneg %p13936_p1 }
  0x4b   : > { %p13944_p11 = pnand %p13943_p7, %p13937_p2 }
  0x4d   : > { %13947 = shalt.err (!%p13944_p11)
}
  0x4e   : > { %s14607_s12 = smov 128   ;;  %s14608_s8 = smov 8  }
  0x4f   : > { %s19554_s27 = sld [smem:[#allocation98_spill]]  ;;  %s13959_s25 = scalar_lea.vmem %s807_s10, 2048 }
  0x50   : > { %p13960_p0 = scmp.ne.s32.totalorder %s807_s10, %s13959_s25  ;;  %p13967_p2 = scmp.lt.s32.totalorder %s807_s10, %s807_s10 }
  0x51   : > { %p13968_p6 = scmp.lt.s32.totalorder %s13959_s25, %s13959_s25 }
  0x52   : > { %p13962_p1 = pnand %p13960_p0, %p13924_p13 }
  0x53   : > { %p13969_p7 = por %p13968_p6, %p13967_p2 }
  0x54   : > { %p13963_p3 = pneg %p13962_p1 }
  0x55   : > { %13077 = dma.hbm_to_vmem [thread:$0]  (!%p14842_p12), %s19554_s27, 2048, %s820_s1, [#allocation6], %s14607_s12, %s14607_s12, %s14608_s8  }
  0x56   : > { %p13970_p11 = pnand %p13969_p7, %p13963_p3 }
  0x58   : > { %13973 = shalt.err (!%p13970_p11)
}
  0x59   : > { %s19555_s28 = sld [smem:[#allocation97_spill]]  ;;  %s13985_s27 = scalar_lea.vmem %s833_s11, 1024 }
  0x5a   : > { %p13986_p9 = scmp.ne.s32.totalorder %s833_s11, %s13985_s27  ;;  %p13993_p2 = scmp.lt.s32.totalorder %s833_s11, %s833_s11 }
  0x5b   : > { %p13994_p3 = scmp.lt.s32.totalorder %s13985_s27, %s13985_s27 }
  0x5c   : > { %p13988_p0 = pnand %p13986_p9, %p13924_p13 }
  0x5d   : > { %p13995_p6 = por %p13994_p3, %p13993_p2 }
  0x5e   : > { %p13989_p1 = pneg %p13988_p0 }
  0x5f   : > { %13074 = dma.hbm_to_vmem [thread:$0]  (!%p14842_p12), %s19555_s28, 2048, %s807_s10, [#allocation4], %s14607_s12, %s14607_s12, %s14608_s8  }
  0x60   : > { %p13996_p7 = pnand %p13995_p6, %p13989_p1 }
  0x62   : > { %13999 = shalt.err (!%p13996_p7)
}
  0x63   : > { %s19556_s1 = sld [smem:[#allocation99_spill]]  ;;  %s14609_s10 = smov [#allocation37]  }
  0x64   : > { %s848_s0 = sshll.u32 %s14609_s10, 4  ;;  %s849_s0 = int_to_ptr.vmem [resolvable:$true] %s848_s0 }
  0x65   : > { %s14011_s6 = scalar_lea.vmem %s849_s0, 2048  ;;  %p14019_p1 = scmp.lt.s32.totalorder %s849_s0, %s849_s0 }
  0x66   : > { %p14012_p9 = scmp.ne.s32.totalorder %s849_s0, %s14011_s6  ;;  %p14020_p2 = scmp.lt.s32.totalorder %s14011_s6, %s14011_s6 }
  0x68   : > { %p14014_p11 = pnand %p14012_p9, %p13924_p13  ;;  %p14021_p3 = por %p14020_p2, %p14019_p1 }
  0x69   : > { %13080 = dma.hbm_to_vmem [thread:$0]  (!%p14842_p12), %s19556_s1, 1024, %s833_s11, [#allocation6], %s14607_s12, %s14607_s12, %s14608_s8  }
  0x6a   : > { %p14015_p0 = pneg %p14014_p11 }
  0x6c   : > { %p14022_p6 = pnand %p14021_p3, %p14015_p0 }
  0x6e   : > { %14025 = shalt.err (!%p14022_p6)
}
  0x6f   : > { %s19557_s26 = sld [smem:[#allocation120_spill]]  ;;  %p11161_p7 = scmp.ge.s32.totalorder %s14602_s30, 2 }
  0x70   : > { %s14894_s27 = sand.u32 (!%p11161_p7), 1, %s14602_s30   ;;  %s14897_s20 = sand.u32 (!%p11161_p7), 1, %s14598_s9  }
  0x71   : > { %861 = sbr.rel (%p11161_p7) target bundleno = 630 (0x276), region = 40  ;;  %s19558_s6 = sld [smem:[#allocation100_spill]] (!%p11161_p7) }
  0x72   : > { %s13013_s4 = smul.u32 (!%p11161_p7), 192, %s14897_s20 }
  0x73   : > { %s13014_s25 = smul.u32 (!%p11161_p7), 3072, %s14602_s30 }
  0x75   : > { %13083 = dma.hbm_to_vmem [thread:$0]  (!%p14842_p12), %s19557_s26, 2048, %s849_s0, [#allocation36], %s14607_s12, %s14607_s12, %s14608_s8  }
  0x76   : > { %s869_s12 = scalar_lea.vmem [#allocation8], %s13013_s4  ;;  %s19415_s0 = scalar_lea.sflag [#allocation9], %s14894_s27 }
  0x77   : > { %s14904_s11 = scalar_lea.hbm %s19558_s6, %s13014_s25  ;;  %s876_s8 = sshll.u32 %s869_s12, 4  ;;  %s14906_s8 = int_to_ptr.vmem [resolvable:$true] %s876_s8 }
  0x78   : > { %s14026_s28 = scalar_lea.hbm %s14904_s11, 3072  ;;  %s14030_s2 = scalar_lea.hbm %s19558_s6, 6144 }
  0x79   : > { %p14027_p12 = scmp.ne.s32.totalorder %s14904_s11, %s14026_s28  ;;  %p14031_p11 = scmp.lt.s32.totalorder %s14904_s11, %s19558_s6 }
  0x7a   : > { %p14032_p0 = scmp.lt.s32.totalorder %s14030_s2, %s14026_s28 }
  0x7b   : > { %p14028_p13 = pnand %p14027_p12, %p14820_p4 }
  0x7c   : > { %p14033_p1 = por %p14032_p0, %p14031_p11 }
  0x7d   : > { %p14029_p9 = pneg %p14028_p13 }
  0x7f   : > { %p14034_p2 = pnand %p14033_p1, %p14029_p9 }
  0x81   : > { %14037 = shalt.err (!%p14034_p2)
}
  0x82   : > { %s14038_s4 = scalar_lea.vmem %s14906_s8, 3072  ;;  %s14610_s10 = smov [#allocation8]  }
  0x83   : > { %p14039_p3 = scmp.ne.s32.totalorder %s14906_s8, %s14038_s4  ;;  %s14042_s26 = sshll.u32 %s14610_s10, 4  ;;  %s14043_s26 = int_to_ptr.vmem [resolvable:$false] %s14042_s26 }
  0x84   : > { %s14044_s9 = scalar_lea.vmem %s14043_s26, 6144  ;;  %p14045_p12 = scmp.lt.s32.totalorder %s14906_s8, %s14043_s26 }
  0x85   : > { %p14040_p6 = pnand %p14039_p3, %p14820_p4  ;;  %p14046_p13 = scmp.lt.s32.totalorder %s14044_s9, %s14038_s4 }
  0x87   : > { %p14041_p7 = pneg %p14040_p6  ;;  %p14047_p5 = por %p14046_p13, %p14045_p12 }
  0x89   : > { %p14048_p8 = pnand %p14047_p5, %p14041_p7 }
  0x8b   : > { %14051 = shalt.err (!%p14048_p8)
}
  0x8c   : > { %s14611_s2 = smov 192   ;;  %s14612_s12 = smov 12  }
  0x8d   : > { %13025 = dma.hbm_to_vmem [thread:$0]  (%p14820_p4), %s14904_s11, 3072, %s14906_s8, %s19415_s0, %s14611_s2, %s14611_s2, %s14612_s12  }
  0x8e   : > { %s14932_s28 = sshll.u32 %s14602_s30, 4  ;;  %s19559_s4 = sld [smem:[#allocation104_spill]] }
  0x8f   : > { %s923_s26 = scalar_lea.vmem [#allocation11], %s14897_s20  ;;  %s14942_s6 = sshll.u32 %s14897_s20, 6 }
  0x90   : > { %s930_s9 = sshll.u32 %s923_s26, 4  ;;  %s931_s9 = int_to_ptr.vmem [resolvable:$true] %s930_s9 }
  0x94   : > { %s14938_s10 = scalar_lea.hbm %s19559_s4, %s14932_s28  ;;  %s14056_s2 = scalar_lea.hbm %s19559_s4, 32 }
  0x95   : > { %s14052_s3 = scalar_lea.hbm %s14938_s10, 16  ;;  %p14057_p11 = scmp.lt.s32.totalorder %s14938_s10, %s19559_s4 }
  0x96   : > { %p14053_p5 = scmp.ne.s32.totalorder %s14938_s10, %s14052_s3  ;;  %p14058_p0 = scmp.lt.s32.totalorder %s14056_s2, %s14052_s3 }
  0x98   : > { %p14054_p8 = pnand %p14053_p5, %p14820_p4  ;;  %p14059_p1 = por %p14058_p0, %p14057_p11 }
  0x9a   : > { %p14055_p9 = pneg %p14054_p8 }
  0x9c   : > { %p14060_p2 = pnand %p14059_p1, %p14055_p9 }
  0x9e   : > { %14063 = shalt.err (!%p14060_p2)
}
  0x9f   : > { %s14064_s25 = scalar_lea.vmem %s931_s9, 16  ;;  %s14613_s26 = smov [#allocation11]  }
  0xa0   : > { %p14065_p3 = scmp.ne.s32.totalorder %s931_s9, %s14064_s25  ;;  %s14068_s0 = sshll.u32 %s14613_s26, 4  ;;  %s14069_s0 = int_to_ptr.vmem [resolvable:$false] %s14068_s0 }
  0xa1   : > { %s14070_s5 = scalar_lea.vmem %s14069_s0, 32  ;;  %p14071_p12 = scmp.lt.s32.totalorder %s931_s9, %s14069_s0 }
  0xa2   : > { %p14066_p6 = pnand %p14065_p3, %p14820_p4  ;;  %p14072_p13 = scmp.lt.s32.totalorder %s14070_s5, %s14064_s25 }
  0xa4   : > { %p14067_p7 = pneg %p14066_p6  ;;  %p14073_p5 = por %p14072_p13, %p14071_p12 }
  0xa6   : > { %p14074_p8 = pnand %p14073_p5, %p14067_p7 }
  0xa8   : > { %14077 = shalt.err (!%p14074_p8)
}
  0xa9   : > { %s19560_s3 = scalar_lea.sflag [#allocation12], %s14894_s27  ;;  %s14964_s11 = sshll.u32 %s14602_s30, 10 }
  0xaa   : > { %13027 = dma.hbm_to_vmem [thread:$0]  (%p14820_p4), %s14938_s10, 16, %s931_s9, %s19560_s3  }
  0xab   : > { %s19561_s5 = sld [smem:[#allocation106_spill]]  ;;  %s958_s1 = scalar_lea.vmem [#allocation14], %s14942_s6 }
  0xac   : > { %s965_s25 = sshll.u32 %s958_s1, 4  ;;  %s11172_s26 = sshll.u32 %s14897_s20, 7  ;;  %s14973_s25 = int_to_ptr.vmem [resolvable:$true] %s965_s25 }
  0xad   : > { %s19421_s4 = scalar_lea.sflag [#allocation15], %s14894_s27 }
  0xb1   : > { %s19562_s2 = smov %s19561_s5  ;;  %s14970_s12 = scalar_lea.hbm %s19561_s5, %s14964_s11 }
  0xb2   : > { %s14078_s7 = scalar_lea.hbm %s14970_s12, 1024  ;;  %s14082_s3 = scalar_lea.hbm %s19562_s2, 2048 }
  0xb3   : > { %p14079_p9 = scmp.ne.s32.totalorder %s14970_s12, %s14078_s7  ;;  %p14083_p1 = scmp.lt.s32.totalorder %s14970_s12, %s19562_s2 }
  0xb4   : > { %p14084_p2 = scmp.lt.s32.totalorder %s14082_s3, %s14078_s7 }
  0xb5   : > { %p14080_p11 = pnand %p14079_p9, %p14820_p4 }
  0xb6   : > { %p14085_p3 = por %p14084_p2, %p14083_p1 }
  0xb7   : > { %p14081_p0 = pneg %p14080_p11 }
  0xb9   : > { %p14086_p6 = pnand %p14085_p3, %p14081_p0 }
  0xbb   : > { %14089 = shalt.err (!%p14086_p6)
}
  0xbc   : > { %s14090_s5 = scalar_lea.vmem %s14973_s25, 1024  ;;  %s14614_s1 = smov [#allocation14]  }
  0xbd   : > { %p14091_p7 = scmp.ne.s32.totalorder %s14973_s25, %s14090_s5  ;;  %s14094_s10 = sshll.u32 %s14614_s1, 4  ;;  %s14095_s10 = int_to_ptr.vmem [resolvable:$false] %s14094_s10 }
  0xbe   : > { %s14096_s9 = scalar_lea.vmem %s14095_s10, 2048  ;;  %p14097_p5 = scmp.lt.s32.totalorder %s14973_s25, %s14095_s10 }
  0xbf   : > { %p14092_p12 = pnand %p14091_p7, %p14820_p4  ;;  %p14098_p8 = scmp.lt.s32.totalorder %s14096_s9, %s14090_s5 }
  0xc1   : > { %p14093_p13 = pneg %p14092_p12  ;;  %p14099_p9 = por %p14098_p8, %p14097_p5 }
  0xc3   : > { %p14100_p11 = pnand %p14099_p9, %p14093_p13 }
  0xc5   : > { %14103 = shalt.err (!%p14100_p11)
}
  0xc6   : > { %s19422_s7 = smov 64   ;;  %s19427_s3 = smov 4  }
  0xc7   : > { %13029 = dma.hbm_to_vmem [thread:$0]  (%p14820_p4), %s14970_s12, 1024, %s14973_s25, %s19421_s4, %s19422_s7, %s19422_s7, %s19427_s3  }
  0xc8   : > { %s11557_s8 = sshll.u32 %s14602_s30, 11  ;;  %s19563_s1 = sld [smem:[#allocation108_spill]] }
  0xc9   : > { %s996_s9 = scalar_lea.vmem [#allocation17], %s11172_s26  ;;  %s19425_s24 = scalar_lea.sflag [#allocation18], %s14894_s27 }
  0xca   : > { %s1003_s2 = sshll.u32 %s996_s9, 4  ;;  %s15010_s2 = int_to_ptr.vmem [resolvable:$true] %s1003_s2 }
  0xce   : > { %s15006_s10 = scalar_lea.hbm %s19563_s1, %s11557_s8  ;;  %s14108_s0 = scalar_lea.hbm %s19563_s1, 4096 }
  0xcf   : > { %s14104_s23 = scalar_lea.hbm %s15006_s10, 2048  ;;  %p14109_p3 = scmp.lt.s32.totalorder %s15006_s10, %s19563_s1 }
  0xd0   : > { %p14105_p0 = scmp.ne.s32.totalorder %s15006_s10, %s14104_s23  ;;  %p14110_p6 = scmp.lt.s32.totalorder %s14108_s0, %s14104_s23 }
  0xd2   : > { %p14106_p1 = pnand %p14105_p0, %p14820_p4  ;;  %p14111_p7 = por %p14110_p6, %p14109_p3 }
  0xd4   : > { %p14107_p2 = pneg %p14106_p1 }
  0xd6   : > { %p14112_p12 = pnand %p14111_p7, %p14107_p2 }
  0xd8   : > { %14115 = shalt.err (!%p14112_p12)
}
  0xd9   : > { %s14116_s26 = scalar_lea.vmem %s15010_s2, 2048  ;;  %s14617_s9 = smov [#allocation17]  }
  0xda   : > { %p14117_p13 = scmp.ne.s32.totalorder %s15010_s2, %s14116_s26  ;;  %s14120_s12 = sshll.u32 %s14617_s9, 4  ;;  %s14121_s12 = int_to_ptr.vmem [resolvable:$false] %s14120_s12 }
  0xdb   : > { %s14122_s25 = scalar_lea.vmem %s14121_s12, 4096  ;;  %p14123_p9 = scmp.lt.s32.totalorder %s15010_s2, %s14121_s12 }
  0xdc   : > { %p14118_p5 = pnand %p14117_p13, %p14820_p4  ;;  %p14124_p11 = scmp.lt.s32.totalorder %s14122_s25, %s14116_s26 }
  0xde   : > { %p14119_p8 = pneg %p14118_p5  ;;  %p14125_p0 = por %p14124_p11, %p14123_p9 }
  0xe0   : > { %p14126_p1 = pnand %p14125_p0, %p14119_p8 }
  0xe2   : > { %14129 = shalt.err (!%p14126_p1)
}
  0xe3   : > { %s14618_s23 = smov 128   ;;  %s14619_s0 = smov 8  }
  0xe4   : > { %13031 = dma.hbm_to_vmem [thread:$0]  (%p14820_p4), %s15006_s10, 2048, %s15010_s2, %s19425_s24, %s14618_s23, %s14618_s23, %s14619_s0  }
  0xe5   : > { %s19564_s13 = sld [smem:[#allocation110_spill]]  ;;  %s1036_s9 = scalar_lea.vmem [#allocation20], %s14942_s6 }
  0xe6   : > { %s1043_s12 = sshll.u32 %s1036_s9, 4  ;;  %s19424_s25 = scalar_lea.sflag [#allocation21], %s14894_s27  ;;  %s15042_s12 = int_to_ptr.vmem [resolvable:$true] %s1043_s12 }
  0xeb   : > { %s15039_s26 = scalar_lea.hbm %s19564_s13, %s14964_s11  ;;  %s14134_s10 = scalar_lea.hbm %s19564_s13, 2048 }
  0xec   : > { %s14130_s4 = scalar_lea.hbm %s15039_s26, 1024  ;;  %p14135_p7 = scmp.lt.s32.totalorder %s15039_s26, %s19564_s13 }
  0xed   : > { %p14131_p2 = scmp.ne.s32.totalorder %s15039_s26, %s14130_s4  ;;  %p14136_p12 = scmp.lt.s32.totalorder %s14134_s10, %s14130_s4 }
  0xef   : > { %p14132_p3 = pnand %p14131_p2, %p14820_p4  ;;  %p14137_p13 = por %p14136_p12, %p14135_p7 }
  0xf1   : > { %p14133_p6 = pneg %p14132_p3 }
  0xf3   : > { %p14138_p5 = pnand %p14137_p13, %p14133_p6 }
  0xf5   : > { %14141 = shalt.err (!%p14138_p5)
}
  0xf6   : > { %s14142_s8 = scalar_lea.vmem %s15042_s12, 1024  ;;  %s14620_s5 = smov [#allocation20]  }
  0xf7   : > { %p14143_p8 = scmp.ne.s32.totalorder %s15042_s12, %s14142_s8  ;;  %s14146_s7 = sshll.u32 %s14620_s5, 4  ;;  %s14147_s7 = int_to_ptr.vmem [resolvable:$false] %s14146_s7 }
  0xf8   : > { %s14148_s9 = scalar_lea.vmem %s14147_s7, 2048  ;;  %p14149_p0 = scmp.lt.s32.totalorder %s15042_s12, %s14147_s7 }
  0xf9   : > { %p14144_p9 = pnand %p14143_p8, %p14820_p4  ;;  %p14150_p1 = scmp.lt.s32.totalorder %s14148_s9, %s14142_s8 }
  0xfb   : > { %p14145_p11 = pneg %p14144_p9  ;;  %p14151_p2 = por %p14150_p1, %p14149_p0 }
  0xfd   : > { %p14152_p3 = pnand %p14151_p2, %p14145_p11 }
  0xff   : > { %14155 = shalt.err (!%p14152_p3)
}
 0x100   : > { %s19565_s4 = smov 64   ;;  %s19566_s15 = sld [smem:[#allocation112_spill]] }
 0x101   : > { %13033 = dma.hbm_to_vmem [thread:$0]  (%p14820_p4), %s15039_s26, 1024, %s15042_s12, %s19424_s25, %s19565_s4, %s19565_s4, %s19427_s3  }
 0x102   : > { %s1074_s0 = scalar_lea.vmem [#allocation23], %s14942_s6  ;;  %s19426_s5 = scalar_lea.sflag [#allocation24], %s14894_s27 }
 0x103   : > { %s1081_s8 = sshll.u32 %s1074_s0, 4  ;;  %s15077_s8 = int_to_ptr.vmem [resolvable:$true] %s1081_s8 }
 0x106   : > { %s15074_s23 = scalar_lea.hbm %s19566_s15, %s14964_s11  ;;  %s14160_s12 = scalar_lea.hbm %s19566_s15, 2048 }
 0x107   : > { %s14156_s7 = scalar_lea.hbm %s15074_s23, 1024  ;;  %p14161_p13 = scmp.lt.s32.totalorder %s15074_s23, %s19566_s15 }
 0x108   : > { %p14157_p6 = scmp.ne.s32.totalorder %s15074_s23, %s14156_s7  ;;  %p14162_p5 = scmp.lt.s32.totalorder %s14160_s12, %s14156_s7 }
 0x10a   : > { %p14158_p7 = pnand %p14157_p6, %p14820_p4  ;;  %p14163_p8 = por %p14162_p5, %p14161_p13 }
 0x10c   : > { %p14159_p12 = pneg %p14158_p7 }
 0x10e   : > { %p14164_p9 = pnand %p14163_p8, %p14159_p12 }
 0x110   : > { %14167 = shalt.err (!%p14164_p9)
}
 0x111   : > { %s14168_s0 = scalar_lea.vmem %s15077_s8, 1024  ;;  %s14621_s25 = smov [#allocation23]  }
 0x112   : > { %p14169_p11 = scmp.ne.s32.totalorder %s15077_s8, %s14168_s0  ;;  %s14172_s9 = sshll.u32 %s14621_s25, 4  ;;  %s14173_s9 = int_to_ptr.vmem [resolvable:$false] %s14172_s9 }
 0x113   : > { %s14174_s26 = scalar_lea.vmem %s14173_s9, 2048  ;;  %p14175_p2 = scmp.lt.s32.totalorder %s15077_s8, %s14173_s9 }
 0x114   : > { %p14170_p0 = pnand %p14169_p11, %p14820_p4  ;;  %p14176_p3 = scmp.lt.s32.totalorder %s14174_s26, %s14168_s0 }
 0x116   : > { %p14171_p1 = pneg %p14170_p0  ;;  %p14177_p6 = por %p14176_p3, %p14175_p2 }
 0x118   : > { %p14178_p7 = pnand %p14177_p6, %p14171_p1 }
 0x11a   : > { %14181 = shalt.err (!%p14178_p7)
}
 0x11b   : > { %13035 = dma.hbm_to_vmem [thread:$0]  (%p14820_p4), %s15074_s23, 1024, %s15077_s8, %s19426_s5, %s19565_s4, %s19565_s4, %s19427_s3  }
 0x11c   : > { %s19567_s17 = sld [smem:[#allocation113_spill]]  ;;  %s1111_s2 = scalar_lea.vmem [#allocation26], %s14897_s20 }
 0x11d   : > { %s1118_s10 = sshll.u32 %s1111_s2, 4  ;;  %s19429_s9 = scalar_lea.sflag [#allocation27], %s14894_s27  ;;  %s1119_s10 = int_to_ptr.vmem [resolvable:$true] %s1118_s10 }
 0x122   : > { %s15109_s12 = scalar_lea.hbm %s19567_s17, %s14932_s28  ;;  %s14186_s8 = scalar_lea.hbm %s19567_s17, 32 }
 0x123   : > { %s14182_s26 = scalar_lea.hbm %s15109_s12, 16  ;;  %p14187_p8 = scmp.lt.s32.totalorder %s15109_s12, %s19567_s17 }
 0x124   : > { %p14183_p12 = scmp.ne.s32.totalorder %s15109_s12, %s14182_s26  ;;  %p14188_p9 = scmp.lt.s32.totalorder %s14186_s8, %s14182_s26 }
 0x126   : > { %p14184_p13 = pnand %p14183_p12, %p14820_p4  ;;  %p14189_p11 = por %p14188_p9, %p14187_p8 }
 0x128   : > { %p14185_p5 = pneg %p14184_p13 }
 0x12a   : > { %p14190_p0 = pnand %p14189_p11, %p14185_p5 }
 0x12c   : > { %14193 = shalt.err (!%p14190_p0)
}
 0x12d   : > { %s14194_s2 = scalar_lea.vmem %s1119_s10, 16  ;;  %s14622_s5 = smov [#allocation26]  }
 0x12e   : > { %p14195_p1 = scmp.ne.s32.totalorder %s1119_s10, %s14194_s2  ;;  %s14198_s3 = sshll.u32 %s14622_s5, 4  ;;  %s14199_s3 = int_to_ptr.vmem [resolvable:$false] %s14198_s3 }
 0x12f   : > { %s14200_s0 = scalar_lea.vmem %s14199_s3, 32  ;;  %p14201_p6 = scmp.lt.s32.totalorder %s1119_s10, %s14199_s3 }
 0x130   : > { %p14196_p2 = pnand %p14195_p1, %p14820_p4  ;;  %p14202_p7 = scmp.lt.s32.totalorder %s14200_s0, %s14194_s2 }
 0x132   : > { %p14197_p3 = pneg %p14196_p2  ;;  %p14203_p12 = por %p14202_p7, %p14201_p6 }
 0x134   : > { %p14204_p13 = pnand %p14203_p12, %p14197_p3 }
 0x136   : > { %14207 = shalt.err (!%p14204_p13)
}
 0x137   : > { %13037 = dma.hbm_to_vmem [thread:$0]  (%p14820_p4), %s15109_s12, 16, %s1119_s10, %s19429_s9  }
 0x138   : > { %s11561_s24 = sshll.u32 %s14602_s30, 12  ;;  %s19568_s19 = sld [smem:[#allocation114_spill]] }
 0x139   : > { %s19569_s0 = sshll.u32 %s14897_s20, 8  ;;  %s19431_s25 = scalar_lea.sflag [#allocation30], %s14894_s27 }
 0x13a   : > { %s1146_s23 = scalar_lea.vmem [#allocation29], %s19569_s0 }
 0x13b   : > { %s1153_s8 = sshll.u32 %s1146_s23, 4  ;;  %s15142_s8 = int_to_ptr.vmem [resolvable:$true] %s1153_s8 }
 0x13e   : > { %s15138_s3 = scalar_lea.hbm %s19568_s19, %s11561_s24  ;;  %s14212_s2 = scalar_lea.hbm %s19568_s19, 8192 }
 0x13f   : > { %s14208_s7 = scalar_lea.hbm %s15138_s3, 4096  ;;  %p14213_p11 = scmp.lt.s32.totalorder %s15138_s3, %s19568_s19 }
 0x140   : > { %p14209_p5 = scmp.ne.s32.totalorder %s15138_s3, %s14208_s7  ;;  %p14214_p0 = scmp.lt.s32.totalorder %s14212_s2, %s14208_s7 }
 0x142   : > { %p14210_p8 = pnand %p14209_p5, %p14820_p4  ;;  %p14215_p1 = por %p14214_p0, %p14213_p11 }
 0x144   : > { %p14211_p9 = pneg %p14210_p8 }
 0x146   : > { %p14216_p2 = pnand %p14215_p1, %p14211_p9 }
 0x148   : > { %14219 = shalt.err (!%p14216_p2)
}
 0x149   : > { %s14220_s0 = scalar_lea.vmem %s15142_s8, 4096  ;;  %s14623_s23 = smov [#allocation29]  }
 0x14a   : > { %p14221_p3 = scmp.ne.s32.totalorder %s15142_s8, %s14220_s0  ;;  %s14224_s12 = sshll.u32 %s14623_s23, 4  ;;  %s14225_s12 = int_to_ptr.vmem [resolvable:$false] %s14224_s12 }
 0x14b   : > { %s14226_s10 = scalar_lea.vmem %s14225_s12, 8192  ;;  %p14227_p12 = scmp.lt.s32.totalorder %s15142_s8, %s14225_s12 }
 0x14c   : > { %p14222_p6 = pnand %p14221_p3, %p14820_p4  ;;  %p14228_p13 = scmp.lt.s32.totalorder %s14226_s10, %s14220_s0 }
 0x14e   : > { %p14223_p7 = pneg %p14222_p6  ;;  %p14229_p5 = por %p14228_p13, %p14227_p12 }
 0x150   : > { %p14230_p8 = pnand %p14229_p5, %p14223_p7 }
 0x152   : > { %14233 = shalt.err (!%p14230_p8)
}
 0x153   : > { %s14624_s7 = smov 256   ;;  %s14625_s2 = smov 16  }
 0x154   : > { %13039 = dma.hbm_to_vmem [thread:$0]  (%p14820_p4), %s15138_s3, 4096, %s15142_s8, %s19431_s25, %s14624_s7, %s14624_s7, %s14625_s2  }
 0x155   : > { %s15172_s0 = scalar_lea.hbm %s19386_s21, %s11561_s24  ;;  %s19570_s23 = sshll.u32 %s14897_s20, 8 }
 0x156   : > { %s15176_s12 = scalar_lea.vmem [#allocation31], %s19570_s23  ;;  %s19571_s22 = sld [smem:[#allocation116_spill]] }
 0x157   : > { %s1194_s3 = scalar_lea.vmem [#allocation32], %s14897_s20  ;;  %s19432_s7 = scalar_lea.sflag [#allocation33], %s14894_s27 }
 0x158   : > { %s1201_s8 = sshll.u32 %s1194_s3, 4  ;;  %s1202_s8 = int_to_ptr.vmem [resolvable:$true] %s1201_s8 }
 0x15c   : > { %s15183_s13 = scalar_lea.hbm %s19571_s22, %s14932_s28  ;;  %s14238_s26 = scalar_lea.hbm %s19571_s22, 32 }
 0x15d   : > { %s14234_s2 = scalar_lea.hbm %s15183_s13, 16  ;;  %p14239_p1 = scmp.lt.s32.totalorder %s15183_s13, %s19571_s22 }
 0x15e   : > { %p14235_p9 = scmp.ne.s32.totalorder %s15183_s13, %s14234_s2  ;;  %p14240_p2 = scmp.lt.s32.totalorder %s14238_s26, %s14234_s2 }
 0x160   : > { %p14236_p11 = pnand %p14235_p9, %p14820_p4  ;;  %p14241_p3 = por %p14240_p2, %p14239_p1 }
 0x162   : > { %p14237_p0 = pneg %p14236_p11 }
 0x164   : > { %p14242_p6 = pnand %p14241_p3, %p14237_p0 }
 0x166   : > { %14245 = shalt.err (!%p14242_p6)
}
 0x167   : > { %s14246_s9 = scalar_lea.vmem %s1202_s8, 16  ;;  %s14626_s3 = smov [#allocation32]  }
 0x168   : > { %p14247_p7 = scmp.ne.s32.totalorder %s1202_s8, %s14246_s9  ;;  %s14250_s25 = sshll.u32 %s14626_s3, 4  ;;  %s14251_s25 = int_to_ptr.vmem [resolvable:$false] %s14250_s25 }
 0x169   : > { %s14252_s10 = scalar_lea.vmem %s14251_s25, 32  ;;  %p14253_p5 = scmp.lt.s32.totalorder %s1202_s8, %s14251_s25 }
 0x16a   : > { %p14248_p12 = pnand %p14247_p7, %p14820_p4  ;;  %p14254_p8 = scmp.lt.s32.totalorder %s14252_s10, %s14246_s9 }
 0x16c   : > { %p14249_p13 = pneg %p14248_p12  ;;  %p14255_p9 = por %p14254_p8, %p14253_p5 }
 0x16e   : > { %p14256_p11 = pnand %p14255_p9, %p14249_p13 }
 0x170   : > { %14259 = shalt.err (!%p14256_p11)
}
 0x171   : > { %13041 = dma.hbm_to_vmem [thread:$0]  (%p14820_p4), %s15183_s13, 16, %s1202_s8, %s19432_s7  }
 0x172   : > { %s19572_s5 = sld [smem:[#allocation102_spill]]  ;;  %s897_s25 = scalar_lea.vmem [#allocation10], %s14942_s6 }
 0x173   : > { %s904_s10 = sshll.u32 %s897_s25, 4  ;;  %s905_s10 = int_to_ptr.vmem [resolvable:$true] %s904_s10 }
 0x178   : > { %s19573_s26 = smov %s19572_s5  ;;  %s15209_s23 = scalar_lea.hbm %s19572_s5, %s14964_s11 }
 0x179   : > { %s14260_s1 = scalar_lea.hbm %s15209_s23, 1024  ;;  %s14264_s13 = scalar_lea.hbm %s19573_s26, 2048 }
 0x17a   : > { %p14261_p0 = scmp.ne.s32.totalorder %s15209_s23, %s14260_s1  ;;  %p14265_p3 = scmp.lt.s32.totalorder %s15209_s23, %s19573_s26 }
 0x17b   : > { %p14266_p6 = scmp.lt.s32.totalorder %s14264_s13, %s14260_s1 }
 0x17c   : > { %p14262_p1 = pnand %p14261_p0, %p14820_p4 }
 0x17d   : > { %p14267_p7 = por %p14266_p6, %p14265_p3 }
 0x17e   : > { %p14263_p2 = pneg %p14262_p1 }
 0x180   : > { %p14268_p12 = pnand %p14267_p7, %p14263_p2 }
 0x182   : > { %14271 = shalt.err (!%p14268_p12)
}
 0x183   : > { %s14272_s6 = scalar_lea.vmem %s905_s10, 1024  ;;  %s14627_s11 = smov [#allocation10]  }
 0x184   : > { %p14273_p13 = scmp.ne.s32.totalorder %s905_s10, %s14272_s6  ;;  %s14276_s2 = sshll.u32 %s14627_s11, 4  ;;  %s14277_s2 = int_to_ptr.vmem [resolvable:$false] %s14276_s2 }
 0x185   : > { %s14278_s24 = scalar_lea.vmem %s14277_s2, 2048  ;;  %p14279_p9 = scmp.lt.s32.totalorder %s905_s10, %s14277_s2 }
 0x186   : > { %p14274_p5 = pnand %p14273_p13, %p14820_p4  ;;  %p14280_p11 = scmp.lt.s32.totalorder %s14278_s24, %s14272_s6 }
 0x188   : > { %p14275_p8 = pneg %p14274_p5  ;;  %p14281_p0 = por %p14280_p11, %p14279_p9 }
 0x18a   : > { %p14282_p1 = pnand %p14281_p0, %p14275_p8 }
 0x18c   : > { %14285 = shalt.err (!%p14282_p1)
}
 0x18d   : > { %s19574_s7 = smov 4   ;;  %s19575_s5 = scalar_lea.sflag [#allocation9], %s14894_s27 }
 0x18e   : > { %13026 = dma.hbm_to_vmem [thread:$0]  (%p14820_p4), %s15209_s23, 1024, %s905_s10, %s19575_s5, %s19565_s4, %s19565_s4, %s19574_s7  }
 0x18f   : > { %s19576_s9 = sld [smem:[#allocation105_spill]]  ;;  %s940_s8 = scalar_lea.vmem [#allocation13], %s14897_s20 }
 0x190   : > { %s947_s6 = sshll.u32 %s940_s8, 4  ;;  %s948_s6 = int_to_ptr.vmem [resolvable:$true] %s947_s6 }
 0x195   : > { %s19577_s3 = smov %s19576_s9  ;;  %s945_s13 = scalar_lea.hbm %s19576_s9, %s14932_s28 }
 0x196   : > { %s14286_s11 = scalar_lea.hbm %s945_s13, 16  ;;  %s14290_s15 = scalar_lea.hbm %s19577_s3, 32 }
 0x197   : > { %p14287_p2 = scmp.ne.s32.totalorder %s945_s13, %s14286_s11  ;;  %p14291_p7 = scmp.lt.s32.totalorder %s945_s13, %s19577_s3 }
 0x198   : > { %p14292_p12 = scmp.lt.s32.totalorder %s14290_s15, %s14286_s11 }
 0x199   : > { %p14288_p3 = pnand %p14287_p2, %p14820_p4 }
 0x19a   : > { %p14293_p13 = por %p14292_p12, %p14291_p7 }
 0x19b   : > { %p14289_p6 = pneg %p14288_p3 }
 0x19d   : > { %p14294_p5 = pnand %p14293_p13, %p14289_p6 }
 0x19f   : > { %14297 = shalt.err (!%p14294_p5)
}
 0x1a0   : > { %s14298_s23 = scalar_lea.vmem %s948_s6, 16  ;;  %s14628_s10 = smov [#allocation13]  }
 0x1a1   : > { %p14299_p8 = scmp.ne.s32.totalorder %s948_s6, %s14298_s23  ;;  %s14302_s5 = sshll.u32 %s14628_s10, 4  ;;  %s14303_s5 = int_to_ptr.vmem [resolvable:$false] %s14302_s5 }
 0x1a2   : > { %s14304_s25 = scalar_lea.vmem %s14303_s5, 32  ;;  %p14305_p0 = scmp.lt.s32.totalorder %s948_s6, %s14303_s5 }
 0x1a3   : > { %p14300_p9 = pnand %p14299_p8, %p14820_p4  ;;  %p14306_p1 = scmp.lt.s32.totalorder %s14304_s25, %s14298_s23 }
 0x1a5   : > { %p14301_p11 = pneg %p14300_p9  ;;  %p14307_p2 = por %p14306_p1, %p14305_p0 }
 0x1a7   : > { %p14308_p3 = pnand %p14307_p2, %p14301_p11 }
 0x1a9   : > { %14311 = shalt.err (!%p14308_p3)
}
 0x1aa   : > { %s19578_s15 = scalar_lea.sflag [#allocation12], %s14894_s27  ;;  %s19579_s1 = sld [smem:[#allocation107_spill]] }
 0x1ab   : > { %13028 = dma.hbm_to_vmem [thread:$0]  (%p14820_p4), %s945_s13, 16, %s948_s6, %s19578_s15  }
 0x1ac   : > { %s978_s8 = scalar_lea.vmem [#allocation16], %s14897_s20  ;;  %s11175_s2 = sshll.u32 %s14897_s20, 1 }
 0x1ad   : > { %s985_s11 = sshll.u32 %s978_s8, 4  ;;  %s986_s11 = int_to_ptr.vmem [resolvable:$true] %s985_s11 }
 0x1b0   : > { %s15256_s9 = scalar_lea.hbm %s19579_s1, %s14932_s28  ;;  %s14316_s13 = scalar_lea.hbm %s19579_s1, 32 }
 0x1b1   : > { %s14312_s24 = scalar_lea.hbm %s15256_s9, 16  ;;  %p14317_p13 = scmp.lt.s32.totalorder %s15256_s9, %s19579_s1 }
 0x1b2   : > { %p14313_p6 = scmp.ne.s32.totalorder %s15256_s9, %s14312_s24  ;;  %p14318_p5 = scmp.lt.s32.totalorder %s14316_s13, %s14312_s24 }
 0x1b4   : > { %p14314_p7 = pnand %p14313_p6, %p14820_p4  ;;  %p14319_p8 = por %p14318_p5, %p14317_p13 }
 0x1b6   : > { %p14315_p12 = pneg %p14314_p7 }
 0x1b8   : > { %p14320_p9 = pnand %p14319_p8, %p14315_p12 }
 0x1ba   : > { %14323 = shalt.err (!%p14320_p9)
}
 0x1bb   : > { %s14324_s25 = scalar_lea.vmem %s986_s11, 16  ;;  %s14629_s15 = smov [#allocation16]  }
 0x1bc   : > { %p14325_p11 = scmp.ne.s32.totalorder %s986_s11, %s14324_s25  ;;  %s14328_s17 = sshll.u32 %s14629_s15, 4  ;;  %s14329_s17 = int_to_ptr.vmem [resolvable:$false] %s14328_s17 }
 0x1bd   : > { %s14330_s19 = scalar_lea.vmem %s14329_s17, 32  ;;  %p14331_p2 = scmp.lt.s32.totalorder %s986_s11, %s14329_s17 }
 0x1be   : > { %p14326_p0 = pnand %p14325_p11, %p14820_p4  ;;  %p14332_p3 = scmp.lt.s32.totalorder %s14330_s19, %s14324_s25 }
 0x1c0   : > { %p14327_p1 = pneg %p14326_p0  ;;  %p14333_p6 = por %p14332_p3, %p14331_p2 }
 0x1c2   : > { %p14334_p7 = pnand %p14333_p6, %p14327_p1 }
 0x1c4   : > { %14337 = shalt.err (!%p14334_p7)
}
 0x1c5   : > { %s19580_s8 = scalar_lea.sflag [#allocation15], %s14894_s27  ;;  %s11558_s24 = sshll.u32 %s14602_s30, 5 }
 0x1c6   : > { %13030 = dma.hbm_to_vmem [thread:$0]  (%p14820_p4), %s15256_s9, 16, %s986_s11, %s19580_s8  }
 0x1c7   : > { %s19581_s13 = sld [smem:[#allocation109_spill]]  ;;  %s1017_s5 = scalar_lea.vmem [#allocation19], %s11175_s2 }
 0x1c8   : > { %s1025_s15 = sshll.u32 %s1017_s5, 4  ;;  %s1026_s15 = int_to_ptr.vmem [resolvable:$true] %s1025_s15 }
 0x1cd   : > { %s1023_s6 = scalar_lea.hbm %s19581_s13, %s11558_s24  ;;  %s14342_s1 = scalar_lea.hbm %s19581_s13, 64 }
 0x1ce   : > { %s14338_s25 = scalar_lea.hbm %s1023_s6, 32  ;;  %p14343_p8 = scmp.lt.s32.totalorder %s1023_s6, %s19581_s13 }
 0x1cf   : > { %p14339_p12 = scmp.ne.s32.totalorder %s1023_s6, %s14338_s25  ;;  %p14344_p9 = scmp.lt.s32.totalorder %s14342_s1, %s14338_s25 }
 0x1d1   : > { %p14340_p13 = pnand %p14339_p12, %p14820_p4  ;;  %p14345_p11 = por %p14344_p9, %p14343_p8 }
 0x1d3   : > { %p14341_p5 = pneg %p14340_p13 }
 0x1d5   : > { %p14346_p0 = pnand %p14345_p11, %p14341_p5 }
 0x1d7   : > { %14349 = shalt.err (!%p14346_p0)
}
 0x1d8   : > { %s14350_s30 = scalar_lea.vmem %s1026_s15, 32  ;;  %s14630_s9 = smov [#allocation19]  }
 0x1d9   : > { %p14351_p1 = scmp.ne.s32.totalorder %s1026_s15, %s14350_s30  ;;  %s14354_s11 = sshll.u32 %s14630_s9, 4  ;;  %s14355_s11 = int_to_ptr.vmem [resolvable:$false] %s14354_s11 }
 0x1da   : > { %s14356_s2 = scalar_lea.vmem %s14355_s11, 64  ;;  %p14357_p6 = scmp.lt.s32.totalorder %s1026_s15, %s14355_s11 }
 0x1db   : > { %p14352_p2 = pnand %p14351_p1, %p14820_p4  ;;  %p14358_p7 = scmp.lt.s32.totalorder %s14356_s2, %s14350_s30 }
 0x1dd   : > { %p14353_p3 = pneg %p14352_p2  ;;  %p14359_p12 = por %p14358_p7, %p14357_p6 }
 0x1df   : > { %p14360_p13 = pnand %p14359_p12, %p14353_p3 }
 0x1e1   : > { %14363 = shalt.err (!%p14360_p13)
}
 0x1e2   : > { %s19582_s22 = scalar_lea.sflag [#allocation18], %s14894_s27  ;;  %s19583_s14 = sld [smem:[#allocation111_spill]] }
 0x1e3   : > { %13032 = dma.hbm_to_vmem [thread:$0]  (%p14820_p4), %s1023_s6, 32, %s1026_s15, %s19582_s22  }
 0x1e4   : > { %s1056_s24 = scalar_lea.vmem [#allocation22], %s14897_s20 }
 0x1e5   : > { %s1063_s23 = sshll.u32 %s1056_s24, 4  ;;  %s1064_s23 = int_to_ptr.vmem [resolvable:$true] %s1063_s23 }
 0x1e8   : > { %s1061_s8 = scalar_lea.hbm %s19583_s14, %s14932_s28  ;;  %s14368_s17 = scalar_lea.hbm %s19583_s14, 32 }
 0x1e9   : > { %s14364_s10 = scalar_lea.hbm %s1061_s8, 16  ;;  %p14369_p11 = scmp.lt.s32.totalorder %s1061_s8, %s19583_s14 }
 0x1ea   : > { %p14365_p5 = scmp.ne.s32.totalorder %s1061_s8, %s14364_s10  ;;  %p14370_p0 = scmp.lt.s32.totalorder %s14368_s17, %s14364_s10 }
 0x1ec   : > { %p14366_p8 = pnand %p14365_p5, %p14820_p4  ;;  %p14371_p1 = por %p14370_p0, %p14369_p11 }
 0x1ee   : > { %p14367_p9 = pneg %p14366_p8 }
 0x1f0   : > { %p14372_p2 = pnand %p14371_p1, %p14367_p9 }
 0x1f2   : > { %14375 = shalt.err (!%p14372_p2)
}
 0x1f3   : > { %s14376_s6 = scalar_lea.vmem %s1064_s23, 16  ;;  %s14631_s15 = smov [#allocation22]  }
 0x1f4   : > { %p14377_p3 = scmp.ne.s32.totalorder %s1064_s23, %s14376_s6  ;;  %s14380_s9 = sshll.u32 %s14631_s15, 4  ;;  %s14381_s9 = int_to_ptr.vmem [resolvable:$false] %s14380_s9 }
 0x1f5   : > { %s14382_s11 = scalar_lea.vmem %s14381_s9, 32  ;;  %p14383_p12 = scmp.lt.s32.totalorder %s1064_s23, %s14381_s9 }
 0x1f6   : > { %p14378_p6 = pnand %p14377_p3, %p14820_p4  ;;  %p14384_p13 = scmp.lt.s32.totalorder %s14382_s11, %s14376_s6 }
 0x1f8   : > { %p14379_p7 = pneg %p14378_p6  ;;  %p14385_p5 = por %p14384_p13, %p14383_p12 }
 0x1fa   : > { %p14386_p8 = pnand %p14385_p5, %p14379_p7 }
 0x1fc   : > { %14389 = shalt.err (!%p14386_p8)
}
 0x1fd   : > { %s19584_s2 = scalar_lea.sflag [#allocation21], %s14894_s27  ;;  %s1099_s1 = scalar_lea.hbm %s19381_s16, %s14932_s28 }
 0x1fe   : > { %13034 = dma.hbm_to_vmem [thread:$0]  (%p14820_p4), %s1061_s8, 16, %s1064_s23, %s19584_s2  }
 0x1ff   : > { %s1094_s24 = scalar_lea.vmem [#allocation25], %s14897_s20  ;;  %s14390_s5 = scalar_lea.hbm %s1099_s1, 16 }
 0x200   : > { %s1101_s10 = sshll.u32 %s1094_s24, 4  ;;  %p14391_p9 = scmp.ne.s32.totalorder %s1099_s1, %s14390_s5  ;;  %s1102_s10 = int_to_ptr.vmem [resolvable:$true] %s1101_s10 }
 0x201   : > { %s14394_s19 = scalar_lea.hbm %s19381_s16, 32  ;;  %p14395_p1 = scmp.lt.s32.totalorder %s1099_s1, %s19381_s16 }
 0x202   : > { %p14392_p11 = pnand %p14391_p9, %p14820_p4  ;;  %p14396_p2 = scmp.lt.s32.totalorder %s14394_s19, %s14390_s5 }
 0x204   : > { %p14393_p0 = pneg %p14392_p11  ;;  %p14397_p3 = por %p14396_p2, %p14395_p1 }
 0x206   : > { %p14398_p6 = pnand %p14397_p3, %p14393_p0 }
 0x208   : > { %14401 = shalt.err (!%p14398_p6)
}
 0x209   : > { %s14402_s8 = scalar_lea.vmem %s1102_s10, 16  ;;  %s14632_s23 = smov [#allocation25]  }
 0x20a   : > { %p14403_p7 = scmp.ne.s32.totalorder %s1102_s10, %s14402_s8  ;;  %s14406_s15 = sshll.u32 %s14632_s23, 4  ;;  %s14407_s15 = int_to_ptr.vmem [resolvable:$false] %s14406_s15 }
 0x20b   : > { %s14408_s9 = scalar_lea.vmem %s14407_s15, 32  ;;  %p14409_p5 = scmp.lt.s32.totalorder %s1102_s10, %s14407_s15 }
 0x20c   : > { %p14404_p12 = pnand %p14403_p7, %p14820_p4  ;;  %p14410_p8 = scmp.lt.s32.totalorder %s14408_s9, %s14402_s8 }
 0x20e   : > { %p14405_p13 = pneg %p14404_p12  ;;  %p14411_p9 = por %p14410_p8, %p14409_p5 }
 0x210   : > { %p14412_p11 = pnand %p14411_p9, %p14405_p13 }
 0x212   : > { %14415 = shalt.err (!%p14412_p11)
}
 0x213   : > { %s19585_s11 = scalar_lea.sflag [#allocation24], %s14894_s27  ;;  %s15338_s3 = scalar_lea.hbm %s19383_s18, %s14932_s28 }
 0x214   : > { %13036 = dma.hbm_to_vmem [thread:$0]  (%p14820_p4), %s1099_s1, 16, %s1102_s10, %s19585_s11  }
 0x215   : > { %s1128_s24 = scalar_lea.vmem [#allocation28], %s14897_s20  ;;  %s19586_s25 = sshll.u32 %s15176_s12, 4  ;;  %s15343_s25 = int_to_ptr.vmem [resolvable:$true] %s19586_s25 }
 0x216   : > { %s1135_s5 = sshll.u32 %s1128_s24, 4  ;;  %s14416_s17 = scalar_lea.hbm %s15338_s3, 16  ;;  %s1136_s5 = int_to_ptr.vmem [resolvable:$true] %s1135_s5 }
 0x217   : > { %p14417_p0 = scmp.ne.s32.totalorder %s15338_s3, %s14416_s17  ;;  %s14420_s19 = scalar_lea.hbm %s19383_s18, 32 }
 0x218   : > { %p14421_p3 = scmp.lt.s32.totalorder %s15338_s3, %s19383_s18  ;;  %p14422_p6 = scmp.lt.s32.totalorder %s14420_s19, %s14416_s17 }
 0x219   : > { %p14418_p1 = pnand %p14417_p0, %p14820_p4 }
 0x21a   : > { %p14423_p7 = por %p14422_p6, %p14421_p3 }
 0x21b   : > { %p14419_p2 = pneg %p14418_p1 }
 0x21d   : > { %p14424_p12 = pnand %p14423_p7, %p14419_p2 }
 0x21f   : > { %14427 = shalt.err (!%p14424_p12)
}
 0x220   : > { %s14428_s12 = scalar_lea.vmem %s1136_s5, 16  ;;  %s14633_s8 = smov [#allocation28]  }
 0x221   : > { %p14429_p13 = scmp.ne.s32.totalorder %s1136_s5, %s14428_s12  ;;  %s14432_s23 = sshll.u32 %s14633_s8, 4  ;;  %s14433_s23 = int_to_ptr.vmem [resolvable:$false] %s14432_s23 }
 0x222   : > { %s14434_s15 = scalar_lea.vmem %s14433_s23, 32  ;;  %p14435_p9 = scmp.lt.s32.totalorder %s1136_s5, %s14433_s23 }
 0x223   : > { %p14430_p5 = pnand %p14429_p13, %p14820_p4  ;;  %p14436_p11 = scmp.lt.s32.totalorder %s14434_s15, %s14428_s12 }
 0x225   : > { %p14431_p8 = pneg %p14430_p5  ;;  %p14437_p0 = por %p14436_p11, %p14435_p9 }
 0x227   : > { %p14438_p1 = pnand %p14437_p0, %p14431_p8 }
 0x229   : > { %14441 = shalt.err (!%p14438_p1)
}
 0x22a   : > { %s19587_s9 = scalar_lea.sflag [#allocation27], %s14894_s27  ;;  %s14442_s11 = scalar_lea.hbm %s15172_s0, 4096 }
 0x22b   : > { %13038 = dma.hbm_to_vmem [thread:$0]  (%p14820_p4), %s15338_s3, 16, %s1136_s5, %s19587_s9  }
 0x22c   : > { %p14443_p2 = scmp.ne.s32.totalorder %s15172_s0, %s14442_s11  ;;  %s14446_s24 = scalar_lea.hbm %s19386_s21, 8192 }
 0x22d   : > { %p14447_p7 = scmp.lt.s32.totalorder %s15172_s0, %s19386_s21  ;;  %p14448_p12 = scmp.lt.s32.totalorder %s14446_s24, %s14442_s11 }
 0x22e   : > { %p14444_p3 = pnand %p14443_p2, %p14820_p4 }
 0x22f   : > { %p14449_p13 = por %p14448_p12, %p14447_p7 }
 0x230   : > { %p14445_p6 = pneg %p14444_p3 }
 0x232   : > { %p14450_p5 = pnand %p14449_p13, %p14445_p6 }
 0x234   : > { %14453 = shalt.err (!%p14450_p5)
}
 0x235   : > { %s14454_s3 = scalar_lea.vmem %s15343_s25, 4096  ;;  %s14634_s5 = smov [#allocation31]  }
 0x236   : > { %p14455_p8 = scmp.ne.s32.totalorder %s15343_s25, %s14454_s3  ;;  %s14458_s10 = sshll.u32 %s14634_s5, 4  ;;  %s14459_s10 = int_to_ptr.vmem [resolvable:$false] %s14458_s10 }
 0x237   : > { %s14460_s19 = scalar_lea.vmem %s14459_s10, 8192  ;;  %p14461_p0 = scmp.lt.s32.totalorder %s15343_s25, %s14459_s10 }
 0x238   : > { %p14456_p9 = pnand %p14455_p8, %p14820_p4  ;;  %p14462_p1 = scmp.lt.s32.totalorder %s14460_s19, %s14454_s3 }
 0x23a   : > { %p14457_p11 = pneg %p14456_p9  ;;  %p14463_p2 = por %p14462_p1, %p14461_p0 }
 0x23c   : > { %p14464_p3 = pnand %p14463_p2, %p14457_p11 }
 0x23e   : > { %14467 = shalt.err (!%p14464_p3)
}
 0x23f   : > { %s19588_s30 = scalar_lea.sflag [#allocation30], %s14894_s27  ;;  %s19589_s8 = sld [smem:[#allocation117_spill]] }
 0x240   : > { %13040 = dma.hbm_to_vmem [thread:$0]  (%p14820_p4), %s15172_s0, 4096, %s15343_s25, %s19588_s30, %s19565_s4, %s19565_s4, %s19574_s7  }
 0x241   : > { %s1211_s9 = scalar_lea.vmem [#allocation34], %s14897_s20 }
 0x242   : > { %s1218_s11 = sshll.u32 %s1211_s9, 4  ;;  %s1219_s11 = int_to_ptr.vmem [resolvable:$true] %s1218_s11 }
 0x245   : > { %s19590_s23 = smov %s19589_s8  ;;  %s1216_s15 = scalar_lea.hbm %s19589_s8, %s14932_s28 }
 0x246   : > { %s14468_s2 = scalar_lea.hbm %s1216_s15, 16  ;;  %s14472_s17 = scalar_lea.hbm %s19590_s23, 32 }
 0x247   : > { %p14469_p6 = scmp.ne.s32.totalorder %s1216_s15, %s14468_s2  ;;  %p14473_p13 = scmp.lt.s32.totalorder %s1216_s15, %s19590_s23 }
 0x248   : > { %p14474_p5 = scmp.lt.s32.totalorder %s14472_s17, %s14468_s2 }
 0x249   : > { %p14470_p7 = pnand %p14469_p6, %p14820_p4 }
 0x24a   : > { %p14475_p8 = por %p14474_p5, %p14473_p13 }
 0x24b   : > { %p14471_p12 = pneg %p14470_p7 }
 0x24d   : > { %p14476_p9 = pnand %p14475_p8, %p14471_p12 }
 0x24f   : > { %14479 = shalt.err (!%p14476_p9)
}
 0x250   : > { %s14480_s4 = scalar_lea.vmem %s1219_s11, 16  ;;  %s14635_s0 = smov [#allocation34]  }
 0x251   : > { %p14481_p11 = scmp.ne.s32.totalorder %s1219_s11, %s14480_s4  ;;  %s14484_s7 = sshll.u32 %s14635_s0, 4  ;;  %s14485_s7 = int_to_ptr.vmem [resolvable:$false] %s14484_s7 }
 0x252   : > { %s14486_s25 = scalar_lea.vmem %s14485_s7, 32  ;;  %p14487_p2 = scmp.lt.s32.totalorder %s1219_s11, %s14485_s7 }
 0x253   : > { %p14482_p0 = pnand %p14481_p11, %p14820_p4  ;;  %p14488_p3 = scmp.lt.s32.totalorder %s14486_s25, %s14480_s4 }
 0x255   : > { %p14483_p1 = pneg %p14482_p0  ;;  %p14489_p6 = por %p14488_p3, %p14487_p2 }
 0x257   : > { %p14490_p7 = pnand %p14489_p6, %p14483_p1 }
 0x259   : > { %14493 = shalt.err (!%p14490_p7)
}
 0x25a   : > { %s19591_s5 = scalar_lea.sflag [#allocation33], %s14894_s27  ;;  %s19592_s30 = sld [smem:[#allocation118_spill]] }
 0x25b   : > { %13042 = dma.hbm_to_vmem [thread:$0]  (%p14820_p4), %s1216_s15, 16, %s1219_s11, %s19591_s5  }
 0x25c   : > { %s1228_s8 = scalar_lea.vmem [#allocation35], %s14897_s20  ;;  %s1226_s2 = scalar_lea.sflag [#allocation36], %s14894_s27 }
 0x25d   : > { %s1235_s9 = sshll.u32 %s1228_s8, 4  ;;  %s1236_s9 = int_to_ptr.vmem [resolvable:$true] %s1235_s9 }
 0x260   : > { %s19593_s6 = smov %s19592_s30  ;;  %s15411_s12 = scalar_lea.hbm %s19592_s30, %s14932_s28 }
 0x261   : > { %s14494_s22 = scalar_lea.hbm %s15411_s12, 16  ;;  %s14498_s15 = scalar_lea.hbm %s19593_s6, 32 }
 0x262   : > { %p14495_p12 = scmp.ne.s32.totalorder %s15411_s12, %s14494_s22  ;;  %p14499_p8 = scmp.lt.s32.totalorder %s15411_s12, %s19593_s6 }
 0x263   : > { %p14500_p9 = scmp.lt.s32.totalorder %s14498_s15, %s14494_s22 }
 0x264   : > { %p14496_p13 = pnand %p14495_p12, %p14820_p4 }
 0x265   : > { %p14501_p11 = por %p14500_p9, %p14499_p8 }
 0x266   : > { %p14497_p5 = pneg %p14496_p13 }
 0x268   : > { %p14502_p0 = pnand %p14501_p11, %p14497_p5 }
 0x26a   : > { %14505 = shalt.err (!%p14502_p0)
}
 0x26b   : > { %s14506_s20 = scalar_lea.vmem %s1236_s9, 16  ;;  %s14636_s27 = smov [#allocation35]  }
 0x26c   : > { %p14507_p1 = scmp.ne.s32.totalorder %s1236_s9, %s14506_s20  ;;  %s14510_s28 = sshll.u32 %s14636_s27, 4  ;;  %s14511_s28 = int_to_ptr.vmem [resolvable:$false] %s14510_s28 }
 0x26d   : > { %s14512_s3 = scalar_lea.vmem %s14511_s28, 32  ;;  %p14513_p6 = scmp.lt.s32.totalorder %s1236_s9, %s14511_s28 }
 0x26e   : > { %p14508_p2 = pnand %p14507_p1, %p14820_p4  ;;  %p14514_p7 = scmp.lt.s32.totalorder %s14512_s3, %s14506_s20 }
 0x270   : > { %p14509_p3 = pneg %p14508_p2  ;;  %p14515_p12 = por %p14514_p7, %p14513_p6 }
 0x272   : > { %p14516_p13 = pnand %p14515_p12, %p14509_p3 }
 0x274   : > { %14519 = shalt.err (!%p14516_p13)
}
 0x275   : > { %13043 = dma.hbm_to_vmem [thread:$0]  (%p14820_p4), %s15411_s12, 16, %s1236_s9, %s1226_s2  }
 0x276 PF: > { %1244 = sbr.rel (%p14834_p10) target bundleno = 9536 (0x2540), region = 132 }
 0x27b   : > { %s19595_s0 = sld [smem:[#allocation53_spill]] }
 0x281   : > { %p19596_p5 = scmp.eq.s32.totalorder %s19595_s0, 0 }
 0x283   : > { %14537 = dma.done.wait (%p19596_p5), [#allocation4], 2048   ;;  %p19597_p8 = pmov %p19596_p5 }
 0x284   : > { %p19598_p9 = pmov %p19596_p5 }
 0x285   : > { %14539 = vsyncadd (%p19597_p8), [#allocation4], 4294965248 }
 0x286   : > { %14541 = dma.done.wait (%p19598_p9), [#allocation6], 3072   ;;  %p19599_p11 = pmov %p19596_p5 }
 0x287   : > { %s19600_s29 = sld [smem:[#allocation51_spill]]  ;;  %s15442_s25 = sand.u32 1, %s19595_s0  }
 0x288   : > { %14543 = vsyncadd (%p19599_p11), [#allocation6], 4294964224  ;;  %s19601_s7 = sld [smem:[#allocation56_spill]]  ;;  %s1259_s19 = scalar_lea.sflag [#allocation9], %s15442_s25 }
 0x28d   : > { %s15445_s5 = sand.u32 1, %s19600_s29  }
 0x28e   : > { %s13015_s10 = smul.u32 192, %s15445_s5  ;;  %p19602_p4 = scmp.ne.s32.totalorder %s19601_s7, 0 }
 0x290   : > { %s15449_s30 = scalar_lea.vmem [#allocation8], %s13015_s10 }
 0x291   : > { %14545 = dma.done.wait (%p19602_p4), %s1259_s19, 4096  }
 0x292   : > { %14547 = vsyncadd (%p19602_p4), %s1259_s19, 4294963200  ;;  %s11201_s12 = sshll.u32 %s15445_s5, 6  ;;  %s1277_s9 = scalar_lea.sflag [#allocation12], %s15442_s25 }
 0x293   : > { %s15456_s8 = scalar_lea.vmem [#allocation10], %s11201_s12 }
 0x294   : > { %14549 = dma.done.wait (%p19602_p4), %s1277_s9, 32  }
 0x295   : > { %14551 = vsyncadd (%p19602_p4), %s1277_s9, 4294967264  ;;  %s1293_s24 = scalar_lea.sflag [#allocation15], %s15442_s25  ;;  %s15466_s17 = scalar_lea.vmem [#allocation14], %s11201_s12 }
 0x296   : > { %14553 = dma.done.wait (%p19602_p4), %s1293_s24, 1040  }
 0x297   : > { %14555 = vsyncadd (%p19602_p4), %s1293_s24, 4294966256  ;;  %s11203_s15 = sshll.u32 %s15445_s5, 7  ;;  %s1310_s1 = scalar_lea.sflag [#allocation18], %s15442_s25 }
 0x298   : > { %s15475_s20 = scalar_lea.vmem [#allocation17], %s11203_s15 }
 0x299   : > { %14557 = dma.done.wait (%p19602_p4), %s1310_s1, 2080  }
 0x29a   : > { %14559 = vsyncadd (%p19602_p4), %s1310_s1, 4294965216  ;;  %s11204_s27 = sshll.u32 %s15445_s5, 1  ;;  %s1328_s3 = scalar_lea.sflag [#allocation21], %s15442_s25 }
 0x29b   : > { %s15482_s28 = scalar_lea.vmem [#allocation19], %s11204_s27  ;;  %s15485_s4 = scalar_lea.vmem [#allocation20], %s11201_s12 }
 0x29c   : > { %14561 = dma.done.wait (%p19602_p4), %s1328_s3, 1040  }
 0x29d   : > { %14563 = vsyncadd (%p19602_p4), %s1328_s3, 4294966256  ;;  %s1345_s10 = scalar_lea.sflag [#allocation24], %s15442_s25  ;;  %s15493_s19 = scalar_lea.vmem [#allocation23], %s11201_s12 }
 0x29e   : > { %14565 = dma.done.wait (%p19602_p4), %s1345_s10, 1040  }
 0x29f   : > { %14567 = vsyncadd (%p19602_p4), %s1345_s10, 4294966256  ;;  %s1362_s24 = scalar_lea.sflag [#allocation27], %s15442_s25 }
 0x2a0   : > { %14569 = dma.done.wait (%p19602_p4), %s1362_s24, 32  }
 0x2a1   : > { %14571 = vsyncadd (%p19602_p4), %s1362_s24, 4294967264  ;;  %s11207_s12 = sshll.u32 %s15445_s5, 8  ;;  %s1378_s27 = scalar_lea.sflag [#allocation30], %s15442_s25 }
 0x2a2   : > { %s15509_s3 = scalar_lea.vmem [#allocation29], %s11207_s12 }
 0x2a3   : > { %14573 = dma.done.wait (%p19602_p4), %s1378_s27, 8192  }
 0x2a4   : > { %14575 = vsyncadd (%p19602_p4), %s1378_s27, 4294959104  ;;  %s15515_s10 = scalar_lea.vmem [#allocation31], %s11207_s12  ;;  %s1396_s24 = scalar_lea.sflag [#allocation33], %s15442_s25 }
 0x2a5   : > { %14577 = dma.done.wait (%p19602_p4), %s1396_s24, 32  }
 0x2a6   : > { %14579 = vsyncadd (%p19602_p4), %s1396_s24, 4294967264  ;;  %s1412_s9 = scalar_lea.sflag [#allocation36], %s15442_s25 }
 0x2a7   : > { %14581 = dma.done.wait (%p19602_p4), %s1412_s9, 16  }
 0x2a8   : > { %14583 = vsyncadd (%p19602_p4), %s1412_s9, 4294967280  ;;  %p19603_p10 = pmov %p19596_p5 }
 0x2a9   : > { %p19604_p0 = pmov %p19596_p5 }
 0x2aa   : > { %14585 = dma.done.wait (%p19603_p10), [#allocation36], 2048  }
 0x2ab   : > { %14587 = vsyncadd (%p19604_p0), [#allocation36], 4294965248  ;;  %p1577_p1 = scmp.lt.s32.totalorder %s19595_s0, 1  ;;  %s19605_s29 = sld [smem:[#allocation103_spill]] }
 0x2ac   : > { %s19606_s22 = sld [smem:[#allocation101_spill]]  ;;  %p19608_p2 = scmp.ne.s32.totalorder %s19595_s0, 0 }
 0x2ad   : > { %s15536_s12 = scalar_select %p1577_p1, %s19595_s0, 1 }
 0x2ae   : > { %s19607_s13 = sld [smem:[#allocation115_spill]] }
 0x2af   : > { %s13016_s25 = smul.u32 3, %s15536_s12  ;;  %s11210_s9 = sshll.u32 %s15536_s12, 2 }
 0x2b0   : > { %1592 = sbr.rel (%p19608_p2) target bundleno = 702 (0x2be), region = 228 }
 0x2b1   : > { %s1583_s7 = scalar_lea.vmem %s19605_s29, %s15536_s12 }
 0x2b2   : > { %s15547_s2 = scalar_lea.vmem %s19606_s22, %s13016_s25 }
 0x2b4   : > { %s15552_s14 = scalar_lea.vmem %s19607_s13, %s11210_s9 }
 0x2b5   : > { %v1593_v0 = vld [vmem:[#allocation3] sm:$0xff]  ;;  %v1594_v1 = vld [vmem:[#allocation3 + $0x8] sm:$0xff]  ;;  %v1595_v2 = vld [vmem:[#allocation3 + $0x10] sm:$0xff] }
 0x2b6   : > { %1609 = vst [vmem:[#allocation2 + $0x30] sm:$0xff] %v1593_v0  ;;  %1610 = vst [vmem:[#allocation2] sm:$0xff] %v1594_v1  ;;  %v1596_v3 = vld [vmem:[#allocation3 + $0x18] sm:$0xff]  ;;  %v1597_v4 = vld [vmem:[#allocation3 + $0x20] sm:$0xff] }
 0x2b7   : > { %1611 = vst [vmem:[#allocation2 + $0x58] sm:$0xff] %v1595_v2  ;;  %v1598_v5 = vld [vmem:[#allocation3 + $0x28] sm:$0xff]  ;;  %1612 = vst [vmem:[#allocation2 + $0x18] sm:$0xff] %v1596_v3  ;;  %v1599_v6 = vld [vmem:[#allocation3 + $0x30] sm:$0xff] }
 0x2b8   : > { %1613 = vst [vmem:[#allocation2 + $0x50] sm:$0xff] %v1597_v4  ;;  %1614 = vst [vmem:[#allocation2 + $0x68] sm:$0xff] %v1598_v5  ;;  %v1600_v7 = vld [vmem:[#allocation3 + $0x38] sm:$0xff]  ;;  %v1601_v8 = vld [vmem:[#allocation3 + $0x40] sm:$0xff] }
 0x2b9   : > { %1615 = vst [vmem:[#allocation2 + $0x8] sm:$0xff] %v1599_v6  ;;  %1616 = vst [vmem:[#allocation2 + $0x48] sm:$0xff] %v1600_v7  ;;  %v1602_v9 = vld [vmem:[#allocation3 + $0x48] sm:$0xff]  ;;  %v1603_v10 = vld [vmem:[#allocation3 + $0x50] sm:$0xff] }
 0x2ba   : > { %1617 = vst [vmem:[#allocation2 + $0x40] sm:$0xff] %v1601_v8  ;;  %v1604_v11 = vld [vmem:[#allocation3 + $0x58] sm:$0xff]  ;;  %1618 = vst [vmem:[#allocation2 + $0x20] sm:$0xff] %v1602_v9  ;;  %v1605_v12 = vld [vmem:[#allocation3 + $0x60] sm:$0xff] }
 0x2bb   : > { %1619 = vst [vmem:[#allocation2 + $0x10] sm:$0xff] %v1603_v10  ;;  %1620 = vst [vmem:[#allocation2 + $0x38] sm:$0xff] %v1604_v11  ;;  %v1606_v13 = vld [vmem:[#allocation3 + $0x68] sm:$0xff]  ;;  %v1607_v14 = vld [vmem:[#allocation3 + $0x70] sm:$0xff] }
 0x2bc   : > { %1621 = vst [vmem:[#allocation2 + $0x60] sm:$0xff] %v1605_v12  ;;  %1622 = vst [vmem:[#allocation2 + $0x70] sm:$0xff] %v1606_v13  ;;  %v1608_v15 = vld [vmem:[#allocation3 + $0x78] sm:$0xff] }
 0x2bd   : > { %1623 = vst [vmem:[#allocation2 + $0x78] sm:$0xff] %v1607_v14  ;;  %1624 = vst [vmem:[#allocation2 + $0x28] sm:$0xff] %v1608_v15 }
 0x2be PF: > { %v13142_v16 = vld [vmem:[%s15449_s30 + $0xac] ss:$12 sps:$4 sm:$0xff]   ;;  %v13144_v17 = vld [vmem:[%s15449_s30 + $0xa8] ss:$12 sps:$4 sm:$0xff]   ;;  %v19438_v18 = vmov 0   ;;  %v1626_v26 = vld [vmem:[#allocation2] sm:$0xff] }
 0x2bf   : > { %1882 = vmatprep.mubr.bf16.mxu0 %v19438_v18  ;;  %1850 = vmatprep.subr.bf16.mxu0 %v13142_v16  ;;  %v13145_v19 = vld [vmem:[%s15449_s30 + $0x94] ss:$12 sps:$4 sm:$0xff]   ;;  %v13147_v20 = vld [vmem:[%s15449_s30 + $0x90] ss:$12 sps:$4 sm:$0xff]   ;;  %v13150_v22 = vld [vmem:[%s15449_s30 + $0x78] ss:$12 sps:$4 sm:$0xff]  }
 0x2c0   : > { %1851 = vmatpush1.bf16.msra.mxu0 %v13144_v17  ;;  %v13148_v21 = vld [vmem:[%s15449_s30 + $0x7c] ss:$12 sps:$4 sm:$0xff]   ;;  %v13151_v23 = vld [vmem:[%s15449_s30 + $0x64] ss:$12 sps:$4 sm:$0xff]   ;;  %v13153_v24 = vld [vmem:[%s15449_s30 + $0x60] ss:$12 sps:$4 sm:$0xff]  }
 0x2c1   : > { %1852 = vmatprep.subr.bf16.mxu0 %v13145_v19  ;;  %v1625_v25 = vld [vmem:[#allocation2 + $0x30] sm:$0xff]  ;;  %v15565_v27 = vld [vmem:[#allocation7] sm:$0xff]  ;;  %v15567_v28 = vld [vmem:[#allocation7 + $0x8] sm:$0xff]  ;;  %vm2100_vm0 = vcmask 261120   ;;  %s14638_s13 = smov 96   ;;  %vm2279_vm1 = vcmask 523264  }
 0x2c2   : > { %v13154_v29 = vld [vmem:[%s15449_s30 + $0x4c] ss:$12 sps:$4 sm:$0xff]   ;;  %v15571_v30 = vadd.f32 %v15565_v27, %v1625_v25  ;;  %v15574_v31 = vadd.f32 %v15567_v28, %v1626_v26  ;;  %v13156_v33 = vld [vmem:[%s15449_s30 + $0x48] ss:$12 sps:$4 sm:$0xff]   ;;  %v13159_v35 = vld [vmem:[%s15449_s30 + $0x30] ss:$12 sps:$4 sm:$0xff]   ;;  %v1707_v26 = vlaneseq }
 0x2c3   : > { %v13157_v34 = vld [vmem:[%s15449_s30 + $0x34] ss:$12 sps:$4 sm:$0xff]   ;;  %v13160_v36 = vld [vmem:[%s15449_s30 + $0x1c] ss:$12 sps:$4 sm:$0xff]   ;;  %v13167_v38 = vld [vmem:[%s15449_s30 + $0x98] ss:$12 sps:$4 sm:$0xff]  }
 0x2c4   : > { %1853 = vmatpush1.bf16.msra.mxu0 %v13147_v20  ;;  %19609 = vst [vmem:[#allocation58_spill] sm:$0xff] %v15571_v30  ;;  %19610 = vst [vmem:[#allocation59_spill] sm:$0xff] %v15574_v31  ;;  %v1697_v32 = vpack.c.bf16 %v15574_v31, %v15571_v30  ;;  %v13166_v37 = vld [vmem:[%s15449_s30 + $0xb0] ss:$12 sps:$4 sm:$0xff]   ;;  %v13162_v39 = vld [vmem:[%s15449_s30 + $0x18] ss:$12 sps:$4 sm:$0xff]  }
 0x2c5   : > { %1854 = vmatprep.subr.bf16.mxu0 %v13148_v21  ;;  %12111 = vmatprep.subr.bf16.mxu1 %v13166_v37  ;;  %v13168_v40 = vld [vmem:[%s15449_s30 + $0x80] ss:$12 sps:$4 sm:$0xff]   ;;  %v13163_v41 = vld [vmem:[%s15449_s30 + $0x4] ss:$12 sps:$4 sm:$0xff]   ;;  %v13169_v43 = vld [vmem:[%s15449_s30 + $0x68] ss:$12 sps:$4 sm:$0xff]  }
 0x2c6   : > { %12127 = vmatprep.mubr.bf16.mxu1 %v1697_v32  ;;  %12112 = vmatpush3.bf16.msra.mxu1 %v13166_v37  ;;  %v13165_v42 = vld [vmem:[%s15449_s30] ss:$12 sps:$4 sm:$0xff]   ;;  %v1627_v44 = vld [vmem:[#allocation2 + $0x58] sm:$0xff]  ;;  %v1643_v46 = vld [vmem:[#allocation7 + $0x10] sm:$0xff]  ;;  %s14639_s6 = smov 64   ;;  %s14640_s0 = smov 32  }
 0x2c7   : > { %12113 = vmatprep.subr.bf16.mxu1 %v13167_v38  ;;  %v1628_v45 = vld [vmem:[#allocation2 + $0x18] sm:$0xff]  ;;  %v15591_v50 = vadd.f32 %v1643_v46, %v1627_v44  ;;  %v1629_v52 = vld [vmem:[#allocation2 + $0x50] sm:$0xff]  ;;  %v1630_v53 = vld [vmem:[#allocation2 + $0x68] sm:$0xff]  ;;  %s19708_s11 = scalar_lea.vmem [#allocation13], %s15445_s5  ;;  %s19801_s29 = scalar_lea.vmem [#allocation28], %s15445_s5 }
 0x2c8   : > { %1855 = vmatpush1.bf16.msra.mxu0 %v13150_v22  ;;  %v1644_v47 = vld [vmem:[#allocation7 + $0x18] sm:$0xff]  ;;  %v1645_v54 = vld [vmem:[#allocation7 + $0x20] sm:$0xff]  ;;  %v1646_v55 = vld [vmem:[#allocation7 + $0x28] sm:$0xff]  ;;  %s19841_s1 = sld [smem:[#allocation119_spill]] }
 0x2c9   : > { %1856 = vmatprep.subr.bf16.mxu0 %v13151_v23  ;;  %v13170_v48 = vld [vmem:[%s15449_s30 + $0x50] ss:$12 sps:$4 sm:$0xff]   ;;  %v13171_v49 = vld [vmem:[%s15449_s30 + $0x38] ss:$12 sps:$4 sm:$0xff]   ;;  %19611 = vst [vmem:[#allocation60_spill] sm:$0xff] %v15591_v50  ;;  %v15593_v51 = vadd.f32 %v1644_v47, %v1628_v45  ;;  %v15600_v59 = vadd.f32 %v1645_v54, %v1629_v52  ;;  %v15602_v60 = vadd.f32 %v1646_v55, %v1630_v53  ;;  %v1631_v61 = vld [vmem:[#allocation2 + $0x8] sm:$0xff] }
 0x2ca   : > { %12114 = vmatpush3.bf16.msra.mxu1 %v13167_v38  ;;  %v13172_v56 = vld [vmem:[%s15449_s30 + $0x20] ss:$12 sps:$4 sm:$0xff]   ;;  %v13173_v58 = vld [vmem:[%s15449_s30 + $0x8] ss:$12 sps:$4 sm:$0xff]   ;;  %v1648_v0 = vld [vmem:[#allocation7 + $0x38] sm:$0xff]  ;;  %s19676_s30 = scalar_lea.vmem [#allocation16], %s15445_s5 }
 0x2cb   : > { %12115 = vmatprep.subr.bf16.mxu1 %v13168_v40  ;;  %19612 = vst [vmem:[#allocation61_spill] sm:$0xff] %v15593_v51  ;;  %v1698_v57 = vpack.c.bf16 %v15593_v51, %v15591_v50  ;;  %19613 = vst [vmem:[#allocation62_spill] sm:$0xff] %v15600_v59  ;;  %v1632_v62 = vld [vmem:[#allocation2 + $0x48] sm:$0xff]  ;;  %v1647_v63 = vld [vmem:[#allocation7 + $0x30] sm:$0xff]  ;;  %v1699_v1 = vpack.c.bf16 %v15602_v60, %v15600_v59  ;;  %s19844_s24 = sld [smem:[#allocation121_spill]] }
 0x2cc   : > { %1857 = vmatpush1.bf16.msra.mxu0 %v13153_v24  ;;  %19614 = vst [vmem:[#allocation63_spill] sm:$0xff] %v15602_v60  ;;  %v15607_v2 = vadd.f32 %v1647_v63, %v1631_v61  ;;  %v15609_v3 = vadd.f32 %v1648_v0, %v1632_v62  ;;  %v1633_v4 = vld [vmem:[#allocation2 + $0x40] sm:$0xff]  ;;  %v1635_v9 = vld [vmem:[#allocation2 + $0x10] sm:$0xff]  ;;  %v1636_v10 = vld [vmem:[#allocation2 + $0x38] sm:$0xff] }
 0x2cd   : > { %1858 = vmatprep.subr.bf16.mxu0 %v13154_v29  ;;  %v1634_v5 = vld [vmem:[#allocation2 + $0x20] sm:$0xff]  ;;  %v15615_v7 = vadd.f32 %v15565_v27, %v1633_v4  ;;  %v1638_v12 = vld [vmem:[#allocation2 + $0x70] sm:$0xff]  ;;  %v15623_v14 = vadd.f32 %v1643_v46, %v1635_v9  ;;  %v15625_v15 = vadd.f32 %v1644_v47, %v1636_v10  ;;  %v1639_v19 = vld [vmem:[#allocation2 + $0x78] sm:$0xff]  ;;  %v15644_v27 = vshrl.u32 %v1707_v26, 7 }
 0x2ce   : > { %12116 = vmatpush3.bf16.msra.mxu1 %v13168_v40  ;;  %19615 = vst [vmem:[#allocation64_spill] sm:$0xff] %v15607_v2  ;;  %19616 = vst [vmem:[#allocation65_spill] sm:$0xff] %v15609_v3  ;;  %v1700_v6 = vpack.c.bf16 %v15609_v3, %v15607_v2  ;;  %v15618_v8 = vadd.f32 %v15567_v28, %v1634_v5  ;;  %v1637_v11 = vld [vmem:[#allocation2 + $0x60] sm:$0xff]  ;;  %v15629_v17 = vadd.f32 %v1646_v55, %v1638_v12  ;;  %v1640_v20 = vld [vmem:[#allocation2 + $0x28] sm:$0xff] }
 0x2cf   : > { %12117 = vmatprep.subr.bf16.mxu1 %v13169_v43  ;;  %19617 = vst [vmem:[#allocation66_spill] sm:$0xff] %v15615_v7  ;;  %19619 = vst [vmem:[#allocation68_spill] sm:$0xff] %v15623_v14  ;;  %v15627_v16 = vadd.f32 %v1645_v54, %v1637_v11  ;;  %v1702_v21 = vpack.c.bf16 %v15625_v15, %v15623_v14  ;;  %v15636_v23 = vadd.f32 %v1647_v63, %v1639_v19  ;;  %v15650_v29 = vld [vmem:[%s15547_s2] sm:$0x7] }
 0x2d0   : > { %1859 = vmatpush1.bf16.msra.mxu0 %v13156_v33  ;;  %19618 = vst [vmem:[#allocation67_spill] sm:$0xff] %v15618_v8  ;;  %v1701_v13 = vpack.c.bf16 %v15618_v8, %v15615_v7  ;;  %19620 = vst [vmem:[#allocation69_spill] sm:$0xff] %v15625_v15  ;;  %v15638_v24 = vadd.f32 %v1648_v0, %v1640_v20  ;;  %v15647_v28 = vsub.s32 0, %v15644_v27 }
 0x2d1   : > { %1860 = vmatprep.subr.bf16.mxu0 %v13157_v34  ;;  %19621 = vst [vmem:[#allocation70_spill] sm:$0xff] %v15627_v16  ;;  %19622 = vst [vmem:[#allocation71_spill] sm:$0xff] %v15629_v17  ;;  %v1703_v22 = vpack.c.bf16 %v15629_v17, %v15627_v16 }
 0x2d2   : > { %12118 = vmatpush3.bf16.msra.mxu1 %v13169_v43  ;;  %19623 = vst [vmem:[#allocation72_spill] sm:$0xff] %v15636_v23  ;;  %19624 = vst [vmem:[#allocation73_spill] sm:$0xff] %v15638_v24  ;;  %v1704_v25 = vpack.c.bf16 %v15638_v24, %v15636_v23  ;;  %v15657_v34 = vrot.slane %v15650_v29, %v15647_v28 }
 0x2d3   : > { %12119 = vmatprep.subr.bf16.mxu1 %v13170_v48  ;;  %19625 = vst [vmem:[#allocation74_spill] sm:$0xff] %v15644_v27  ;;  %19626 = vst [vmem:[#allocation75_spill] sm:$0xff] %v15647_v28 }
 0x2d4   : > { %1861 = vmatpush1.bf16.msra.mxu0 %v13159_v35 }
 0x2d5   : > { %1862 = vmatprep.subr.bf16.mxu0 %v13160_v36 }
 0x2d6   : > { %12120 = vmatpush3.bf16.msra.mxu1 %v13170_v48 }
 0x2d7   : > { %12121 = vmatprep.subr.bf16.mxu1 %v13171_v49 }
 0x2d8   : > { %1863 = vmatpush1.bf16.msra.mxu0 %v13162_v39 }
 0x2d9   : > { %1864 = vmatprep.subr.bf16.mxu0 %v13163_v41 }
 0x2da   : > { %12122 = vmatpush3.bf16.msra.mxu1 %v13171_v49 }
 0x2db   : > { %12123 = vmatprep.subr.bf16.mxu1 %v13172_v56 }
 0x2dc   : > { %1865 = vmatpush1.bf16.msra.mxu0 %v13165_v42 }
 0x2de   : > { %12124 = vmatpush3.bf16.msra.mxu1 %v13172_v56 }
 0x2df   : > { %1883 = vmatmul.mubr.bf16.vlgmr.msra.gmra.mxu0 %v1697_v32  ;;  %12125 = vmatprep.subr.bf16.mxu1 %v13173_v58  ;;  %v15653_v32 = vsub.s32 1, %v15644_v27 }
 0x2e0   : > { %1892 = vmatprep.mubr.bf16.mxu0 %v19438_v18 }
 0x2e1   : > { %19627 = vst [vmem:[#allocation76_spill] sm:$0xff] %v15653_v32  ;;  %v15661_v36 = vrot.slane %v15650_v29, %v15653_v32 }
 0x2e2   : > { %12126 = vmatpush3.bf16.msra.mxu1 %v13173_v58 }
 0x2e5   : > { %12128 = vmatmul.mubr.bf16.vlgmr.msra.gmra.mxu1 %v1698_v57 }
 0x2e6   : > { %12131 = vmatprep.mubr.bf16.mxu1 %v1699_v1 }
 0x2e7   : > { %1893 = vmatmul.mubr.bf16.gmra.mxu0 %v1698_v57 }
 0x2e8   : > { %1902 = vmatprep.mubr.bf16.mxu0 %v19438_v18 }
 0x2ed   : > { %12132 = vmatmul.mubr.bf16.gmra.mxu1 %v1700_v6 }
 0x2ee   : > { %12135 = vmatprep.mubr.bf16.mxu1 %v1701_v13 }
 0x2ef   : > { %1903 = vmatmul.mubr.bf16.gmra.mxu0 %v1699_v1 }
 0x2f0   : > { %1912 = vmatprep.mubr.bf16.mxu0 %v19438_v18 }
 0x2f5   : > { %12136 = vmatmul.mubr.bf16.gmra.mxu1 %v1702_v21 }
 0x2f6   : > { %12139 = vmatprep.mubr.bf16.mxu1 %v1703_v22 }
 0x2f7   : > { %1913 = vmatmul.mubr.bf16.gmra.mxu0 %v1700_v6 }
 0x2f8   : > { %1922 = vmatprep.mubr.bf16.mxu0 %v19438_v18 }
 0x2fd   : > { %12140 = vmatmul.mubr.bf16.gmra.mxu1 %v1704_v25 }
 0x2ff   : > { %1923 = vmatmul.mubr.bf16.gmra.mxu0 %v1701_v13 }
 0x300   : > { %1932 = vmatprep.mubr.bf16.mxu0 %v19438_v18 }
 0x307   : > { %1933 = vmatmul.mubr.bf16.gmra.mxu0 %v1702_v21 }
 0x308   : > { %1942 = vmatprep.mubr.bf16.mxu0 %v19438_v18 }
 0x30f   : > { %1943 = vmatmul.mubr.bf16.gmra.mxu0 %v1703_v22 }
 0x310   : > { %1952 = vmatprep.mubr.bf16.mxu0 %v19438_v18 }
 0x317   : > { %1953 = vmatmul.mubr.bf16.gmra.mxu0 %v1704_v25 }
 0x39f   : > { %v1884_v33 = vpop.f32.mrf.mxu0 }
 0x3a0   : > { %v1885_v38 = vadd.f32 %v1884_v33, %v15657_v34 }
 0x3a1   : > { %v1886_v35 = vpop.f32.mrf.mxu0 }
 0x3a2   : > { %v1887_v41 = vadd.f32 %v1886_v35, %v15661_v36 }
 0x3a3   : > { %v1888_v37 = vpop.f32.mrf.mxu0 }
 0x3a4   : > { %v1889_v39 = vadd.f32 %v1888_v37, %v15657_v34 }
 0x3a5   : > { %v1890_v40 = vpop.f32.mrf.mxu0 }
 0x3a6   : > { %v15666_v42 = vpack.c.bf16 %v1889_v39, %v1885_v38  ;;  %v1891_v43 = vadd.f32 %v1890_v40, %v15661_v36 }
 0x3a7   : > { %v15669_v44 = vpop.f32.mrf.mxu0 }
 0x3a8   : > { %v15671_v45 = vpack.c.bf16 %v1891_v43, %v1887_v41  ;;  %12151 = vmatprep.mubr.msk.bf16.mxu1 %vm2100_vm0, %v15666_v42  ;;  %v12129_v43 = vpop.f32.mrf.mxu1 }
 0x3a9   : > { %v1896_v46 = vpop.f32.mrf.mxu0 }
 0x3aa   : > { %2642 = vrot.lane.b32.xlu1 %v15671_v45, %s14638_s13  ;;  %v1897_v49 = vadd.f32 %v1896_v46, %v15661_v36 }
 0x3ab   : > { %v15677_v47 = vpop.f32.mrf.mxu0 }
 0x3ad   : > { %v1900_v48 = vpop.f32.mrf.mxu0 }
 0x3ae   : > { %v1901_v52 = vadd.f32 %v1900_v48, %v15661_v36 }
 0x3af   : > { %v15681_v53 = vpop.f32.mrf.mxu0 }
 0x3b0   : > { %v15683_v54 = vpack.c.bf16 %v1901_v52, %v1897_v49  ;;  %v1997_v52 = vpop.f32.mrf.mxu1 }
 0x3b1   : > { %v1906_v55 = vpop.f32.mrf.mxu0 }
 0x3b2   : > { %2644 = vrot.lane.b32.xlu0 %v15683_v54, %s14638_s13  ;;  %v1907_v58 = vadd.f32 %v1906_v55, %v15661_v36  ;;  %v2117_v40 = vsel %vm2100_vm0, %v15683_v54, 0 }
 0x3b3   : > { %v1908_v56 = vpop.f32.mrf.mxu0 }
 0x3b5   : > { %v1910_v57 = vpop.f32.mrf.mxu0 }
 0x3b6   : > { %v1911_v61 = vadd.f32 %v1910_v57, %v15661_v36  ;;  %v19437_v57 = vsub.s32 2, %v15644_v27 }
 0x3b7   : > { %v15689_v62 = vpop.f32.mrf.mxu0 }
 0x3b8   : > { %v15691_v63 = vpack.c.bf16 %v1911_v61, %v1907_v58  ;;  %v12130_v61 = vpop.f32.mrf.mxu1 }
 0x3b9   : > { %v1916_v0 = vpop.f32.mrf.mxu0 }
 0x3ba   : > { %2646 = vrot.lane.b32.xlu1 %v15691_v63, %s14638_s13  ;;  %v1917_v5 = vadd.f32 %v1916_v0, %v15661_v36  ;;  %v2120_v33 = vsel %vm2100_vm0, %v15691_v63, 0 }
 0x3bb   : > { %v15695_v1 = vpop.f32.mrf.mxu0 }
 0x3bd   : > { %v1920_v4 = vpop.f32.mrf.mxu0 }
 0x3be   : > { %v1921_v6 = vadd.f32 %v1920_v4, %v15661_v36  ;;  %v2114_v4 = vsel %vm2100_vm0, %v15671_v45, 0 }
 0x3bf   : > { %v1924_v9 = vpop.f32.mrf.mxu0 }
 0x3c0   : > { %v15699_v10 = vpack.c.bf16 %v1921_v6, %v1917_v5  ;;  %v1925_v19 = vadd.f32 %v1924_v9, %v15657_v34  ;;  %v2000_v5 = vpop.f32.mrf.mxu1  ;;  %v15753_v9 = vrot.slane %v15650_v29, %v19437_v57  ;;  %v1905_v29 = vadd.f32 %v15681_v53, %v15657_v34 }
 0x3c1   : > { %v15701_v11 = vpop.f32.mrf.mxu0 }
 0x3c2   : > { %12949 = vmatprep.subr.msk.bf16.mxu1 %vm2100_vm0, %v15699_v10  ;;  %2648 = vrot.lane.b32.xlu0 %v15699_v10, %s14638_s13  ;;  %v2123_v12 = vsel %vm2100_vm0, %v15699_v10, 0 }
 0x3c3   : > { %v1928_v13 = vpop.f32.mrf.mxu0  ;;  %12144 = vmatpush3.bf16.xpose.msra.mxu1 %v2123_v12  ;;  %v12133_v12 = vpop.f32.mrf.mxu1 }
 0x3c4   : > { %v1929_v20 = vadd.f32 %v1928_v13, %v15657_v34  ;;  %12950 = vmatprep.subr.msk.bf16.mxu1 %vm2100_vm0, %v15691_v63  ;;  %v1899_v13 = vadd.f32 %v15677_v47, %v15657_v34 }
 0x3c5   : > { %v15713_v21 = vpop.f32.mrf.mxu0 }
 0x3c6   : > { %v15715_v22 = vpack.c.bf16 %v1929_v20, %v1925_v19  ;;  %v1909_v20 = vadd.f32 %v1908_v56, %v15657_v34 }
 0x3c7   : > { %v15717_v25 = vpop.f32.mrf.mxu0 }
 0x3c8   : > { %12167 = vmatprep.mubr.msk.bf16.mxu0 %vm2100_vm0, %v15715_v22  ;;  %v15771_v57 = vpack.c.bf16 %v1909_v20, %v1905_v29  ;;  %v2009_v20 = vadd.f32 %v12130_v61, %v15753_v9  ;;  %v1998_v61 = vadd.f32 %v1997_v52, %v15753_v9 }
 0x3c9   : > { %v15721_v26 = vpop.f32.mrf.mxu0 }
 0x3cb   : > { %v15725_v35 = vpop.f32.mrf.mxu0  ;;  %12146 = vmatpush3.bf16.xpose.msra.mxu1 %v2120_v33 }
 0x3cc   : > { %12951 = vmatprep.subr.msk.bf16.mxu1 %vm2100_vm0, %v15683_v54 }
 0x3cd   : > { %v1940_v37 = vpop.f32.mrf.mxu0 }
 0x3cf   : > { %v15729_v38 = vpop.f32.mrf.mxu0 }
 0x3d1   : > { %v1946_v39 = vpop.f32.mrf.mxu0 }
 0x3d2   : > { %v1947_v48 = vadd.f32 %v1946_v39, %v15661_v36 }
 0x3d3   : > { %v15733_v41 = vpop.f32.mrf.mxu0  ;;  %12148 = vmatpush3.bf16.xpose.msra.mxu1 %v2117_v40  ;;  %v2013_v40 = vpop.f32.mrf.mxu1 }
 0x3d4   : > { %12952 = vmatprep.subr.msk.bf16.mxu1 %vm2100_vm0, %v15671_v45  ;;  %v2014_v56 = vadd.f32 %v2013_v40, %v15753_v9 }
 0x3d5   : > { %v1950_v46 = vpop.f32.mrf.mxu0 }
 0x3d6   : > { %v1951_v49 = vadd.f32 %v1950_v46, %v15661_v36  ;;  %v1895_v46 = vadd.f32 %v15669_v44, %v15657_v34 }
 0x3d7   : > { %v15739_v55 = vpop.f32.mrf.mxu0 }
 0x3d8   : > { %v15742_v58 = vpack.c.bf16 %v1951_v49, %v1947_v48  ;;  %v2022_v48 = vadd.f32 %v12133_v12, %v15753_v9  ;;  %v15767_v47 = vpack.c.bf16 %v1899_v13, %v1895_v46 }
 0x3d9   : > { %v1956_v0 = vpop.f32.mrf.mxu0 }
 0x3da   : > { %2759 = vrot.lane.b32.xlu1 %v15742_v58, %s14638_s13  ;;  %v1957_v33 = vadd.f32 %v1956_v0, %v15661_v36 }
 0x3db   : > { %v15748_v6 = vpop.f32.mrf.mxu0  ;;  %12150 = vmatpush3.bf16.xpose.msra.mxu1 %v2114_v4  ;;  %v12134_v4 = vpop.f32.mrf.mxu1 }
 0x3dc   : > { %v2025_v0 = vadd.f32 %v12134_v4, %v15753_v9  ;;  %v2001_v4 = vadd.f32 %v2000_v5, %v15753_v9 }
 0x3dd   : > { %v1960_v19 = vpop.f32.mrf.mxu0  ;;  %v2016_v53 = vpop.f32.mrf.mxu1 }
 0x3de   : > { %v1961_v39 = vadd.f32 %v1960_v19, %v15661_v36  ;;  %v15781_v12 = vpack.c.bf16 %v2025_v0, %v2022_v48  ;;  %v2017_v13 = vadd.f32 %v2016_v53, %v15753_v9  ;;  %v2006_v19 = vadd.f32 %v12129_v43, %v15753_v9 }
 0x3df   : > { %v1941_v48 = vadd.f32 %v1940_v37, %v15661_v36  ;;  %v1915_v43 = vadd.f32 %v15689_v62, %v15657_v34  ;;  %v2209_v62 = vsel %vm2100_vm0, %v15742_v58, 0 }
 0x3e0   : > { %v15765_v49 = vpack.c.bf16 %v1961_v39, %v1957_v33  ;;  %19628 = vst [vmem:[#allocation77_spill] sm:$0xff] %v15781_v12  ;;  %v12137_v33 = vpop.f32.mrf.mxu1  ;;  %v1919_v39 = vadd.f32 %v15695_v1, %v15657_v34  ;;  %v15792_v40 = vpack.c.bf16 %v2017_v13, %v2014_v56  ;;  %12175 = vmatprep.subr.bf16.mxu1 %v15781_v12 }
 0x3e1   : > { %v2038_v46 = vadd.f32 %v12137_v33, %v15753_v9  ;;  %v1937_v56 = vadd.f32 %v15721_v26, %v15661_v36  ;;  %v15806_v0 = vpack.c.bf16 %v2009_v20, %v2006_v19  ;;  %v15818_v26 = vpack.c.bf16 %v2001_v4, %v1998_v61 }
 0x3e2   : > { %12953 = vmatprep.subr.msk.bf16.mxu0 %vm2100_vm0, %v15765_v49  ;;  %2761 = vrot.lane.b32.xlu1 %v15765_v49, %s14638_s13  ;;  %v2212_v44 = vsel %vm2100_vm0, %v15765_v49, 0  ;;  %19629 = vst [vmem:[#allocation78_spill] sm:$0xff] %v15792_v40  ;;  %v2029_v29 = vpop.f32.mrf.mxu1 }
 0x3e3   : > { %12152 = vmatmul.mubr.msk.bf16.vlgmr.msra.gmra.mxu1 %vm2100_vm0, %v15767_v47  ;;  %12160 = vmatpush3.bf16.xpose.msra.mxu0 %v2212_v44  ;;  %v2030_v1 = vadd.f32 %v2029_v29, %v15753_v9  ;;  %19630 = vst [vmem:[#allocation79_spill] sm:$0xff] %v15806_v0  ;;  %v15808_v44 = vpack.c.bf16 %v1919_v39, %v1915_v43  ;;  %19631 = vst [vmem:[#allocation80_spill] sm:$0xff] %v15818_v26 }
 0x3e4   : > { %12155 = vmatprep.mubr.msk.bf16.mxu1 %vm2100_vm0, %v15771_v57  ;;  %12954 = vmatprep.subr.msk.bf16.mxu0 %vm2100_vm0, %v15742_v58  ;;  %v12138_v37 = vpop.f32.mrf.mxu1  ;;  %v15811_v13 = vpack.c.bf16 %v1941_v48, %v1937_v56  ;;  %v1931_v39 = vadd.f32 %v15713_v21, %v15661_v36  ;;  %v1927_v43 = vadd.f32 %v15701_v11, %v15661_v36 }
 0x3e5   : > { %12176 = vmatpush3.bf16.msra.mxu1 %v15781_v12  ;;  %v2041_v53 = vadd.f32 %v12138_v37, %v15753_v9 }
 0x3e6   : > { %12177 = vmatprep.subr.bf16.mxu1 %v15792_v40  ;;  %v2032_v52 = vpop.f32.mrf.mxu1  ;;  %v2206_v21 = vsel %vm2100_vm0, %v15811_v13, 0 }
 0x3e7   : > { %v15820_v5 = vpack.c.bf16 %v2041_v53, %v2038_v46  ;;  %v2033_v19 = vadd.f32 %v2032_v52, %v15753_v9  ;;  %v1949_v52 = vadd.f32 %v15733_v41, %v15657_v34  ;;  %v1955_v41 = vadd.f32 %v15739_v55, %v15657_v34 }
 0x3e8   : > { %v12141_v20 = vpop.f32.mrf.mxu1 }
 0x3e9   : > { %12178 = vmatpush3.bf16.msra.mxu1 %v15792_v40  ;;  %v15826_v33 = vpack.c.bf16 %v2033_v19, %v2030_v1  ;;  %v2054_v46 = vadd.f32 %v12141_v20, %v15753_v9  ;;  %v15837_v1 = vpack.c.bf16 %v1931_v39, %v1927_v43  ;;  %v1945_v19 = vadd.f32 %v15729_v38, %v15657_v34 }
 0x3ea   : > { %12179 = vmatprep.subr.bf16.mxu1 %v15806_v0  ;;  %v2045_v48 = vpop.f32.mrf.mxu1 }
 0x3eb   : > { %12156 = vmatmul.mubr.msk.bf16.gmra.mxu1 %vm2100_vm0, %v15808_v44  ;;  %12162 = vmatpush3.bf16.xpose.msra.mxu0 %v2209_v62  ;;  %v2046_v29 = vadd.f32 %v2045_v48, %v15753_v9  ;;  %v2203_v11 = vsel %vm2100_vm0, %v15837_v1, 0  ;;  %v1939_v62 = vadd.f32 %v15725_v35, %v15657_v34  ;;  %v15862_v39 = vpack.c.bf16 %v1949_v52, %v1945_v19 }
 0x3ec   : > { %12955 = vmatprep.subr.msk.bf16.mxu0 %vm2100_vm0, %v15811_v13  ;;  %v12142_v61 = vpop.f32.mrf.mxu1  ;;  %v1959_v35 = vadd.f32 %v15748_v6, %v15657_v34 }
 0x3ed   : > { %12180 = vmatpush3.bf16.msra.mxu1 %v15806_v0  ;;  %v2057_v4 = vadd.f32 %v12142_v61, %v15753_v9 }
 0x3ee   : > { %12181 = vmatprep.subr.bf16.mxu1 %v15818_v26  ;;  %v2048_v56 = vpop.f32.mrf.mxu1 }
 0x3ef   : > { %v15842_v37 = vpack.c.bf16 %v2057_v4, %v2054_v46  ;;  %v2049_v53 = vadd.f32 %v2048_v56, %v15753_v9  ;;  %v1935_v9 = vadd.f32 %v15717_v25, %v15657_v34  ;;  %v15872_v25 = vpack.c.bf16 %v1959_v35, %v1955_v41 }
 0x3f1   : > { %12182 = vmatpush3.bf16.msra.mxu1 %v15818_v26  ;;  %19632 = vst [vmem:[#allocation81_spill] sm:$0xff] %v15842_v37  ;;  %v15847_v36 = vpack.c.bf16 %v2049_v53, %v2046_v29  ;;  %v15860_v20 = vpack.c.bf16 %v1939_v62, %v1935_v9 }
 0x3f2   : > { %12191 = vmatprep.subr.bf16.mxu1 %v15842_v37 }
 0x3f3   : > { %12164 = vmatpush3.bf16.xpose.msra.mxu0 %v2206_v21  ;;  %19633 = vst [vmem:[#allocation82_spill] sm:$0xff] %v15847_v36 }
 0x3f4   : > { %12956 = vmatprep.subr.msk.bf16.mxu0 %vm2100_vm0, %v15837_v1 }
 0x3fb   : > { %12166 = vmatpush3.bf16.xpose.msra.mxu0 %v2203_v11 }
 0x402   : > { %12168 = vmatmul.mubr.msk.bf16.vlgmr.msra.gmra.mxu0 %vm2100_vm0, %v15860_v20 }
 0x403   : > { %12171 = vmatprep.mubr.msk.bf16.mxu0 %vm2100_vm0, %v15862_v39 }
 0x40a   : > { %12172 = vmatmul.mubr.msk.bf16.gmra.mxu0 %vm2100_vm0, %v15872_v25 }
 0x41c   : > { %v2643_v48 = vpop.permute.xlu1 %2642 }
 0x41d   : > { %v2663_v55 = vsel %vm2100_vm0, %v2643_v48, 0 }
 0x424   : > { %v2645_v38 = vpop.permute.xlu0 %2644 }
 0x425   : > { %v2666_v34 = vsel %vm2100_vm0, %v2645_v38, 0 }
 0x42c   : > { %v2647_v43 = vpop.permute.xlu1 %2646 }
 0x42d   : > { %v2669_v6 = vsel %vm2100_vm0, %v2647_v43, 0 }
 0x434   : > { %v2649_v46 = vpop.permute.xlu0 %2648 }
 0x435   : > { %12957 = vmatprep.subr.msk.bf16.mxu0 %vm2100_vm0, %v2649_v46  ;;  %v2672_v29 = vsel %vm2100_vm0, %v2649_v46, 0 }
 0x436   : > { %12208 = vmatpush3.bf16.xpose.msra.mxu0 %v2672_v29 }
 0x437   : > { %12958 = vmatprep.subr.msk.bf16.mxu0 %vm2100_vm0, %v2647_v43 }
 0x43e   : > { %12210 = vmatpush3.bf16.xpose.msra.mxu0 %v2669_v6 }
 0x43f   : > { %12959 = vmatprep.subr.msk.bf16.mxu0 %vm2100_vm0, %v2645_v38 }
 0x446   : > { %12212 = vmatpush3.bf16.xpose.msra.mxu0 %v2666_v34 }
 0x447   : > { %12960 = vmatprep.subr.msk.bf16.mxu0 %vm2100_vm0, %v2643_v48 }
 0x44e   : > { %12214 = vmatpush3.bf16.xpose.msra.mxu0 %v2663_v55 }
 0x4a3   : > { %v12153_v61 = vpop.f32.mrf.mxu1 }
 0x4a4   : > { %v2286_v4 = vsel %vm2279_vm1, %v12153_v61, -inf }
 0x4a5   : > { %2287 = vmax.xlane.f32.xlu1 %v2286_v4  ;;  %v2159_v21 = vpop.f32.mrf.mxu1 }
 0x4a6   : > { %v2280_v56 = vsel %vm2279_vm1, %v2159_v21, -inf }
 0x4a7   : > { %2281 = vmax.xlane.f32.xlu0 %v2280_v56  ;;  %v12154_v53 = vpop.f32.mrf.mxu1 }
 0x4a8   : > { %v2289_v11 = vsel %vm2279_vm1, %v12154_v53, -inf }
 0x4a9   : > { %2290 = vmax.xlane.f32.xlu1 %v2289_v11  ;;  %v2162_v62 = vpop.f32.mrf.mxu1 }
 0x4aa   : > { %v2283_v52 = vsel %vm2279_vm1, %v2162_v62, -inf }
 0x4ab   : > { %2284 = vmax.xlane.f32.xlu0 %v2283_v52  ;;  %v12157_v9 = vpop.f32.mrf.mxu1 }
 0x4ac   : > { %v2298_v35 = vsel %vm2279_vm1, %v12157_v9, -inf }
 0x4ad   : > { %v15888_v19 = vpop.f32.mrf.mxu1 }
 0x4ae   : > { %v2292_v46 = vsel %vm2279_vm1, %v15888_v19, -inf }
 0x4af   : > { %2299 = vmax.xlane.f32.xlu0 %v2298_v35  ;;  %v12158_v41 = vpop.f32.mrf.mxu1 }
 0x4b0   : > { %v2301_v38 = vsel %vm2279_vm1, %v12158_v41, -inf }
 0x4b1   : > { %2302 = vmax.xlane.f32.xlu1 %v2301_v38  ;;  %v15892_v48 = vpop.f32.mrf.mxu1 }
 0x4b2   : > { %v2295_v29 = vsel %vm2279_vm1, %v15892_v48, -inf }
 0x4b3   : > { %2293 = vmax.xlane.f32.xlu0 %v2292_v46 }
 0x4b5   : > { %2296 = vmax.xlane.f32.xlu1 %v2295_v29 }
 0x4c2   : > { %v15898_v43 = vpop.f32.mrf.mxu0 }
 0x4c3   : > { %v2310_v6 = vsel %vm2279_vm1, %v15898_v43, -inf }
 0x4c4   : > { %v15902_v34 = vpop.f32.mrf.mxu0  ;;  %2311 = vmax.xlane.f32.xlu0 %v2310_v6 }
 0x4c5   : > { %v2304_v4 = vsel %vm2279_vm1, %v15902_v34, -inf }
 0x4c6   : > { %v15904_v55 = vpop.f32.mrf.mxu0 }
 0x4c7   : > { %v2313_v56 = vsel %vm2279_vm1, %v15904_v55, -inf }
 0x4c8   : > { %v15910_v11 = vpop.f32.mrf.mxu0  ;;  %2305 = vmax.xlane.f32.xlu0 %v2304_v4  ;;  %2314 = vmax.xlane.f32.xlu1 %v2313_v56 }
 0x4c9   : > { %v2307_v38 = vsel %vm2279_vm1, %v15910_v11, -inf }
 0x4ca   : > { %v15912_v52 = vpop.f32.mrf.mxu0 }
 0x4cb   : > { %v2322_v35 = vsel %vm2279_vm1, %v15912_v52, -inf }
 0x4cc   : > { %v15918_v46 = vpop.f32.mrf.mxu0  ;;  %2323 = vmax.xlane.f32.xlu0 %v2322_v35  ;;  %2308 = vmax.xlane.f32.xlu1 %v2307_v38  ;;  %v15934_v35 = vpop.permute.xlu1 %2759 }
 0x4cd   : > { %v2316_v6 = vsel %vm2279_vm1, %v15918_v46, -inf }
 0x4ce   : > { %v15920_v29 = vpop.f32.mrf.mxu0 }
 0x4cf   : > { %v2325_v4 = vsel %vm2279_vm1, %v15920_v29, -inf }
 0x4d0   : > { %v15926_v56 = vpop.f32.mrf.mxu0  ;;  %2317 = vmax.xlane.f32.xlu0 %v2316_v6  ;;  %2326 = vmax.xlane.f32.xlu1 %v2325_v4  ;;  %v15936_v38 = vpop.permute.xlu1 %2761 }
 0x4d1   : > { %v2319_v18 = vsel %vm2279_vm1, %v15926_v56, -inf }
 0x4d4   : > { %2320 = vmax.xlane.f32.xlu1 %v2319_v18 }
 0x4e5   : > { %2632 = vrot.lane.b32.xlu1 %v15767_v47, %s14638_s13 }
 0x4e6   : > { %2630 = vrot.lane.b32.xlu0 %v15666_v42, %s14638_s13 }
 0x52e   : > { %v2288_v27 = vpop.xlane.xlu1 %2287 }
 0x52f   : > { %v2330_v28 = vsub.f32 %v12153_v61, %v2288_v27 }
 0x530   : > { %v2282_v32 = vpop.xlane.xlu0 %2281 }
 0x531   : > { %v2348_v24 = vmul.f32 1.442695, %v2330_v28  ;;  %v2328_v6 = vsub.f32 %v2159_v21, %v2282_v32 }
 0x532   : > { %v2291_v4 = vpop.xlane.xlu1 %2290 }
 0x533   : > { %13310 = vpow2.f32 %v2348_v24  ;;  %v2344_v17 = vmul.f32 1.442695, %v2328_v6  ;;  %v2331_v23 = vsub.f32 %v12154_v53, %v2291_v4 }
 0x534   : > { %v2285_v18 = vpop.xlane.xlu0 %2284 }
 0x535   : > { %13312 = vpow2.f32 %v2344_v17  ;;  %v2350_v16 = vmul.f32 1.442695, %v2331_v23  ;;  %v2329_v15 = vsub.f32 %v2162_v62, %v2285_v18 }
 0x537   : > { %13314 = vpow2.f32 %v2350_v16  ;;  %v2346_v8 = vmul.f32 1.442695, %v2329_v15 }
 0x538   : > { %v2300_v14 = vpop.xlane.xlu0 %2299 }
 0x539   : > { %13316 = vpow2.f32 %v2346_v8  ;;  %v2334_v7 = vsub.f32 %v12157_v9, %v2300_v14 }
 0x53a   : > { %v2303_v2 = vpop.xlane.xlu1 %2302 }
 0x53b   : > { %v2356_v60 = vmul.f32 1.442695, %v2334_v7  ;;  %v2335_v59 = vsub.f32 %v12158_v41, %v2303_v2 }
 0x53c   : > { %v2294_v27 = vpop.xlane.xlu0 %2293 }
 0x53d   : > { %13318 = vpow2.f32 %v2356_v60  ;;  %v2358_v28 = vmul.f32 1.442695, %v2335_v59  ;;  %v2332_v32 = vsub.f32 %v15888_v19, %v2294_v27 }
 0x53e   : > { %v2297_v24 = vpop.xlane.xlu1 %2296 }
 0x53f   : > { %13320 = vpow2.f32 %v2358_v28  ;;  %v2352_v61 = vmul.f32 1.442695, %v2332_v32  ;;  %v2333_v17 = vsub.f32 %v15892_v48, %v2297_v24 }
 0x540   : > { %v15940_v23 = vpop.eup %13310 }
 0x541   : > { %13322 = vpow2.f32 %v2352_v61  ;;  %v2354_v15 = vmul.f32 1.442695, %v2333_v17  ;;  %v2382_v8 = vsel %vm2279_vm1, %v15940_v23, 0.0 }
 0x542   : > { %v15944_v14 = vpop.eup %13312  ;;  %2383 = vadd.xlane.f32.xlu0 %v2382_v8 }
 0x543   : > { %13324 = vpow2.f32 %v2354_v15  ;;  %v2376_v59 = vsel %vm2279_vm1, %v15944_v14, 0.0 }
 0x544   : > { %v15946_v60 = vpop.eup %13314 }
 0x545   : > { %v2385_v2 = vsel %vm2279_vm1, %v15946_v60, 0.0 }
 0x546   : > { %v15952_v7 = vpop.eup %13316  ;;  %2377 = vadd.xlane.f32.xlu0 %v2376_v59  ;;  %2386 = vadd.xlane.f32.xlu1 %v2385_v2 }
 0x547   : > { %v2379_v16 = vsel %vm2279_vm1, %v15952_v7, 0.0 }
 0x54a   : > { %v15956_v21 = vpop.eup %13318  ;;  %2380 = vadd.xlane.f32.xlu1 %v2379_v16 }
 0x54b   : > { %v2394_v53 = vsel %vm2279_vm1, %v15956_v21, 0.0 }
 0x54c   : > { %v15960_v62 = vpop.eup %13320  ;;  %2395 = vadd.xlane.f32.xlu0 %v2394_v53 }
 0x54d   : > { %v2312_v9 = vpop.xlane.xlu0 %2311  ;;  %v2397_v19 = vsel %vm2279_vm1, %v15960_v62, 0.0 }
 0x54e   : > { %v15964_v41 = vpop.eup %13322  ;;  %v2338_v48 = vsub.f32 %v15898_v43, %v2312_v9  ;;  %2398 = vadd.xlane.f32.xlu1 %v2397_v19 }
 0x54f   : > { %v2388_v6 = vsel %vm2279_vm1, %v15964_v41, 0.0 }
 0x550   : > { %v15969_v4 = vpop.eup %13324  ;;  %v2364_v18 = vmul.f32 1.442695, %v2338_v48  ;;  %2389 = vadd.xlane.f32.xlu0 %v2388_v6 }
 0x551   : > { %v2306_v27 = vpop.xlane.xlu0 %2305  ;;  %v2391_v28 = vsel %vm2279_vm1, %v15969_v4, 0.0  ;;  %v2315_v32 = vpop.xlane.xlu1 %2314 }
 0x552   : > { %13326 = vpow2.f32 %v2364_v18  ;;  %v2336_v24 = vsub.f32 %v15902_v34, %v2306_v27  ;;  %2392 = vadd.xlane.f32.xlu1 %v2391_v28  ;;  %v2339_v61 = vsub.f32 %v15904_v55, %v2315_v32 }
 0x554   : > { %v2360_v43 = vmul.f32 1.442695, %v2336_v24  ;;  %v2366_v17 = vmul.f32 1.442695, %v2339_v61 }
 0x555   : > { %v2324_v15 = vpop.xlane.xlu0 %2323  ;;  %v2309_v8 = vpop.xlane.xlu1 %2308 }
 0x556   : > { %13328 = vpow2.f32 %v2360_v43  ;;  %v2337_v59 = vsub.f32 %v15910_v11, %v2309_v8  ;;  %v2342_v24 = vsub.f32 %v15912_v52, %v2324_v15 }
 0x557   : > { %13330 = vpow2.f32 %v2366_v17 }
 0x558   : > { %v2362_v2 = vmul.f32 1.442695, %v2337_v59  ;;  %v2372_v61 = vmul.f32 1.442695, %v2342_v24 }
 0x559   : > { %v2318_v16 = vpop.xlane.xlu0 %2317  ;;  %v2327_v53 = vpop.xlane.xlu1 %2326 }
 0x55a   : > { %13332 = vpow2.f32 %v2362_v2  ;;  %v2340_v17 = vsub.f32 %v15918_v46, %v2318_v16  ;;  %v2343_v2 = vsub.f32 %v15920_v29, %v2327_v53 }
 0x55b   : > { %13334 = vpow2.f32 %v2372_v61 }
 0x55c   : > { %v2368_v59 = vmul.f32 1.442695, %v2340_v17 }
 0x55d   : > { %v2631_v9 = vpop.permute.xlu0 %2630  ;;  %v2321_v19 = vpop.xlane.xlu1 %2320 }
 0x55e   : > { %12215 = vmatprep.mubr.msk.bf16.mxu0 %vm2100_vm0, %v2631_v9  ;;  %v2341_v43 = vsub.f32 %v15926_v56, %v2321_v19  ;;  %v2374_v9 = vmul.f32 1.442695, %v2343_v2 }
 0x55f   : > { %v15977_v34 = vpop.eup %13326 }
 0x560   : > { %v2406_v55 = vsel %vm2279_vm1, %v15977_v34, 0.0  ;;  %v2370_v8 = vmul.f32 1.442695, %v2341_v43 }
 0x561   : > { %2407 = vadd.xlane.f32.xlu0 %v2406_v55  ;;  %v2633_v48 = vpop.permute.xlu1 %2632 }
 0x562   : > { %12216 = vmatmul.mubr.msk.bf16.vlgmr.msra.gmra.mxu0 %vm2100_vm0, %v2633_v48  ;;  %13336 = vpow2.f32 %v2370_v8 }
 0x563   : > { %v15982_v6 = vpop.eup %13328  ;;  %13338 = vpow2.f32 %v2368_v59 }
 0x564   : > { %v15984_v11 = vpop.eup %13330  ;;  %v2400_v18 = vsel %vm2279_vm1, %v15982_v6, 0.0  ;;  %13340 = vpow2.f32 %v2374_v9 }
 0x565   : > { %2401 = vadd.xlane.f32.xlu0 %v2400_v18  ;;  %v2409_v27 = vsel %vm2279_vm1, %v15984_v11, 0.0 }
 0x566   : > { %2410 = vadd.xlane.f32.xlu1 %v2409_v27 }
 0x567   : > { %v15990_v28 = vpop.eup %13332 }
 0x568   : > { %v2403_v32 = vsel %vm2279_vm1, %v15990_v28, 0.0  ;;  %v16002_v55 = vpop.eup %13334 }
 0x569   : > { %v2418_v48 = vsel %vm2279_vm1, %v16002_v55, 0.0 }
 0x56a   : > { %2404 = vadd.xlane.f32.xlu1 %v2403_v32 }
 0x56f   : > { %v16006_v52 = vpop.eup %13336 }
 0x570   : > { %v16008_v56 = vpop.eup %13338  ;;  %v2415_v46 = vsel %vm2279_vm1, %v16006_v52, 0.0 }
 0x571   : > { %v2412_v29 = vsel %vm2279_vm1, %v16008_v56, 0.0  ;;  %v16014_v15 = vpop.eup %13340 }
 0x572   : > { %v2421_v16 = vsel %vm2279_vm1, %v16014_v15, 0.0 }
 0x57b   : > { %2634 = vrot.lane.b32.xlu1 %v15771_v57, %s14638_s13  ;;  %2757 = vrot.lane.b32.xlu0 %v15811_v13, %s14638_s13 }
 0x59a   : > { %2419 = vadd.xlane.f32.xlu0 %v2418_v48 }
 0x59e   : > { %2416 = vadd.xlane.f32.xlu0 %v2415_v46 }
 0x59f   : > { %2413 = vadd.xlane.f32.xlu1 %v2412_v29 }
 0x5a3   : > { %2422 = vadd.xlane.f32.xlu1 %v2421_v16 }
 0x5b4   : > { %2755 = vrot.lane.b32.xlu1 %v15837_v1, %s14638_s13  ;;  %2636 = vrot.lane.b32.xlu0 %v15808_v44, %s14638_s13 }
 0x5b8   : > { %2745 = vrot.lane.b32.xlu1 %v15860_v20, %s14638_s13  ;;  %2743 = vrot.lane.b32.xlu0 %v15715_v22, %s14638_s13 }
 0x5bc   : > { %2749 = vrot.lane.b32.xlu1 %v15872_v25, %s14638_s13  ;;  %2747 = vrot.lane.b32.xlu0 %v15862_v39, %s14638_s13 }
 0x5cb   : > { %v2384_v53 = vpop.xlane.xlu0 %2383 }
 0x5cf   : > { %v2378_v19 = vpop.xlane.xlu0 %2377  ;;  %v2387_v18 = vpop.xlane.xlu1 %2386 }
 0x5d0   : > { %13342 = vrcp.f32 %v2387_v18 }
 0x5d1   : > { %13344 = vrcp.f32 %v2378_v19 }
 0x5d2   : > { %13346 = vrcp.f32 %v2384_v53 }
 0x5d3   : > { %v2381_v27 = vpop.xlane.xlu1 %2380 }
 0x5d4   : > { %13348 = vrcp.f32 %v2381_v27 }
 0x5d5   : > { %v2396_v32 = vpop.xlane.xlu0 %2395 }
 0x5d7   : > { %v2399_v24 = vpop.xlane.xlu1 %2398 }
 0x5d8   : > { %13350 = vrcp.f32 %v2399_v24 }
 0x5d9   : > { %v2390_v61 = vpop.xlane.xlu0 %2389 }
 0x5da   : > { %13352 = vrcp.f32 %v2390_v61 }
 0x5db   : > { %13354 = vrcp.f32 %v2396_v32  ;;  %v2393_v43 = vpop.xlane.xlu1 %2392 }
 0x5dc   : > { %13356 = vrcp.f32 %v2393_v43 }
 0x5dd   : > { %v13343_v17 = vpop.eup %13342 }
 0x5de   : > { %v13345_v8 = vpop.eup %13344  ;;  %v2443_v9 = vmul.f32 %v13343_v17, %v15946_v60 }
 0x5df   : > { %v13347_v59 = vpop.eup %13346  ;;  %v2440_v48 = vmul.f32 %v13345_v8, %v15944_v14 }
 0x5e0   : > { %v2442_v29 = vmul.f32 %v13347_v59, %v15940_v23 }
 0x5e1   : > { %v13349_v2 = vpop.eup %13348 }
 0x5e2   : > { %v2441_v46 = vmul.f32 %v13349_v2, %v15952_v7  ;;  %v2457_v53 = vpack.c.bf16 %v2443_v9, %v2442_v29 }
 0x5e4   : > { %v2456_v16 = vpack.c.bf16 %v2441_v46, %v2440_v48 }
 0x5e5   : > { %v13351_v19 = vpop.eup %13350 }
 0x5e6   : > { %12183 = vmatprep.mubr.msk.bf16.mxu1 %vm2279_vm1, %v2456_v16  ;;  %v2447_v14 = vmul.f32 %v13351_v19, %v15960_v62  ;;  %v2785_v19 = vsel %vm2100_vm0, %v15936_v38, 0 }
 0x5e7   : > { %v13353_v18 = vpop.eup %13352  ;;  %12184 = vmatmul.mubr.msk.bf16.vlgmr.msra.gmra.mxu1 %vm2279_vm1, %v2457_v53 }
 0x5e8   : > { %v13355_v27 = vpop.eup %13354  ;;  %12192 = vmatpush3.bf16.msra.mxu1 %v15842_v37  ;;  %v2444_v7 = vmul.f32 %v13353_v18, %v15964_v41 }
 0x5e9   : > { %v13357_v32 = vpop.eup %13356  ;;  %12193 = vmatprep.subr.bf16.mxu1 %v15847_v36  ;;  %v2446_v24 = vmul.f32 %v13355_v27, %v15956_v21 }
 0x5ea   : > { %v2408_v60 = vpop.xlane.xlu0 %2407  ;;  %v2445_v23 = vmul.f32 %v13357_v32, %v15969_v4 }
 0x5eb   : > { %v2459_v43 = vpack.c.bf16 %v2447_v14, %v2446_v24 }
 0x5ec   : > { %12194 = vmatpush3.bf16.msra.mxu1 %v15847_v36  ;;  %v2458_v61 = vpack.c.bf16 %v2445_v23, %v2444_v7 }
 0x5ed   : > { %12195 = vmatprep.subr.bf16.mxu1 %v15820_v5 }
 0x5ee   : > { %12187 = vmatprep.mubr.msk.bf16.mxu1 %vm2279_vm1, %v2458_v61  ;;  %v2402_v17 = vpop.xlane.xlu0 %2401 }
 0x5ef   : > { %12188 = vmatmul.mubr.msk.bf16.gmra.mxu1 %vm2279_vm1, %v2459_v43  ;;  %v2411_v8 = vpop.xlane.xlu1 %2410 }
 0x5f0   : > { %12196 = vmatpush3.bf16.msra.mxu1 %v15820_v5  ;;  %13358 = vrcp.f32 %v2411_v8 }
 0x5f1   : > { %12197 = vmatprep.subr.bf16.mxu1 %v15826_v33  ;;  %13360 = vrcp.f32 %v2402_v17 }
 0x5f2   : > { %13362 = vrcp.f32 %v2408_v60 }
 0x5f3   : > { %v2405_v21 = vpop.xlane.xlu1 %2404 }
 0x5f4   : > { %12198 = vmatpush3.bf16.msra.mxu1 %v15826_v33  ;;  %13364 = vrcp.f32 %v2405_v21 }
 0x5f5   : > { %12961 = vmatprep.subr.msk.bf16.mxu1 %vm2100_vm0, %v15936_v38 }
 0x5f7   : > { %v2635_v62 = vpop.permute.xlu1 %2634 }
 0x5f8   : > { %12219 = vmatprep.mubr.msk.bf16.mxu0 %vm2100_vm0, %v2635_v62 }
 0x5fd   : > { %v13359_v41 = vpop.eup %13358 }
 0x5fe   : > { %v13361_v4 = vpop.eup %13360  ;;  %v2451_v9 = vmul.f32 %v13359_v41, %v15984_v11  ;;  %v2758_v11 = vpop.permute.xlu0 %2757 }
 0x5ff   : > { %v13363_v59 = vpop.eup %13362  ;;  %v2448_v48 = vmul.f32 %v13361_v4, %v15982_v6  ;;  %v2782_v6 = vsel %vm2100_vm0, %v15934_v35, 0 }
 0x600   : > { %v2450_v29 = vmul.f32 %v13363_v59, %v15977_v34  ;;  %v2779_v34 = vsel %vm2100_vm0, %v2758_v11, 0 }
 0x601   : > { %v13365_v2 = vpop.eup %13364 }
 0x602   : > { %v2449_v46 = vmul.f32 %v13365_v2, %v15990_v28  ;;  %v2461_v53 = vpack.c.bf16 %v2451_v9, %v2450_v29 }
 0x604   : > { %v2460_v16 = vpack.c.bf16 %v2449_v46, %v2448_v48 }
 0x606   : > { %12199 = vmatprep.mubr.msk.bf16.mxu1 %vm2279_vm1, %v2460_v16 }
 0x607   : > { %12200 = vmatmul.mubr.msk.bf16.vlgmr.msra.gmra.mxu1 %vm2279_vm1, %v2461_v53 }
 0x608   : > { %12224 = vmatpush3.bf16.xpose.msra.mxu1 %v2785_v19 }
 0x609   : > { %12962 = vmatprep.subr.msk.bf16.mxu1 %vm2100_vm0, %v15934_v35 }
 0x610   : > { %12226 = vmatpush3.bf16.xpose.msra.mxu1 %v2782_v6 }
 0x611   : > { %12963 = vmatprep.subr.msk.bf16.mxu1 %vm2100_vm0, %v2758_v11 }
 0x618   : > { %12228 = vmatpush3.bf16.xpose.msra.mxu1 %v2779_v34 }
 0x622   : > { %v16066_v28 = vpop.f32.mrf.mxu0 }
 0x623   : > { %v2420_v18 = vpop.xlane.xlu0 %2419  ;;  %v2858_v7 = vsel %vm2279_vm1, %v16066_v28, -inf }
 0x624   : > { %v16068_v27 = vpop.f32.mrf.mxu0 }
 0x625   : > { %v2852_v38 = vsel %vm2279_vm1, %v16068_v27, -inf }
 0x626   : > { %2853 = vmax.xlane.f32.xlu0 %v2852_v38  ;;  %v16072_v32 = vpop.f32.mrf.mxu0 }
 0x627   : > { %v2417_v14 = vpop.xlane.xlu0 %2416  ;;  %v2861_v43 = vsel %vm2279_vm1, %v16072_v32, -inf }
 0x628   : > { %13366 = vrcp.f32 %v2417_v14  ;;  %v2414_v35 = vpop.xlane.xlu1 %2413  ;;  %v16074_v60 = vpop.f32.mrf.mxu0 }
 0x629   : > { %13368 = vrcp.f32 %v2414_v35  ;;  %v2855_v23 = vsel %vm2279_vm1, %v16074_v60, -inf }
 0x62a   : > { %2859 = vmax.xlane.f32.xlu0 %v2858_v7  ;;  %2856 = vmax.xlane.f32.xlu1 %v2855_v23  ;;  %13370 = vrcp.f32 %v2420_v18 }
 0x62b   : > { %v2637_v24 = vpop.permute.xlu0 %2636 }
 0x62c   : > { %v2423_v61 = vpop.xlane.xlu1 %2422  ;;  %12220 = vmatmul.mubr.msk.bf16.gmra.mxu0 %vm2100_vm0, %v2637_v24 }
 0x62d   : > { %13372 = vrcp.f32 %v2423_v61 }
 0x62e   : > { %2862 = vmax.xlane.f32.xlu0 %v2861_v43 }
 0x62f   : > { %v2744_v16 = vpop.permute.xlu0 %2743 }
 0x630   : > { %v2756_v17 = vpop.permute.xlu1 %2755 }
 0x631   : > { %12964 = vmatprep.subr.msk.bf16.mxu1 %vm2100_vm0, %v2756_v17  ;;  %v2776_v8 = vsel %vm2100_vm0, %v2756_v17, 0 }
 0x632   : > { %12230 = vmatpush3.bf16.xpose.msra.mxu1 %v2776_v8 }
 0x633   : > { %v2748_v19 = vpop.permute.xlu0 %2747 }
 0x634   : > { %v2746_v53 = vpop.permute.xlu1 %2745 }
 0x635   : > { %v13367_v21 = vpop.eup %13366 }
 0x636   : > { %v13369_v62 = vpop.eup %13368  ;;  %v2453_v41 = vmul.f32 %v13367_v21, %v16006_v52 }
 0x637   : > { %v2452_v4 = vmul.f32 %v13369_v62, %v16008_v56  ;;  %v13371_v59 = vpop.eup %13370 }
 0x638   : > { %v2454_v48 = vmul.f32 %v13371_v59, %v16002_v55  ;;  %v2750_v52 = vpop.permute.xlu1 %2749 }
 0x639   : > { %v2462_v2 = vpack.c.bf16 %v2453_v41, %v2452_v4 }
 0x63a   : > { %v13373_v9 = vpop.eup %13372 }
 0x63b   : > { %12203 = vmatprep.mubr.msk.bf16.mxu1 %vm2279_vm1, %v2462_v2  ;;  %v2455_v46 = vmul.f32 %v13373_v9, %v16014_v15 }
 0x63d   : > { %v2463_v29 = vpack.c.bf16 %v2455_v46, %v2454_v48 }
 0x63f   : > { %12204 = vmatmul.mubr.msk.bf16.gmra.mxu1 %vm2279_vm1, %v2463_v29 }
 0x640   : > { %12231 = vmatprep.mubr.msk.bf16.mxu1 %vm2100_vm0, %v2744_v16 }
 0x647   : > { %12232 = vmatmul.mubr.msk.bf16.vlgmr.msra.gmra.mxu1 %vm2100_vm0, %v2746_v53 }
 0x648   : > { %12235 = vmatprep.mubr.msk.bf16.mxu1 %vm2100_vm0, %v2748_v19 }
 0x64f   : > { %12236 = vmatmul.mubr.msk.bf16.gmra.mxu1 %vm2100_vm0, %v2750_v52 }
 0x6a7   : > { %v16095_v56 = vpop.f32.mrf.mxu1 }
 0x6a9   : > { %v16097_v55 = vpop.f32.mrf.mxu1 }
 0x6ab   : > { %v16099_v15 = vpop.f32.mrf.mxu1 }
 0x6ad   : > { %v16103_v11 = vpop.f32.mrf.mxu1 }
 0x6af   : > { %v16105_v34 = vpop.f32.mrf.mxu1  ;;  %v2854_v43 = vpop.xlane.xlu0 %2853 }
 0x6b0   : > { %v2900_v62 = vsub.f32 %v16068_v27, %v2854_v43 }
 0x6b1   : > { %v16107_v18 = vpop.f32.mrf.mxu1 }
 0x6b2   : > { %v2916_v2 = vmul.f32 1.442695, %v2900_v62 }
 0x6b3   : > { %v16109_v38 = vpop.f32.mrf.mxu1  ;;  %v2860_v17 = vpop.xlane.xlu0 %2859 }
 0x6b4   : > { %v2902_v8 = vsub.f32 %v16066_v28, %v2860_v17  ;;  %v2857_v59 = vpop.xlane.xlu1 %2856 }
 0x6b5   : > { %v16113_v35 = vpop.f32.mrf.mxu1  ;;  %v2901_v9 = vsub.f32 %v16074_v60, %v2857_v59 }
 0x6b6   : > { %v2920_v41 = vmul.f32 1.442695, %v2902_v8 }
 0x6b7   : > { %v2863_v21 = vpop.xlane.xlu0 %2862  ;;  %v2918_v46 = vmul.f32 1.442695, %v2901_v9 }
 0x6b8   : > { %v2903_v4 = vsub.f32 %v16072_v32, %v2863_v21  ;;  %13374 = vpow2.f32 %v2920_v41 }
 0x6b9   : > { %13376 = vpow2.f32 %v2916_v2 }
 0x6ba   : > { %v2922_v48 = vmul.f32 1.442695, %v2903_v4 }
 0x6bc   : > { %13378 = vpow2.f32 %v2922_v48 }
 0x6bd   : > { %13380 = vpow2.f32 %v2918_v46 }
 0x6c5   : > { %v16130_v52 = vpop.eup %13374 }
 0x6c6   : > { %v13377_v60 = vpop.eup %13376  ;;  %v2954_v43 = vsel %vm2279_vm1, %v16130_v52, 0.0 }
 0x6c7   : > { %v16115_v7 = vpop.f32.mrf.mxu1  ;;  %v2948_v21 = vsel %vm2279_vm1, %v13377_v60, 0.0 }
 0x6c8   : > { %19634 = vst [vmem:[#allocation83_spill] sm:$0xff] %v16115_v7 }
 0x6c9   : > { %v16117_v23 = vpop.f32.mrf.mxu1  ;;  %v16135_v8 = vpop.eup %13378 }
 0x6ca   : > { %v2957_v62 = vsel %vm2279_vm1, %v16135_v8, 0.0  ;;  %v13381_v41 = vpop.eup %13380 }
 0x6cb   : > { %v16119_v24 = vpop.f32.mrf.mxu1  ;;  %v2951_v2 = vsel %vm2279_vm1, %v13381_v41, 0.0 }
 0x6cd   : > { %v16140_v4 = vpop.f32.mrf.mxu1 }
 0x6ec   : > { %v12221_v29 = vpop.f32.mrf.mxu0 }
 0x6ed   : > { %v2870_v19 = vsel %vm2279_vm1, %v12221_v29, -inf }
 0x6ee   : > { %v2724_v16 = vpop.f32.mrf.mxu0 }
 0x6ef   : > { %v2864_v28 = vsel %vm2279_vm1, %v2724_v16, -inf }
 0x6f0   : > { %2865 = vmax.xlane.f32.xlu0 %v2864_v28  ;;  %v12222_v53 = vpop.f32.mrf.mxu0 }
 0x6f1   : > { %v2873_v17 = vsel %vm2279_vm1, %v12222_v53, -inf }
 0x6f2   : > { %v2727_v27 = vpop.f32.mrf.mxu0 }
 0x6f3   : > { %v2867_v32 = vsel %vm2279_vm1, %v2727_v27, -inf }
 0x6f4   : > { %2871 = vmax.xlane.f32.xlu0 %v2870_v19  ;;  %2868 = vmax.xlane.f32.xlu1 %v2867_v32 }
 0x6f8   : > { %2955 = vadd.xlane.f32.xlu0 %v2954_v43  ;;  %2874 = vmax.xlane.f32.xlu1 %v2873_v17 }
 0x6fc   : > { %2949 = vadd.xlane.f32.xlu0 %v2948_v21  ;;  %2958 = vadd.xlane.f32.xlu1 %v2957_v62 }
 0x6ff   : > { %v16142_v59 = vpop.f32.mrf.mxu1 }
 0x700   : > { %19635 = vst [vmem:[#allocation84_spill] sm:$0xff] %v16142_v59  ;;  %2952 = vadd.xlane.f32.xlu1 %v2951_v2 }
 0x701   : > { %v16145_v9 = vpop.f32.mrf.mxu1 }
 0x703   : > { %v16147_v48 = vpop.f32.mrf.mxu1 }
 0x704   : > { %19636 = vst [vmem:[#allocation85_spill] sm:$0xff] %v16147_v48 }
 0x705   : > { %v16151_v62 = vpop.f32.mrf.mxu1 }
 0x707   : > { %v16155_v6 = vpop.f32.mrf.mxu1 }
 0x779   : > { %v2866_v28 = vpop.xlane.xlu0 %2865 }
 0x77a   : > { %v2904_v19 = vsub.f32 %v2724_v16, %v2866_v28  ;;  %v16159_v16 = vpop.f32.mrf.mxu1 }
 0x77c   : > { %v2924_v32 = vmul.f32 1.442695, %v2904_v19 }
 0x77d   : > { %v2872_v43 = vpop.xlane.xlu0 %2871  ;;  %v2869_v17 = vpop.xlane.xlu1 %2868 }
 0x77e   : > { %13382 = vpow2.f32 %v2924_v32  ;;  %v2905_v21 = vsub.f32 %v2727_v27, %v2869_v17  ;;  %v2906_v46 = vsub.f32 %v12221_v29, %v2872_v43 }
 0x780   : > { %v2926_v61 = vmul.f32 1.442695, %v2905_v21  ;;  %v2928_v32 = vmul.f32 1.442695, %v2906_v46  ;;  %v2876_v46 = vsel %vm2279_vm1, %v16159_v16, -inf }
 0x781   : > { %v16153_v14 = vpop.xlane.xlu0 %2955  ;;  %v2875_v2 = vpop.xlane.xlu1 %2874 }
 0x782   : > { %13384 = vpow2.f32 %v2926_v61  ;;  %v2907_v3 = vsub.f32 %v12222_v53, %v2875_v2  ;;  %v12234_v61 = vpop.f32.mrf.mxu1 }
 0x783   : > { %v2885_v2 = vsel %vm2279_vm1, %v12234_v61, -inf }
 0x784   : > { %v2930_v28 = vmul.f32 1.442695, %v2907_v3  ;;  %v2824_v29 = vpop.f32.mrf.mxu1 }
 0x785   : > { %v2950_v51 = vpop.xlane.xlu0 %2949  ;;  %v16157_v31 = vpop.xlane.xlu1 %2958 }
 0x786   : > { %13386 = vrcp.f32 %v2950_v51  ;;  %v2882_v51 = vsel %vm2279_vm1, %v16155_v6, -inf  ;;  %v12237_v21 = vpop.f32.mrf.mxu1 }
 0x788   : > { %v2837_v50 = vpop.f32.mrf.mxu1 }
 0x789   : > { %v2953_v19 = vpop.xlane.xlu1 %2952 }
 0x78a   : > { %13388 = vrcp.f32 %v2953_v19  ;;  %v2894_v19 = vsel %vm2279_vm1, %v12237_v21, -inf }
 0x78b   : > { %v16161_v27 = vpop.eup %13382  ;;  %13390 = vpow2.f32 %v2930_v28 }
 0x78c   : > { %v2960_v17 = vsel %vm2279_vm1, %v16161_v27, 0.0  ;;  %13392 = vpow2.f32 %v2928_v32 }
 0x78d   : > { %2961 = vadd.xlane.f32.xlu0 %v2960_v17 }
 0x78f   : > { %v16165_v53 = vpop.eup %13384 }
 0x790   : > { %v2963_v3 = vsel %vm2279_vm1, %v16165_v53, 0.0 }
 0x791   : > { %2883 = vmax.xlane.f32.xlu0 %v2882_v51  ;;  %2964 = vadd.xlane.f32.xlu1 %v2963_v3  ;;  %v2879_v51 = vsel %vm2279_vm1, %v2824_v29, -inf }
 0x793   : > { %v13387_v43 = vpop.eup %13386 }
 0x794   : > { %v3012_v32 = vmul.f32 %v13387_v43, %v13377_v60 }
 0x795   : > { %2877 = vmax.xlane.f32.xlu0 %v2876_v46  ;;  %2886 = vmax.xlane.f32.xlu1 %v2885_v2  ;;  %v2888_v46 = vsel %vm2279_vm1, %v2837_v50, -inf }
 0x797   : > { %v13389_v28 = vpop.eup %13388 }
 0x798   : > { %v3013_v17 = vmul.f32 %v13389_v28, %v13381_v41  ;;  %v16176_v30 = vpop.eup %13390  ;;  %v16194_v41 = vpop.f32.mrf.mxu1 }
 0x799   : > { %2895 = vmax.xlane.f32.xlu0 %v2894_v19  ;;  %2880 = vmax.xlane.f32.xlu1 %v2879_v51  ;;  %v16180_v59 = vpop.eup %13392  ;;  %v2969_v2 = vsel %vm2279_vm1, %v16176_v30, 0.0  ;;  %v2897_v43 = vsel %vm2279_vm1, %v16194_v41, -inf }
 0x79a   : > { %v3028_v3 = vpack.c.bf16 %v3013_v17, %v3012_v32  ;;  %v2966_v60 = vsel %vm2279_vm1, %v16180_v59, 0.0  ;;  %v16198_v28 = vpop.f32.mrf.mxu1 }
 0x79b   : > { %v2891_v19 = vsel %vm2279_vm1, %v16198_v28, -inf }
 0x79c   : > { %12247 = vmatprep.mubr.msk.bf16.mxu0 %vm2279_vm1, %v3028_v3 }
 0x79d   : > { %2889 = vmax.xlane.f32.xlu0 %v2888_v46  ;;  %2970 = vadd.xlane.f32.xlu1 %v2969_v2 }
 0x7a1   : > { %2967 = vadd.xlane.f32.xlu0 %v2966_v60 }
 0x7ae   : > { %3044 = vrot.lane.b32.xlu1 %v15792_v40, %s14638_s13 }
 0x7b7   : > { %3046 = vrot.lane.b32.xlu0 %v15781_v12, %s14638_s13 }
 0x7bb   : > { %3042 = vrot.lane.b32.xlu0 %v15806_v0, %s14638_s13 }
 0x7bf   : > { %3040 = vrot.lane.b32.xlu0 %v15818_v26, %s14638_s13 }
 0x7d2   : > { %2898 = vmax.xlane.f32.xlu1 %v2897_v43 }
 0x7d6   : > { %2892 = vmax.xlane.f32.xlu1 %v2891_v19 }
 0x7e7   : > { %3139 = vrot.lane.b32.xlu1 %v15842_v37, %s14638_s13 }
 0x7eb   : > { %3137 = vrot.lane.b32.xlu1 %v15847_v36, %s14638_s13 }
 0x816   : > { %v2962_v32 = vpop.xlane.xlu0 %2961 }
 0x81a   : > { %v2884_v17 = vpop.xlane.xlu0 %2883  ;;  %v2965_v3 = vpop.xlane.xlu1 %2964 }
 0x81b   : > { %v2910_v51 = vsub.f32 %v16155_v6, %v2884_v17 }
 0x81d   : > { %v2936_v46 = vmul.f32 1.442695, %v2910_v51 }
 0x81e   : > { %v2878_v2 = vpop.xlane.xlu0 %2877  ;;  %v2887_v43 = vpop.xlane.xlu1 %2886 }
 0x81f   : > { %13394 = vpow2.f32 %v2936_v46  ;;  %v2908_v60 = vsub.f32 %v16159_v16, %v2878_v2  ;;  %v2911_v26 = vsub.f32 %v12234_v61, %v2887_v43 }
 0x821   : > { %v2932_v0 = vmul.f32 1.442695, %v2908_v60  ;;  %v2938_v19 = vmul.f32 1.442695, %v2911_v26 }
 0x822   : > { %v2896_v40 = vpop.xlane.xlu0 %2895  ;;  %v2881_v48 = vpop.xlane.xlu1 %2880 }
 0x823   : > { %13396 = vpow2.f32 %v2932_v0  ;;  %v2914_v37 = vsub.f32 %v12237_v21, %v2896_v40  ;;  %v2909_v7 = vsub.f32 %v2824_v29, %v2881_v48 }
 0x824   : > { %13398 = vpow2.f32 %v2938_v19 }
 0x825   : > { %v2944_v36 = vmul.f32 1.442695, %v2914_v37  ;;  %13400 = vrcp.f32 %v16153_v14  ;;  %v2934_v6 = vmul.f32 1.442695, %v2909_v7 }
 0x826   : > { %v2890_v17 = vpop.xlane.xlu0 %2889  ;;  %v2971_v61 = vpop.xlane.xlu1 %2970 }
 0x827   : > { %13402 = vpow2.f32 %v2944_v36  ;;  %v2912_v51 = vsub.f32 %v2837_v50, %v2890_v17 }
 0x828   : > { %13404 = vrcp.f32 %v16157_v31 }
 0x829   : > { %13406 = vpow2.f32 %v2934_v6  ;;  %v2940_v16 = vmul.f32 1.442695, %v2912_v51 }
 0x82a   : > { %13408 = vrcp.f32 %v2965_v3  ;;  %v2968_v26 = vpop.xlane.xlu0 %2967  ;;  %v3045_v50 = vpop.permute.xlu1 %3044 }
 0x82b   : > { %13410 = vpow2.f32 %v2940_v16 }
 0x82c   : > { %v16210_v0 = vpop.eup %13394  ;;  %13412 = vrcp.f32 %v2962_v32 }
 0x82d   : > { %v2978_v40 = vsel %vm2279_vm1, %v16210_v0, 0.0  ;;  %13414 = vrcp.f32 %v2968_v26 }
 0x82e   : > { %v3047_v37 = vpop.permute.xlu0 %3046  ;;  %2979 = vadd.xlane.f32.xlu1 %v2978_v40  ;;  %13416 = vrcp.f32 %v2971_v61 }
 0x82f   : > { %12239 = vmatprep.subr.bf16.mxu0 %v3047_v37 }
 0x830   : > { %v16214_v14 = vpop.eup %13396  ;;  %12240 = vmatpush3.bf16.msra.mxu0 %v3047_v37 }
 0x831   : > { %12241 = vmatprep.subr.bf16.mxu0 %v3045_v50  ;;  %v2972_v31 = vsel %vm2279_vm1, %v16214_v14, 0.0  ;;  %v16218_v36 = vpop.eup %13398 }
 0x832   : > { %v3043_v7 = vpop.permute.xlu0 %3042  ;;  %2973 = vadd.xlane.f32.xlu1 %v2972_v31  ;;  %v13401_v48 = vpop.eup %13400  ;;  %v2981_v3 = vsel %vm2279_vm1, %v16218_v36, 0.0 }
 0x833   : > { %v3014_v61 = vmul.f32 %v13401_v48, %v16130_v52 }
 0x834   : > { %v16220_v29 = vpop.eup %13402  ;;  %12242 = vmatpush3.bf16.msra.mxu0 %v3045_v50 }
 0x835   : > { %v13405_v21 = vpop.eup %13404  ;;  %12243 = vmatprep.subr.bf16.mxu0 %v3043_v7  ;;  %v2990_v32 = vsel %vm2279_vm1, %v16220_v29, 0.0 }
 0x836   : > { %v16226_v46 = vpop.eup %13406  ;;  %2991 = vadd.xlane.f32.xlu0 %v2990_v32  ;;  %2982 = vadd.xlane.f32.xlu1 %v2981_v3  ;;  %v3041_v43 = vpop.permute.xlu0 %3040  ;;  %v3015_v6 = vmul.f32 %v13405_v21, %v16135_v8 }
 0x837   : > { %v13409_v2 = vpop.eup %13408  ;;  %v2975_v51 = vsel %vm2279_vm1, %v16226_v46, 0.0 }
 0x838   : > { %v16228_v60 = vpop.eup %13410  ;;  %12244 = vmatpush3.bf16.msra.mxu0 %v3043_v7  ;;  %v3017_v16 = vmul.f32 %v13409_v2, %v16165_v53  ;;  %v3029_v40 = vpack.c.bf16 %v3015_v6, %v3014_v61  ;;  %v13175_v6 = vld [vmem:[%s15456_s8 + $0x10] sm:$0xff]  }
 0x839   : > { %v13413_v19 = vpop.eup %13412  ;;  %12245 = vmatprep.subr.bf16.mxu0 %v3041_v43  ;;  %v2984_v17 = vsel %vm2279_vm1, %v16228_v60, 0.0 }
 0x83a   : > { %2985 = vadd.xlane.f32.xlu0 %v2984_v17  ;;  %2976 = vadd.xlane.f32.xlu1 %v2975_v51  ;;  %v3016_v26 = vmul.f32 %v13413_v19, %v16161_v27  ;;  %v13415_v37 = vpop.eup %13414  ;;  %v13174_v19 = vld [vmem:[%s15456_s8 + $0x18] sm:$0xff]  }
 0x83b   : > { %v13417_v8 = vpop.eup %13416  ;;  %v3018_v31 = vmul.f32 %v13415_v37, %v16180_v59 }
 0x83c   : > { %12246 = vmatpush3.bf16.msra.mxu0 %v3041_v43  ;;  %v3030_v50 = vpack.c.bf16 %v3017_v16, %v3016_v26  ;;  %v3019_v7 = vmul.f32 %v13417_v8, %v16176_v30 }
 0x83d   : > { %12271 = vmatprep.subr.bf16.mxu0 %v13174_v19 }
 0x83e   : > { %v3031_v21 = vpack.c.bf16 %v3019_v7, %v3018_v31 }
 0x83f   : > { %12248 = vmatmul.mubr.msk.bf16.vlgmr.msra.gmra.mxu0 %vm2279_vm1, %v3029_v40 }
 0x840   : > { %12251 = vmatprep.mubr.msk.bf16.mxu0 %vm2279_vm1, %v3030_v50  ;;  %12272 = vmatpush3.bf16.msra.mxu0 %v13174_v19 }
 0x841   : > { %12273 = vmatprep.subr.bf16.mxu0 %v13175_v6 }
 0x844   : > { %12274 = vmatpush3.bf16.msra.mxu0 %v13175_v6  ;;  %v13177_v6 = vld [vmem:[%s15456_s8] sm:$0xff]  }
 0x847   : > { %12252 = vmatmul.mubr.msk.bf16.gmra.mxu0 %vm2279_vm1, %v3031_v21 }
 0x85b   : > { %v2899_v53 = vpop.xlane.xlu1 %2898 }
 0x85c   : > { %v2915_v52 = vsub.f32 %v16194_v41, %v2899_v53 }
 0x85e   : > { %v2946_v48 = vmul.f32 1.442695, %v2915_v52 }
 0x85f   : > { %v2893_v27 = vpop.xlane.xlu1 %2892 }
 0x860   : > { %13418 = vpow2.f32 %v2946_v48  ;;  %v2913_v32 = vsub.f32 %v16198_v28, %v2893_v27 }
 0x862   : > { %v2942_v3 = vmul.f32 1.442695, %v2913_v32  ;;  %v13176_v32 = vld [vmem:[%s15456_s8 + $0x8] sm:$0xff]  }
 0x863   : > { %v3140_v2 = vpop.permute.xlu1 %3139 }
 0x864   : > { %13420 = vpow2.f32 %v2942_v3  ;;  %12255 = vmatprep.subr.bf16.mxu1 %v3140_v2 }
 0x865   : > { %12256 = vmatpush3.bf16.msra.mxu1 %v3140_v2 }
 0x867   : > { %v3138_v59 = vpop.permute.xlu1 %3137 }
 0x868   : > { %12257 = vmatprep.subr.bf16.mxu1 %v3138_v59 }
 0x869   : > { %12258 = vmatpush3.bf16.msra.mxu1 %v3138_v59 }
 0x86d   : > { %v16245_v30 = vpop.eup %13418 }
 0x86e   : > { %v2993_v41 = vsel %vm2279_vm1, %v16245_v30, 0.0 }
 0x86f   : > { %2994 = vadd.xlane.f32.xlu0 %v2993_v41 }
 0x871   : > { %v16249_v43 = vpop.eup %13420 }
 0x872   : > { %v2987_v28 = vsel %vm2279_vm1, %v16249_v43, 0.0 }
 0x873   : > { %2988 = vadd.xlane.f32.xlu1 %v2987_v28 }
 0x884   : > { %3133 = vrot.lane.b32.xlu1 %v15826_v33, %s14638_s13 }
 0x885   : > { %3135 = vrot.lane.b32.xlu0 %v15820_v5, %s14638_s13 }
 0x888   : > { %3508 = vrot.lane.b32.xlu1 %v15691_v63, %s14639_s6 }
 0x889   : > { %3510 = vrot.lane.b32.xlu0 %v15699_v10, %s14639_s6 }
 0x88c   : > { %3615 = vrot.lane.b32.xlu1 %v15765_v49, %s14639_s6 }
 0x88d   : > { %3506 = vrot.lane.b32.xlu0 %v15683_v54, %s14639_s6 }
 0x890   : > { %3613 = vrot.lane.b32.xlu1 %v15742_v58, %s14639_s6 }
 0x891   : > { %3504 = vrot.lane.b32.xlu0 %v15671_v45, %s14639_s6 }
 0x894   : > { %3498 = vrot.lane.b32.xlu1 %v15767_v47, %s14639_s6 }
 0x895   : > { %3496 = vrot.lane.b32.xlu0 %v15666_v42, %s14639_s6 }
 0x898   : > { %3500 = vrot.lane.b32.xlu1 %v15771_v57, %s14639_s6 }
 0x899   : > { %3611 = vrot.lane.b32.xlu0 %v15811_v13, %s14639_s6 }
 0x89c   : > { %3609 = vrot.lane.b32.xlu1 %v15837_v1, %s14639_s6 }
 0x89d   : > { %3502 = vrot.lane.b32.xlu0 %v15808_v44, %s14639_s6 }
 0x8a0   : > { %3603 = vrot.lane.b32.xlu1 %v15860_v20, %s14639_s6 }
 0x8a1   : > { %3601 = vrot.lane.b32.xlu0 %v15715_v22, %s14639_s6 }
 0x8a4   : > { %3607 = vrot.lane.b32.xlu1 %v15872_v25, %s14639_s6 }
 0x8a5   : > { %3605 = vrot.lane.b32.xlu0 %v15862_v39, %s14639_s6 }
 0x8a9   : > { %3896 = vrot.lane.b32.xlu0 %v15781_v12, %s14639_s6 }
 0x8b7   : > { %v2980_v17 = vpop.xlane.xlu1 %2979 }
 0x8bb   : > { %v2974_v51 = vpop.xlane.xlu1 %2973 }
 0x8bc   : > { %13422 = vrcp.f32 %v2974_v51 }
 0x8bf   : > { %v2983_v16 = vpop.xlane.xlu1 %2982  ;;  %v2992_v31 = vpop.xlane.xlu0 %2991 }
 0x8c3   : > { %v2977_v61 = vpop.xlane.xlu1 %2976  ;;  %v2986_v7 = vpop.xlane.xlu0 %2985 }
 0x8c4   : > { %13424 = vrcp.f32 %v2977_v61 }
 0x8c5   : > { %13426 = vrcp.f32 %v2983_v16 }
 0x8c6   : > { %13428 = vrcp.f32 %v2980_v17 }
 0x8c9   : > { %v13423_v26 = vpop.eup %13422 }
 0x8ca   : > { %v3020_v37 = vmul.f32 %v13423_v26, %v16214_v14 }
 0x8d1   : > { %v13425_v40 = vpop.eup %13424 }
 0x8d2   : > { %v3021_v50 = vmul.f32 %v13425_v40, %v16226_v46  ;;  %v13427_v53 = vpop.eup %13426 }
 0x8d3   : > { %v13429_v14 = vpop.eup %13428  ;;  %v3023_v27 = vmul.f32 %v13427_v53, %v16218_v36 }
 0x8d4   : > { %v3032_v8 = vpack.c.bf16 %v3021_v50, %v3020_v37  ;;  %v3022_v59 = vmul.f32 %v13429_v14, %v16210_v0 }
 0x8d6   : > { %12263 = vmatprep.mubr.msk.bf16.mxu1 %vm2279_vm1, %v3032_v8  ;;  %v3033_v19 = vpack.c.bf16 %v3023_v27, %v3022_v59 }
 0x8f8   : > { %v2995_v21 = vpop.xlane.xlu0 %2994 }
 0x8f9   : > { %13430 = vrcp.f32 %v2995_v21 }
 0x8fa   : > { %13432 = vrcp.f32 %v2986_v7 }
 0x8fb   : > { %13434 = vrcp.f32 %v2992_v31 }
 0x8fc   : > { %v3136_v52 = vpop.permute.xlu0 %3135  ;;  %v2989_v48 = vpop.xlane.xlu1 %2988 }
 0x8fd   : > { %13436 = vrcp.f32 %v2989_v48  ;;  %12259 = vmatprep.subr.bf16.mxu1 %v3136_v52 }
 0x8fe   : > { %12260 = vmatpush3.bf16.msra.mxu1 %v3136_v52 }
 0x8ff   : > { %v12249_v46 = vpop.f32.mrf.mxu0 }
 0x900   : > { %v3511_v3 = vpop.permute.xlu0 %3510  ;;  %v3134_v2 = vpop.permute.xlu1 %3133 }
 0x901   : > { %v3098_v41 = vpop.f32.mrf.mxu0  ;;  %12261 = vmatprep.subr.bf16.mxu1 %v3134_v2  ;;  %12965 = vmatprep.subr.msk.bf16.mxu0 %vm2100_vm0, %v3511_v3  ;;  %v3534_v31 = vsel %vm2100_vm0, %v3511_v3, 0 }
 0x902   : > { %12262 = vmatpush3.bf16.msra.mxu1 %v3134_v2 }
 0x903   : > { %v12250_v28 = vpop.f32.mrf.mxu0  ;;  %12291 = vmatprep.subr.bf16.mxu1 %v13176_v32 }
 0x904   : > { %v3507_v17 = vpop.permute.xlu0 %3506  ;;  %v3509_v51 = vpop.permute.xlu1 %3508  ;;  %v3223_v26 = vpack.c.bf16 %v12250_v28, %v12249_v46 }
 0x905   : > { %v3101_v16 = vpop.f32.mrf.mxu0  ;;  %12264 = vmatmul.mubr.msk.bf16.vlgmr.msra.gmra.mxu1 %vm2279_vm1, %v3033_v19  ;;  %v19637_v19 = vpack.c.bf16 %v16099_v15, %v16095_v56  ;;  %v19638_v15 = vpack.c.bf16 %v16109_v38, %v16105_v34 }
 0x906   : > { %v3222_v36 = vpack.c.bf16 %v3101_v16, %v3098_v41  ;;  %12292 = vmatpush3.bf16.msra.mxu1 %v13176_v32  ;;  %v13431_v61 = vpop.eup %13430  ;;  %v2622_v16 = vpack.c.bf16 %v16140_v4, %v16117_v23  ;;  %v2624_v23 = vpack.c.bf16 %v16151_v62, %v16145_v9  ;;  %v19639_v4 = vld [vmem:[#allocation83_spill] sm:$0xff] }
 0x907   : > { %v12253_v40 = vpop.f32.mrf.mxu0  ;;  %12293 = vmatprep.subr.bf16.mxu1 %v13177_v6  ;;  %v13433_v0 = vpop.eup %13432  ;;  %v3027_v53 = vmul.f32 %v13431_v61, %v16245_v30  ;;  %v2618_v30 = vpack.c.bf16 %v16103_v11, %v16097_v55  ;;  %v2620_v55 = vpack.c.bf16 %v16113_v35, %v16107_v18  ;;  %v19640_v34 = vpack.c.bf16 %v16119_v24, %v19639_v4 }
 0x908   : > { %12275 = vmatprep.mubr.msk.bf16.mxu0 %vm2100_vm0, %v3222_v36  ;;  %v3505_v37 = vpop.permute.xlu0 %3504  ;;  %v13435_v50 = vpop.eup %13434  ;;  %v3024_v48 = vmul.f32 %v13433_v0, %v16228_v60  ;;  %v19642_v0 = vld [vmem:[#allocation84_spill] sm:$0xff] }
 0x909   : > { %v3114_v8 = vpop.f32.mrf.mxu0  ;;  %12276 = vmatmul.mubr.msk.bf16.vlgmr.msra.gmra.mxu0 %vm2100_vm0, %v3223_v26  ;;  %v3616_v21 = vpop.permute.xlu1 %3615  ;;  %v3026_v27 = vmul.f32 %v13435_v50, %v16220_v29  ;;  %v3531_v29 = vsel %vm2100_vm0, %v3509_v51, 0 }
 0x90a   : > { %v13437_v7 = vpop.eup %13436  ;;  %12312 = vmatpush3.bf16.xpose.msra.mxu0 %v3534_v31  ;;  %12294 = vmatpush3.bf16.msra.mxu1 %v13177_v6  ;;  %v3639_v6 = vsel %vm2100_vm0, %v3616_v21, 0 }
 0x90b   : > { %12966 = vmatprep.subr.msk.bf16.mxu0 %vm2100_vm0, %v3509_v51  ;;  %v12254_v52 = vpop.f32.mrf.mxu0  ;;  %12969 = vmatprep.subr.msk.bf16.mxu1 %vm2100_vm0, %v3616_v21  ;;  %v3025_v14 = vmul.f32 %v13437_v7, %v16249_v43  ;;  %v3035_v59 = vpack.c.bf16 %v3027_v53, %v3026_v27  ;;  %v3528_v51 = vsel %vm2100_vm0, %v3507_v17, 0 }
 0x90c   : > { %v16310_v46 = vpop.permute.xlu0 %3496  ;;  %v3225_v41 = vpack.c.bf16 %v12254_v52, %v12253_v40  ;;  %v19641_v40 = vld [vmem:[#allocation85_spill] sm:$0xff] }
 0x90d   : > { %v3117_v32 = vpop.f32.mrf.mxu0  ;;  %v3034_v3 = vpack.c.bf16 %v3025_v14, %v3024_v48  ;;  %v3614_v11 = vpop.permute.xlu1 %3613 }
 0x90e   : > { %v3224_v2 = vpack.c.bf16 %v3117_v32, %v3114_v8  ;;  %v3636_v36 = vsel %vm2100_vm0, %v3614_v11, 0 }
 0x90f   : > { %12267 = vmatprep.mubr.msk.bf16.mxu1 %vm2279_vm1, %v3034_v3 }
 0x910   : > { %12279 = vmatprep.mubr.msk.bf16.mxu0 %vm2100_vm0, %v3224_v2  ;;  %v3612_v28 = vpop.permute.xlu0 %3611  ;;  %12268 = vmatmul.mubr.msk.bf16.gmra.mxu1 %vm2279_vm1, %v3035_v59 }
 0x911   : > { %12280 = vmatmul.mubr.msk.bf16.gmra.mxu0 %vm2100_vm0, %v3225_v41  ;;  %12295 = vmatprep.mubr.msk.bf16.mxu1 %vm2100_vm0, %v2618_v30  ;;  %v3499_v35 = vpop.permute.xlu1 %3498  ;;  %v3633_v38 = vsel %vm2100_vm0, %v3612_v28, 0 }
 0x912   : > { %12314 = vmatpush3.bf16.xpose.msra.mxu0 %v3531_v29 }
 0x913   : > { %12967 = vmatprep.subr.msk.bf16.mxu0 %vm2100_vm0, %v3507_v17  ;;  %v3525_v17 = vsel %vm2100_vm0, %v3505_v37, 0 }
 0x914   : > { %v16322_v60 = vpop.permute.xlu0 %3502 }
 0x915   : > { %v3501_v61 = vpop.permute.xlu1 %3500 }
 0x918   : > { %v3602_v43 = vpop.permute.xlu0 %3601  ;;  %12296 = vmatmul.mubr.msk.bf16.vlgmr.msra.gmra.mxu1 %vm2100_vm0, %v19637_v19 }
 0x919   : > { %12328 = vmatpush3.bf16.xpose.msra.mxu1 %v3639_v6  ;;  %12299 = vmatprep.mubr.msk.bf16.mxu1 %vm2100_vm0, %v2620_v55  ;;  %v3610_v26 = vpop.permute.xlu1 %3609 }
 0x91a   : > { %12316 = vmatpush3.bf16.xpose.msra.mxu0 %v3528_v51  ;;  %12970 = vmatprep.subr.msk.bf16.mxu1 %vm2100_vm0, %v3614_v11  ;;  %v3630_v9 = vsel %vm2100_vm0, %v3610_v26, 0 }
 0x91b   : > { %12968 = vmatprep.subr.msk.bf16.mxu0 %vm2100_vm0, %v3505_v37  ;;  %v19643_v37 = vpack.c.bf16 %v19641_v40, %v19642_v0 }
 0x91c   : > { %v3606_v18 = vpop.permute.xlu0 %3605 }
 0x91d   : > { %v3604_v24 = vpop.permute.xlu1 %3603 }
 0x920   : > { %v3897_v56 = vpop.permute.xlu0 %3896  ;;  %12300 = vmatmul.mubr.msk.bf16.gmra.mxu1 %vm2100_vm0, %v19638_v15 }
 0x921   : > { %12330 = vmatpush3.bf16.xpose.msra.mxu1 %v3636_v36  ;;  %12303 = vmatprep.mubr.msk.bf16.mxu1 %vm2100_vm0, %v2622_v16  ;;  %v3608_v62 = vpop.permute.xlu1 %3607 }
 0x922   : > { %12318 = vmatpush3.bf16.xpose.msra.mxu0 %v3525_v17  ;;  %12971 = vmatprep.subr.msk.bf16.mxu1 %vm2100_vm0, %v3612_v28 }
 0x923   : > { %12343 = vmatprep.subr.bf16.mxu0 %v3897_v56 }
 0x928   : > { %12304 = vmatmul.mubr.msk.bf16.gmra.mxu1 %vm2100_vm0, %v19640_v34 }
 0x929   : > { %12332 = vmatpush3.bf16.xpose.msra.mxu1 %v3633_v38  ;;  %12307 = vmatprep.mubr.msk.bf16.mxu1 %vm2100_vm0, %v2624_v23 }
 0x92a   : > { %12972 = vmatprep.subr.msk.bf16.mxu1 %vm2100_vm0, %v3610_v26 }
 0x930   : > { %12308 = vmatmul.mubr.msk.bf16.gmra.mxu1 %vm2100_vm0, %v19643_v37 }
 0x931   : > { %12334 = vmatpush3.bf16.xpose.msra.mxu1 %v3630_v9  ;;  %12335 = vmatprep.mubr.msk.bf16.mxu1 %vm2100_vm0, %v3602_v43 }
 0x938   : > { %12336 = vmatmul.mubr.msk.bf16.vlgmr.msra.gmra.mxu1 %vm2100_vm0, %v3604_v24 }
 0x939   : > { %12339 = vmatprep.mubr.msk.bf16.mxu1 %vm2100_vm0, %v3606_v18 }
 0x940   : > { %12340 = vmatmul.mubr.msk.bf16.gmra.mxu1 %vm2100_vm0, %v3608_v62 }
 0x9c5   : > { %v12265_v50 = vpop.f32.mrf.mxu1 }
 0x9c7   : > { %v3191_v8 = vpop.f32.mrf.mxu1 }
 0x9c9   : > { %v12266_v31 = vpop.f32.mrf.mxu1  ;;  %v12277_v21 = vpop.f32.mrf.mxu0 }
 0x9ca   : > { %v3227_v52 = vpack.c.bf16 %v12266_v31, %v12265_v50 }
 0x9cb   : > { %v3194_v7 = vpop.f32.mrf.mxu1  ;;  %v3300_v48 = vpop.f32.mrf.mxu0 }
 0x9cc   : > { %v3226_v53 = vpack.c.bf16 %v3194_v7, %v3191_v8 }
 0x9cd   : > { %v12278_v32 = vpop.f32.mrf.mxu0 }
 0x9ce   : > { %12283 = vmatprep.mubr.msk.bf16.mxu0 %vm2100_vm0, %v3226_v53 }
 0x9cf   : > { %12284 = vmatmul.mubr.msk.bf16.gmra.mxu0 %vm2100_vm0, %v3227_v52  ;;  %v16365_v30 = vpop.f32.mrf.mxu0 }
 0x9d0   : > { %v12269_v14 = vpop.f32.mrf.mxu1  ;;  %19644 = vst [vmem:[#allocation83_spill] sm:$0xff] %v16365_v30 }
 0x9d1   : > { %v12281_v43 = vpop.f32.mrf.mxu0 }
 0x9d2   : > { %v3207_v27 = vpop.f32.mrf.mxu1 }
 0x9d3   : > { %v3316_v18 = vpop.f32.mrf.mxu0 }
 0x9d4   : > { %v12270_v3 = vpop.f32.mrf.mxu1 }
 0x9d5   : > { %v3229_v41 = vpack.c.bf16 %v12270_v3, %v12269_v14  ;;  %v12282_v23 = vpop.f32.mrf.mxu0 }
 0x9d6   : > { %v3210_v2 = vpop.f32.mrf.mxu1 }
 0x9d7   : > { %v3228_v59 = vpack.c.bf16 %v3210_v2, %v3207_v27 }
 0x9d8   : > { %v12297_v28 = vpop.f32.mrf.mxu1 }
 0x9d9   : > { %v16367_v29 = vadd.f32 %v12297_v28, %v12277_v21  ;;  %12287 = vmatprep.mubr.msk.bf16.mxu0 %vm2100_vm0, %v3228_v59 }
 0x9da   : > { %12288 = vmatmul.mubr.msk.bf16.gmra.mxu0 %vm2100_vm0, %v3229_v41  ;;  %v3433_v55 = vpop.f32.mrf.mxu1 }
 0x9db   : > { %v16371_v11 = vadd.f32 %v3433_v55, %v3300_v48  ;;  %12319 = vmatprep.mubr.msk.bf16.mxu0 %vm2100_vm0, %v16310_v46 }
 0x9dc   : > { %v12298_v19 = vpop.f32.mrf.mxu1 }
 0x9dd   : > { %v16375_v6 = vadd.f32 %v12298_v19, %v12278_v32 }
 0x9de   : > { %v16377_v51 = vpop.f32.mrf.mxu1 }
 0x9df   : > { %19645 = vst [vmem:[#allocation85_spill] sm:$0xff] %v16377_v51 }
 0x9e0   : > { %v12301_v16 = vpop.f32.mrf.mxu1 }
 0x9e1   : > { %v16379_v15 = vadd.f32 %v12301_v16, %v12281_v43 }
 0x9e2   : > { %v3449_v36 = vpop.f32.mrf.mxu1  ;;  %12320 = vmatmul.mubr.msk.bf16.vlgmr.msra.gmra.mxu0 %vm2100_vm0, %v3499_v35 }
 0x9e3   : > { %v16382_v17 = vadd.f32 %v3449_v36, %v3316_v18  ;;  %12344 = vmatpush3.bf16.msra.mxu0 %v3897_v56  ;;  %12323 = vmatprep.mubr.msk.bf16.mxu0 %vm2100_vm0, %v3501_v61 }
 0x9e4   : > { %v12302_v46 = vpop.f32.mrf.mxu1 }
 0x9e5   : > { %v16385_v4 = vadd.f32 %v12302_v46, %v12282_v23  ;;  %v16427_v46 = vpop.f32.mrf.mxu0 }
 0x9e6   : > { %v16387_v34 = vpop.f32.mrf.mxu1  ;;  %19652 = vst [vmem:[#allocation91_spill] sm:$0xff] %v16427_v46 }
 0x9e7   : > { %19646 = vst [vmem:[#allocation84_spill] sm:$0xff] %v16387_v34  ;;  %v19659_v34 = vld [vmem:[#allocation79_spill] sm:$0xff] }
 0x9e8   : > { %v16389_v38 = vpop.f32.mrf.mxu1 }
 0x9ea   : > { %v16391_v26 = vpop.f32.mrf.mxu1  ;;  %12324 = vmatmul.mubr.msk.bf16.gmra.mxu0 %vm2100_vm0, %v16322_v60 }
 0x9ec   : > { %v16395_v40 = vpop.f32.mrf.mxu1 }
 0x9ee   : > { %v16397_v35 = vpop.f32.mrf.mxu1 }
 0x9ef   : > { %19647 = vst [vmem:[#allocation86_spill] sm:$0xff] %v16397_v35 }
 0x9f0   : > { %v16399_v56 = vpop.f32.mrf.mxu1 }
 0x9f1   : > { %19648 = vst [vmem:[#allocation87_spill] sm:$0xff] %v16399_v56 }
 0x9f2   : > { %v16401_v61 = vpop.f32.mrf.mxu1 }
 0x9f3   : > { %19649 = vst [vmem:[#allocation88_spill] sm:$0xff] %v16401_v61 }
 0x9f4   : > { %v16403_v0 = vpop.f32.mrf.mxu1 }
 0x9f5   : > { %19650 = vst [vmem:[#allocation89_spill] sm:$0xff] %v16403_v0 }
 0x9f6   : > { %v16405_v37 = vpop.f32.mrf.mxu1 }
 0x9f7   : > { %19651 = vst [vmem:[#allocation90_spill] sm:$0xff] %v16405_v37 }
 0x9f8   : > { %v12337_v9 = vpop.f32.mrf.mxu1 }
 0x9f9   : > { %v3736_v24 = vsel %vm2279_vm1, %v12337_v9, -inf }
 0x9fa   : > { %3737 = vmax.xlane.f32.xlu0 %v3736_v24  ;;  %v3675_v62 = vpop.f32.mrf.mxu1 }
 0x9fb   : > { %v3730_v60 = vsel %vm2279_vm1, %v3675_v62, -inf }
 0x9fc   : > { %v12338_v50 = vpop.f32.mrf.mxu1 }
 0x9fd   : > { %v3739_v8 = vsel %vm2279_vm1, %v12338_v50, -inf }
 0x9fe   : > { %3731 = vmax.xlane.f32.xlu0 %v3730_v60  ;;  %3740 = vmax.xlane.f32.xlu1 %v3739_v8  ;;  %v3678_v31 = vpop.f32.mrf.mxu1 }
 0x9ff   : > { %v3733_v21 = vsel %vm2279_vm1, %v3678_v31, -inf }
 0xa00   : > { %v16410_v7 = vpop.f32.mrf.mxu1 }
 0xa01   : > { %v3748_v53 = vsel %vm2279_vm1, %v16410_v7, -inf }
 0xa02   : > { %3734 = vmax.xlane.f32.xlu1 %v3733_v21  ;;  %3749 = vmax.xlane.f32.xlu0 %v3748_v53  ;;  %v16415_v52 = vpop.f32.mrf.mxu1 }
 0xa03   : > { %v3742_v14 = vsel %vm2279_vm1, %v16415_v52, -inf }
 0xa04   : > { %v16417_v48 = vpop.f32.mrf.mxu1 }
 0xa05   : > { %v3751_v27 = vsel %vm2279_vm1, %v16417_v48, -inf }
 0xa06   : > { %3743 = vmax.xlane.f32.xlu0 %v3742_v14  ;;  %3752 = vmax.xlane.f32.xlu1 %v3751_v27  ;;  %v16423_v32 = vpop.f32.mrf.mxu1 }
 0xa07   : > { %v3745_v3 = vsel %vm2279_vm1, %v16423_v32, -inf }
 0xa0a   : > { %3746 = vmax.xlane.f32.xlu1 %v3745_v3 }
 0xa83   : > { %v3738_v2 = vpop.xlane.xlu0 %3737 }
 0xa84   : > { %v3764_v59 = vsub.f32 %v12337_v9, %v3738_v2 }
 0xa86   : > { %v3790_v41 = vmul.f32 1.442695, %v3764_v59 }
 0xa87   : > { %v3732_v28 = vpop.xlane.xlu0 %3731  ;;  %v3741_v55 = vpop.xlane.xlu1 %3740 }
 0xa88   : > { %13438 = vpow2.f32 %v3790_v41  ;;  %v3762_v43 = vsub.f32 %v3675_v62, %v3732_v28  ;;  %v3765_v19 = vsub.f32 %v12338_v50, %v3741_v55 }
 0xa8a   : > { %v3786_v18 = vmul.f32 1.442695, %v3762_v43  ;;  %v3792_v16 = vmul.f32 1.442695, %v3765_v19 }
 0xa8b   : > { %v3735_v36 = vpop.xlane.xlu1 %3734  ;;  %v3750_v35 = vpop.xlane.xlu0 %3749 }
 0xa8c   : > { %13440 = vpow2.f32 %v3786_v18  ;;  %v3763_v23 = vsub.f32 %v3678_v31, %v3735_v36  ;;  %v3768_v12 = vsub.f32 %v16410_v7, %v3750_v35  ;;  %v19660_v7 = vld [vmem:[#allocation81_spill] sm:$0xff] }
 0xa8d   : > { %13442 = vpow2.f32 %v3792_v16 }
 0xa8e   : > { %v3788_v24 = vmul.f32 1.442695, %v3763_v23 }
 0xa8f   : > { %v16429_v60 = vpop.f32.mrf.mxu0  ;;  %v3744_v46 = vpop.xlane.xlu0 %3743 }
 0xa90   : > { %13444 = vpow2.f32 %v3788_v24 }
 0xa91   : > { %v16431_v8 = vpop.f32.mrf.mxu0 }
 0xa93   : > { %v16433_v9 = vpop.f32.mrf.mxu0 }
 0xa95   : > { %v16435_v21 = vpop.eup %13438  ;;  %v16439_v50 = vpop.f32.mrf.mxu0 }
 0xa96   : > { %v3832_v62 = vsel %vm2279_vm1, %v16435_v21, 0.0  ;;  %19653 = vst [vmem:[#allocation92_spill] sm:$0xff] %v16439_v50  ;;  %v3753_v50 = vpop.xlane.xlu1 %3752 }
 0xa97   : > { %3833 = vadd.xlane.f32.xlu1 %v3832_v62 }
 0xa99   : > { %v16441_v31 = vpop.eup %13440 }
 0xa9a   : > { %v16443_v53 = vpop.f32.mrf.mxu0  ;;  %v3826_v14 = vsel %vm2279_vm1, %v16441_v31, 0.0  ;;  %v16447_v27 = vpop.eup %13442 }
 0xa9b   : > { %19654 = vst [vmem:[#allocation93_spill] sm:$0xff] %v16443_v53  ;;  %3827 = vadd.xlane.f32.xlu1 %v3826_v14  ;;  %v3835_v59 = vsel %vm2279_vm1, %v16447_v27, 0.0  ;;  %v3747_v51 = vpop.xlane.xlu1 %3746 }
 0xa9c   : > { %v16449_v3 = vpop.f32.mrf.mxu0 }
 0xa9d   : > { %19655 = vst [vmem:[#allocation94_spill] sm:$0xff] %v16449_v3  ;;  %v16455_v41 = vpop.eup %13444 }
 0xa9e   : > { %v16451_v2 = vpop.f32.mrf.mxu0  ;;  %v3829_v43 = vsel %vm2279_vm1, %v16455_v41, 0.0 }
 0xa9f   : > { %19656 = vst [vmem:[#allocation95_spill] sm:$0xff] %v16451_v2  ;;  %3836 = vadd.xlane.f32.xlu1 %v3835_v59 }
 0xaa0   : > { %v16457_v28 = vpop.f32.mrf.mxu0 }
 0xaa1   : > { %19657 = vst [vmem:[#allocation96_spill] sm:$0xff] %v16457_v28 }
 0xaa2   : > { %v16459_v55 = vpop.f32.mrf.mxu0 }
 0xaa3   : > { %3830 = vadd.xlane.f32.xlu1 %v3829_v43  ;;  %v3712_v19 = vsel %vm2279_vm1, %v16459_v55, -inf }
 0xaa4   : > { %v16465_v18 = vpop.f32.mrf.mxu0  ;;  %3713 = vmax.xlane.f32.xlu0 %v3712_v19 }
 0xaa5   : > { %v3706_v36 = vsel %vm2279_vm1, %v16465_v18, -inf }
 0xaa6   : > { %v16467_v16 = vpop.f32.mrf.mxu0 }
 0xaa7   : > { %v3715_v14 = vsel %vm2279_vm1, %v16467_v16, -inf }
 0xaa8   : > { %v16471_v23 = vpop.f32.mrf.mxu0  ;;  %3707 = vmax.xlane.f32.xlu0 %v3706_v36 }
 0xaa9   : > { %v3709_v24 = vsel %vm2279_vm1, %v16471_v23, -inf }
 0xaaa   : > { %v16475_v62 = vpop.f32.mrf.mxu0  ;;  %3710 = vmax.xlane.f32.xlu1 %v3709_v24 }
 0xaab   : > { %v3724_v19 = vsel %vm2279_vm1, %v16475_v62, -inf }
 0xaac   : > { %v16479_v59 = vpop.f32.mrf.mxu0  ;;  %3716 = vmax.xlane.f32.xlu0 %v3715_v14  ;;  %v19658_v14 = vld [vmem:[#allocation78_spill] sm:$0xff] }
 0xaad   : > { %v3718_v24 = vsel %vm2279_vm1, %v16479_v59, -inf }
 0xaae   : > { %v16481_v43 = vpop.f32.mrf.mxu0 }
 0xaaf   : > { %v3727_v36 = vsel %vm2279_vm1, %v16481_v43, -inf }
 0xab0   : > { %v16487_v37 = vpop.f32.mrf.mxu0  ;;  %3725 = vmax.xlane.f32.xlu0 %v3724_v19  ;;  %3728 = vmax.xlane.f32.xlu1 %v3727_v36  ;;  %v3766_v19 = vsub.f32 %v16415_v52, %v3744_v46  ;;  %v3767_v36 = vsub.f32 %v16423_v32, %v3747_v51  ;;  %v19662_v32 = vld [vmem:[#allocation80_spill] sm:$0xff] }
 0xab1   : > { %v3721_v28 = vsel %vm2279_vm1, %v16487_v37, -inf }
 0xab2   : > { %v3794_v30 = vmul.f32 1.442695, %v3766_v19  ;;  %v3796_v0 = vmul.f32 1.442695, %v3767_v36 }
 0xab4   : > { %3719 = vmax.xlane.f32.xlu0 %v3718_v24  ;;  %3722 = vmax.xlane.f32.xlu1 %v3721_v28  ;;  %13446 = vpow2.f32 %v3794_v30  ;;  %v3798_v28 = vmul.f32 1.442695, %v3768_v12  ;;  %v3769_v24 = vsub.f32 %v16417_v48, %v3753_v50  ;;  %v19661_v48 = vld [vmem:[#allocation82_spill] sm:$0xff] }
 0xab5   : > { %13448 = vpow2.f32 %v3796_v0 }
 0xab6   : > { %13450 = vpow2.f32 %v3798_v28  ;;  %v3800_v2 = vmul.f32 1.442695, %v3769_v24 }
 0xab8   : > { %13452 = vpow2.f32 %v3800_v2 }
 0xac1   : > { %v16501_v61 = vpop.eup %13446 }
 0xac2   : > { %v3838_v52 = vsel %vm2279_vm1, %v16501_v61, 0.0 }
 0xac5   : > { %3894 = vrot.lane.b32.xlu1 %v19658_v14, %s14639_s6 }
 0xaca   : > { %3892 = vrot.lane.b32.xlu0 %v19659_v34, %s14639_s6  ;;  %v16503_v34 = vpop.eup %13448 }
 0xacb   : > { %v3841_v51 = vsel %vm2279_vm1, %v16503_v34, 0.0  ;;  %v16509_v35 = vpop.eup %13450 }
 0xacc   : > { %v3844_v12 = vsel %vm2279_vm1, %v16509_v35, 0.0  ;;  %v16513_v30 = vpop.eup %13452 }
 0xacd   : > { %v3847_v0 = vsel %vm2279_vm1, %v16513_v30, 0.0 }
 0xae9   : > { %3839 = vadd.xlane.f32.xlu0 %v3838_v52  ;;  %3842 = vadd.xlane.f32.xlu1 %v3841_v51 }
 0xaed   : > { %3845 = vadd.xlane.f32.xlu0 %v3844_v12 }
 0xaf1   : > { %3848 = vadd.xlane.f32.xlu0 %v3847_v0 }
 0xafa   : > { %3985 = vrot.lane.b32.xlu1 %v19660_v7, %s14639_s6 }
 0xafe   : > { %3983 = vrot.lane.b32.xlu1 %v19661_v48, %s14639_s6 }
 0xb07   : > { %3890 = vrot.lane.b32.xlu0 %v19662_v32, %s14639_s6 }
 0xb20   : > { %v16523_v46 = vpop.xlane.xlu1 %3833 }
 0xb24   : > { %v3828_v50 = vpop.xlane.xlu1 %3827 }
 0xb25   : > { %13454 = vrcp.f32 %v3828_v50 }
 0xb28   : > { %v16525_v2 = vpop.xlane.xlu1 %3836 }
 0xb2c   : > { %v3831_v19 = vpop.xlane.xlu1 %3830 }
 0xb2d   : > { %13456 = vrcp.f32 %v3831_v19  ;;  %v3714_v36 = vpop.xlane.xlu0 %3713 }
 0xb2e   : > { %v3756_v28 = vsub.f32 %v16459_v55, %v3714_v36 }
 0xb30   : > { %v3774_v24 = vmul.f32 1.442695, %v3756_v28 }
 0xb31   : > { %v3708_v52 = vpop.xlane.xlu0 %3707 }
 0xb32   : > { %13458 = vpow2.f32 %v3774_v24  ;;  %v3754_v51 = vsub.f32 %v16465_v18, %v3708_v52  ;;  %v13455_v3 = vpop.eup %13454 }
 0xb33   : > { %v3711_v12 = vpop.xlane.xlu1 %3710  ;;  %v3874_v18 = vmul.f32 %v13455_v3, %v16441_v31 }
 0xb34   : > { %v3770_v0 = vmul.f32 1.442695, %v3754_v51  ;;  %v3755_v7 = vsub.f32 %v16471_v23, %v3711_v12 }
 0xb35   : > { %v3717_v32 = vpop.xlane.xlu0 %3716 }
 0xb36   : > { %13460 = vpow2.f32 %v3770_v0  ;;  %v3757_v48 = vsub.f32 %v16467_v16, %v3717_v32  ;;  %v3772_v50 = vmul.f32 1.442695, %v3755_v7 }
 0xb38   : > { %v3776_v56 = vmul.f32 1.442695, %v3757_v48 }
 0xb39   : > { %v3726_v19 = vpop.xlane.xlu0 %3725  ;;  %v3729_v53 = vpop.xlane.xlu1 %3728 }
 0xb3a   : > { %v13457_v14 = vpop.eup %13456  ;;  %13462 = vpow2.f32 %v3776_v56  ;;  %v3760_v55 = vsub.f32 %v16475_v62, %v3726_v19  ;;  %v3761_v36 = vsub.f32 %v16481_v43, %v3729_v53 }
 0xb3b   : > { %v3875_v28 = vmul.f32 %v13457_v14, %v16455_v41  ;;  %13464 = vpow2.f32 %v3772_v50 }
 0xb3c   : > { %v3782_v23 = vmul.f32 1.442695, %v3760_v55  ;;  %v3784_v24 = vmul.f32 1.442695, %v3761_v36 }
 0xb3d   : > { %v3720_v52 = vpop.xlane.xlu0 %3719  ;;  %v3723_v16 = vpop.xlane.xlu1 %3722  ;;  %v3886_v32 = vpack.c.bf16 %v3875_v28, %v3874_v18 }
 0xb3e   : > { %13466 = vpow2.f32 %v3782_v23  ;;  %v3758_v7 = vsub.f32 %v16479_v59, %v3720_v52  ;;  %v3759_v48 = vsub.f32 %v16487_v37, %v3723_v16 }
 0xb3f   : > { %v16537_v56 = vpop.eup %13458  ;;  %12367 = vmatprep.mubr.msk.bf16.mxu1 %vm2279_vm1, %v3886_v32  ;;  %13468 = vpow2.f32 %v3784_v24 }
 0xb40   : > { %v3778_v53 = vmul.f32 1.442695, %v3758_v7  ;;  %v3780_v31 = vmul.f32 1.442695, %v3759_v48  ;;  %v3808_v3 = vsel %vm2279_vm1, %v16537_v56, 0.0 }
 0xb41   : > { %3809 = vadd.xlane.f32.xlu0 %v3808_v3  ;;  %v3895_v41 = vpop.permute.xlu1 %3894  ;;  %v3893_v43 = vpop.permute.xlu0 %3892 }
 0xb42   : > { %13470 = vpow2.f32 %v3778_v53  ;;  %12345 = vmatprep.subr.bf16.mxu0 %v3895_v41 }
 0xb43   : > { %v16542_v62 = vpop.eup %13460  ;;  %12346 = vmatpush3.bf16.msra.mxu0 %v3895_v41  ;;  %13472 = vpow2.f32 %v3780_v31 }
 0xb44   : > { %12347 = vmatprep.subr.bf16.mxu0 %v3893_v43  ;;  %v3802_v37 = vsel %vm2279_vm1, %v16542_v62, 0.0  ;;  %13474 = vrcp.f32 %v16525_v2 }
 0xb45   : > { %3803 = vadd.xlane.f32.xlu0 %v3802_v37 }
 0xb47   : > { %v16546_v59 = vpop.eup %13462  ;;  %12348 = vmatpush3.bf16.msra.mxu0 %v3893_v43 }
 0xb48   : > { %v3811_v14 = vsel %vm2279_vm1, %v16546_v59, 0.0  ;;  %v16550_v51 = vpop.eup %13464 }
 0xb49   : > { %3812 = vadd.xlane.f32.xlu1 %v3811_v14  ;;  %v3805_v50 = vsel %vm2279_vm1, %v16550_v51, 0.0 }
 0xb4b   : > { %v16552_v12 = vpop.eup %13466 }
 0xb4c   : > { %v3820_v0 = vsel %vm2279_vm1, %v16552_v12, 0.0  ;;  %v16558_v19 = vpop.eup %13468 }
 0xb4d   : > { %3821 = vadd.xlane.f32.xlu0 %v3820_v0  ;;  %3806 = vadd.xlane.f32.xlu1 %v3805_v50  ;;  %v3823_v18 = vsel %vm2279_vm1, %v16558_v19, 0.0 }
 0xb4f   : > { %v16560_v55 = vpop.eup %13470 }
 0xb50   : > { %v3814_v36 = vsel %vm2279_vm1, %v16560_v55, 0.0  ;;  %v16566_v28 = vpop.eup %13472 }
 0xb51   : > { %3815 = vadd.xlane.f32.xlu0 %v3814_v36  ;;  %3824 = vadd.xlane.f32.xlu1 %v3823_v18  ;;  %v3817_v23 = vsel %vm2279_vm1, %v16566_v28, 0.0 }
 0xb55   : > { %3818 = vadd.xlane.f32.xlu1 %v3817_v23 }
 0xb66   : > { %3979 = vrot.lane.b32.xlu1 %v15826_v33, %s14639_s6 }
 0xb67   : > { %3981 = vrot.lane.b32.xlu0 %v15820_v5, %s14639_s6 }
 0xb6a   : > { %4237 = vrot.lane.b32.xlu1 %v15691_v63, %s14640_s0 }
 0xb6b   : > { %4239 = vrot.lane.b32.xlu0 %v15699_v10, %s14640_s0 }
 0xb6e   : > { %4344 = vrot.lane.b32.xlu1 %v15765_v49, %s14640_s0 }
 0xb6f   : > { %4235 = vrot.lane.b32.xlu0 %v15683_v54, %s14640_s0 }
 0xb72   : > { %v3840_v24 = vpop.xlane.xlu0 %3839  ;;  %4342 = vrot.lane.b32.xlu1 %v15742_v58, %s14640_s0  ;;  %v3843_v52 = vpop.xlane.xlu1 %3842 }
 0xb73   : > { %4233 = vrot.lane.b32.xlu0 %v15671_v45, %s14640_s0  ;;  %v16595_v45 = vld [vmem:[%s15456_s8 + $0x28] sm:$0xff]   ;;  %13476 = vrcp.f32 %v3840_v24 }
 0xb74   : > { %13478 = vrcp.f32 %v3843_v52 }
 0xb75   : > { %13480 = vrcp.f32 %v16523_v46 }
 0xb76   : > { %v3846_v16 = vpop.xlane.xlu0 %3845  ;;  %4227 = vrot.lane.b32.xlu1 %v15767_v47, %s14640_s0  ;;  %v3986_v63 = vpop.permute.xlu1 %3985 }
 0xb77   : > { %4225 = vrot.lane.b32.xlu0 %v15666_v42, %s14640_s0  ;;  %12359 = vmatprep.subr.bf16.mxu1 %v3986_v63 }
 0xb78   : > { %12360 = vmatpush3.bf16.msra.mxu1 %v3986_v63 }
 0xb7a   : > { %v3849_v54 = vpop.xlane.xlu0 %3848  ;;  %4229 = vrot.lane.b32.xlu1 %v15771_v57, %s14640_s0  ;;  %v3984_v10 = vpop.permute.xlu1 %3983 }
 0xb7b   : > { %4340 = vrot.lane.b32.xlu0 %v15811_v13, %s14640_s0  ;;  %12361 = vmatprep.subr.bf16.mxu1 %v3984_v10 }
 0xb7c   : > { %12362 = vmatpush3.bf16.msra.mxu1 %v3984_v10 }
 0xb7e   : > { %v3891_v58 = vpop.permute.xlu0 %3890  ;;  %4338 = vrot.lane.b32.xlu1 %v15837_v1, %s14640_s0  ;;  %v13475_v1 = vpop.eup %13474 }
 0xb7f   : > { %4231 = vrot.lane.b32.xlu0 %v15808_v44, %s14640_s0  ;;  %12349 = vmatprep.subr.bf16.mxu0 %v3891_v58  ;;  %v3877_v32 = vmul.f32 %v13475_v1, %v16447_v27 }
 0xb80   : > { %12350 = vmatpush3.bf16.msra.mxu0 %v3891_v58 }
 0xb81   : > { %12375 = vmatprep.subr.bf16.mxu0 %v16595_v45 }
 0xb82   : > { %4332 = vrot.lane.b32.xlu1 %v15860_v20, %s14640_s0  ;;  %v13477_v20 = vpop.eup %13476 }
 0xb83   : > { %4330 = vrot.lane.b32.xlu0 %v15715_v22, %s14640_s0  ;;  %v13479_v2 = vpop.eup %13478  ;;  %v3878_v31 = vmul.f32 %v13477_v20, %v16501_v61 }
 0xb84   : > { %v13481_v46 = vpop.eup %13480  ;;  %v3879_v3 = vmul.f32 %v13479_v2, %v16503_v34 }
 0xb85   : > { %v3876_v43 = vmul.f32 %v13481_v46, %v16435_v21 }
 0xb86   : > { %4336 = vrot.lane.b32.xlu1 %v15872_v25, %s14640_s0  ;;  %v3888_v18 = vpack.c.bf16 %v3879_v3, %v3878_v31 }
 0xb87   : > { %4334 = vrot.lane.b32.xlu0 %v15862_v39, %s14640_s0  ;;  %v3887_v50 = vpack.c.bf16 %v3877_v32, %v3876_v43 }
 0xbca   : > { %v3810_v42 = vpop.xlane.xlu0 %3809 }
 0xbce   : > { %v3804_v57 = vpop.xlane.xlu0 %3803 }
 0xbd2   : > { %v3813_v49 = vpop.xlane.xlu1 %3812 }
 0xbd3   : > { %13482 = vrcp.f32 %v3813_v49 }
 0xbd4   : > { %13484 = vrcp.f32 %v3804_v57 }
 0xbd5   : > { %13486 = vrcp.f32 %v3810_v42 }
 0xbd6   : > { %v3822_v47 = vpop.xlane.xlu0 %3821  ;;  %v3807_v44 = vpop.xlane.xlu1 %3806 }
 0xbd7   : > { %13488 = vrcp.f32 %v3807_v44 }
 0xbd8   : > { %13490 = vrcp.f32 %v3849_v54  ;;  %v13179_v54 = vld [vmem:[%s15456_s8 + $0x20] sm:$0xff]  }
 0xbd9   : > { %13492 = vrcp.f32 %v3846_v16 }
 0xbda   : > { %v3816_v22 = vpop.xlane.xlu0 %3815  ;;  %v3825_v13 = vpop.xlane.xlu1 %3824 }
 0xbdb   : > { %13494 = vrcp.f32 %v3816_v22 }
 0xbdc   : > { %13496 = vrcp.f32 %v3825_v13 }
 0xbdd   : > { %13498 = vrcp.f32 %v3822_v47 }
 0xbde   : > { %v3982_v39 = vpop.permute.xlu0 %3981  ;;  %v3819_v25 = vpop.xlane.xlu1 %3818 }
 0xbdf   : > { %13500 = vrcp.f32 %v3819_v25  ;;  %12363 = vmatprep.subr.bf16.mxu1 %v3982_v39 }
 0xbe0   : > { %12364 = vmatpush3.bf16.msra.mxu1 %v3982_v39  ;;  %v13483_v7 = vpop.eup %13482 }
 0xbe1   : > { %v13485_v41 = vpop.eup %13484  ;;  %v3869_v0 = vmul.f32 %v13483_v7, %v16546_v59 }
 0xbe2   : > { %v4240_v48 = vpop.permute.xlu0 %4239  ;;  %v3980_v53 = vpop.permute.xlu1 %3979  ;;  %v3866_v61 = vmul.f32 %v13485_v41, %v16542_v62 }
 0xbe3   : > { %12365 = vmatprep.subr.bf16.mxu1 %v3980_v53  ;;  %v13487_v37 = vpop.eup %13486  ;;  %v4263_v21 = vsel %vm2100_vm0, %v4240_v48, 0 }
 0xbe4   : > { %12366 = vmatpush3.bf16.msra.mxu1 %v3980_v53  ;;  %v13489_v14 = vpop.eup %13488  ;;  %v3868_v23 = vmul.f32 %v13487_v37, %v16537_v56 }
 0xbe5   : > { %12973 = vmatprep.subr.msk.bf16.mxu1 %vm2100_vm0, %v4240_v48  ;;  %v13491_v27 = vpop.eup %13490  ;;  %v3867_v34 = vmul.f32 %v13489_v14, %v16550_v51 }
 0xbe6   : > { %v4236_v36 = vpop.permute.xlu0 %4235  ;;  %v13493_v24 = vpop.eup %13492  ;;  %v3883_v63 = vpack.c.bf16 %v3869_v0, %v3868_v23  ;;  %v3881_v62 = vmul.f32 %v13491_v27, %v16513_v30 }
 0xbe7   : > { %12368 = vmatmul.mubr.msk.bf16.vlgmr.msra.gmra.mxu1 %vm2279_vm1, %v3887_v50  ;;  %v4238_v52 = vpop.permute.xlu1 %4237  ;;  %v3882_v59 = vpack.c.bf16 %v3867_v34, %v3866_v61  ;;  %v3880_v58 = vmul.f32 %v13493_v24, %v16509_v35 }
 0xbe8   : > { %12371 = vmatprep.mubr.msk.bf16.mxu1 %vm2279_vm1, %v3888_v18  ;;  %12396 = vmatpush3.bf16.xpose.msra.mxu1 %v4263_v21  ;;  %v13495_v16 = vpop.eup %13494  ;;  %v4260_v22 = vsel %vm2100_vm0, %v4238_v52, 0 }
 0xbe9   : > { %12974 = vmatprep.subr.msk.bf16.mxu1 %vm2100_vm0, %v4238_v52  ;;  %v13497_v51 = vpop.eup %13496  ;;  %12351 = vmatprep.mubr.msk.bf16.mxu0 %vm2279_vm1, %v3882_v59  ;;  %v3889_v57 = vpack.c.bf16 %v3881_v62, %v3880_v58  ;;  %v3870_v49 = vmul.f32 %v13495_v16, %v16560_v55 }
 0xbea   : > { %v4234_v56 = vpop.permute.xlu0 %4233  ;;  %v13499_v10 = vpop.eup %13498  ;;  %12352 = vmatmul.mubr.msk.bf16.vlgmr.msra.gmra.mxu0 %vm2279_vm1, %v3883_v63  ;;  %v3873_v30 = vmul.f32 %v13497_v51, %v16558_v19  ;;  %v4257_v19 = vsel %vm2100_vm0, %v4236_v36, 0 }
 0xbeb   : > { %12376 = vmatpush3.bf16.msra.mxu0 %v16595_v45  ;;  %v3872_v1 = vmul.f32 %v13499_v10, %v16552_v12  ;;  %v4345_v35 = vpop.permute.xlu1 %4344 }
 0xbec   : > { %v13501_v42 = vpop.eup %13500  ;;  %12377 = vmatprep.subr.bf16.mxu0 %v13179_v54  ;;  %v4368_v50 = vsel %vm2100_vm0, %v4345_v35, 0 }
 0xbed   : > { %v3871_v47 = vmul.f32 %v13501_v42, %v16566_v28  ;;  %v3885_v55 = vpack.c.bf16 %v3873_v30, %v3872_v1  ;;  %v4254_v28 = vsel %vm2100_vm0, %v4234_v56, 0 }
 0xbee   : > { %v4226_v44 = vpop.permute.xlu0 %4225 }
 0xbef   : > { %12372 = vmatmul.mubr.msk.bf16.gmra.mxu1 %vm2279_vm1, %v3889_v57  ;;  %v3884_v13 = vpack.c.bf16 %v3871_v47, %v3870_v49  ;;  %12378 = vmatpush3.bf16.msra.mxu0 %v13179_v54  ;;  %v4343_v12 = vpop.permute.xlu1 %4342 }
 0xbf0   : > { %12398 = vmatpush3.bf16.xpose.msra.mxu1 %v4260_v22  ;;  %12977 = vmatprep.subr.msk.bf16.mxu0 %vm2100_vm0, %v4345_v35  ;;  %v4365_v24 = vsel %vm2100_vm0, %v4343_v12, 0 }
 0xbf1   : > { %12403 = vmatprep.mubr.msk.bf16.mxu1 %vm2100_vm0, %v4226_v44  ;;  %12355 = vmatprep.mubr.msk.bf16.mxu0 %vm2279_vm1, %v3884_v13 }
 0xbf2   : > { %12975 = vmatprep.subr.msk.bf16.mxu1 %vm2100_vm0, %v4236_v36  ;;  %12356 = vmatmul.mubr.msk.bf16.gmra.mxu0 %vm2279_vm1, %v3885_v55  ;;  %v4341_v39 = vpop.permute.xlu0 %4340 }
 0xbf3   : > { %v4228_v45 = vpop.permute.xlu1 %4227  ;;  %v4362_v63 = vsel %vm2100_vm0, %v4341_v39, 0 }
 0xbf6   : > { %v4232_v25 = vpop.permute.xlu0 %4231 }
 0xbf7   : > { %v4230_v20 = vpop.permute.xlu1 %4229 }
 0xbf8   : > { %12400 = vmatpush3.bf16.xpose.msra.mxu1 %v4257_v19 }
 0xbf9   : > { %12976 = vmatprep.subr.msk.bf16.mxu1 %vm2100_vm0, %v4234_v56 }
 0xbfa   : > { %v4331_v57 = vpop.permute.xlu0 %4330 }
 0xbfb   : > { %v4339_v54 = vpop.permute.xlu1 %4338 }
 0xbfc   : > { %v4359_v49 = vsel %vm2100_vm0, %v4339_v54, 0 }
 0xbff   : > { %v4333_v35 = vpop.permute.xlu1 %4332 }
 0xc00   : > { %12402 = vmatpush3.bf16.xpose.msra.mxu1 %v4254_v28 }
 0xc07   : > { %12404 = vmatmul.mubr.msk.bf16.vlgmr.msra.gmra.mxu1 %vm2100_vm0, %v4228_v45 }
 0xc08   : > { %12407 = vmatprep.mubr.msk.bf16.mxu1 %vm2100_vm0, %v4230_v20 }
 0xc0f   : > { %12408 = vmatmul.mubr.msk.bf16.gmra.mxu1 %vm2100_vm0, %v4232_v25 }
 0xca7   : > { %v12369_v2 = vpop.f32.mrf.mxu1 }
 0xca9   : > { %v4037_v46 = vpop.f32.mrf.mxu1 }
 0xcaa   : > { %v12353_v32 = vpop.f32.mrf.mxu0 }
 0xcab   : > { %v12370_v7 = vpop.f32.mrf.mxu1 }
 0xcac   : > { %v3948_v48 = vpop.f32.mrf.mxu0  ;;  %v4073_v59 = vpack.c.bf16 %v12370_v7, %v12369_v2 }
 0xcad   : > { %v4040_v31 = vpop.f32.mrf.mxu1 }
 0xcae   : > { %v12354_v53 = vpop.f32.mrf.mxu0  ;;  %v4072_v23 = vpack.c.bf16 %v4040_v31, %v4037_v46 }
 0xcaf   : > { %v4069_v43 = vpack.c.bf16 %v12354_v53, %v12353_v32  ;;  %v12373_v14 = vpop.f32.mrf.mxu1 }
 0xcb0   : > { %v3951_v3 = vpop.f32.mrf.mxu0 }
 0xcb1   : > { %v4068_v41 = vpack.c.bf16 %v3951_v3, %v3948_v48  ;;  %v4053_v36 = vpop.f32.mrf.mxu1 }
 0xcb2   : > { %v12357_v37 = vpop.f32.mrf.mxu0 }
 0xcb3   : > { %12379 = vmatprep.mubr.msk.bf16.mxu0 %vm2100_vm0, %v4068_v41  ;;  %v12374_v21 = vpop.f32.mrf.mxu1 }
 0xcb4   : > { %v3964_v0 = vpop.f32.mrf.mxu0  ;;  %12380 = vmatmul.mubr.msk.bf16.vlgmr.msra.gmra.mxu0 %vm2100_vm0, %v4069_v43  ;;  %v4075_v10 = vpack.c.bf16 %v12374_v21, %v12373_v14 }
 0xcb5   : > { %12412 = vmatpush3.bf16.xpose.msra.mxu0 %v4368_v50  ;;  %v4056_v52 = vpop.f32.mrf.mxu1 }
 0xcb6   : > { %12978 = vmatprep.subr.msk.bf16.mxu0 %vm2100_vm0, %v4343_v12  ;;  %v12358_v27 = vpop.f32.mrf.mxu0  ;;  %v4074_v16 = vpack.c.bf16 %v4056_v52, %v4053_v36  ;;  %v4335_v12 = vpop.permute.xlu0 %4334 }
 0xcb7   : > { %v4071_v34 = vpack.c.bf16 %v12358_v27, %v12357_v37 }
 0xcb8   : > { %v3967_v18 = vpop.f32.mrf.mxu0 }
 0xcb9   : > { %v4070_v61 = vpack.c.bf16 %v3967_v18, %v3964_v0 }
 0xcbb   : > { %12383 = vmatprep.mubr.msk.bf16.mxu0 %vm2100_vm0, %v4070_v61 }
 0xcbc   : > { %12384 = vmatmul.mubr.msk.bf16.gmra.mxu0 %vm2100_vm0, %v4071_v34 }
 0xcbd   : > { %12414 = vmatpush3.bf16.xpose.msra.mxu0 %v4365_v24  ;;  %12387 = vmatprep.mubr.msk.bf16.mxu0 %vm2100_vm0, %v4072_v23 }
 0xcbe   : > { %12979 = vmatprep.subr.msk.bf16.mxu0 %vm2100_vm0, %v4341_v39  ;;  %v4337_v39 = vpop.permute.xlu1 %4336 }
 0xcc4   : > { %12388 = vmatmul.mubr.msk.bf16.gmra.mxu0 %vm2100_vm0, %v4073_v59 }
 0xcc5   : > { %12416 = vmatpush3.bf16.xpose.msra.mxu0 %v4362_v63  ;;  %12391 = vmatprep.mubr.msk.bf16.mxu0 %vm2100_vm0, %v4074_v16 }
 0xcc6   : > { %12980 = vmatprep.subr.msk.bf16.mxu0 %vm2100_vm0, %v4339_v54 }
 0xcc7   : > { %v12405_v62 = vpop.f32.mrf.mxu1 }
 0xcc8   : > { %v4441_v51 = vsel %vm2279_vm1, %v12405_v62, -inf }
 0xcc9   : > { %4442 = vmax.xlane.f32.xlu0 %v4441_v51  ;;  %v4299_v56 = vpop.f32.mrf.mxu1 }
 0xcca   : > { %v4435_v42 = vsel %vm2279_vm1, %v4299_v56, -inf }
 0xccb   : > { %v12406_v58 = vpop.f32.mrf.mxu1 }
 0xccc   : > { %12392 = vmatmul.mubr.msk.bf16.gmra.mxu0 %vm2100_vm0, %v4075_v10  ;;  %v4444_v22 = vsel %vm2279_vm1, %v12406_v58, -inf }
 0xccd   : > { %4436 = vmax.xlane.f32.xlu0 %v4435_v42  ;;  %v4302_v47 = vpop.f32.mrf.mxu1  ;;  %12418 = vmatpush3.bf16.xpose.msra.mxu0 %v4359_v49 }
 0xcce   : > { %12419 = vmatprep.mubr.msk.bf16.mxu0 %vm2100_vm0, %v4331_v57  ;;  %v4438_v30 = vsel %vm2279_vm1, %v4302_v47, -inf }
 0xccf   : > { %4439 = vmax.xlane.f32.xlu1 %v4438_v30  ;;  %v12409_v44 = vpop.f32.mrf.mxu1 }
 0xcd0   : > { %v4453_v55 = vsel %vm2279_vm1, %v12409_v44, -inf }
 0xcd1   : > { %4445 = vmax.xlane.f32.xlu0 %v4444_v22  ;;  %v4315_v13 = vpop.f32.mrf.mxu1 }
 0xcd2   : > { %v4447_v45 = vsel %vm2279_vm1, %v4315_v13, -inf }
 0xcd3   : > { %v12410_v1 = vpop.f32.mrf.mxu1 }
 0xcd4   : > { %v4456_v19 = vsel %vm2279_vm1, %v12410_v1, -inf  ;;  %12420 = vmatmul.mubr.msk.bf16.vlgmr.msra.gmra.mxu0 %vm2100_vm0, %v4333_v35 }
 0xcd5   : > { %4454 = vmax.xlane.f32.xlu0 %v4453_v55  ;;  %4457 = vmax.xlane.f32.xlu1 %v4456_v19  ;;  %v4318_v28 = vpop.f32.mrf.mxu1 }
 0xcd6   : > { %12423 = vmatprep.mubr.msk.bf16.mxu0 %vm2100_vm0, %v4335_v12  ;;  %v4450_v20 = vsel %vm2279_vm1, %v4318_v28, -inf }
 0xcd9   : > { %4448 = vmax.xlane.f32.xlu0 %v4447_v45  ;;  %4451 = vmax.xlane.f32.xlu1 %v4450_v20 }
 0xcdc   : > { %12424 = vmatmul.mubr.msk.bf16.gmra.mxu0 %vm2100_vm0, %v4337_v39 }
 0xd52   : > { %v4443_v25 = vpop.xlane.xlu0 %4442 }
 0xd53   : > { %v4485_v2 = vsub.f32 %v12405_v62, %v4443_v25 }
 0xd55   : > { %v4503_v46 = vmul.f32 1.442695, %v4485_v2 }
 0xd56   : > { %v4437_v32 = vpop.xlane.xlu0 %4436 }
 0xd57   : > { %13502 = vpow2.f32 %v4503_v46  ;;  %v4483_v7 = vsub.f32 %v4299_v56, %v4437_v32  ;;  %v3466_v32 = vadd.f32 %v16391_v26, %v16431_v8  ;;  %v19666_v8 = vld [vmem:[#allocation94_spill] sm:$0xff] }
 0xd58   : > { %v4440_v48 = vpop.xlane.xlu1 %4439 }
 0xd59   : > { %v4499_v53 = vmul.f32 1.442695, %v4483_v7  ;;  %v4484_v31 = vsub.f32 %v4302_v47, %v4440_v48 }
 0xd5a   : > { %v4446_v3 = vpop.xlane.xlu0 %4445 }
 0xd5b   : > { %13504 = vpow2.f32 %v4499_v53  ;;  %v4486_v41 = vsub.f32 %v12406_v58, %v4446_v3  ;;  %v4501_v43 = vmul.f32 1.442695, %v4484_v31  ;;  %v19663_v3 = vld [vmem:[#allocation78_spill] sm:$0xff] }
 0xd5d   : > { %v4505_v37 = vmul.f32 1.442695, %v4486_v41 }
 0xd5e   : > { %v4455_v14 = vpop.xlane.xlu0 %4454  ;;  %v4458_v50 = vpop.xlane.xlu1 %4457 }
 0xd5f   : > { %13506 = vpow2.f32 %v4505_v37  ;;  %v4489_v0 = vsub.f32 %v12409_v44, %v4455_v14  ;;  %v4490_v27 = vsub.f32 %v12410_v1, %v4458_v50 }
 0xd60   : > { %13508 = vpow2.f32 %v4501_v43  ;;  %v19667_v43 = vld [vmem:[#allocation88_spill] sm:$0xff] }
 0xd61   : > { %v4511_v36 = vmul.f32 1.442695, %v4489_v0  ;;  %v4513_v18 = vmul.f32 1.442695, %v4490_v27  ;;  %v3482_v37 = vadd.f32 %v19667_v43, %v19666_v8  ;;  %v19669_v0 = vld [vmem:[#allocation89_spill] sm:$0xff] }
 0xd62   : > { %v4449_v61 = vpop.xlane.xlu0 %4448  ;;  %v4452_v23 = vpop.xlane.xlu1 %4451 }
 0xd63   : > { %13510 = vpow2.f32 %v4511_v36  ;;  %v4487_v34 = vsub.f32 %v4315_v13, %v4449_v61  ;;  %v4488_v24 = vsub.f32 %v4318_v28, %v4452_v23 }
 0xd64   : > { %v16675_v21 = vpop.eup %13502  ;;  %13512 = vpow2.f32 %v4513_v18 }
 0xd65   : > { %v4507_v52 = vmul.f32 1.442695, %v4487_v34  ;;  %v4537_v59 = vsel %vm2279_vm1, %v16675_v21, 0.0  ;;  %v4509_v16 = vmul.f32 1.442695, %v4488_v24 }
 0xd66   : > { %4538 = vadd.xlane.f32.xlu0 %v4537_v59 }
 0xd67   : > { %13514 = vpow2.f32 %v4507_v52 }
 0xd68   : > { %v16679_v63 = vpop.eup %13504  ;;  %13516 = vpow2.f32 %v4509_v16 }
 0xd69   : > { %v4531_v54 = vsel %vm2279_vm1, %v16679_v63, 0.0 }
 0xd6a   : > { %4532 = vadd.xlane.f32.xlu0 %v4531_v54 }
 0xd6c   : > { %v16683_v62 = vpop.eup %13506 }
 0xd6d   : > { %v4540_v51 = vsel %vm2279_vm1, %v16683_v62, 0.0  ;;  %v16687_v56 = vpop.eup %13508 }
 0xd6e   : > { %4541 = vadd.xlane.f32.xlu1 %v4540_v51  ;;  %v4534_v42 = vsel %vm2279_vm1, %v16687_v56, 0.0 }
 0xd70   : > { %v16689_v10 = vpop.eup %13510 }
 0xd71   : > { %v4549_v58 = vsel %vm2279_vm1, %v16689_v10, 0.0  ;;  %v16695_v57 = vpop.eup %13512 }
 0xd72   : > { %4550 = vadd.xlane.f32.xlu0 %v4549_v58  ;;  %4535 = vadd.xlane.f32.xlu1 %v4534_v42  ;;  %v4552_v44 = vsel %vm2279_vm1, %v16695_v57, 0.0  ;;  %v19670_v42 = vld [vmem:[#allocation77_spill] sm:$0xff] }
 0xd74   : > { %v16697_v49 = vpop.eup %13514  ;;  %v12381_v47 = vpop.f32.mrf.mxu0 }
 0xd75   : > { %v4543_v30 = vsel %vm2279_vm1, %v16697_v49, 0.0  ;;  %v16703_v22 = vpop.eup %13516  ;;  %v16706_v13 = vadd.f32 %v12381_v47, %v16367_v29 }
 0xd76   : > { %4544 = vadd.xlane.f32.xlu0 %v4543_v30  ;;  %4553 = vadd.xlane.f32.xlu1 %v4552_v44  ;;  %v4146_v1 = vpop.f32.mrf.mxu0  ;;  %v4546_v19 = vsel %vm2279_vm1, %v16703_v22, 0.0 }
 0xd77   : > { %v16709_v35 = vadd.f32 %v4146_v1, %v16371_v11 }
 0xd78   : > { %v12382_v55 = vpop.f32.mrf.mxu0 }
 0xd79   : > { %v16714_v12 = vadd.f32 %v12382_v55, %v16375_v6  ;;  %v3474_v6 = vadd.f32 %v16389_v38, %v16429_v60  ;;  %v19664_v38 = vld [vmem:[#allocation93_spill] sm:$0xff]  ;;  %v19665_v60 = vld [vmem:[#allocation87_spill] sm:$0xff] }
 0xd7a   : > { %4547 = vadd.xlane.f32.xlu1 %v4546_v19  ;;  %v16716_v28 = vpop.f32.mrf.mxu0  ;;  %v3490_v41 = vadd.f32 %v19665_v60, %v19664_v38  ;;  %v19671_v19 = vld [vmem:[#allocation82_spill] sm:$0xff] }
 0xd7c   : > { %v12385_v45 = vpop.f32.mrf.mxu0 }
 0xd7d   : > { %v16719_v29 = vadd.f32 %v12385_v45, %v16379_v15 }
 0xd7e   : > { %v4162_v20 = vpop.f32.mrf.mxu0 }
 0xd7f   : > { %v16722_v39 = vadd.f32 %v4162_v20, %v16382_v17  ;;  %v3477_v17 = vadd.f32 %v16395_v40, %v16433_v9  ;;  %v19668_v9 = vld [vmem:[#allocation95_spill] sm:$0xff] }
 0xd80   : > { %v12386_v11 = vpop.f32.mrf.mxu0  ;;  %v3493_v50 = vadd.f32 %v19669_v0, %v19668_v9 }
 0xd81   : > { %v16725_v25 = vadd.f32 %v12386_v11, %v16385_v4  ;;  %v19672_v11 = vld [vmem:[#allocation79_spill] sm:$0xff] }
 0xd82   : > { %v16727_v2 = vpop.f32.mrf.mxu0 }
 0xd84   : > { %v12389_v46 = vpop.f32.mrf.mxu0 }
 0xd85   : > { %v16733_v7 = vadd.f32 %v12389_v46, %v3474_v6  ;;  %v19673_v6 = vld [vmem:[#allocation80_spill] sm:$0xff] }
 0xd86   : > { %v4178_v15 = vpop.f32.mrf.mxu0 }
 0xd87   : > { %v16737_v48 = vadd.f32 %v4178_v15, %v3466_v32  ;;  %v19674_v32 = vld [vmem:[#allocation81_spill] sm:$0xff] }
 0xd88   : > { %v12390_v53 = vpop.f32.mrf.mxu0 }
 0xd89   : > { %v16739_v4 = vadd.f32 %v12390_v53, %v3477_v17 }
 0xd8a   : > { %v16741_v31 = vpop.f32.mrf.mxu0 }
 0xd8b   : > { %4623 = vrot.lane.b32.xlu1 %v19663_v3, %s14640_s0 }
 0xd8c   : > { %v12393_v26 = vpop.f32.mrf.mxu0 }
 0xd8d   : > { %v16749_v14 = vadd.f32 %v12393_v26, %v3490_v41 }
 0xd8e   : > { %v4194_v40 = vpop.f32.mrf.mxu0 }
 0xd8f   : > { %v16753_v27 = vadd.f32 %v4194_v40, %v3482_v37 }
 0xd90   : > { %v12394_v36 = vpop.f32.mrf.mxu0 }
 0xd91   : > { %v16755_v18 = vadd.f32 %v12394_v36, %v3493_v50 }
 0xd92   : > { %v16757_v61 = vpop.f32.mrf.mxu0 }
 0xd94   : > { %v12421_v34 = vpop.f32.mrf.mxu0 }
 0xd95   : > { %v4465_v23 = vsel %vm2279_vm1, %v12421_v34, -inf }
 0xd96   : > { %4466 = vmax.xlane.f32.xlu0 %v4465_v23  ;;  %v4404_v24 = vpop.f32.mrf.mxu0 }
 0xd97   : > { %v4459_v52 = vsel %vm2279_vm1, %v4404_v24, -inf }
 0xd98   : > { %v12422_v59 = vpop.f32.mrf.mxu0 }
 0xd99   : > { %v4468_v51 = vsel %vm2279_vm1, %v12422_v59, -inf }
 0xd9a   : > { %4460 = vmax.xlane.f32.xlu0 %v4459_v52  ;;  %v16761_v16 = vpop.f32.mrf.mxu0 }
 0xd9b   : > { %v4462_v47 = vsel %vm2279_vm1, %v16761_v16, -inf }
 0xd9c   : > { %v16763_v54 = vpop.f32.mrf.mxu0 }
 0xd9d   : > { %v4477_v45 = vsel %vm2279_vm1, %v16763_v54, -inf }
 0xd9e   : > { %v16766_v58 = vpop.f32.mrf.mxu0 }
 0xd9f   : > { %v4471_v20 = vsel %vm2279_vm1, %v16766_v58, -inf }
 0xda0   : > { %v16772_v30 = vpop.f32.mrf.mxu0 }
 0xda1   : > { %v4480_v44 = vsel %vm2279_vm1, %v16772_v30, -inf }
 0xda2   : > { %v16776_v1 = vpop.f32.mrf.mxu0 }
 0xda3   : > { %v4474_v55 = vsel %vm2279_vm1, %v16776_v1, -inf }
 0xdaf   : > { %4469 = vmax.xlane.f32.xlu1 %v4468_v51 }
 0xdb0   : > { %4625 = vrot.lane.b32.xlu0 %v19670_v42, %s14640_s0 }
 0xdb3   : > { %4463 = vmax.xlane.f32.xlu1 %v4462_v47 }
 0xdb7   : > { %4481 = vmax.xlane.f32.xlu1 %v4480_v44 }
 0xdbb   : > { %4475 = vmax.xlane.f32.xlu1 %v4474_v55 }
 0xdcc   : > { %4712 = vrot.lane.b32.xlu1 %v19671_v19, %s14640_s0 }
 0xdcf   : > { %4478 = vmax.xlane.f32.xlu0 %v4477_v45 }
 0xdd3   : > { %4472 = vmax.xlane.f32.xlu0 %v4471_v20  ;;  %v5216_v20 = vld [vmem:[#allocation5] sm:$0xff] }
 0xdd4   : > { %vm5232_vm2 = vcmp.ge.f32.partialorder %v5216_v20, 0.0 }
 0xde9   : > { %4621 = vrot.lane.b32.xlu0 %v19672_v11, %s14640_s0  ;;  %v5217_v11 = vld [vmem:[#allocation5 + $0x8] sm:$0xff] }
 0xdea   : > { %vm5233_vm3 = vcmp.ge.f32.partialorder %v5217_v11, 0.0 }
 0xded   : > { %4619 = vrot.lane.b32.xlu0 %v19673_v6, %s14640_s0 }
 0xdef   : > { %v16790_v46 = vpop.xlane.xlu0 %4538 }
 0xdf1   : > { %4714 = vrot.lane.b32.xlu0 %v19674_v32, %s14640_s0  ;;  %v5248_v32 = vmul.f32 0.2, %v5216_v20 }
 0xdf3   : > { %v4533_v17 = vpop.xlane.xlu0 %4532 }
 0xdf4   : > { %13518 = vrcp.f32 %v4533_v17  ;;  %v5249_v17 = vmul.f32 0.2, %v5217_v11 }
 0xdf7   : > { %v16794_v15 = vpop.xlane.xlu1 %4541 }
 0xdfb   : > { %v4536_v53 = vpop.xlane.xlu1 %4535  ;;  %v16799_v8 = vpop.xlane.xlu0 %4550 }
 0xdfc   : > { %13520 = vrcp.f32 %v4536_v53  ;;  %v5218_v53 = vld [vmem:[#allocation5 + $0x10] sm:$0xff] }
 0xdfd   : > { %vm5234_vm4 = vcmp.ge.f32.partialorder %v5218_v53, 0.0 }
 0xdff   : > { %v16801_v43 = vpop.xlane.xlu0 %4544  ;;  %v16803_v37 = vpop.xlane.xlu1 %4553 }
 0xe01   : > { %v13519_v3 = vpop.eup %13518 }
 0xe02   : > { %v4595_v60 = vmul.f32 %v13519_v3, %v16679_v63  ;;  %v5250_v3 = vmul.f32 0.2, %v5218_v53 }
 0xe03   : > { %v16805_v50 = vpop.xlane.xlu1 %4547 }
 0xe09   : > { %v13521_v38 = vpop.eup %13520 }
 0xe0a   : > { %v4596_v41 = vmul.f32 %v13521_v38, %v16687_v56  ;;  %v4624_v56 = vpop.permute.xlu1 %4623  ;;  %v16816_v38 = vsel %vm5232_vm2, %v5216_v20, %v5248_v32 }
 0xe0c   : > { %v4611_v26 = vpack.c.bf16 %v4596_v41, %v4595_v60  ;;  %v5219_v60 = vld [vmem:[#allocation5 + $0x18] sm:$0xff] }
 0xe0d   : > { %v5251_v41 = vmul.f32 0.2, %v5219_v60  ;;  %vm5235_vm5 = vcmp.ge.f32.partialorder %v5219_v60, 0.0 }
 0xe0e   : > { %12435 = vmatprep.mubr.msk.bf16.mxu1 %vm2279_vm1, %v4611_v26  ;;  %v16820_v26 = vsel %vm5234_vm4, %v5218_v53, %v5250_v3 }
 0xe1f   : > { %v4467_v40 = vpop.xlane.xlu0 %4466 }
 0xe20   : > { %v4493_v9 = vsub.f32 %v12421_v34, %v4467_v40  ;;  %v5220_v40 = vld [vmem:[#allocation5 + $0x20] sm:$0xff] }
 0xe21   : > { %vm5236_vm6 = vcmp.ge.f32.partialorder %v5220_v40, 0.0 }
 0xe22   : > { %v4519_v0 = vmul.f32 1.442695, %v4493_v9  ;;  %v5252_v9 = vmul.f32 0.2, %v5220_v40 }
 0xe23   : > { %v4461_v36 = vpop.xlane.xlu0 %4460 }
 0xe24   : > { %13522 = vpow2.f32 %v4519_v0  ;;  %v4491_v23 = vsub.f32 %v4404_v24, %v4461_v36  ;;  %v16824_v0 = vsel %vm5235_vm5, %v5219_v60, %v5251_v41  ;;  %v5221_v36 = vld [vmem:[#allocation5 + $0x28] sm:$0xff] }
 0xe25   : > { %vm5237_vm7 = vcmp.ge.f32.partialorder %v5221_v36, 0.0  ;;  %v5225_v60 = vld [vmem:[#allocation5 + $0x48] sm:$0xff] }
 0xe26   : > { %v4515_v63 = vmul.f32 1.442695, %v4491_v23  ;;  %vm5241_vm11 = vcmp.ge.f32.partialorder %v5225_v60, 0.0 }
 0xe27   : > { %v4626_v52 = vpop.permute.xlu0 %4625 }
 0xe28   : > { %13524 = vpow2.f32 %v4515_v63  ;;  %12427 = vmatprep.subr.bf16.mxu1 %v4626_v52  ;;  %v5253_v63 = vmul.f32 0.2, %v5221_v36 }
 0xe29   : > { %12428 = vmatpush3.bf16.msra.mxu1 %v4626_v52  ;;  %v16827_v52 = vsel %vm5236_vm6, %v5220_v40, %v5252_v9  ;;  %v5257_v40 = vmul.f32 0.2, %v5225_v60 }
 0xe2a   : > { %12429 = vmatprep.subr.bf16.mxu1 %v4624_v56 }
 0xe2d   : > { %12430 = vmatpush3.bf16.msra.mxu1 %v4624_v56  ;;  %v5222_v56 = vld [vmem:[#allocation5 + $0x30] sm:$0xff] }
 0xe2e   : > { %vm5238_vm8 = vcmp.ge.f32.partialorder %v5222_v56, 0.0 }
 0xe31   : > { %v16807_v51 = vpop.eup %13522 }
 0xe32   : > { %v4561_v42 = vsel %vm2279_vm1, %v16807_v51, 0.0 }
 0xe33   : > { %4562 = vadd.xlane.f32.xlu1 %v4561_v42 }
 0xe35   : > { %v16811_v34 = vpop.eup %13524 }
 0xe36   : > { %v4555_v47 = vsel %vm2279_vm1, %v16811_v34, 0.0 }
 0xe37   : > { %4556 = vadd.xlane.f32.xlu1 %v4555_v47  ;;  %v5254_v47 = vmul.f32 0.2, %v5222_v56 }
 0xe38   : > { %v4470_v24 = vpop.xlane.xlu1 %4469 }
 0xe39   : > { %v4494_v44 = vsub.f32 %v12422_v59, %v4470_v24  ;;  %v16818_v59 = vsel %vm5233_vm3, %v5217_v11, %v5249_v17  ;;  %v16830_v24 = vsel %vm5237_vm7, %v5221_v36, %v5253_v63  ;;  %v16837_v11 = vsel %vm5238_vm8, %v5222_v56, %v5254_v47  ;;  %v5226_v36 = vld [vmem:[#allocation5 + $0x50] sm:$0xff] }
 0xe3a   : > { %v5258_v63 = vmul.f32 0.2, %v5226_v36  ;;  %v16850_v56 = vsel %vm5241_vm11, %v5225_v60, %v5257_v40  ;;  %vm5242_vm12 = vcmp.ge.f32.partialorder %v5226_v36, 0.0  ;;  %v5229_v60 = vld [vmem:[#allocation5 + $0x68] sm:$0xff] }
 0xe3b   : > { %v4521_v55 = vmul.f32 1.442695, %v4494_v44  ;;  %vm5245_vm15 = vcmp.ge.f32.partialorder %v5229_v60, 0.0 }
 0xe3c   : > { %v4464_v19 = vpop.xlane.xlu1 %4463 }
 0xe3d   : > { %13526 = vpow2.f32 %v4521_v55  ;;  %v4492_v45 = vsub.f32 %v16761_v16, %v4464_v19  ;;  %v5280_v16 = vadd.f32 %v16818_v59, %v16816_v38  ;;  %v5223_v55 = vld [vmem:[#allocation5 + $0x38] sm:$0xff] }
 0xe3e   : > { %v5255_v20 = vmul.f32 0.2, %v5223_v55  ;;  %vm5239_vm9 = vcmp.ge.f32.partialorder %v5223_v55, 0.0 }
 0xe3f   : > { %v4517_v6 = vmul.f32 1.442695, %v4492_v45  ;;  %v5281_v23 = vadd.f32 %v5280_v16, %v16820_v26 }
 0xe40   : > { %v16840_v53 = vsel %vm5239_vm9, %v5223_v55, %v5255_v20  ;;  %v4482_v55 = vpop.xlane.xlu1 %4481  ;;  %v5228_v20 = vld [vmem:[#allocation5 + $0x60] sm:$0xff] }
 0xe41   : > { %13528 = vpow2.f32 %v4517_v6  ;;  %v5282_v42 = vadd.f32 %v5281_v23, %v16824_v0  ;;  %v5224_v6 = vld [vmem:[#allocation5 + $0x40] sm:$0xff]  ;;  %vm5244_vm14 = vcmp.ge.f32.partialorder %v5228_v20, 0.0 }
 0xe42   : > { %v5256_v17 = vmul.f32 0.2, %v5224_v6  ;;  %vm5240_vm10 = vcmp.ge.f32.partialorder %v5224_v6, 0.0  ;;  %13530 = vrcp.f32 %v16794_v15  ;;  %v5261_v15 = vmul.f32 0.2, %v5229_v60 }
 0xe43   : > { %v5283_v19 = vadd.f32 %v5282_v42, %v16827_v52  ;;  %v5227_v42 = vld [vmem:[#allocation5 + $0x58] sm:$0xff]  ;;  %13532 = vrcp.f32 %v16805_v50 }
 0xe44   : > { %v16847_v9 = vsel %vm5240_vm10, %v5224_v6, %v5256_v17  ;;  %vm5243_vm13 = vcmp.ge.f32.partialorder %v5227_v42, 0.0  ;;  %13534 = vrcp.f32 %v16790_v46 }
 0xe45   : > { %v5284_v32 = vadd.f32 %v5283_v19, %v16830_v24  ;;  %v5259_v19 = vmul.f32 0.2, %v5227_v42  ;;  %13536 = vrcp.f32 %v16801_v43 }
 0xe46   : > { %13538 = vrcp.f32 %v16803_v37 }
 0xe47   : > { %v5285_v41 = vadd.f32 %v5284_v32, %v16837_v11  ;;  %v5260_v32 = vmul.f32 0.2, %v5228_v20  ;;  %v16858_v17 = vsel %vm5243_vm13, %v5227_v42, %v5259_v19  ;;  %v5231_v19 = vld [vmem:[#allocation5 + $0x78] sm:$0xff]  ;;  %13540 = vrcp.f32 %v16799_v8 }
 0xe48   : > { %vm5247_vm3 = vcmp.ge.f32.partialorder %v5231_v19, 0.0 }
 0xe49   : > { %v5286_v23 = vadd.f32 %v5285_v41, %v16840_v53  ;;  %v16864_v40 = vsel %vm5244_vm14, %v5228_v20, %v5260_v32 }
 0xe4a   : > { %v16832_v44 = vpop.eup %13526 }
 0xe4b   : > { %v4564_v45 = vsel %vm2279_vm1, %v16832_v44, 0.0  ;;  %v5287_v47 = vadd.f32 %v5286_v23, %v16847_v9  ;;  %v4476_v23 = vpop.xlane.xlu1 %4475 }
 0xe4c   : > { %4565 = vadd.xlane.f32.xlu1 %v4564_v45  ;;  %v16853_v45 = vsel %vm5242_vm12, %v5226_v36, %v5258_v63  ;;  %v5230_v36 = vld [vmem:[#allocation5 + $0x70] sm:$0xff] }
 0xe4d   : > { %v5288_v6 = vadd.f32 %v5287_v47, %v16850_v56  ;;  %v5262_v42 = vmul.f32 0.2, %v5230_v36  ;;  %v16867_v47 = vsel %vm5245_vm15, %v5229_v60, %v5261_v15  ;;  %vm5246_vm2 = vcmp.ge.f32.partialorder %v5230_v36, 0.0 }
 0xe4e   : > { %v16842_v3 = vpop.eup %13528 }
 0xe4f   : > { %v4558_v16 = vsel %vm2279_vm1, %v16842_v3, 0.0  ;;  %v5289_v41 = vadd.f32 %v5288_v6, %v16853_v45  ;;  %v16872_v20 = vsel %vm5246_vm2, %v5230_v36, %v5262_v42  ;;  %v4496_v6 = vsub.f32 %v16776_v1, %v4476_v23  ;;  %v13531_v1 = vpop.eup %13530 }
 0xe50   : > { %4559 = vadd.xlane.f32.xlu1 %v4558_v16  ;;  %v4498_v16 = vsub.f32 %v16772_v30, %v4482_v55  ;;  %v5263_v55 = vmul.f32 0.2, %v5231_v19 }
 0xe51   : > { %v5290_v50 = vadd.f32 %v5289_v41, %v16858_v17 }
 0xe52   : > { %v4529_v30 = vmul.f32 1.442695, %v4498_v16  ;;  %v4525_v16 = vmul.f32 1.442695, %v4496_v6 }
 0xe53   : > { %v5291_v43 = vadd.f32 %v5290_v50, %v16864_v40 }
 0xe55   : > { %v5292_v41 = vadd.f32 %v5291_v43, %v16867_v47 }
 0xe57   : > { %v5293_v37 = vadd.f32 %v5292_v41, %v16872_v20 }
 0xe58   : > { %v4479_v63 = vpop.xlane.xlu0 %4478 }
 0xe59   : > { %v4497_v46 = vsub.f32 %v16763_v54, %v4479_v63  ;;  %v16877_v54 = vsel %vm5247_vm3, %v5231_v19, %v5263_v55  ;;  %v13533_v63 = vpop.eup %13532  ;;  %v4598_v19 = vmul.f32 %v13531_v1, %v16683_v62 }
 0xe5a   : > { %v5294_v50 = vadd.f32 %v5293_v37, %v16877_v54  ;;  %v13535_v8 = vpop.eup %13534 }
 0xe5b   : > { %v4527_v32 = vmul.f32 1.442695, %v4497_v46  ;;  %v13537_v46 = vpop.eup %13536  ;;  %v4597_v55 = vmul.f32 %v13535_v8, %v16675_v21 }
 0xe5c   : > { %v4473_v60 = vpop.xlane.xlu0 %4472  ;;  %v5295_v42 = vrot.slane %v5294_v50, 4  ;;  %v13539_v41 = vpop.eup %13538 }
 0xe5d   : > { %13542 = vpow2.f32 %v4527_v32  ;;  %v4495_v15 = vsub.f32 %v16766_v58, %v4473_v60  ;;  %v4599_v32 = vmul.f32 %v13537_v46, %v16697_v49  ;;  %v4612_v60 = vpack.c.bf16 %v4598_v19, %v4597_v55 }
 0xe5e   : > { %13544 = vpow2.f32 %v4529_v30  ;;  %v5296_v58 = vadd.f32 %v5295_v42, %v5294_v50  ;;  %v4600_v30 = vmul.f32 %v13533_v63, %v16703_v22  ;;  %v4713_v22 = vpop.permute.xlu1 %4712  ;;  %v4602_v21 = vmul.f32 %v13539_v41, %v16695_v57 }
 0xe5f   : > { %v4523_v36 = vmul.f32 1.442695, %v4495_v15 }
 0xe60   : > { %v4622_v23 = vpop.permute.xlu0 %4621  ;;  %v5297_v6 = vrot.slane %v5296_v58, 2 }
 0xe61   : > { %13546 = vpow2.f32 %v4523_v36  ;;  %12431 = vmatprep.subr.bf16.mxu1 %v4622_v23  ;;  %v4613_v36 = vpack.c.bf16 %v4600_v30, %v4599_v32 }
 0xe62   : > { %12432 = vmatpush3.bf16.msra.mxu1 %v4622_v23  ;;  %13548 = vpow2.f32 %v4525_v16  ;;  %v5298_v15 = vadd.f32 %v5297_v6, %v5296_v58  ;;  %v13541_v23 = vpop.eup %13540 }
 0xe63   : > { %v4601_v63 = vmul.f32 %v13541_v23, %v16689_v10 }
 0xe64   : > { %v4620_v43 = vpop.permute.xlu0 %4619  ;;  %v5299_v62 = vrot.slane %v5298_v15, 1 }
 0xe65   : > { %12433 = vmatprep.subr.bf16.mxu1 %v4620_v43  ;;  %v4614_v19 = vpack.c.bf16 %v4602_v21, %v4601_v63 }
 0xe66   : > { %12434 = vmatpush3.bf16.msra.mxu1 %v4620_v43  ;;  %v5300_v1 = vadd.f32 %v5299_v62, %v5298_v15 }
 0xe68   : > { %v4715_v37 = vpop.permute.xlu0 %4714  ;;  %v5301_v42 = vmul.f32 0.0078125, %v5300_v1 }
 0xe69   : > { %12436 = vmatmul.mubr.msk.bf16.vlgmr.msra.gmra.mxu1 %vm2279_vm1, %v4612_v60  ;;  %12443 = vmatprep.subr.bf16.mxu0 %v4715_v37 }
 0xe6a   : > { %v16887_v16 = vpop.eup %13542  ;;  %12439 = vmatprep.mubr.msk.bf16.mxu1 %vm2279_vm1, %v4613_v36  ;;  %12444 = vmatpush3.bf16.msra.mxu0 %v4715_v37  ;;  %v16903_v58 = vsub.f32 %v16816_v38, %v5301_v42  ;;  %v16906_v43 = vsub.f32 %v16818_v59, %v5301_v42  ;;  %v16909_v30 = vsub.f32 %v16820_v26, %v5301_v42 }
 0xe6b   : > { %v16891_v50 = vpop.eup %13544  ;;  %12445 = vmatprep.subr.bf16.mxu0 %v4713_v22  ;;  %v4573_v49 = vsel %vm2279_vm1, %v16887_v16, 0.0  ;;  %v16915_v55 = vsub.f32 %v16824_v0, %v5301_v42  ;;  %v5306_v32 = vsub.f32 %v16827_v52, %v5301_v42  ;;  %v5307_v0 = vsub.f32 %v16830_v24, %v5301_v42 }
 0xe6c   : > { %4574 = vadd.xlane.f32.xlu1 %v4573_v49  ;;  %v4576_v46 = vsel %vm2279_vm1, %v16891_v50, 0.0  ;;  %v5318_v6 = vmul.f32 %v16903_v58, %v16903_v58  ;;  %v5319_v38 = vmul.f32 %v16906_v43, %v16906_v43  ;;  %v5320_v59 = vmul.f32 %v16909_v30, %v16909_v30 }
 0xe6d   : > { %v5321_v41 = vmul.f32 %v16915_v55, %v16915_v55  ;;  %v5322_v15 = vmul.f32 %v5306_v32, %v5306_v32  ;;  %v5308_v36 = vsub.f32 %v16837_v11, %v5301_v42  ;;  %v5323_v23 = vmul.f32 %v5307_v0, %v5307_v0 }
 0xe6e   : > { %v16896_v8 = vpop.eup %13546  ;;  %12446 = vmatpush3.bf16.msra.mxu0 %v4713_v22  ;;  %v5334_v60 = vadd.f32 %v5319_v38, %v5318_v6  ;;  %v5309_v22 = vsub.f32 %v16840_v53, %v5301_v42  ;;  %v5310_v1 = vsub.f32 %v16847_v9, %v5301_v42  ;;  %v5312_v24 = vsub.f32 %v16853_v45, %v5301_v42 }
 0xe6f   : > { %v4567_v57 = vsel %vm2279_vm1, %v16896_v8, 0.0  ;;  %v16911_v10 = vpop.eup %13548  ;;  %v5324_v21 = vmul.f32 %v5308_v36, %v5308_v36  ;;  %v5313_v11 = vsub.f32 %v16858_v17, %v5301_v42  ;;  %v5314_v53 = vsub.f32 %v16864_v40, %v5301_v42 }
 0xe70   : > { %4568 = vadd.xlane.f32.xlu0 %v4567_v57  ;;  %4577 = vadd.xlane.f32.xlu1 %v4576_v46  ;;  %v4570_v26 = vsel %vm2279_vm1, %v16911_v10, 0.0  ;;  %v5335_v37 = vadd.f32 %v5334_v60, %v5320_v59  ;;  %v5325_v52 = vmul.f32 %v5309_v22, %v5309_v22  ;;  %v5311_v46 = vsub.f32 %v16850_v56, %v5301_v42 }
 0xe71   : > { %12440 = vmatmul.mubr.msk.bf16.gmra.mxu1 %vm2279_vm1, %v4614_v19  ;;  %v5326_v19 = vmul.f32 %v5310_v1, %v5310_v1  ;;  %v5328_v59 = vmul.f32 %v5312_v24, %v5312_v24  ;;  %v5315_v9 = vsub.f32 %v16867_v47, %v5301_v42  ;;  %v5330_v56 = vmul.f32 %v5314_v53, %v5314_v53 }
 0xe72   : > { %v5336_v62 = vadd.f32 %v5335_v37, %v5321_v41  ;;  %v5327_v6 = vmul.f32 %v5311_v46, %v5311_v46  ;;  %v5329_v41 = vmul.f32 %v5313_v11, %v5313_v11  ;;  %v5316_v45 = vsub.f32 %v16872_v20, %v5301_v42 }
 0xe73   : > { %v5331_v37 = vmul.f32 %v5315_v9, %v5315_v9 }
 0xe74   : > { %4571 = vadd.xlane.f32.xlu1 %v4570_v26  ;;  %v5337_v49 = vadd.f32 %v5336_v62, %v5322_v15  ;;  %v5332_v40 = vmul.f32 %v5316_v45, %v5316_v45 }
 0xe76   : > { %v5338_v63 = vadd.f32 %v5337_v49, %v5323_v23  ;;  %v5317_v23 = vsub.f32 %v16877_v54, %v5301_v42  ;;  %v13189_v42 = vld [vmem:[%s15456_s8 + $0x30] sm:$0xff]  }
 0xe78   : > { %v5339_v57 = vadd.f32 %v5338_v63, %v5324_v21  ;;  %v5333_v21 = vmul.f32 %v5317_v23, %v5317_v23 }
 0xe7a   : > { %v5340_v38 = vadd.f32 %v5339_v57, %v5325_v52 }
 0xe7c   : > { %v5341_v26 = vadd.f32 %v5340_v38, %v5326_v19 }
 0xe7e   : > { %v5342_v60 = vadd.f32 %v5341_v26, %v5327_v6 }
 0xe80   : > { %v5343_v15 = vadd.f32 %v5342_v60, %v5328_v59  ;;  %v13187_v59 = vld [vmem:[%s15456_s8 + $0x38] sm:$0xff]  }
 0xe81   : > { %12459 = vmatprep.subr.bf16.mxu1 %v13187_v59 }
 0xe82   : > { %v5344_v17 = vadd.f32 %v5343_v15, %v5329_v41  ;;  %12460 = vmatpush3.bf16.msra.mxu1 %v13187_v59 }
 0xe83   : > { %12461 = vmatprep.subr.bf16.mxu1 %v13189_v42 }
 0xe84   : > { %v5345_v62 = vadd.f32 %v5344_v17, %v5330_v56 }
 0xe85   : > { %4708 = vrot.lane.b32.xlu1 %v15826_v33, %s14640_s0 }
 0xe86   : > { %4710 = vrot.lane.b32.xlu0 %v15820_v5, %s14640_s0  ;;  %v5346_v49 = vadd.f32 %v5345_v62, %v5331_v37  ;;  %12462 = vmatpush3.bf16.msra.mxu1 %v13189_v42  ;;  %v13180_v42 = vld [vmem:[%s15466_s17 + $0x38] sm:$0xff]  }
 0xe88   : > { %v5347_v33 = vadd.f32 %v5346_v49, %v5332_v40 }
 0xe8a   : > { %v5348_v52 = vadd.f32 %v5347_v33, %v5333_v21 }
 0xe8c   : > { %v5349_v47 = vrot.slane %v5348_v52, 4 }
 0xe8e   : > { %v5350_v63 = vadd.f32 %v5349_v47, %v5348_v52 }
 0xe90   : > { %v5351_v19 = vrot.slane %v5350_v63, 2 }
 0xe92   : > { %v5352_v57 = vadd.f32 %v5351_v19, %v5350_v63 }
 0xe94   : > { %v5353_v6 = vrot.slane %v5352_v57, 1 }
 0xe96   : > { %v5354_v5 = vadd.f32 %v5353_v6, %v5352_v57 }
 0xe98   : > { %v5355_v38 = vmul.f32 0.0078125, %v5354_v5 }
 0xe9a   : > { %v5356_v20 = vadd.f32 1e-05, %v5355_v38 }
 0xe9c   : > { %13550 = vrsqrt.f32 %v5356_v20 }
 0xea9   : > { %v16944_v54 = vpop.eup %13550 }
 0xeaa   : > { %v16949_v26 = vmul.f32 %v16944_v54, %v16909_v30  ;;  %v16953_v41 = vmul.f32 %v16944_v54, %v16915_v55  ;;  %v16958_v56 = vmul.f32 %v16944_v54, %v5306_v32  ;;  %v16961_v15 = vmul.f32 %v16944_v54, %v5307_v0 }
 0xeab   : > { %v16964_v37 = vmul.f32 %v16944_v54, %v5308_v36  ;;  %v16967_v30 = vmul.f32 %v16944_v54, %v5309_v22  ;;  %v16974_v40 = vmul.f32 %v16944_v54, %v5310_v1  ;;  %v16977_v32 = vmul.f32 %v16944_v54, %v5311_v46 }
 0xeac   : > { %v5391_v60 = vpack.c.bf16 %v16953_v41, %v16949_v26  ;;  %v5392_v55 = vpack.c.bf16 %v16961_v15, %v16958_v56  ;;  %v16980_v0 = vmul.f32 %v16944_v54, %v5312_v24  ;;  %v16983_v36 = vmul.f32 %v16944_v54, %v5313_v11 }
 0xead   : > { %v5393_v17 = vpack.c.bf16 %v16967_v30, %v16964_v37  ;;  %v16986_v22 = vmul.f32 %v16944_v54, %v5314_v53  ;;  %v16989_v62 = vmul.f32 %v16944_v54, %v5315_v9  ;;  %v16992_v21 = vmul.f32 %v16944_v54, %v5316_v45 }
 0xeae   : > { %v16995_v1 = vmul.f32 %v16944_v54, %v5317_v23  ;;  %v5394_v46 = vpack.c.bf16 %v16977_v32, %v16974_v40  ;;  %v5395_v24 = vpack.c.bf16 %v16983_v36, %v16980_v0  ;;  %v13192_v36 = vld [vmem:[%s15475_s20 + $0x74] ss:$8 sps:$4 sm:$0xff]  }
 0xeaf   : > { %v5396_v11 = vpack.c.bf16 %v16989_v62, %v16986_v22  ;;  %v13190_v22 = vld [vmem:[%s15475_s20 + $0x70] ss:$8 sps:$4 sm:$0xff]   ;;  %5808 = vmatprep.subr.bf16.mxu1 %v13192_v36 }
 0xeb0   : > { %v5397_v53 = vpack.c.bf16 %v16995_v1, %v16992_v21  ;;  %v13195_v1 = vld [vmem:[%s15475_s20 + $0x64] ss:$8 sps:$4 sm:$0xff]  }
 0xebc   : > { %v4563_v9 = vpop.xlane.xlu1 %4562 }
 0xec0   : > { %v4557_v49 = vpop.xlane.xlu1 %4556 }
 0xec1   : > { %13552 = vrcp.f32 %v4557_v49 }
 0xece   : > { %v13553_v23 = vpop.eup %13552 }
 0xecf   : > { %v4603_v47 = vmul.f32 %v13553_v23, %v16811_v34 }
 0xed5   : > { %v4566_v33 = vpop.xlane.xlu1 %4565 }
 0xed9   : > { %v4560_v45 = vpop.xlane.xlu1 %4559 }
 0xeda   : > { %13554 = vrcp.f32 %v4560_v45  ;;  %v13181_v45 = vld [vmem:[%s15466_s17 + $0x30] sm:$0xff]  }
 0xedb   : > { %13556 = vrcp.f32 %v4566_v33 }
 0xedc   : > { %13558 = vrcp.f32 %v4563_v9 }
 0xee7   : > { %v13555_v52 = vpop.eup %13554 }
 0xee8   : > { %v4604_v63 = vmul.f32 %v13555_v52, %v16842_v3  ;;  %v13557_v38 = vpop.eup %13556  ;;  %v13182_v52 = vld [vmem:[%s15466_s17 + $0x28] sm:$0xff]  }
 0xee9   : > { %v13559_v34 = vpop.eup %13558  ;;  %v4606_v3 = vmul.f32 %v13557_v38, %v16832_v44  ;;  %v5358_v44 = vmul.f32 %v16944_v54, %v16903_v58  ;;  %v13183_v38 = vld [vmem:[%s15466_s17 + $0x20] sm:$0xff]  }
 0xeea   : > { %v4615_v19 = vpack.c.bf16 %v4604_v63, %v4603_v47  ;;  %v4605_v9 = vmul.f32 %v13559_v34, %v16807_v51  ;;  %v5359_v51 = vmul.f32 %v16944_v54, %v16906_v43  ;;  %v13186_v43 = vld [vmem:[%s15466_s17 + $0x8] sm:$0xff]  }
 0xeec   : > { %12451 = vmatprep.mubr.msk.bf16.mxu0 %vm2279_vm1, %v4615_v19  ;;  %v4616_v33 = vpack.c.bf16 %v4606_v3, %v4605_v9  ;;  %v5390_v58 = vpack.c.bf16 %v5359_v51, %v5358_v44  ;;  %v13204_v44 = vld [vmem:[%s15475_s20 + $0x34] ss:$8 sps:$4 sm:$0xff]   ;;  %v13202_v51 = vld [vmem:[%s15475_s20 + $0x30] ss:$8 sps:$4 sm:$0xff]  }
 0xef5   : > { %v4575_v57 = vpop.xlane.xlu1 %4574 }
 0xef9   : > { %v4569_v6 = vpop.xlane.xlu0 %4568  ;;  %v4578_v5 = vpop.xlane.xlu1 %4577 }
 0xefa   : > { %13560 = vrcp.f32 %v4578_v5 }
 0xefb   : > { %13562 = vrcp.f32 %v4569_v6 }
 0xefc   : > { %13564 = vrcp.f32 %v4575_v57 }
 0xefd   : > { %v4711_v20 = vpop.permute.xlu0 %4710  ;;  %v4572_v59 = vpop.xlane.xlu1 %4571 }
 0xefe   : > { %13566 = vrcp.f32 %v4572_v59  ;;  %12447 = vmatprep.subr.bf16.mxu0 %v4711_v20 }
 0xeff   : > { %12448 = vmatpush3.bf16.msra.mxu0 %v4711_v20 }
 0xf01   : > { %v4709_v49 = vpop.permute.xlu1 %4708 }
 0xf02   : > { %12449 = vmatprep.subr.bf16.mxu0 %v4709_v49 }
 0xf03   : > { %12450 = vmatpush3.bf16.msra.mxu0 %v4709_v49 }
 0xf04   : > { %12479 = vmatprep.subr.bf16.mxu0 %v13180_v42 }
 0xf06   : > { %12452 = vmatmul.mubr.msk.bf16.vlgmr.msra.gmra.mxu0 %vm2279_vm1, %v4616_v33 }
 0xf07   : > { %12480 = vmatpush3.bf16.msra.mxu0 %v13180_v42  ;;  %v13561_v23 = vpop.eup %13560 }
 0xf08   : > { %12481 = vmatprep.subr.bf16.mxu0 %v13181_v45  ;;  %v13563_v47 = vpop.eup %13562  ;;  %v4610_v57 = vmul.f32 %v13561_v23, %v16891_v50  ;;  %v13184_v50 = vld [vmem:[%s15466_s17 + $0x18] sm:$0xff]  }
 0xf09   : > { %v13565_v63 = vpop.eup %13564  ;;  %v4607_v6 = vmul.f32 %v13563_v47, %v16896_v8  ;;  %v13185_v8 = vld [vmem:[%s15466_s17 + $0x10] sm:$0xff]   ;;  %v13199_v47 = vld [vmem:[%s15475_s20 + $0x40] ss:$8 sps:$4 sm:$0xff]  }
 0xf0a   : > { %v4609_v20 = vmul.f32 %v13565_v63, %v16887_v16  ;;  %v13188_v16 = vld [vmem:[%s15466_s17] sm:$0xff]   ;;  %v19675_v63 = vmov 0   ;;  %s19707_s17 = scalar_lea.vmem [#allocation11], %s15445_s5 }
 0xf0b   : > { %v13567_v19 = vpop.eup %13566  ;;  %12482 = vmatpush3.bf16.msra.mxu0 %v13181_v45  ;;  %v13196_v45 = vld [vmem:[%s15475_s20 + $0x50] ss:$8 sps:$4 sm:$0xff]  }
 0xf0c   : > { %v4608_v5 = vmul.f32 %v13567_v19, %v16911_v10  ;;  %12483 = vmatprep.subr.bf16.mxu0 %v13182_v52  ;;  %v4618_v34 = vpack.c.bf16 %v4610_v57, %v4609_v20  ;;  %v13205_v19 = vld [vmem:[%s15475_s20 + $0x20] ss:$8 sps:$4 sm:$0xff]   ;;  %v13207_v57 = vld [vmem:[%s15475_s20 + $0x24] ss:$8 sps:$4 sm:$0xff]   ;;  %v13208_v20 = vld [vmem:[%s15475_s20 + $0x10] ss:$8 sps:$4 sm:$0xff]  }
 0xf0e   : > { %v4617_v59 = vpack.c.bf16 %v4608_v5, %v4607_v6  ;;  %v13210_v6 = vld [vmem:[%s15475_s20 + $0x14] ss:$8 sps:$4 sm:$0xff]  }
 0xf0f   : > { %12484 = vmatpush3.bf16.msra.mxu0 %v13182_v52  ;;  %v13201_v52 = vld [vmem:[%s15475_s20 + $0x44] ss:$8 sps:$4 sm:$0xff]  }
 0xf10   : > { %12455 = vmatprep.mubr.msk.bf16.mxu0 %vm2279_vm1, %v4617_v59  ;;  %12485 = vmatprep.subr.bf16.mxu0 %v13183_v38  ;;  %v13213_v59 = vld [vmem:[%s15475_s20 + $0x4] ss:$8 sps:$4 sm:$0xff]  }
 0xf11   : > { %12456 = vmatmul.mubr.msk.bf16.gmra.mxu0 %vm2279_vm1, %v4618_v34 }
 0xf12   : > { %12495 = vmatprep.mubr.bf16.mxu0 %v5390_v58 }
 0xf13   : > { %12486 = vmatpush3.bf16.msra.mxu0 %v13183_v38  ;;  %v17074_v38 = vld [vmem:[%s19676_s30] ss:$0 sm:$0xff] }
 0xf14   : > { %12487 = vmatprep.subr.bf16.mxu0 %v13184_v50 }
 0xf17   : > { %12488 = vmatpush3.bf16.msra.mxu0 %v13184_v50 }
 0xf18   : > { %12489 = vmatprep.subr.bf16.mxu0 %v13185_v8 }
 0xf1b   : > { %12490 = vmatpush3.bf16.msra.mxu0 %v13185_v8 }
 0xf1c   : > { %12491 = vmatprep.subr.bf16.mxu0 %v13186_v43 }
 0xf1f   : > { %12492 = vmatpush3.bf16.msra.mxu0 %v13186_v43  ;;  %v13211_v43 = vld [vmem:[%s15475_s20] ss:$8 sps:$4 sm:$0xff]  }
 0xf20   : > { %12493 = vmatprep.subr.bf16.mxu0 %v13188_v16 }
 0xf23   : > { %12494 = vmatpush3.bf16.msra.mxu0 %v13188_v16 }
 0xf26   : > { %12496 = vmatmul.mubr.bf16.vlgmr.msra.gmra.mxu0 %v5391_v60 }
 0xf27   : > { %12499 = vmatprep.mubr.bf16.mxu0 %v5392_v55 }
 0xf29   : > { %v12437_v10 = vpop.f32.mrf.mxu1 }
 0xf2b   : > { %v4677_v54 = vpop.f32.mrf.mxu1 }
 0xf2d   : > { %v12438_v3 = vpop.f32.mrf.mxu1 }
 0xf2e   : > { %12500 = vmatmul.mubr.bf16.gmra.mxu0 %v5393_v17  ;;  %v4798_v9 = vpack.c.bf16 %v12438_v3, %v12437_v10 }
 0xf2f   : > { %v4680_v42 = vpop.f32.mrf.mxu1  ;;  %12503 = vmatprep.mubr.bf16.mxu0 %v5394_v46  ;;  %v13193_v46 = vld [vmem:[%s15475_s20 + $0x60] ss:$8 sps:$4 sm:$0xff]  }
 0xf30   : > { %v4797_v49 = vpack.c.bf16 %v4680_v42, %v4677_v54 }
 0xf31   : > { %v12441_v26 = vpop.f32.mrf.mxu1 }
 0xf32   : > { %12463 = vmatprep.mubr.msk.bf16.mxu1 %vm2100_vm0, %v4797_v49 }
 0xf33   : > { %v4693_v41 = vpop.f32.mrf.mxu1  ;;  %12464 = vmatmul.mubr.msk.bf16.vlgmr.msra.gmra.mxu1 %vm2100_vm0, %v4798_v9 }
 0xf34   : > { %5809 = vmatpush1.bf16.msra.mxu1 %v13190_v22 }
 0xf35   : > { %v12442_v60 = vpop.f32.mrf.mxu1  ;;  %5810 = vmatprep.subr.bf16.mxu1 %v13195_v1  ;;  %v19678_v1 = vld [vmem:[#allocation85_spill] sm:$0xff] }
 0xf36   : > { %12504 = vmatmul.mubr.bf16.gmra.mxu0 %v5395_v24  ;;  %v4800_v37 = vpack.c.bf16 %v12442_v60, %v12441_v26 }
 0xf37   : > { %v4696_v56 = vpop.f32.mrf.mxu1  ;;  %12507 = vmatprep.mubr.bf16.mxu0 %v5396_v11 }
 0xf38   : > { %v4799_v15 = vpack.c.bf16 %v4696_v56, %v4693_v41  ;;  %5811 = vmatpush1.bf16.msra.mxu1 %v13193_v46 }
 0xf3a   : > { %12467 = vmatprep.mubr.msk.bf16.mxu1 %vm2100_vm0, %v4799_v15 }
 0xf3b   : > { %12468 = vmatmul.mubr.msk.bf16.gmra.mxu1 %vm2100_vm0, %v4800_v37 }
 0xf3e   : > { %12508 = vmatmul.mubr.bf16.gmra.mxu0 %v5397_v53  ;;  %v13198_v53 = vld [vmem:[%s15475_s20 + $0x54] ss:$8 sps:$4 sm:$0xff]   ;;  %s19728_s20 = scalar_lea.vmem [#allocation22], %s15445_s5 }
 0xf3f   : > { %5812 = vmatprep.subr.bf16.mxu1 %v13198_v53 }
 0xf40   : > { %5813 = vmatpush1.bf16.msra.mxu1 %v13196_v45 }
 0xf41   : > { %5814 = vmatprep.subr.bf16.mxu1 %v13201_v52 }
 0xf44   : > { %5815 = vmatpush1.bf16.msra.mxu1 %v13199_v47 }
 0xf45   : > { %5816 = vmatprep.subr.bf16.mxu1 %v13204_v44 }
 0xf48   : > { %5817 = vmatpush1.bf16.msra.mxu1 %v13202_v51 }
 0xf49   : > { %5818 = vmatprep.subr.bf16.mxu1 %v13207_v57 }
 0xf4c   : > { %5819 = vmatpush1.bf16.msra.mxu1 %v13205_v19 }
 0xf4d   : > { %5820 = vmatprep.subr.bf16.mxu1 %v13210_v6 }
 0xf50   : > { %5821 = vmatpush1.bf16.msra.mxu1 %v13208_v20 }
 0xf51   : > { %5822 = vmatprep.subr.bf16.mxu1 %v13213_v59 }
 0xf54   : > { %5823 = vmatpush1.bf16.msra.mxu1 %v13211_v43 }
 0xfc6   : > { %v12453_v30 = vpop.f32.mrf.mxu0 }
 0xfc8   : > { %v4766_v55 = vpop.f32.mrf.mxu0 }
 0xfca   : > { %v12454_v17 = vpop.f32.mrf.mxu0 }
 0xfcb   : > { %v4802_v0 = vpack.c.bf16 %v12454_v17, %v12453_v30 }
 0xfcc   : > { %v4769_v40 = vpop.f32.mrf.mxu0 }
 0xfcd   : > { %v4801_v32 = vpack.c.bf16 %v4769_v40, %v4766_v55 }
 0xfcf   : > { %12471 = vmatprep.mubr.msk.bf16.mxu1 %vm2100_vm0, %v4801_v32 }
 0xfd0   : > { %12472 = vmatmul.mubr.msk.bf16.gmra.mxu1 %vm2100_vm0, %v4802_v0 }
 0xfd1   : > { %v12457_v62 = vpop.f32.mrf.mxu0 }
 0xfd3   : > { %v4782_v21 = vpop.f32.mrf.mxu0 }
 0xfd5   : > { %v12458_v24 = vpop.f32.mrf.mxu0 }
 0xfd6   : > { %v4804_v23 = vpack.c.bf16 %v12458_v24, %v12457_v62 }
 0xfd7   : > { %v4785_v11 = vpop.f32.mrf.mxu0 }
 0xfd8   : > { %v4803_v33 = vpack.c.bf16 %v4785_v11, %v4782_v21  ;;  %v19677_v21 = vld [vmem:[#allocation83_spill] sm:$0xff] }
 0xfd9   : > { %v3437_v46 = vadd.f32 %v19678_v1, %v19677_v21  ;;  %v19683_v1 = vld [vmem:[#allocation60_spill] sm:$0xff] }
 0xfda   : > { %12475 = vmatprep.mubr.msk.bf16.mxu1 %vm2100_vm0, %v4803_v33 }
 0xfdb   : > { %12476 = vmatmul.mubr.msk.bf16.gmra.mxu1 %vm2100_vm0, %v4804_v23  ;;  %v17108_v23 = vld [vmem:[%s1583_s7] ss:$0 sm:$0xff]  ;;  %v4210_v51 = vadd.f32 %v16716_v28, %v3437_v46  ;;  %s19845_s7 = sld [smem:[#allocation53_spill]] }
 0xfdc   : > { %5840 = vmatprep.mubr.bf16.mxu1 %v19675_v63 }
 0xfe1   : > { %p11552_p3 = scmp.ne.s32.totalorder %s19845_s7, 1 }
 0xfe6   : > { %v12497_v5 = vpop.f32.mrf.mxu0 }
 0xfe7   : > { %v5496_v34 = vadd.f32 %v12497_v5, %v17074_v38 }
 0xfe8   : > { %v5487_v58 = vpop.f32.mrf.mxu0 }
 0xfe9   : > { %v5488_v50 = vadd.f32 %v17074_v38, %v5487_v58  ;;  %v5568_v3 = vmul.f32 0.2, %v5496_v34  ;;  %vm5552_vm5 = vcmp.ge.f32.partialorder %v5496_v34, 0.0 }
 0xfea   : > { %v12498_v8 = vpop.f32.mrf.mxu0 }
 0xfeb   : > { %v5566_v16 = vmul.f32 0.2, %v5488_v50  ;;  %v5499_v10 = vadd.f32 %v12498_v8, %v17074_v38  ;;  %vm5550_vm4 = vcmp.ge.f32.partialorder %v5488_v50, 0.0  ;;  %v17085_v56 = vsel %vm5552_vm5, %v5496_v34, %v5568_v3 }
 0xfec   : > { %v5490_v54 = vpop.f32.mrf.mxu0 }
 0xfed   : > { %v5491_v42 = vadd.f32 %v17074_v38, %v5490_v54  ;;  %v17083_v9 = vsel %vm5550_vm4, %v5488_v50, %v5566_v16  ;;  %v5569_v26 = vmul.f32 0.2, %v5499_v10  ;;  %vm5553_vm7 = vcmp.ge.f32.partialorder %v5499_v10, 0.0  ;;  %v19680_v16 = vld [vmem:[#allocation58_spill] sm:$0xff] }
 0xfee   : > { %v12501_v49 = vpop.f32.mrf.mxu0 }
 0xfef   : > { %vm5551_vm6 = vcmp.ge.f32.partialorder %v5491_v42, 0.0  ;;  %v5567_v41 = vmul.f32 0.2, %v5491_v42  ;;  %v5512_v37 = vadd.f32 %v12501_v49, %v17074_v38  ;;  %v17093_v32 = vsel %vm5553_vm7, %v5499_v10, %v5569_v26 }
 0xff0   : > { %v5503_v60 = vpop.f32.mrf.mxu0 }
 0xff1   : > { %v17087_v15 = vsel %vm5551_vm6, %v5491_v42, %v5567_v41  ;;  %v5504_v30 = vadd.f32 %v17074_v38, %v5503_v60  ;;  %v5572_v11 = vmul.f32 0.2, %v5512_v37  ;;  %vm5556_vm9 = vcmp.ge.f32.partialorder %v5512_v37, 0.0  ;;  %v19681_v41 = vld [vmem:[#allocation91_spill] sm:$0xff]  ;;  %v19682_v60 = vld [vmem:[#allocation84_spill] sm:$0xff] }
 0xff2   : > { %v5598_v55 = vadd.f32 %v17087_v15, %v17083_v9  ;;  %v12502_v17 = vpop.f32.mrf.mxu0 }
 0xff3   : > { %v12465_v40 = vpop.f32.mrf.mxu1  ;;  %vm5554_vm8 = vcmp.ge.f32.partialorder %v5504_v30, 0.0  ;;  %v5570_v0 = vmul.f32 0.2, %v5504_v30  ;;  %v5515_v36 = vadd.f32 %v12502_v17, %v17074_v38  ;;  %v17117_v34 = vsel %vm5556_vm9, %v5512_v37, %v5572_v11 }
 0xff4   : > { %v5599_v22 = vadd.f32 %v5598_v55, %v17085_v56  ;;  %v5506_v62 = vpop.f32.mrf.mxu0  ;;  %v4940_v45 = vadd.f32 %v12465_v40, %v16706_v13  ;;  %v3453_v37 = vadd.f32 %v19682_v60, %v19681_v41 }
 0xff5   : > { %v4875_v24 = vpop.f32.mrf.mxu1  ;;  %v17099_v53 = vsel %vm5554_vm8, %v5504_v30, %v5570_v0  ;;  %v5507_v33 = vadd.f32 %v17074_v38, %v5506_v62  ;;  %v5573_v57 = vmul.f32 0.2, %v5515_v36  ;;  %vm5557_vm11 = vcmp.ge.f32.partialorder %v5515_v36, 0.0 }
 0xff6   : > { %v4938_v52 = vadd.f32 %v4875_v24, %v16709_v35  ;;  %v5600_v47 = vadd.f32 %v5599_v22, %v17093_v32  ;;  %v12505_v44 = vpop.f32.mrf.mxu0  ;;  %v4963_v8 = vadd.f32 %v17108_v23, %v4940_v45  ;;  %v19684_v24 = vld [vmem:[#allocation59_spill] sm:$0xff] }
 0xff7   : > { %v12466_v19 = vpop.f32.mrf.mxu1  ;;  %vm5555_vm10 = vcmp.ge.f32.partialorder %v5507_v33, 0.0  ;;  %v5571_v6 = vmul.f32 0.2, %v5507_v33  ;;  %v5528_v20 = vadd.f32 %v12505_v44, %v17074_v38  ;;  %v17127_v49 = vsel %vm5557_vm11, %v5515_v36, %v5573_v57 }
 0xff8   : > { %v4961_v13 = vadd.f32 %v17108_v23, %v4938_v52  ;;  %v5601_v5 = vadd.f32 %v5600_v47, %v17099_v53  ;;  %v5519_v59 = vpop.f32.mrf.mxu0  ;;  %v4941_v35 = vadd.f32 %v12466_v19, %v16714_v12  ;;  %v17141_v46 = vadd.f32 %v4963_v8, %v19683_v1 }
 0xff9   : > { %v4878_v58 = vpop.f32.mrf.mxu1  ;;  %v17119_v50 = vsel %vm5555_vm10, %v5507_v33, %v5571_v6  ;;  %v5520_v28 = vadd.f32 %v17074_v38, %v5519_v59  ;;  %v5576_v17 = vmul.f32 0.2, %v5528_v20  ;;  %vm5560_vm13 = vcmp.ge.f32.partialorder %v5528_v20, 0.0 }
 0xffa   : > { %v4939_v43 = vadd.f32 %v4878_v58, %v4210_v51  ;;  %v17124_v10 = vadd.f32 %v4961_v13, %v19680_v16  ;;  %v5602_v54 = vadd.f32 %v5601_v5, %v17119_v50  ;;  %v12506_v3 = vpop.f32.mrf.mxu0  ;;  %v4964_v0 = vadd.f32 %v17108_v23, %v4941_v35  ;;  %v19685_v5 = vld [vmem:[#allocation61_spill] sm:$0xff] }
 0xffb   : > { %v12469_v42 = vpop.f32.mrf.mxu1  ;;  %vm5558_vm12 = vcmp.ge.f32.partialorder %v5520_v28, 0.0  ;;  %v5574_v12 = vmul.f32 0.2, %v5520_v28  ;;  %v5531_v26 = vadd.f32 %v12506_v3, %v17074_v38  ;;  %v4214_v52 = vadd.f32 %v16727_v2, %v3453_v37 }
 0xffc   : > { %v4962_v30 = vadd.f32 %v17108_v23, %v4939_v43  ;;  %4995 = vadd.xlane.f32.xlu0 %v17124_v10  ;;  %v5603_v55 = vadd.f32 %v5602_v54, %v17117_v34  ;;  %v5522_v40 = vpop.f32.mrf.mxu0  ;;  %v17156_v2 = vadd.f32 %v4964_v0, %v19685_v5  ;;  %v19687_v0 = vld [vmem:[#allocation62_spill] sm:$0xff] }
 0xffd   : > { %v4891_v22 = vpop.f32.mrf.mxu1  ;;  %v17136_v36 = vsel %vm5558_vm12, %v5520_v28, %v5574_v12  ;;  %v5523_v62 = vadd.f32 %v17074_v38, %v5522_v40  ;;  %v5577_v44 = vmul.f32 0.2, %v5531_v26  ;;  %vm5561_vm15 = vcmp.ge.f32.partialorder %v5531_v26, 0.0  ;;  %v19686_v12 = vld [vmem:[#allocation65_spill] sm:$0xff] }
 0xffe   : > { %v4942_v21 = vadd.f32 %v4891_v22, %v16722_v39  ;;  %v17144_v11 = vadd.f32 %v4962_v30, %v19684_v24  ;;  %v5604_v33 = vadd.f32 %v5603_v55, %v17127_v49  ;;  %v12509_v45 = vpop.f32.mrf.mxu0  ;;  %v17152_v39 = vsel %vm5560_vm13, %v5528_v20, %v5576_v17 }
 0xfff   : > { %v12470_v47 = vpop.f32.mrf.mxu1  ;;  %vm5559_vm14 = vcmp.ge.f32.partialorder %v5523_v62, 0.0  ;;  %v5575_v51 = vmul.f32 0.2, %v5523_v62  ;;  %v5544_v35 = vadd.f32 %v12509_v45, %v17074_v38  ;;  %v17165_v16 = vsel %vm5561_vm15, %v5531_v26, %v5577_v44 }
0x1000   : > { %v4945_v19 = vadd.f32 %v12470_v47, %v16725_v25  ;;  %4999 = vadd.xlane.f32.xlu0 %v17141_v46  ;;  %4997 = vadd.xlane.f32.xlu1 %v17144_v11  ;;  %v5605_v57 = vadd.f32 %v5604_v33, %v17136_v36  ;;  %v5535_v6 = vpop.f32.mrf.mxu0  ;;  %v4965_v58 = vadd.f32 %v17108_v23, %v4942_v21  ;;  %v19688_v33 = vld [vmem:[#allocation63_spill] sm:$0xff] }
0x1001   : > { %v4894_v13 = vpop.f32.mrf.mxu1  ;;  %v17158_v59 = vsel %vm5559_vm14, %v5523_v62, %v5575_v51  ;;  %v5536_v25 = vadd.f32 %v17074_v38, %v5535_v6  ;;  %v4944_v30 = vadd.f32 %v12469_v42, %v16719_v29  ;;  %v5580_v55 = vmul.f32 0.2, %v5544_v35 }
0x1002   : > { %v4968_v28 = vadd.f32 %v17108_v23, %v4945_v19  ;;  %v4943_v20 = vadd.f32 %v4894_v13, %v4214_v52  ;;  %v5606_v8 = vadd.f32 %v5605_v57, %v17158_v59  ;;  %v12510_v43 = vpop.f32.mrf.mxu0  ;;  %v17178_v22 = vadd.f32 %v4965_v58, %v19687_v0  ;;  %v19689_v19 = vld [vmem:[#allocation64_spill] sm:$0xff] }
0x1003   : > { %vm5562_vm2 = vcmp.ge.f32.partialorder %v5536_v25, 0.0  ;;  %v5578_v54 = vmul.f32 0.2, %v5536_v25  ;;  %v5547_v3 = vadd.f32 %v12510_v43, %v17074_v38  ;;  %vm5564_vm3 = vcmp.ge.f32.partialorder %v5544_v35, 0.0 }
0x1004   : > { %5001 = vadd.xlane.f32.xlu0 %v17156_v2  ;;  %v17170_v41 = vadd.f32 %v4968_v28, %v19686_v12  ;;  %v5607_v60 = vadd.f32 %v5606_v8, %v17152_v39  ;;  %v5538_v37 = vpop.f32.mrf.mxu0  ;;  %v4966_v26 = vadd.f32 %v17108_v23, %v4943_v20  ;;  %v5596_v42 = vsel %vm5564_vm3, %v5544_v35, %v5580_v55 }
0x1005   : > { %v5594_v17 = vsel %vm5562_vm2, %v5536_v25, %v5578_v54  ;;  %v5539_v40 = vadd.f32 %v17074_v38, %v5538_v37  ;;  %v5581_v21 = vmul.f32 0.2, %v5547_v3  ;;  %vm5565_vm5 = vcmp.ge.f32.partialorder %v5547_v3, 0.0 }
0x1006   : > { %5009 = vadd.xlane.f32.xlu1 %v17170_v41  ;;  %v5608_v62 = vadd.f32 %v5607_v60, %v17165_v16  ;;  %v4967_v38 = vadd.f32 %v17108_v23, %v4944_v30  ;;  %v17184_v45 = vadd.f32 %v4966_v26, %v19688_v33 }
0x1007   : > { %vm5563_vm4 = vcmp.ge.f32.partialorder %v5539_v40, 0.0  ;;  %v5579_v1 = vmul.f32 0.2, %v5539_v40  ;;  %v5597_v47 = vsel %vm5565_vm5, %v5547_v3, %v5581_v21 }
0x1008   : > { %5003 = vadd.xlane.f32.xlu0 %v17178_v22  ;;  %v5609_v29 = vadd.f32 %v5608_v62, %v5594_v17  ;;  %v17188_v57 = vadd.f32 %v4967_v38, %v19689_v19 }
0x1009   : > { %v5595_v24 = vsel %vm5563_vm4, %v5539_v40, %v5579_v1 }
0x100a   : > { %v5610_v52 = vadd.f32 %v5609_v29, %v5595_v24 }
0x100c   : > { %5005 = vadd.xlane.f32.xlu0 %v17184_v45  ;;  %v5611_v44 = vadd.f32 %v5610_v52, %v5596_v42 }
0x100e   : > { %v5612_v51 = vadd.f32 %v5611_v44, %v5597_v47 }
0x1010   : > { %v5613_v6 = vrot.slane %v5612_v51, 4  ;;  %5007 = vadd.xlane.f32.xlu0 %v17188_v57 }
0x1012   : > { %v5614_v13 = vadd.f32 %v5613_v6, %v5612_v51 }
0x1014   : > { %v5615_v5 = vrot.slane %v5614_v13, 2 }
0x1016   : > { %v5616_v35 = vadd.f32 %v5615_v5, %v5614_v13 }
0x1018   : > { %v5617_v25 = vrot.slane %v5616_v35, 1 }
0x101a   : > { %v5618_v58 = vadd.f32 %v5617_v25, %v5616_v35 }
0x101c   : > { %v5619_v28 = vmul.f32 0.0078125, %v5618_v58 }
0x101e   : > { %v5620_v20 = vsub.f32 %v17083_v9, %v5619_v28  ;;  %v5621_v8 = vsub.f32 %v17087_v15, %v5619_v28  ;;  %v17194_v43 = vsub.f32 %v17085_v56, %v5619_v28  ;;  %v17197_v54 = vsub.f32 %v17093_v32, %v5619_v28 }
0x101f   : > { %v5624_v60 = vsub.f32 %v17099_v53, %v5619_v28  ;;  %v5625_v30 = vsub.f32 %v17119_v50, %v5619_v28  ;;  %v17206_v15 = vsub.f32 %v17117_v34, %v5619_v28  ;;  %v5627_v32 = vsub.f32 %v17127_v49, %v5619_v28 }
0x1020   : > { %v5636_v3 = vmul.f32 %v5620_v20, %v5620_v20  ;;  %v5637_v12 = vmul.f32 %v5621_v8, %v5621_v8  ;;  %v5638_v37 = vmul.f32 %v17194_v43, %v17194_v43  ;;  %v5639_v9 = vmul.f32 %v17197_v54, %v17197_v54 }
0x1021   : > { %v5640_v56 = vmul.f32 %v5624_v60, %v5624_v60  ;;  %v5641_v26 = vmul.f32 %v5625_v30, %v5625_v30  ;;  %v5628_v53 = vsub.f32 %v17136_v36, %v5619_v28  ;;  %v5642_v62 = vmul.f32 %v17206_v15, %v17206_v15 }
0x1022   : > { %v5652_v55 = vadd.f32 %v5637_v12, %v5636_v3  ;;  %v5629_v50 = vsub.f32 %v17158_v59, %v5619_v28  ;;  %v5643_v1 = vmul.f32 %v5627_v32, %v5627_v32  ;;  %v5630_v38 = vsub.f32 %v17152_v39, %v5619_v28 }
0x1023   : > { %v5644_v34 = vmul.f32 %v5628_v53, %v5628_v53  ;;  %v5631_v52 = vsub.f32 %v17165_v16, %v5619_v28  ;;  %v5632_v51 = vsub.f32 %v5594_v17, %v5619_v28  ;;  %v5633_v36 = vsub.f32 %v5595_v24, %v5619_v28 }
0x1024   : > { %v5653_v40 = vadd.f32 %v5652_v55, %v5638_v37  ;;  %v5645_v44 = vmul.f32 %v5629_v50, %v5629_v50  ;;  %v5646_v19 = vmul.f32 %v5630_v38, %v5630_v38  ;;  %v17215_v35 = vsub.f32 %v5596_v42, %v5619_v28 }
0x1025   : > { %v5647_v13 = vmul.f32 %v5631_v52, %v5631_v52  ;;  %v5648_v25 = vmul.f32 %v5632_v51, %v5632_v51  ;;  %v17217_v58 = vsub.f32 %v5597_v47, %v5619_v28  ;;  %v5649_v3 = vmul.f32 %v5633_v36, %v5633_v36 }
0x1026   : > { %v5654_v0 = vadd.f32 %v5653_v40, %v5639_v9  ;;  %v5650_v12 = vmul.f32 %v17215_v35, %v17215_v35 }
0x1027   : > { %v5651_v17 = vmul.f32 %v17217_v58, %v17217_v58 }
0x1028   : > { %v5655_v21 = vadd.f32 %v5654_v0, %v5640_v56 }
0x102a   : > { %v5656_v29 = vadd.f32 %v5655_v21, %v5641_v26 }
0x102c   : > { %v5657_v33 = vadd.f32 %v5656_v29, %v5642_v62 }
0x102e   : > { %v5658_v49 = vadd.f32 %v5657_v33, %v5643_v1 }
0x1030   : > { %v5659_v6 = vadd.f32 %v5658_v49, %v5644_v34 }
0x1032   : > { %v5660_v5 = vadd.f32 %v5659_v6, %v5645_v44 }
0x1034   : > { %v5661_v59 = vadd.f32 %v5660_v5, %v5646_v19 }
0x1036   : > { %v5662_v39 = vadd.f32 %v5661_v59, %v5647_v13 }
0x1038   : > { %v5663_v16 = vadd.f32 %v5662_v39, %v5648_v25  ;;  %v19690_v39 = vld [vmem:[#allocation92_spill] sm:$0xff] }
0x103a   : > { %v5664_v37 = vadd.f32 %v5663_v16, %v5649_v3 }
0x103c   : > { %v5665_v9 = vadd.f32 %v5664_v37, %v5650_v12  ;;  %v19691_v12 = vld [vmem:[#allocation86_spill] sm:$0xff] }
0x103d   : > { %v3469_v16 = vadd.f32 %v19691_v12, %v19690_v39 }
0x103e   : > { %v5666_v24 = vadd.f32 %v5665_v9, %v5651_v17 }
0x103f   : > { %v4218_v9 = vadd.f32 %v16741_v31, %v3469_v16 }
0x1040   : > { %v5667_v55 = vrot.slane %v5666_v24, 4 }
0x1042   : > { %v5668_v56 = vadd.f32 %v5667_v55, %v5666_v24 }
0x1044   : > { %v5669_v42 = vrot.slane %v5668_v56, 2 }
0x1046   : > { %v5670_v40 = vadd.f32 %v5669_v42, %v5668_v56 }
0x1048   : > { %v5671_v26 = vrot.slane %v5670_v40, 1 }
0x104a   : > { %v5672_v0 = vadd.f32 %v5671_v26, %v5670_v40  ;;  %v19692_v26 = vld [vmem:[#allocation66_spill] sm:$0xff] }
0x104c   : > { %v5673_v47 = vmul.f32 0.0078125, %v5672_v0 }
0x104e   : > { %v5674_v28 = vadd.f32 1e-05, %v5673_v47 }
0x1050   : > { %13568 = vrsqrt.f32 %v5674_v28 }
0x105d   : > { %v13569_v62 = vpop.eup %13568 }
0x105e   : > { %v5676_v21 = vmul.f32 %v13569_v62, %v5620_v20  ;;  %v5677_v1 = vmul.f32 %v13569_v62, %v5621_v8  ;;  %v5680_v29 = vmul.f32 %v13569_v62, %v5624_v60  ;;  %v5681_v34 = vmul.f32 %v13569_v62, %v5625_v30 }
0x105f   : > { %v5684_v44 = vmul.f32 %v13569_v62, %v5628_v53  ;;  %v5685_v49 = vmul.f32 %v13569_v62, %v5629_v50  ;;  %v5678_v6 = vmul.f32 %v13569_v62, %v17194_v43  ;;  %v5679_v13 = vmul.f32 %v13569_v62, %v17197_v54 }
0x1060   : > { %v5708_v33 = vpack.c.bf16 %v5677_v1, %v5676_v21  ;;  %v5710_v19 = vpack.c.bf16 %v5681_v34, %v5680_v29  ;;  %v5682_v20 = vmul.f32 %v13569_v62, %v17206_v15  ;;  %v5683_v8 = vmul.f32 %v13569_v62, %v5627_v32  ;;  %v19695_v1 = vld [vmem:[#allocation96_spill] sm:$0xff]  ;;  %v19696_v29 = vld [vmem:[#allocation90_spill] sm:$0xff] }
0x1061   : > { %v5712_v5 = vpack.c.bf16 %v5685_v49, %v5684_v44  ;;  %v5709_v25 = vpack.c.bf16 %v5679_v13, %v5678_v6  ;;  %v5686_v43 = vmul.f32 %v13569_v62, %v5630_v38  ;;  %v5687_v54 = vmul.f32 %v13569_v62, %v5631_v52  ;;  %v19697_v6 = vld [vmem:[#allocation69_spill] sm:$0xff] }
0x1062   : > { %5841 = vmatmul.mubr.bf16.vlgmr.msra.gmra.mxu1 %v5708_v33  ;;  %v5711_v60 = vpack.c.bf16 %v5683_v8, %v5682_v20  ;;  %v5689_v50 = vmul.f32 %v13569_v62, %v5633_v36  ;;  %v5688_v59 = vmul.f32 %v13569_v62, %v5632_v51  ;;  %v5690_v51 = vmul.f32 %v13569_v62, %v17215_v35 }
0x1063   : > { %5850 = vmatprep.mubr.bf16.mxu1 %v19675_v63  ;;  %v5713_v30 = vpack.c.bf16 %v5687_v54, %v5686_v43  ;;  %v5691_v55 = vmul.f32 %v13569_v62, %v17217_v58  ;;  %v19693_v58 = vld [vmem:[#allocation68_spill] sm:$0xff]  ;;  %v19694_v62 = vld [vmem:[#allocation67_spill] sm:$0xff]  ;;  %v3485_v34 = vadd.f32 %v19696_v29, %v19695_v1  ;;  %v19698_v54 = vld [vmem:[#allocation70_spill] sm:$0xff] }
0x1064   : > { %v5714_v3 = vpack.c.bf16 %v5689_v50, %v5688_v59  ;;  %v13221_v1 = vld [vmem:[%s15485_s4] sm:$0xff]  }
0x1065   : > { %v5715_v0 = vpack.c.bf16 %v5691_v55, %v5690_v51 }
0x106a   : > { %5851 = vmatmul.mubr.bf16.gmra.mxu1 %v5709_v25 }
0x106b   : > { %5860 = vmatprep.mubr.bf16.mxu1 %v19675_v63 }
0x1072   : > { %5861 = vmatmul.mubr.bf16.gmra.mxu1 %v5710_v19 }
0x1073   : > { %5870 = vmatprep.mubr.bf16.mxu1 %v19675_v63 }
0x107a   : > { %5871 = vmatmul.mubr.bf16.gmra.mxu1 %v5711_v60 }
0x107b   : > { %5880 = vmatprep.mubr.bf16.mxu1 %v19675_v63 }
0x1082   : > { %5881 = vmatmul.mubr.bf16.gmra.mxu1 %v5712_v5  ;;  %v4222_v5 = vadd.f32 %v16757_v61, %v3485_v34 }
0x1083   : > { %5890 = vmatprep.mubr.bf16.mxu1 %v19675_v63 }
0x1085   : > { %v4996_v53 = vpop.xlane.xlu0 %4995 }
0x1086   : > { %v5028_v20 = vmul.f32 0.0078125, %v4996_v53 }
0x1088   : > { %v17275_v53 = vsub.f32 %v17124_v10, %v5028_v20 }
0x1089   : > { %v5000_v17 = vpop.xlane.xlu0 %4999  ;;  %v4998_v60 = vpop.xlane.xlu1 %4997 }
0x108a   : > { %5891 = vmatmul.mubr.bf16.gmra.mxu1 %v5713_v30  ;;  %v5030_v61 = vmul.f32 0.0078125, %v5000_v17  ;;  %v5029_v59 = vmul.f32 0.0078125, %v4998_v60 }
0x108b   : > { %5900 = vmatprep.mubr.bf16.mxu1 %v19675_v63 }
0x108c   : > { %v17287_v16 = vsub.f32 %v17141_v46, %v5030_v61  ;;  %v17290_v17 = vsub.f32 %v17144_v11, %v5029_v59 }
0x108e   : > { %v5061_v46 = vmul.f32 %v17290_v17, %v17290_v17 }
0x1090   : > { %v12473_v15 = vpop.f32.mrf.mxu1 }
0x1091   : > { %v4948_v37 = vadd.f32 %v12473_v15, %v16733_v7 }
0x1092   : > { %v4907_v32 = vpop.f32.mrf.mxu1  ;;  %5901 = vmatmul.mubr.bf16.gmra.mxu1 %v5714_v3  ;;  %v19699_v3 = vld [vmem:[#allocation72_spill] sm:$0xff] }
0x1093   : > { %v4946_v38 = vadd.f32 %v4907_v32, %v16737_v48  ;;  %v4971_v56 = vadd.f32 %v17108_v23, %v4948_v37  ;;  %5910 = vmatprep.mubr.bf16.mxu1 %v19675_v63  ;;  %v5002_v48 = vpop.xlane.xlu0 %5001 }
0x1094   : > { %v12474_v52 = vpop.f32.mrf.mxu1  ;;  %v5031_v10 = vmul.f32 0.0078125, %v5002_v48 }
0x1095   : > { %v4969_v36 = vadd.f32 %v17108_v23, %v4946_v38  ;;  %v4949_v42 = vadd.f32 %v12474_v52, %v16739_v4  ;;  %v17250_v28 = vadd.f32 %v4971_v56, %v19693_v58  ;;  %v19701_v38 = vld [vmem:[#allocation73_spill] sm:$0xff]  ;;  %v13218_v58 = vld [vmem:[%s15485_s4 + $0x18] sm:$0xff]  }
0x1096   : > { %v4910_v24 = vpop.f32.mrf.mxu1  ;;  %v17303_v11 = vsub.f32 %v17156_v2, %v5031_v10 }
0x1097   : > { %v4947_v40 = vadd.f32 %v4910_v24, %v4218_v9  ;;  %v17243_v7 = vadd.f32 %v4969_v36, %v19692_v26  ;;  %v4972_v35 = vadd.f32 %v17108_v23, %v4949_v42  ;;  %v5004_v49 = vpop.xlane.xlu0 %5003  ;;  %v5062_v36 = vmul.f32 %v17287_v16, %v17287_v16  ;;  %v5010_v24 = vpop.xlane.xlu1 %5009 }
0x1098   : > { %v5032_v37 = vmul.f32 0.0078125, %v5004_v49  ;;  %v5035_v42 = vmul.f32 0.0078125, %v5010_v24 }
0x1099   : > { %v4970_v31 = vadd.f32 %v17108_v23, %v4947_v40  ;;  %5011 = vadd.xlane.f32.xlu0 %v17243_v7  ;;  %v17262_v13 = vadd.f32 %v4972_v35, %v19697_v6  ;;  %v13216_v35 = vld [vmem:[%s15485_s4 + $0x28] sm:$0xff]   ;;  %v19702_v6 = vld [vmem:[#allocation76_spill] sm:$0xff] }
0x109a   : > { %5911 = vmatmul.mubr.bf16.gmra.mxu1 %v5715_v0  ;;  %v17306_v51 = vsub.f32 %v17178_v22, %v5032_v37  ;;  %v5063_v22 = vmul.f32 %v17303_v11, %v17303_v11  ;;  %v17319_v48 = vsub.f32 %v17170_v41, %v5035_v42  ;;  %v13214_v0 = vld [vmem:[%s15485_s4 + $0x38] sm:$0xff]   ;;  %v13215_v41 = vld [vmem:[%s15485_s4 + $0x30] sm:$0xff]  }
0x109b   : > { %v12477_v47 = vpop.f32.mrf.mxu1  ;;  %v17253_v4 = vadd.f32 %v4970_v31, %v19694_v62  ;;  %v5006_v15 = vpop.xlane.xlu0 %5005  ;;  %12511 = vmatprep.subr.bf16.mxu0 %v13214_v0  ;;  %v13219_v62 = vld [vmem:[%s15485_s4 + $0x10] sm:$0xff]  }
0x109c   : > { %v4952_v33 = vadd.f32 %v12477_v47, %v16749_v14  ;;  %v5033_v55 = vmul.f32 0.0078125, %v5006_v15  ;;  %v5064_v2 = vmul.f32 %v17306_v51, %v17306_v51  ;;  %v5067_v31 = vmul.f32 %v17319_v48, %v17319_v48  ;;  %12512 = vmatpush3.bf16.msra.mxu0 %v13214_v0  ;;  %v13217_v47 = vld [vmem:[%s15485_s4 + $0x20] sm:$0xff]  }
0x109d   : > { %5015 = vadd.xlane.f32.xlu0 %v17250_v28  ;;  %5013 = vadd.xlane.f32.xlu1 %v17253_v4  ;;  %v4923_v21 = vpop.f32.mrf.mxu1 }
0x109e   : > { %v4950_v44 = vadd.f32 %v4923_v21, %v16753_v27  ;;  %v4975_v43 = vadd.f32 %v17108_v23, %v4952_v33  ;;  %v17309_v40 = vsub.f32 %v17184_v45, %v5033_v55  ;;  %12513 = vmatprep.subr.bf16.mxu0 %v13215_v41  ;;  %v13220_v21 = vld [vmem:[%s15485_s4 + $0x8] sm:$0xff]   ;;  %s19800_s4 = scalar_lea.vmem [#allocation26], %s15445_s5 }
0x109f   : > { %v12478_v19 = vpop.f32.mrf.mxu1  ;;  %v5008_v9 = vpop.xlane.xlu0 %5007 }
0x10a0   : > { %v4973_v25 = vadd.f32 %v17108_v23, %v4950_v44  ;;  %v4953_v14 = vadd.f32 %v12478_v19, %v16755_v18  ;;  %v17279_v39 = vadd.f32 %v4975_v43, %v19699_v3  ;;  %v19700_v18 = vld [vmem:[#allocation71_spill] sm:$0xff]  ;;  %v5034_v56 = vmul.f32 0.0078125, %v5008_v9  ;;  %12514 = vmatpush3.bf16.msra.mxu0 %v13215_v41 }
0x10a1   : > { %5017 = vadd.xlane.f32.xlu1 %v17262_v13  ;;  %v4926_v8 = vpop.f32.mrf.mxu1  ;;  %12515 = vmatprep.subr.bf16.mxu0 %v13216_v35  ;;  %v17339_v44 = vld [vmem:[%s15482_s28] sm:$0x3]  ;;  %s19777_s28 = scalar_lea.vmem [#allocation25], %s15445_s5 }
0x10a2   : > { %v4951_v27 = vadd.f32 %v4926_v8, %v4222_v5  ;;  %v17270_v30 = vadd.f32 %v4973_v25, %v19698_v54  ;;  %v4976_v32 = vadd.f32 %v17108_v23, %v4953_v14  ;;  %v17312_v26 = vsub.f32 %v17188_v57, %v5034_v56 }
0x10a3   : > { %v5065_v57 = vmul.f32 %v17309_v40, %v17309_v40  ;;  %v17343_v5 = vrot.slane %v17339_v44, %v19702_v6 }
0x10a4   : > { %v4974_v50 = vadd.f32 %v17108_v23, %v4951_v27  ;;  %5019 = vadd.xlane.f32.xlu0 %v17270_v30  ;;  %v5060_v23 = vmul.f32 %v17275_v53, %v17275_v53  ;;  %v17295_v52 = vadd.f32 %v4976_v32, %v19701_v38  ;;  %v5066_v45 = vmul.f32 %v17312_v26, %v17312_v26 }
0x10a5   : > { %12516 = vmatpush3.bf16.msra.mxu0 %v13216_v35 }
0x10a6   : > { %v17282_v12 = vadd.f32 %v4974_v50, %v19700_v18  ;;  %12517 = vmatprep.subr.bf16.mxu0 %v13217_v47 }
0x10a8   : > { %5023 = vadd.xlane.f32.xlu0 %v17279_v39  ;;  %5021 = vadd.xlane.f32.xlu1 %v17282_v12 }
0x10a9   : > { %12518 = vmatpush3.bf16.msra.mxu0 %v13217_v47 }
0x10aa   : > { %12519 = vmatprep.subr.bf16.mxu0 %v13218_v58 }
0x10ac   : > { %5076 = vadd.xlane.f32.xlu0 %v5060_v23  ;;  %5025 = vadd.xlane.f32.xlu1 %v17295_v52 }
0x10ad   : > { %12520 = vmatpush3.bf16.msra.mxu0 %v13218_v58 }
0x10ae   : > { %12521 = vmatprep.subr.bf16.mxu0 %v13219_v62 }
0x10b0   : > { %5080 = vadd.xlane.f32.xlu0 %v5062_v36  ;;  %5078 = vadd.xlane.f32.xlu1 %v5061_v46 }
0x10b1   : > { %12522 = vmatpush3.bf16.msra.mxu0 %v13219_v62 }
0x10b2   : > { %12523 = vmatprep.subr.bf16.mxu0 %v13220_v21 }
0x10b4   : > { %5084 = vadd.xlane.f32.xlu0 %v5064_v2  ;;  %5082 = vadd.xlane.f32.xlu1 %v5063_v22 }
0x10b5   : > { %12524 = vmatpush3.bf16.msra.mxu0 %v13220_v21 }
0x10b6   : > { %12525 = vmatprep.subr.bf16.mxu0 %v13221_v1 }
0x10b8   : > { %5088 = vadd.xlane.f32.xlu0 %v5066_v45  ;;  %5086 = vadd.xlane.f32.xlu1 %v5065_v57 }
0x10b9   : > { %12526 = vmatpush3.bf16.msra.mxu0 %v13221_v1 }
0x10bc   : > { %5090 = vadd.xlane.f32.xlu1 %v5067_v31 }
0x1122   : > { %v5012_v29 = vpop.xlane.xlu0 %5011  ;;  %v17347_v60 = vpop.f32.mrf.mxu1 }
0x1123   : > { %v5036_v34 = vmul.f32 0.0078125, %v5012_v29 }
0x1124   : > { %v5844_v14 = vpop.f32.mrf.mxu1 }
0x1125   : > { %v17336_v33 = vsub.f32 %v17243_v7, %v5036_v34  ;;  %v5845_v54 = vadd.f32 %v5844_v14, %v17343_v5 }
0x1126   : > { %v5016_v49 = vpop.xlane.xlu0 %5015  ;;  %v5014_v19 = vpop.xlane.xlu1 %5013 }
0x1127   : > { %v5038_v25 = vmul.f32 0.0078125, %v5016_v49  ;;  %v5037_v20 = vmul.f32 0.0078125, %v5014_v19  ;;  %v5068_v8 = vmul.f32 %v17336_v33, %v17336_v33  ;;  %v17360_v15 = vpop.f32.mrf.mxu1 }
0x1129   : > { %v17350_v43 = vsub.f32 %v17250_v28, %v5038_v25  ;;  %v17353_v7 = vsub.f32 %v17253_v4, %v5037_v20  ;;  %5092 = vadd.xlane.f32.xlu0 %v5068_v8  ;;  %v5848_v32 = vpop.f32.mrf.mxu1 }
0x112a   : > { %v5018_v27 = vpop.xlane.xlu1 %5017  ;;  %v5849_v18 = vadd.f32 %v5848_v32, %v17343_v5 }
0x112b   : > { %v5039_v50 = vmul.f32 0.0078125, %v5018_v27  ;;  %v5070_v61 = vmul.f32 %v17350_v43, %v17350_v43  ;;  %v5069_v59 = vmul.f32 %v17353_v7, %v17353_v7  ;;  %v17368_v37 = vpop.f32.mrf.mxu1 }
0x112c   : > { %v17373_v38 = vpack.c.bf16 %v5849_v18, %v5845_v54 }
0x112d   : > { %v17363_v28 = vsub.f32 %v17262_v13, %v5039_v50  ;;  %5096 = vadd.xlane.f32.xlu0 %v5070_v61  ;;  %v5020_v4 = vpop.xlane.xlu0 %5019  ;;  %5094 = vadd.xlane.f32.xlu1 %v5069_v59  ;;  %v5854_v55 = vpop.f32.mrf.mxu1  ;;  %v19705_v59 = vld [vmem:[#allocation75_spill] sm:$0xff] }
0x112e   : > { %v5040_v3 = vmul.f32 0.0078125, %v5020_v4  ;;  %19703 = vst [vmem:[#allocation78_spill] sm:$0xff] %v17373_v38  ;;  %v5855_v56 = vadd.f32 %v5854_v55, %v17343_v5  ;;  %v17399_v4 = vrot.slane %v17339_v44, %v19705_v59 }
0x112f   : > { %v5071_v10 = vmul.f32 %v17363_v28, %v17363_v28 }
0x1130   : > { %v17371_v23 = vsub.f32 %v17270_v30, %v5040_v3  ;;  %v5856_v30 = vpop.f32.mrf.mxu1 }
0x1131   : > { %v5024_v9 = vpop.xlane.xlu0 %5023  ;;  %5098 = vadd.xlane.f32.xlu1 %v5071_v10  ;;  %v5022_v13 = vpop.xlane.xlu1 %5021 }
0x1132   : > { %v5042_v36 = vmul.f32 0.0078125, %v5024_v9  ;;  %v5041_v46 = vmul.f32 0.0078125, %v5022_v13  ;;  %v5072_v24 = vmul.f32 %v17371_v23, %v17371_v23  ;;  %v5858_v35 = vpop.f32.mrf.mxu1 }
0x1133   : > { %v5859_v47 = vadd.f32 %v5858_v35, %v17343_v5 }
0x1134   : > { %v17379_v42 = vsub.f32 %v17279_v39, %v5042_v36  ;;  %v17382_v2 = vsub.f32 %v17282_v12, %v5041_v46  ;;  %5100 = vadd.xlane.f32.xlu0 %v5072_v24  ;;  %v5862_v12 = vpop.f32.mrf.mxu1 }
0x1135   : > { %v5077_v22 = vpop.xlane.xlu0 %5076  ;;  %v5026_v45 = vpop.xlane.xlu1 %5025  ;;  %v17392_v1 = vpack.c.bf16 %v5859_v47, %v5855_v56 }
0x1136   : > { %v5108_v57 = vmul.f32 0.0078125, %v5077_v22  ;;  %v5043_v31 = vmul.f32 0.0078125, %v5026_v45  ;;  %v5074_v0 = vmul.f32 %v17379_v42, %v17379_v42  ;;  %v5073_v41 = vmul.f32 %v17382_v2, %v17382_v2  ;;  %v5864_v19 = vpop.f32.mrf.mxu1 }
0x1137   : > { %19704 = vst [vmem:[#allocation93_spill] sm:$0xff] %v17392_v1  ;;  %v5865_v25 = vadd.f32 %v5864_v19, %v17343_v5  ;;  %v17426_v19 = vld [vmem:[%s19707_s17] ss:$0 sm:$0xff] }
0x1138   : > { %v5124_v39 = vadd.f32 1e-06, %v5108_v57  ;;  %v17390_v58 = vsub.f32 %v17295_v52, %v5043_v31  ;;  %5104 = vadd.xlane.f32.xlu0 %v5074_v0  ;;  %5102 = vadd.xlane.f32.xlu1 %v5073_v41  ;;  %v5866_v52 = vpop.f32.mrf.mxu1  ;;  %v5843_v57 = vadd.f32 %v17347_v60, %v17399_v4  ;;  %v5847_v31 = vadd.f32 %v17360_v15, %v17399_v4 }
0x1139   : > { %v5081_v62 = vpop.xlane.xlu0 %5080  ;;  %v5079_v21 = vpop.xlane.xlu1 %5078  ;;  %v5857_v60 = vadd.f32 %v5856_v30, %v17399_v4  ;;  %v5867_v30 = vadd.f32 %v5866_v52, %v17399_v4 }
0x113a   : > { %13570 = vrsqrt.f32 %v5124_v39  ;;  %v5110_v29 = vmul.f32 0.0078125, %v5081_v62  ;;  %v5109_v34 = vmul.f32 0.0078125, %v5079_v21  ;;  %v5075_v49 = vmul.f32 %v17390_v58, %v17390_v58  ;;  %v5868_v61 = vpop.f32.mrf.mxu1 }
0x113b   : > { %v5869_v32 = vadd.f32 %v5868_v61, %v17343_v5  ;;  %v5853_v21 = vadd.f32 %v17368_v37, %v17399_v4  ;;  %v5863_v37 = vadd.f32 %v5862_v12, %v17399_v4  ;;  %v17441_v61 = vld [vmem:[%s19708_s11] ss:$0 sm:$0xff] }
0x113c   : > { %v5126_v20 = vadd.f32 1e-06, %v5110_v29  ;;  %v5125_v8 = vadd.f32 1e-06, %v5109_v34  ;;  %5106 = vadd.xlane.f32.xlu1 %v5075_v49  ;;  %v5872_v10 = vpop.f32.mrf.mxu1  ;;  %v17422_v49 = vpack.c.bf16 %v5847_v31, %v5843_v57 }
0x113d   : > { %v5085_v14 = vpop.xlane.xlu0 %5084  ;;  %v5083_v27 = vpop.xlane.xlu1 %5082  ;;  %v17402_v36 = vpack.c.bf16 %v5869_v32, %v5865_v25  ;;  %v5873_v56 = vadd.f32 %v5872_v10, %v17399_v4 }
0x113e   : > { %13572 = vrsqrt.f32 %v5126_v20  ;;  %v5112_v54 = vmul.f32 0.0078125, %v5085_v14  ;;  %v5111_v50 = vmul.f32 0.0078125, %v5083_v27  ;;  %v17404_v55 = vpop.f32.mrf.mxu1  ;;  %v17434_v27 = vpack.c.bf16 %v5857_v60, %v5853_v21 }
0x113f   : > { %13574 = vrsqrt.f32 %v5125_v8  ;;  %19706 = vst [vmem:[#allocation87_spill] sm:$0xff] %v17402_v36 }
0x1140   : > { %v5128_v3 = vadd.f32 1e-06, %v5112_v54  ;;  %v5127_v18 = vadd.f32 1e-06, %v5111_v50  ;;  %v5876_v45 = vpop.f32.mrf.mxu1 }
0x1141   : > { %v5089_v9 = vpop.xlane.xlu0 %5088  ;;  %v5087_v13 = vpop.xlane.xlu1 %5086  ;;  %v5877_v41 = vadd.f32 %v5876_v45, %v17399_v4 }
0x1142   : > { %13576 = vrsqrt.f32 %v5128_v3  ;;  %v5114_v46 = vmul.f32 0.0078125, %v5089_v9  ;;  %v5113_v24 = vmul.f32 0.0078125, %v5087_v13  ;;  %v17412_v47 = vpop.f32.mrf.mxu1 }
0x1143   : > { %13578 = vrsqrt.f32 %v5127_v18  ;;  %v17414_v62 = vpack.c.bf16 %v5877_v41, %v5873_v56 }
0x1144   : > { %v5130_v44 = vadd.f32 1e-06, %v5114_v46  ;;  %v5129_v22 = vadd.f32 1e-06, %v5113_v24  ;;  %v17419_v34 = vpop.f32.mrf.mxu1 }
0x1145   : > { %v5091_v0 = vpop.xlane.xlu1 %5090  ;;  %12981 = vmatprep.subr.msk.bf16.mxu0 %vm2100_vm0, %v17414_v62 }
0x1146   : > { %13580 = vrsqrt.f32 %v5130_v44  ;;  %v5115_v35 = vmul.f32 0.0078125, %v5091_v0  ;;  %v5884_v25 = vpop.f32.mrf.mxu1 }
0x1147   : > { %v13571_v39 = vpop.eup %13570  ;;  %13582 = vrsqrt.f32 %v5129_v22  ;;  %v5885_v8 = vadd.f32 %v5884_v25, %v17343_v5 }
0x1148   : > { %v5131_v29 = vadd.f32 1e-06, %v5115_v35  ;;  %v5156_v15 = vmul.f32 %v13571_v39, %v17275_v53  ;;  %v17436_v54 = vpop.f32.mrf.mxu1 }
0x114a   : > { %13584 = vrsqrt.f32 %v5131_v29  ;;  %v5178_v50 = vmul.f32 %v17426_v19, %v5156_v15  ;;  %v5888_v12 = vpop.f32.mrf.mxu1 }
0x114b   : > { %v13573_v20 = vpop.eup %13572  ;;  %v5889_v3 = vadd.f32 %v5888_v12, %v17343_v5 }
0x114c   : > { %v13575_v14 = vpop.eup %13574  ;;  %v5158_v53 = vmul.f32 %v13573_v20, %v17287_v16  ;;  %v17448_v16 = vpack.c.bf16 %v5867_v30, %v5863_v37  ;;  %v17454_v13 = vadd.f32 %v17441_v61, %v5178_v50  ;;  %v6159_v37 = vsel %vm2100_vm0, %v17414_v62, 0 }
0x114d   : > { %v5157_v32 = vmul.f32 %v13575_v14, %v17290_v17  ;;  %6677 = vrot.lane.b32.xlu1 %v17422_v49, %s14638_s13  ;;  %v17456_v17 = vpop.f32.mrf.mxu1  ;;  %v17459_v24 = vpack.c.bf16 %v5889_v3, %v5885_v8 }
0x114e   : > { %6679 = vrot.lane.b32.xlu0 %v17434_v27, %s14638_s13  ;;  %v5180_v9 = vmul.f32 %v17426_v19, %v5158_v53  ;;  %19709 = vst [vmem:[#allocation94_spill] sm:$0xff] %v17454_v13 }
0x114f   : > { %v13577_v52 = vpop.eup %13576  ;;  %v5179_v18 = vmul.f32 %v17426_v19, %v5157_v32  ;;  %v5894_v22 = vpop.f32.mrf.mxu1 }
0x1150   : > { %v13579_v10 = vpop.eup %13578  ;;  %v5160_v44 = vmul.f32 %v13577_v52, %v17306_v51  ;;  %v5895_v31 = vadd.f32 %v5894_v22, %v17343_v5  ;;  %v17475_v51 = vadd.f32 %v17441_v61, %v5180_v9 }
0x1151   : > { %v5159_v46 = vmul.f32 %v13579_v10, %v17303_v11  ;;  %v17462_v56 = vadd.f32 %v17441_v61, %v5179_v18  ;;  %6681 = vrot.lane.b32.xlu1 %v17448_v16, %s14638_s13  ;;  %v5896_v41 = vpop.f32.mrf.mxu1 }
0x1152   : > { %6683 = vrot.lane.b32.xlu0 %v17414_v62, %s14638_s13  ;;  %19711 = vst [vmem:[#allocation95_spill] sm:$0xff] %v17475_v51  ;;  %v5182_v60 = vmul.f32 %v17426_v19, %v5160_v44 }
0x1153   : > { %19710 = vst [vmem:[#allocation88_spill] sm:$0xff] %v17462_v56  ;;  %v13581_v45 = vpop.eup %13580  ;;  %v5181_v57 = vmul.f32 %v17426_v19, %v5159_v46  ;;  %v5953_v11 = vpack.c.bf16 %v17462_v56, %v17454_v13  ;;  %v5898_v29 = vpop.f32.mrf.mxu1 }
0x1154   : > { %v13583_v0 = vpop.eup %13582  ;;  %v5162_v35 = vmul.f32 %v13581_v45, %v17312_v26  ;;  %v5899_v20 = vadd.f32 %v5898_v29, %v17343_v5  ;;  %v17493_v53 = vadd.f32 %v17441_v61, %v5182_v60 }
0x1155   : > { %12527 = vmatprep.mubr.bf16.mxu0 %v5953_v11  ;;  %v17478_v39 = vadd.f32 %v17441_v61, %v5181_v57  ;;  %v5161_v21 = vmul.f32 %v13583_v0, %v17309_v40  ;;  %v5902_v30 = vpop.f32.mrf.mxu1  ;;  %v6156_v11 = vsel %vm2100_vm0, %v17448_v16, 0 }
0x1156   : > { %v5184_v14 = vmul.f32 %v17426_v19, %v5162_v35  ;;  %v17490_v40 = vpack.c.bf16 %v5899_v20, %v5895_v31  ;;  %19713 = vst [vmem:[#allocation77_spill] sm:$0xff] %v17493_v53 }
0x1157   : > { %19712 = vst [vmem:[#allocation89_spill] sm:$0xff] %v17478_v39  ;;  %v13585_v15 = vpop.eup %13584  ;;  %v5954_v25 = vpack.c.bf16 %v17478_v39, %v17475_v51  ;;  %v5183_v26 = vmul.f32 %v17426_v19, %v5161_v21  ;;  %v5904_v32 = vpop.f32.mrf.mxu1 }
0x1158   : > { %v5163_v8 = vmul.f32 %v13585_v15, %v17319_v48  ;;  %v5903_v48 = vadd.f32 %v5902_v30, %v17399_v4  ;;  %v5905_v3 = vadd.f32 %v5904_v32, %v17343_v5  ;;  %v17506_v18 = vadd.f32 %v17441_v61, %v5184_v14 }
0x1159   : > { %12528 = vmatmul.mubr.bf16.vlgmr.msra.gmra.mxu0 %v5954_v25  ;;  %v17496_v50 = vadd.f32 %v17441_v61, %v5183_v26  ;;  %v5906_v9 = vpop.f32.mrf.mxu1  ;;  %v6153_v25 = vsel %vm2100_vm0, %v17434_v27, 0  ;;  %v5875_v26 = vadd.f32 %v17404_v55, %v17343_v5  ;;  %v5893_v30 = vadd.f32 %v17456_v17, %v17399_v4 }
0x115a   : > { %12544 = vmatpush3.bf16.xpose.msra.mxu0 %v6159_v37  ;;  %v5185_v12 = vmul.f32 %v17426_v19, %v5163_v8  ;;  %19715 = vst [vmem:[#allocation79_spill] sm:$0xff] %v17506_v18  ;;  %v5907_v46 = vadd.f32 %v5906_v9, %v17399_v4  ;;  %v5879_v37 = vadd.f32 %v17412_v47, %v17343_v5  ;;  %v6150_v55 = vsel %vm2100_vm0, %v17422_v49, 0 }
0x115b   : > { %19714 = vst [vmem:[#allocation82_spill] sm:$0xff] %v17496_v50  ;;  %v5955_v52 = vpack.c.bf16 %v17496_v50, %v17493_v53  ;;  %12982 = vmatprep.subr.msk.bf16.mxu0 %vm2100_vm0, %v17448_v16  ;;  %v5908_v22 = vpop.f32.mrf.mxu1  ;;  %v5897_v8 = vadd.f32 %v5896_v41, %v17399_v4  ;;  %v5883_v17 = vadd.f32 %v17419_v34, %v17399_v4 }
0x115c   : > { %v17509_v10 = vadd.f32 %v17441_v61, %v5185_v12  ;;  %v17514_v45 = vpack.c.bf16 %v5907_v46, %v5903_v48  ;;  %v5909_v57 = vadd.f32 %v5908_v22, %v17343_v5  ;;  %v17548_v14 = vpack.c.bf16 %v5879_v37, %v5875_v26 }
0x115d   : > { %12531 = vmatprep.mubr.bf16.mxu0 %v5955_v52  ;;  %v5912_v31 = vpop.f32.mrf.mxu1  ;;  %v17550_v32 = vpack.c.bf16 %v5897_v8, %v5893_v30  ;;  %v5887_v41 = vadd.f32 %v17436_v54, %v17399_v4 }
0x115e   : > { %19716 = vst [vmem:[#allocation80_spill] sm:$0xff] %v17509_v10  ;;  %v5956_v44 = vpack.c.bf16 %v17509_v10, %v17506_v18  ;;  %v17519_v0 = vpack.c.bf16 %v5909_v57, %v5905_v3  ;;  %6794 = vrot.lane.b32.xlu1 %v17514_v45, %s14638_s13  ;;  %v5913_v21 = vadd.f32 %v5912_v31, %v17399_v4  ;;  %19718 = vst [vmem:[#allocation83_spill] sm:$0xff] %v17548_v14 }
0x115f   : > { %v5914_v35 = vpop.f32.mrf.mxu1  ;;  %v6245_v47 = vsel %vm2100_vm0, %v17514_v45, 0  ;;  %v17563_v12 = vpack.c.bf16 %v5887_v41, %v5883_v17  ;;  %v6242_v52 = vsel %vm2100_vm0, %v17550_v32, 0 }
0x1160   : > { %19717 = vst [vmem:[#allocation81_spill] sm:$0xff] %v17519_v0  ;;  %v5915_v3 = vadd.f32 %v5914_v35, %v17343_v5 }
0x1161   : > { %12532 = vmatmul.mubr.bf16.gmra.mxu0 %v5956_v44  ;;  %v5916_v60 = vpop.f32.mrf.mxu1 }
0x1162   : > { %12546 = vmatpush3.bf16.xpose.msra.mxu0 %v6156_v11  ;;  %v5917_v29 = vadd.f32 %v5916_v60, %v17399_v4  ;;  %v6239_v4 = vsel %vm2100_vm0, %v17563_v12, 0 }
0x1163   : > { %12983 = vmatprep.subr.msk.bf16.mxu0 %vm2100_vm0, %v17434_v27  ;;  %v5918_v48 = vpop.f32.mrf.mxu1 }
0x1164   : > { %v17527_v15 = vpack.c.bf16 %v5917_v29, %v5913_v21  ;;  %v5919_v34 = vadd.f32 %v5918_v48, %v17343_v5 }
0x1166   : > { %12985 = vmatprep.subr.msk.bf16.mxu1 %vm2100_vm0, %v17527_v15  ;;  %v6248_v20 = vsel %vm2100_vm0, %v17527_v15, 0  ;;  %6796 = vrot.lane.b32.xlu1 %v17527_v15, %s14638_s13  ;;  %v17573_v54 = vpack.c.bf16 %v5919_v34, %v5915_v3 }
0x1167   : > { %12560 = vmatpush3.bf16.xpose.msra.mxu1 %v6248_v20 }
0x1168   : > { %12986 = vmatprep.subr.msk.bf16.mxu1 %vm2100_vm0, %v17514_v45  ;;  %19719 = vst [vmem:[#allocation85_spill] sm:$0xff] %v17573_v54 }
0x116a   : > { %12548 = vmatpush3.bf16.xpose.msra.mxu0 %v6153_v25 }
0x116b   : > { %12984 = vmatprep.subr.msk.bf16.mxu0 %vm2100_vm0, %v17422_v49 }
0x116f   : > { %12562 = vmatpush3.bf16.xpose.msra.mxu1 %v6245_v47 }
0x1170   : > { %12987 = vmatprep.subr.msk.bf16.mxu1 %vm2100_vm0, %v17550_v32 }
0x1172   : > { %12550 = vmatpush3.bf16.xpose.msra.mxu0 %v6150_v55 }
0x1173   : > { %12575 = vmatprep.subr.bf16.mxu0 %v17548_v14 }
0x1177   : > { %12564 = vmatpush3.bf16.xpose.msra.mxu1 %v6242_v52 }
0x1178   : > { %12988 = vmatprep.subr.msk.bf16.mxu1 %vm2100_vm0, %v17563_v12 }
0x117f   : > { %12566 = vmatpush3.bf16.xpose.msra.mxu1 %v6239_v4 }
0x1180   : > { %12591 = vmatprep.subr.bf16.mxu1 %v17573_v54 }
0x11b2   : > { %v5093_v9 = vpop.xlane.xlu0 %5092 }
0x11b3   : > { %v5116_v46 = vmul.f32 0.0078125, %v5093_v9 }
0x11b5   : > { %v5132_v44 = vadd.f32 1e-06, %v5116_v46 }
0x11b6   : > { %v5097_v22 = vpop.xlane.xlu0 %5096  ;;  %v5095_v57 = vpop.xlane.xlu1 %5094 }
0x11b7   : > { %13586 = vrsqrt.f32 %v5132_v44  ;;  %v5118_v11 = vmul.f32 0.0078125, %v5097_v22  ;;  %v5117_v31 = vmul.f32 0.0078125, %v5095_v57 }
0x11b9   : > { %v5134_v35 = vadd.f32 1e-06, %v5118_v11  ;;  %v5133_v21 = vadd.f32 1e-06, %v5117_v31 }
0x11ba   : > { %v5099_v60 = vpop.xlane.xlu1 %5098 }
0x11bb   : > { %13588 = vrsqrt.f32 %v5134_v35  ;;  %v5119_v5 = vmul.f32 0.0078125, %v5099_v60 }
0x11bc   : > { %13590 = vrsqrt.f32 %v5133_v21 }
0x11bd   : > { %v5135_v29 = vadd.f32 1e-06, %v5119_v5  ;;  %v5101_v25 = vpop.xlane.xlu0 %5100 }
0x11be   : > { %v5120_v20 = vmul.f32 0.0078125, %v5101_v25 }
0x11bf   : > { %13592 = vrsqrt.f32 %v5135_v29 }
0x11c0   : > { %v5136_v26 = vadd.f32 1e-06, %v5120_v20 }
0x11c1   : > { %v5105_v37 = vpop.xlane.xlu0 %5104  ;;  %v5103_v30 = vpop.xlane.xlu1 %5102 }
0x11c2   : > { %13594 = vrsqrt.f32 %v5136_v26  ;;  %v5122_v8 = vmul.f32 0.0078125, %v5105_v37  ;;  %v5121_v55 = vmul.f32 0.0078125, %v5103_v30 }
0x11c4   : > { %v13587_v47 = vpop.eup %13586  ;;  %v5138_v17 = vadd.f32 1e-06, %v5122_v8  ;;  %v5137_v41 = vadd.f32 1e-06, %v5121_v55 }
0x11c5   : > { %v5107_v52 = vpop.xlane.xlu1 %5106  ;;  %v5164_v3 = vmul.f32 %v13587_v47, %v17336_v33 }
0x11c6   : > { %13596 = vrsqrt.f32 %v5138_v17  ;;  %v5123_v48 = vmul.f32 0.0078125, %v5107_v52 }
0x11c7   : > { %13598 = vrsqrt.f32 %v5137_v41  ;;  %v5186_v22 = vmul.f32 %v17426_v19, %v5164_v3 }
0x11c8   : > { %v13589_v34 = vpop.eup %13588  ;;  %v5139_v4 = vadd.f32 1e-06, %v5123_v48 }
0x11c9   : > { %v13591_v9 = vpop.eup %13590  ;;  %v5166_v46 = vmul.f32 %v13589_v34, %v17350_v43  ;;  %v17584_v33 = vadd.f32 %v17441_v61, %v5186_v22 }
0x11ca   : > { %13600 = vrsqrt.f32 %v5139_v4  ;;  %v5165_v44 = vmul.f32 %v13591_v9, %v17353_v7 }
0x11cb   : > { %v5188_v35 = vmul.f32 %v17426_v19, %v5166_v46  ;;  %19720 = vst [vmem:[#allocation58_spill] sm:$0xff] %v17584_v33  ;;  %v11368_v46 = vld [vmem:[%s19728_s20] ss:$0 sm:$0xff] }
0x11cc   : > { %v13593_v57 = vpop.eup %13592  ;;  %v5187_v11 = vmul.f32 %v17426_v19, %v5165_v44 }
0x11cd   : > { %v5167_v31 = vmul.f32 %v13593_v57, %v17363_v28  ;;  %v17593_v5 = vadd.f32 %v17441_v61, %v5188_v35 }
0x11ce   : > { %v17587_v21 = vadd.f32 %v17441_v61, %v5187_v11 }
0x11cf   : > { %v13595_v60 = vpop.eup %13594  ;;  %v5189_v43 = vmul.f32 %v17426_v19, %v5167_v31  ;;  %19722 = vst [vmem:[#allocation84_spill] sm:$0xff] %v17593_v5 }
0x11d0   : > { %19721 = vst [vmem:[#allocation91_spill] sm:$0xff] %v17587_v21  ;;  %v5957_v7 = vpack.c.bf16 %v17587_v21, %v17584_v33  ;;  %v5168_v28 = vmul.f32 %v13595_v60, %v17371_v23 }
0x11d1   : > { %v17596_v29 = vadd.f32 %v17441_v61, %v5189_v43 }
0x11d2   : > { %12535 = vmatprep.mubr.bf16.mxu0 %v5957_v7  ;;  %v5190_v8 = vmul.f32 %v17426_v19, %v5168_v28 }
0x11d3   : > { %19723 = vst [vmem:[#allocation60_spill] sm:$0xff] %v17596_v29  ;;  %v13597_v25 = vpop.eup %13596  ;;  %v5958_v20 = vpack.c.bf16 %v17596_v29, %v17593_v5 }
0x11d4   : > { %v13599_v26 = vpop.eup %13598  ;;  %v5170_v37 = vmul.f32 %v13597_v25, %v17379_v42  ;;  %v17608_v41 = vadd.f32 %v17441_v61, %v5190_v8  ;;  %v17646_v8 = vpop.permute.xlu0 %6679 }
0x11d5   : > { %12536 = vmatmul.mubr.bf16.gmra.mxu0 %v5958_v20  ;;  %v5169_v30 = vmul.f32 %v13599_v26, %v17382_v2 }
0x11d6   : > { %v5192_v23 = vmul.f32 %v17426_v19, %v5170_v37  ;;  %19724 = vst [vmem:[#allocation59_spill] sm:$0xff] %v17608_v41 }
0x11d7   : > { %v13601_v55 = vpop.eup %13600  ;;  %v5191_v47 = vmul.f32 %v17426_v19, %v5169_v30 }
0x11d8   : > { %v5171_v17 = vmul.f32 %v13601_v55, %v17390_v58  ;;  %v17617_v48 = vadd.f32 %v17441_v61, %v5192_v23  ;;  %v17650_v55 = vpop.permute.xlu0 %6683 }
0x11d9   : > { %v17611_v52 = vadd.f32 %v17441_v61, %v5191_v47 }
0x11da   : > { %v5193_v42 = vmul.f32 %v17426_v19, %v5171_v17  ;;  %19726 = vst [vmem:[#allocation65_spill] sm:$0xff] %v17617_v48 }
0x11db   : > { %19725 = vst [vmem:[#allocation61_spill] sm:$0xff] %v17611_v52  ;;  %v5959_v2 = vpack.c.bf16 %v17611_v52, %v17608_v41 }
0x11dc   : > { %v17620_v3 = vadd.f32 %v17441_v61, %v5193_v42 }
0x11dd   : > { %12539 = vmatprep.mubr.bf16.mxu0 %v5959_v2 }
0x11de   : > { %19727 = vst [vmem:[#allocation62_spill] sm:$0xff] %v17620_v3  ;;  %v5960_v58 = vpack.c.bf16 %v17620_v3, %v17617_v48 }
0x11e0   : > { %12540 = vmatmul.mubr.bf16.gmra.mxu0 %v5960_v58 }
0x1219   : > { %v12529_v34 = vpop.f32.mrf.mxu0 }
0x121a   : > { %v6059_v11 = vadd.f32 %v12529_v34, %v11368_v46 }
0x121b   : > { %v6050_v4 = vpop.f32.mrf.mxu0 }
0x121c   : > { %v6051_v22 = vadd.f32 %v11368_v46, %v6050_v4 }
0x121d   : > { %v12530_v9 = vpop.f32.mrf.mxu0 }
0x121e   : > { %v6062_v19 = vadd.f32 %v12530_v9, %v11368_v46 }
0x121f   : > { %v6053_v44 = vpop.f32.mrf.mxu0 }
0x1220   : > { %v6054_v57 = vadd.f32 %v11368_v46, %v6053_v44  ;;  %v17628_v61 = vpack.c.bf16 %v6062_v19, %v6059_v11  ;;  %v17659_v44 = vpop.permute.xlu1 %6677 }
0x1221   : > { %v12533_v31 = vpop.f32.mrf.mxu0 }
0x1222   : > { %v17626_v35 = vpack.c.bf16 %v6054_v57, %v6051_v22  ;;  %v6075_v26 = vadd.f32 %v12533_v31, %v11368_v46 }
0x1223   : > { %v6066_v60 = vpop.f32.mrf.mxu0 }
0x1224   : > { %12551 = vmatprep.mubr.msk.bf16.mxu0 %vm2100_vm0, %v17626_v35  ;;  %v6067_v25 = vadd.f32 %v11368_v46, %v6066_v60  ;;  %v17667_v11 = vpop.permute.xlu1 %6681 }
0x1225   : > { %v12534_v43 = vpop.f32.mrf.mxu0  ;;  %12552 = vmatmul.mubr.msk.bf16.vlgmr.msra.gmra.mxu0 %vm2100_vm0, %v17628_v61 }
0x1226   : > { %12576 = vmatpush3.bf16.msra.mxu0 %v17548_v14  ;;  %v6078_v7 = vadd.f32 %v12534_v43, %v11368_v46 }
0x1227   : > { %12577 = vmatprep.subr.bf16.mxu0 %v17402_v36  ;;  %v6069_v28 = vpop.f32.mrf.mxu0 }
0x1228   : > { %v6070_v20 = vadd.f32 %v11368_v46, %v6069_v28  ;;  %v17639_v30 = vpack.c.bf16 %v6078_v7, %v6075_v26 }
0x122a   : > { %v17636_v37 = vpack.c.bf16 %v6070_v20, %v6067_v25  ;;  %12578 = vmatpush3.bf16.msra.mxu0 %v17402_v36  ;;  %v17671_v25 = vpop.permute.xlu1 %6794 }
0x122b   : > { %12579 = vmatprep.subr.bf16.mxu0 %v17392_v1 }
0x122c   : > { %12555 = vmatprep.mubr.msk.bf16.mxu0 %vm2100_vm0, %v17636_v37 }
0x122d   : > { %12556 = vmatmul.mubr.msk.bf16.gmra.mxu0 %vm2100_vm0, %v17639_v30 }
0x122e   : > { %12580 = vmatpush3.bf16.msra.mxu0 %v17392_v1 }
0x122f   : > { %12581 = vmatprep.subr.bf16.mxu0 %v17373_v38 }
0x1232   : > { %12582 = vmatpush3.bf16.msra.mxu0 %v17373_v38 }
0x1233   : > { %12989 = vmatprep.subr.msk.bf16.mxu0 %vm2100_vm0, %v17650_v55 }
0x1295   : > { %v12537_v47 = vpop.f32.mrf.mxu0 }
0x1296   : > { %v6091_v4 = vadd.f32 %v12537_v47, %v11368_v46 }
0x1297   : > { %v6082_v17 = vpop.f32.mrf.mxu0 }
0x1298   : > { %v6083_v58 = vadd.f32 %v11368_v46, %v6082_v17  ;;  %v17683_v17 = vpop.permute.xlu1 %6796 }
0x1299   : > { %v12538_v23 = vpop.f32.mrf.mxu0 }
0x129a   : > { %v6094_v42 = vadd.f32 %v12538_v23, %v11368_v46 }
0x129b   : > { %v6085_v2 = vpop.f32.mrf.mxu0 }
0x129c   : > { %v6086_v34 = vadd.f32 %v11368_v46, %v6085_v2  ;;  %v17657_v19 = vpack.c.bf16 %v6094_v42, %v6091_v4 }
0x129e   : > { %v17655_v9 = vpack.c.bf16 %v6086_v34, %v6083_v58 }
0x12a0   : > { %v12541_v22 = vpop.f32.mrf.mxu0  ;;  %12567 = vmatprep.mubr.msk.bf16.mxu1 %vm2100_vm0, %v17655_v9 }
0x12a1   : > { %12568 = vmatmul.mubr.msk.bf16.vlgmr.msra.gmra.mxu1 %vm2100_vm0, %v17657_v19  ;;  %v6107_v20 = vadd.f32 %v12541_v22, %v11368_v46 }
0x12a2   : > { %12592 = vmatpush3.bf16.msra.mxu1 %v17573_v54  ;;  %v6098_v57 = vpop.f32.mrf.mxu0 }
0x12a3   : > { %12593 = vmatprep.subr.bf16.mxu1 %v17519_v0  ;;  %v6099_v7 = vadd.f32 %v11368_v46, %v6098_v57 }
0x12a4   : > { %v12542_v31 = vpop.f32.mrf.mxu0 }
0x12a5   : > { %v6110_v60 = vadd.f32 %v12542_v31, %v11368_v46 }
0x12a6   : > { %12594 = vmatpush3.bf16.msra.mxu1 %v17519_v0  ;;  %v6101_v43 = vpop.f32.mrf.mxu0 }
0x12a7   : > { %v6102_v28 = vadd.f32 %v11368_v46, %v6101_v43  ;;  %12595 = vmatprep.subr.bf16.mxu1 %v17490_v40  ;;  %v17675_v47 = vpack.c.bf16 %v6110_v60, %v6107_v20 }
0x12a9   : > { %v17673_v26 = vpack.c.bf16 %v6102_v28, %v6099_v7 }
0x12aa   : > { %12596 = vmatpush3.bf16.msra.mxu1 %v17490_v40 }
0x12ab   : > { %12597 = vmatprep.subr.bf16.mxu1 %v17459_v24  ;;  %12571 = vmatprep.mubr.msk.bf16.mxu1 %vm2100_vm0, %v17673_v26 }
0x12ac   : > { %12572 = vmatmul.mubr.msk.bf16.gmra.mxu1 %vm2100_vm0, %v17675_v47 }
0x12ae   : > { %12598 = vmatpush3.bf16.msra.mxu1 %v17459_v24 }
0x12af   : > { %12993 = vmatprep.subr.msk.bf16.mxu1 %vm2100_vm0, %v17683_v17 }
0x12e5   : > { %v12553_v46 = vpop.f32.mrf.mxu0 }
0x12e6   : > { %v6321_v23 = vsel %vm2279_vm1, %v12553_v46, -inf }
0x12e7   : > { %6322 = vmax.xlane.f32.xlu0 %v6321_v23  ;;  %v6195_v42 = vpop.f32.mrf.mxu0 }
0x12e8   : > { %v6315_v58 = vsel %vm2279_vm1, %v6195_v42, -inf }
0x12e9   : > { %v12554_v2 = vpop.f32.mrf.mxu0 }
0x12ea   : > { %v6324_v34 = vsel %vm2279_vm1, %v12554_v2, -inf }
0x12eb   : > { %6316 = vmax.xlane.f32.xlu0 %v6315_v58  ;;  %6325 = vmax.xlane.f32.xlu1 %v6324_v34  ;;  %v6198_v4 = vpop.f32.mrf.mxu0 }
0x12ec   : > { %v6318_v57 = vsel %vm2279_vm1, %v6198_v4, -inf }
0x12ed   : > { %v12557_v22 = vpop.f32.mrf.mxu0 }
0x12ee   : > { %v6333_v31 = vsel %vm2279_vm1, %v12557_v22, -inf }
0x12ef   : > { %6319 = vmax.xlane.f32.xlu1 %v6318_v57  ;;  %6334 = vmax.xlane.f32.xlu0 %v6333_v31  ;;  %v6211_v60 = vpop.f32.mrf.mxu0 }
0x12f0   : > { %v6327_v7 = vsel %vm2279_vm1, %v6211_v60, -inf }
0x12f1   : > { %v12558_v43 = vpop.f32.mrf.mxu0 }
0x12f2   : > { %v6336_v28 = vsel %vm2279_vm1, %v12558_v43, -inf }
0x12f3   : > { %6328 = vmax.xlane.f32.xlu0 %v6327_v7  ;;  %6337 = vmax.xlane.f32.xlu1 %v6336_v28  ;;  %v6214_v20 = vpop.f32.mrf.mxu0 }
0x12f4   : > { %v6330_v23 = vsel %vm2279_vm1, %v6214_v20, -inf }
0x12f7   : > { %6331 = vmax.xlane.f32.xlu1 %v6330_v23 }
0x1370   : > { %v6323_v58 = vpop.xlane.xlu0 %6322 }
0x1371   : > { %v6365_v34 = vsub.f32 %v12553_v46, %v6323_v58 }
0x1373   : > { %v6383_v59 = vmul.f32 1.442695, %v6365_v34 }
0x1374   : > { %v6317_v6 = vpop.xlane.xlu0 %6316  ;;  %v6326_v3 = vpop.xlane.xlu1 %6325 }
0x1375   : > { %13602 = vpow2.f32 %v6383_v59  ;;  %v6363_v57 = vsub.f32 %v6195_v42, %v6317_v6  ;;  %v6366_v31 = vsub.f32 %v12554_v2, %v6326_v3 }
0x1377   : > { %v6379_v52 = vmul.f32 1.442695, %v6363_v57  ;;  %v6385_v48 = vmul.f32 1.442695, %v6366_v31 }
0x1378   : > { %v6335_v41 = vpop.xlane.xlu0 %6334  ;;  %v6320_v29 = vpop.xlane.xlu1 %6319 }
0x1379   : > { %13604 = vpow2.f32 %v6379_v52  ;;  %v6369_v21 = vsub.f32 %v12557_v22, %v6335_v41  ;;  %v6364_v7 = vsub.f32 %v6198_v4, %v6320_v29 }
0x137a   : > { %13606 = vpow2.f32 %v6385_v48 }
0x137b   : > { %v6391_v28 = vmul.f32 1.442695, %v6369_v21  ;;  %v6381_v5 = vmul.f32 1.442695, %v6364_v7 }
0x137c   : > { %v6329_v33 = vpop.xlane.xlu0 %6328  ;;  %v6338_v23 = vpop.xlane.xlu1 %6337 }
0x137d   : > { %13608 = vpow2.f32 %v6391_v28  ;;  %v6367_v46 = vsub.f32 %v6211_v60, %v6329_v33  ;;  %v6370_v58 = vsub.f32 %v12558_v43, %v6338_v23  ;;  %v17704_v33 = vpop.f32.mrf.mxu1 }
0x137e   : > { %13610 = vpow2.f32 %v6381_v5 }
0x137f   : > { %v6387_v34 = vmul.f32 1.442695, %v6367_v46  ;;  %v6393_v59 = vmul.f32 1.442695, %v6370_v58  ;;  %v17714_v22 = vpop.f32.mrf.mxu1  ;;  %v6345_v58 = vsel %vm2279_vm1, %v17704_v33, -inf }
0x1380   : > { %v6332_v6 = vpop.xlane.xlu1 %6331 }
0x1381   : > { %13612 = vpow2.f32 %v6387_v34  ;;  %v6368_v3 = vsub.f32 %v6214_v20, %v6332_v6  ;;  %v12570_v31 = vpop.f32.mrf.mxu1  ;;  %v6339_v6 = vsel %vm2279_vm1, %v17714_v22, -inf }
0x1382   : > { %v17696_v42 = vpop.eup %13602  ;;  %13614 = vpow2.f32 %v6393_v59 }
0x1383   : > { %v6389_v52 = vmul.f32 1.442695, %v6368_v3  ;;  %v6417_v29 = vsel %vm2279_vm1, %v17696_v42, 0.0  ;;  %v17730_v46 = vpop.f32.mrf.mxu1  ;;  %v6348_v3 = vsel %vm2279_vm1, %v12570_v31, -inf }
0x1384   : > { %6418 = vadd.xlane.f32.xlu0 %v6417_v29 }
0x1385   : > { %13616 = vpow2.f32 %v6389_v52  ;;  %v17736_v59 = vpop.f32.mrf.mxu1 }
0x1386   : > { %v17700_v21 = vpop.eup %13604  ;;  %v6357_v29 = vsel %vm2279_vm1, %v17736_v59, -inf }
0x1387   : > { %v17702_v41 = vpop.eup %13606  ;;  %v6411_v5 = vsel %vm2279_vm1, %v17700_v21, 0.0  ;;  %v17741_v52 = vpop.f32.mrf.mxu1 }
0x1388   : > { %6412 = vadd.xlane.f32.xlu0 %v6411_v5  ;;  %v6420_v48 = vsel %vm2279_vm1, %v17702_v41, 0.0  ;;  %v6342_v5 = vsel %vm2279_vm1, %v17730_v46, -inf }
0x1389   : > { %6421 = vadd.xlane.f32.xlu1 %v6420_v48  ;;  %v17747_v48 = vpop.f32.mrf.mxu1 }
0x138a   : > { %v17710_v2 = vpop.eup %13608 }
0x138b   : > { %v17712_v4 = vpop.eup %13610  ;;  %v6429_v60 = vsel %vm2279_vm1, %v17710_v2, 0.0 }
0x138c   : > { %6430 = vadd.xlane.f32.xlu0 %v6429_v60  ;;  %v6414_v43 = vsel %vm2279_vm1, %v17712_v4, 0.0  ;;  %v6351_v60 = vsel %vm2279_vm1, %v17741_v52, -inf }
0x138d   : > { %6415 = vadd.xlane.f32.xlu1 %v6414_v43  ;;  %v6360_v43 = vsel %vm2279_vm1, %v17747_v48, -inf }
0x138e   : > { %v17720_v20 = vpop.eup %13612 }
0x138f   : > { %v17722_v57 = vpop.eup %13614  ;;  %v6423_v7 = vsel %vm2279_vm1, %v17720_v20, 0.0 }
0x1390   : > { %6424 = vadd.xlane.f32.xlu0 %v6423_v7  ;;  %v6432_v28 = vsel %vm2279_vm1, %v17722_v57, 0.0  ;;  %v17753_v7 = vpop.f32.mrf.mxu1 }
0x1391   : > { %6433 = vadd.xlane.f32.xlu1 %v6432_v28  ;;  %v6354_v28 = vsel %vm2279_vm1, %v17753_v7, -inf }
0x1392   : > { %v17728_v23 = vpop.eup %13616 }
0x1393   : > { %v6426_v34 = vsel %vm2279_vm1, %v17728_v23, 0.0 }
0x1394   : > { %6346 = vmax.xlane.f32.xlu0 %v6345_v58 }
0x1395   : > { %6427 = vadd.xlane.f32.xlu1 %v6426_v34 }
0x1398   : > { %6340 = vmax.xlane.f32.xlu0 %v6339_v6 }
0x1399   : > { %6349 = vmax.xlane.f32.xlu1 %v6348_v3 }
0x139c   : > { %6358 = vmax.xlane.f32.xlu0 %v6357_v29 }
0x139d   : > { %6343 = vmax.xlane.f32.xlu1 %v6342_v5 }
0x13a0   : > { %6352 = vmax.xlane.f32.xlu0 %v6351_v60 }
0x13a1   : > { %6361 = vmax.xlane.f32.xlu1 %v6360_v43 }
0x13a5   : > { %6355 = vmax.xlane.f32.xlu1 %v6354_v28 }
0x13b6   : > { %6667 = vrot.lane.b32.xlu1 %v17628_v61, %s14638_s13  ;;  %6665 = vrot.lane.b32.xlu0 %v17626_v35, %s14638_s13 }
0x140d   : > { %v6419_v58 = vpop.xlane.xlu0 %6418 }
0x1411   : > { %v6413_v34 = vpop.xlane.xlu0 %6412 }
0x1412   : > { %v6422_v6 = vpop.xlane.xlu1 %6421 }
0x1413   : > { %13618 = vrcp.f32 %v6422_v6 }
0x1414   : > { %13620 = vrcp.f32 %v6413_v34 }
0x1415   : > { %v6431_v3 = vpop.xlane.xlu0 %6430  ;;  %13622 = vrcp.f32 %v6419_v58 }
0x1416   : > { %v6416_v29 = vpop.xlane.xlu1 %6415 }
0x1417   : > { %13624 = vrcp.f32 %v6416_v29 }
0x1419   : > { %v6425_v5 = vpop.xlane.xlu0 %6424 }
0x141a   : > { %v6434_v60 = vpop.xlane.xlu1 %6433 }
0x141b   : > { %13626 = vrcp.f32 %v6434_v60 }
0x141c   : > { %13628 = vrcp.f32 %v6425_v5 }
0x141d   : > { %v6347_v43 = vpop.xlane.xlu0 %6346  ;;  %13630 = vrcp.f32 %v6431_v3 }
0x141e   : > { %v6373_v28 = vsub.f32 %v17704_v33, %v6347_v43  ;;  %v6428_v10 = vpop.xlane.xlu1 %6427 }
0x141f   : > { %13632 = vrcp.f32 %v6428_v10 }
0x1420   : > { %v6399_v18 = vmul.f32 1.442695, %v6373_v28  ;;  %v13619_v50 = vpop.eup %13618 }
0x1421   : > { %v6341_v53 = vpop.xlane.xlu0 %6340  ;;  %v13621_v39 = vpop.eup %13620  ;;  %v6478_v60 = vmul.f32 %v13619_v50, %v17702_v41 }
0x1422   : > { %13634 = vpow2.f32 %v6399_v18  ;;  %v6371_v34 = vsub.f32 %v17714_v22, %v6341_v53  ;;  %v6350_v58 = vpop.xlane.xlu1 %6349  ;;  %v13623_v6 = vpop.eup %13622  ;;  %v6475_v3 = vmul.f32 %v13621_v39, %v17700_v21 }
0x1423   : > { %v6374_v29 = vsub.f32 %v12570_v31, %v6350_v58  ;;  %v6477_v10 = vmul.f32 %v13623_v6, %v17696_v42 }
0x1424   : > { %v13625_v56 = vpop.eup %13624  ;;  %v6395_v5 = vmul.f32 1.442695, %v6371_v34 }
0x1425   : > { %v6401_v51 = vmul.f32 1.442695, %v6374_v29  ;;  %v6476_v33 = vmul.f32 %v13625_v56, %v17712_v4  ;;  %v6359_v43 = vpop.xlane.xlu0 %6358  ;;  %v6492_v22 = vpack.c.bf16 %v6478_v60, %v6477_v10  ;;  %v6707_v56 = vsel %vm2100_vm0, %v17650_v55, 0 }
0x1426   : > { %13636 = vpow2.f32 %v6395_v5  ;;  %v6344_v28 = vpop.xlane.xlu1 %6343 }
0x1427   : > { %13638 = vpow2.f32 %v6401_v51  ;;  %v6372_v53 = vsub.f32 %v17730_v46, %v6344_v28  ;;  %v6491_v18 = vpack.c.bf16 %v6476_v33, %v6475_v3  ;;  %v6701_v33 = vsel %vm2100_vm0, %v17646_v8, 0 }
0x1428   : > { %v13627_v31 = vpop.eup %13626  ;;  %v6698_v28 = vsel %vm2100_vm0, %v17659_v44, 0 }
0x1429   : > { %v6397_v58 = vmul.f32 1.442695, %v6372_v53  ;;  %12583 = vmatprep.mubr.msk.bf16.mxu0 %vm2279_vm1, %v6491_v18  ;;  %v13629_v50 = vpop.eup %13628  ;;  %v6353_v21 = vpop.xlane.xlu0 %6352  ;;  %v6482_v51 = vmul.f32 %v13627_v31, %v17722_v57 }
0x142a   : > { %12584 = vmatmul.mubr.msk.bf16.vlgmr.msra.gmra.mxu0 %vm2279_vm1, %v6492_v22  ;;  %v13631_v39 = vpop.eup %13630  ;;  %v6479_v41 = vmul.f32 %v13629_v50, %v17720_v20  ;;  %v6704_v20 = vsel %vm2100_vm0, %v17667_v11, 0  ;;  %v6362_v10 = vpop.xlane.xlu1 %6361 }
0x142b   : > { %13640 = vpow2.f32 %v6397_v58  ;;  %12608 = vmatpush3.bf16.xpose.msra.mxu0 %v6707_v56  ;;  %v6481_v46 = vmul.f32 %v13631_v39, %v17710_v2  ;;  %v6375_v58 = vsub.f32 %v17741_v52, %v6353_v21  ;;  %v6378_v56 = vsub.f32 %v17747_v48, %v6362_v10 }
0x142c   : > { %v13633_v42 = vpop.eup %13632  ;;  %12990 = vmatprep.subr.msk.bf16.mxu0 %vm2100_vm0, %v17667_v11 }
0x142d   : > { %v6480_v4 = vmul.f32 %v13633_v42, %v17728_v23  ;;  %v6494_v29 = vpack.c.bf16 %v6482_v51, %v6481_v46  ;;  %v6666_v60 = vpop.permute.xlu0 %6665  ;;  %v6403_v50 = vmul.f32 1.442695, %v6375_v58  ;;  %v6409_v39 = vmul.f32 1.442695, %v6378_v56 }
0x142e   : > { %v6356_v53 = vpop.xlane.xlu1 %6355 }
0x142f   : > { %v17778_v34 = vpop.eup %13634  ;;  %v6493_v6 = vpack.c.bf16 %v6480_v4, %v6479_v41  ;;  %v6376_v31 = vsub.f32 %v17753_v7, %v6356_v53 }
0x1430   : > { %v6441_v55 = vsel %vm2279_vm1, %v17778_v34, 0.0 }
0x1431   : > { %12587 = vmatprep.mubr.msk.bf16.mxu0 %vm2279_vm1, %v6493_v6  ;;  %6442 = vadd.xlane.f32.xlu0 %v6441_v55 }
0x1432   : > { %12588 = vmatmul.mubr.msk.bf16.gmra.mxu0 %vm2279_vm1, %v6494_v29  ;;  %v6668_v18 = vpop.permute.xlu1 %6667 }
0x1433   : > { %v17786_v57 = vpop.eup %13636  ;;  %12610 = vmatpush3.bf16.xpose.msra.mxu0 %v6704_v20  ;;  %12615 = vmatprep.mubr.msk.bf16.mxu0 %vm2100_vm0, %v6666_v60 }
0x1434   : > { %v17789_v2 = vpop.eup %13638  ;;  %12991 = vmatprep.subr.msk.bf16.mxu0 %vm2100_vm0, %v17646_v8  ;;  %v6435_v23 = vsel %vm2279_vm1, %v17786_v57, 0.0  ;;  %v6377_v8 = vsub.f32 %v17736_v59, %v6359_v43 }
0x1435   : > { %6436 = vadd.xlane.f32.xlu0 %v6435_v23  ;;  %v6444_v5 = vsel %vm2279_vm1, %v17789_v2, 0.0 }
0x1436   : > { %6445 = vadd.xlane.f32.xlu1 %v6444_v5  ;;  %v6407_v22 = vmul.f32 1.442695, %v6377_v8 }
0x1438   : > { %v13641_v3 = vpop.eup %13640  ;;  %13642 = vpow2.f32 %v6407_v22 }
0x1439   : > { %v6438_v11 = vsel %vm2279_vm1, %v13641_v3, 0.0 }
0x143a   : > { %6439 = vadd.xlane.f32.xlu1 %v6438_v11 }
0x143b   : > { %12612 = vmatpush3.bf16.xpose.msra.mxu0 %v6701_v33 }
0x143c   : > { %12992 = vmatprep.subr.msk.bf16.mxu0 %vm2100_vm0, %v17659_v44  ;;  %v6405_v44 = vmul.f32 1.442695, %v6376_v31 }
0x143e   : > { %13644 = vpow2.f32 %v6405_v44 }
0x143f   : > { %13646 = vpow2.f32 %v6403_v50 }
0x1440   : > { %13648 = vpow2.f32 %v6409_v39 }
0x1443   : > { %12614 = vmatpush3.bf16.xpose.msra.mxu0 %v6698_v28 }
0x1445   : > { %v17813_v42 = vpop.eup %13642 }
0x1446   : > { %v6453_v51 = vsel %vm2279_vm1, %v17813_v42, 0.0 }
0x144a   : > { %12616 = vmatmul.mubr.msk.bf16.vlgmr.msra.gmra.mxu0 %vm2100_vm0, %v6668_v18  ;;  %v6820_v18 = vsel %vm2100_vm0, %v17683_v17, 0 }
0x144b   : > { %6669 = vrot.lane.b32.xlu1 %v17636_v37, %s14638_s13  ;;  %6792 = vrot.lane.b32.xlu0 %v17550_v32, %s14638_s13  ;;  %v17817_v59 = vpop.eup %13644 }
0x144c   : > { %v17819_v7 = vpop.eup %13646  ;;  %v6450_v52 = vsel %vm2279_vm1, %v17817_v59, 0.0 }
0x144d   : > { %v6447_v48 = vsel %vm2279_vm1, %v17819_v7, 0.0  ;;  %v17825_v43 = vpop.eup %13648 }
0x144e   : > { %v6456_v21 = vsel %vm2279_vm1, %v17825_v43, 0.0 }
0x146a   : > { %6454 = vadd.xlane.f32.xlu0 %v6453_v51 }
0x146e   : > { %6451 = vadd.xlane.f32.xlu0 %v6450_v52 }
0x146f   : > { %6448 = vadd.xlane.f32.xlu1 %v6447_v48 }
0x1473   : > { %6457 = vadd.xlane.f32.xlu1 %v6456_v21 }
0x1484   : > { %6790 = vrot.lane.b32.xlu1 %v17563_v12, %s14638_s13  ;;  %6671 = vrot.lane.b32.xlu0 %v17639_v30, %s14638_s13 }
0x1488   : > { %6780 = vrot.lane.b32.xlu1 %v17657_v19, %s14638_s13  ;;  %6778 = vrot.lane.b32.xlu0 %v17655_v9, %s14638_s13 }
0x148c   : > { %6784 = vrot.lane.b32.xlu1 %v17675_v47, %s14638_s13  ;;  %6782 = vrot.lane.b32.xlu0 %v17673_v26, %s14638_s13 }
0x14ba   : > { %v6443_v41 = vpop.xlane.xlu0 %6442 }
0x14be   : > { %v6437_v4 = vpop.xlane.xlu0 %6436 }
0x14bf   : > { %v6446_v46 = vpop.xlane.xlu1 %6445 }
0x14c0   : > { %13650 = vrcp.f32 %v6446_v46 }
0x14c1   : > { %13652 = vrcp.f32 %v6437_v4 }
0x14c2   : > { %13654 = vrcp.f32 %v6443_v41 }
0x14c3   : > { %v6440_v6 = vpop.xlane.xlu1 %6439 }
0x14c4   : > { %13656 = vrcp.f32 %v6440_v6 }
0x14c7   : > { %v6670_v55 = vpop.permute.xlu1 %6669 }
0x14c8   : > { %12619 = vmatprep.mubr.msk.bf16.mxu0 %vm2100_vm0, %v6670_v55 }
0x14cd   : > { %v13651_v29 = vpop.eup %13650 }
0x14ce   : > { %v13653_v60 = vpop.eup %13652  ;;  %v6486_v5 = vmul.f32 %v13651_v29, %v17789_v2  ;;  %v6817_v2 = vsel %vm2100_vm0, %v17671_v25, 0 }
0x14cf   : > { %v13655_v20 = vpop.eup %13654  ;;  %v6483_v11 = vmul.f32 %v13653_v60, %v17786_v57  ;;  %v6793_v57 = vpop.permute.xlu0 %6792 }
0x14d0   : > { %v6485_v10 = vmul.f32 %v13655_v20, %v17778_v34  ;;  %v6814_v34 = vsel %vm2100_vm0, %v6793_v57, 0 }
0x14d1   : > { %v13657_v23 = vpop.eup %13656 }
0x14d2   : > { %v6484_v33 = vmul.f32 %v13657_v23, %v13641_v3  ;;  %v6496_v53 = vpack.c.bf16 %v6486_v5, %v6485_v10 }
0x14d4   : > { %v6495_v28 = vpack.c.bf16 %v6484_v33, %v6483_v11 }
0x14d6   : > { %12599 = vmatprep.mubr.msk.bf16.mxu1 %vm2279_vm1, %v6495_v28 }
0x14d7   : > { %12600 = vmatmul.mubr.msk.bf16.vlgmr.msra.gmra.mxu1 %vm2279_vm1, %v6496_v53 }
0x14d8   : > { %12624 = vmatpush3.bf16.xpose.msra.mxu1 %v6820_v18 }
0x14d9   : > { %12994 = vmatprep.subr.msk.bf16.mxu1 %vm2100_vm0, %v17671_v25 }
0x14e0   : > { %12626 = vmatpush3.bf16.xpose.msra.mxu1 %v6817_v2 }
0x14e1   : > { %12995 = vmatprep.subr.msk.bf16.mxu1 %vm2100_vm0, %v6793_v57 }
0x14e8   : > { %12628 = vmatpush3.bf16.xpose.msra.mxu1 %v6814_v34 }
0x14ea   : > { %v17855_v3 = vpop.f32.mrf.mxu0 }
0x14ec   : > { %v17857_v8 = vpop.f32.mrf.mxu0 }
0x14ee   : > { %v17859_v22 = vpop.f32.mrf.mxu0 }
0x14f0   : > { %v17863_v31 = vpop.f32.mrf.mxu0 }
0x14f2   : > { %v17865_v58 = vpop.f32.mrf.mxu0 }
0x14f3   : > { %v6455_v25 = vpop.xlane.xlu0 %6454 }
0x14f4   : > { %v17867_v44 = vpop.f32.mrf.mxu0 }
0x14f6   : > { %v17869_v50 = vpop.f32.mrf.mxu0 }
0x14f7   : > { %v6452_v39 = vpop.xlane.xlu0 %6451 }
0x14f8   : > { %13658 = vrcp.f32 %v6452_v39  ;;  %v6449_v51 = vpop.xlane.xlu1 %6448  ;;  %v17878_v60 = vpop.f32.mrf.mxu0 }
0x14f9   : > { %13660 = vrcp.f32 %v6449_v51 }
0x14fa   : > { %13662 = vrcp.f32 %v6455_v25 }
0x14fb   : > { %v6672_v52 = vpop.permute.xlu0 %6671 }
0x14fc   : > { %v6458_v48 = vpop.xlane.xlu1 %6457  ;;  %12620 = vmatmul.mubr.msk.bf16.gmra.mxu0 %vm2100_vm0, %v6672_v52 }
0x14fd   : > { %13664 = vrcp.f32 %v6458_v48 }
0x14ff   : > { %v6779_v18 = vpop.permute.xlu0 %6778 }
0x1500   : > { %v6791_v21 = vpop.permute.xlu1 %6790 }
0x1501   : > { %12996 = vmatprep.subr.msk.bf16.mxu1 %vm2100_vm0, %v6791_v21  ;;  %v6811_v41 = vsel %vm2100_vm0, %v6791_v21, 0 }
0x1502   : > { %12630 = vmatpush3.bf16.xpose.msra.mxu1 %v6811_v41 }
0x1503   : > { %v6783_v34 = vpop.permute.xlu0 %6782 }
0x1505   : > { %v13659_v4 = vpop.eup %13658 }
0x1506   : > { %v13661_v46 = vpop.eup %13660  ;;  %v6488_v6 = vmul.f32 %v13659_v4, %v17817_v59 }
0x1507   : > { %v6487_v55 = vmul.f32 %v13661_v46, %v17819_v7  ;;  %v13663_v29 = vpop.eup %13662 }
0x1508   : > { %v6489_v33 = vmul.f32 %v13663_v29, %v17813_v42 }
0x1509   : > { %v6497_v20 = vpack.c.bf16 %v6488_v6, %v6487_v55 }
0x150a   : > { %v13665_v23 = vpop.eup %13664  ;;  %v12617_v5 = vpop.f32.mrf.mxu0 }
0x150b   : > { %v6893_v11 = vsel %vm2279_vm1, %v12617_v5, -inf  ;;  %12603 = vmatprep.mubr.msk.bf16.mxu1 %vm2279_vm1, %v6497_v20  ;;  %v6490_v10 = vmul.f32 %v13665_v23, %v17825_v43  ;;  %v6781_v43 = vpop.permute.xlu1 %6780 }
0x150c   : > { %6894 = vmax.xlane.f32.xlu0 %v6893_v11  ;;  %v6743_v28 = vpop.f32.mrf.mxu0 }
0x150d   : > { %v6498_v53 = vpack.c.bf16 %v6490_v10, %v6489_v33  ;;  %v6887_v7 = vsel %vm2279_vm1, %v6743_v28, -inf }
0x150e   : > { %v12618_v59 = vpop.f32.mrf.mxu0 }
0x150f   : > { %12604 = vmatmul.mubr.msk.bf16.gmra.mxu1 %vm2279_vm1, %v6498_v53  ;;  %v6896_v42 = vsel %vm2279_vm1, %v12618_v59, -inf  ;;  %v6785_v25 = vpop.permute.xlu1 %6784 }
0x1510   : > { %6888 = vmax.xlane.f32.xlu0 %v6887_v7  ;;  %v6746_v2 = vpop.f32.mrf.mxu0  ;;  %12631 = vmatprep.mubr.msk.bf16.mxu1 %vm2100_vm0, %v6779_v18 }
0x1511   : > { %v6890_v57 = vsel %vm2279_vm1, %v6746_v2, -inf }
0x1512   : > { %6891 = vmax.xlane.f32.xlu1 %v6890_v57 }
0x1514   : > { %6897 = vmax.xlane.f32.xlu0 %v6896_v42 }
0x1517   : > { %12632 = vmatmul.mubr.msk.bf16.vlgmr.msra.gmra.mxu1 %vm2100_vm0, %v6781_v43 }
0x1518   : > { %12635 = vmatprep.mubr.msk.bf16.mxu1 %vm2100_vm0, %v6783_v34 }
0x151f   : > { %12636 = vmatmul.mubr.msk.bf16.gmra.mxu1 %vm2100_vm0, %v6785_v25 }
0x1595   : > { %v6895_v21 = vpop.xlane.xlu0 %6894 }
0x1596   : > { %v6937_v4 = vsub.f32 %v12617_v5, %v6895_v21 }
0x1597   : > { %v17892_v39 = vpop.f32.mrf.mxu1 }
0x1598   : > { %19729 = vst [vmem:[#allocation63_spill] sm:$0xff] %v17892_v39  ;;  %v6955_v55 = vmul.f32 1.442695, %v6937_v4 }
0x1599   : > { %v17894_v51 = vpop.f32.mrf.mxu1  ;;  %v6889_v41 = vpop.xlane.xlu0 %6888 }
0x159a   : > { %v6935_v6 = vsub.f32 %v6743_v28, %v6889_v41  ;;  %13666 = vpow2.f32 %v6955_v55 }
0x159b   : > { %v17896_v52 = vpop.f32.mrf.mxu1  ;;  %v6892_v20 = vpop.xlane.xlu1 %6891 }
0x159c   : > { %19730 = vst [vmem:[#allocation64_spill] sm:$0xff] %v17896_v52  ;;  %v6951_v23 = vmul.f32 1.442695, %v6935_v6  ;;  %v6936_v11 = vsub.f32 %v6746_v2, %v6892_v20 }
0x159d   : > { %v6898_v46 = vpop.xlane.xlu0 %6897 }
0x159e   : > { %v6938_v29 = vsub.f32 %v12618_v59, %v6898_v46  ;;  %13668 = vpow2.f32 %v6951_v23  ;;  %v6953_v10 = vmul.f32 1.442695, %v6936_v11  ;;  %v17913_v46 = vpop.f32.mrf.mxu1 }
0x15a0   : > { %v6957_v33 = vmul.f32 1.442695, %v6938_v29 }
0x15a2   : > { %13670 = vpow2.f32 %v6957_v33 }
0x15a3   : > { %13672 = vpow2.f32 %v6953_v10 }
0x15a7   : > { %v17903_v59 = vpop.eup %13666 }
0x15a8   : > { %v6989_v43 = vsel %vm2279_vm1, %v17903_v59, 0.0 }
0x15ab   : > { %v13669_v42 = vpop.eup %13668 }
0x15ac   : > { %v6983_v21 = vsel %vm2279_vm1, %v13669_v42, 0.0 }
0x15af   : > { %v17908_v25 = vpop.eup %13670 }
0x15b0   : > { %v6992_v41 = vsel %vm2279_vm1, %v17908_v25, 0.0  ;;  %v13673_v4 = vpop.eup %13672 }
0x15b1   : > { %v6986_v6 = vsel %vm2279_vm1, %v13673_v4, 0.0 }
0x15bc   : > { %v12621_v53 = vpop.f32.mrf.mxu0 }
0x15bd   : > { %v6905_v18 = vsel %vm2279_vm1, %v12621_v53, -inf }
0x15be   : > { %6906 = vmax.xlane.f32.xlu0 %v6905_v18  ;;  %v6759_v7 = vpop.f32.mrf.mxu0 }
0x15bf   : > { %v6899_v5 = vsel %vm2279_vm1, %v6759_v7, -inf }
0x15c0   : > { %v12622_v57 = vpop.f32.mrf.mxu0 }
0x15c1   : > { %v6908_v28 = vsel %vm2279_vm1, %v12622_v57, -inf }
0x15c2   : > { %6900 = vmax.xlane.f32.xlu0 %v6899_v5  ;;  %6909 = vmax.xlane.f32.xlu1 %v6908_v28  ;;  %v6762_v2 = vpop.f32.mrf.mxu0 }
0x15c3   : > { %v6902_v34 = vsel %vm2279_vm1, %v6762_v2, -inf }
0x15c6   : > { %6990 = vadd.xlane.f32.xlu0 %v6989_v43  ;;  %6903 = vmax.xlane.f32.xlu1 %v6902_v34 }
0x15ca   : > { %6984 = vadd.xlane.f32.xlu0 %v6983_v21  ;;  %6993 = vadd.xlane.f32.xlu1 %v6992_v41 }
0x15ce   : > { %6987 = vadd.xlane.f32.xlu1 %v6986_v6 }
0x15cf   : > { %v17916_v55 = vpop.f32.mrf.mxu1 }
0x15d0   : > { %19731 = vst [vmem:[#allocation92_spill] sm:$0xff] %v17916_v55 }
0x15d1   : > { %v17918_v29 = vpop.f32.mrf.mxu1 }
0x15d3   : > { %v17920_v20 = vpop.f32.mrf.mxu1 }
0x15d4   : > { %19732 = vst [vmem:[#allocation86_spill] sm:$0xff] %v17920_v20 }
0x15d5   : > { %v17926_v21 = vpop.f32.mrf.mxu1 }
0x15d6   : > { %19733 = vst [vmem:[#allocation66_spill] sm:$0xff] %v17926_v21 }
0x15d7   : > { %v12633_v23 = vpop.f32.mrf.mxu1 }
0x1647   : > { %v6907_v11 = vpop.xlane.xlu0 %6906 }
0x1648   : > { %v6941_v13 = vsub.f32 %v12621_v53, %v6907_v11 }
0x164a   : > { %v6963_v63 = vmul.f32 1.442695, %v6941_v13 }
0x164b   : > { %v6901_v33 = vpop.xlane.xlu0 %6900  ;;  %v6910_v10 = vpop.xlane.xlu1 %6909 }
0x164c   : > { %v6939_v18 = vsub.f32 %v6759_v7, %v6901_v33  ;;  %v6942_v56 = vsub.f32 %v12622_v57, %v6910_v10  ;;  %v6856_v33 = vpop.f32.mrf.mxu1  ;;  %v6917_v57 = vsel %vm2279_vm1, %v12633_v23, -inf }
0x164d   : > { %v6911_v13 = vsel %vm2279_vm1, %v6856_v33, -inf }
0x164e   : > { %v6959_v5 = vmul.f32 1.442695, %v6939_v18  ;;  %v6965_v7 = vmul.f32 1.442695, %v6942_v56 }
0x164f   : > { %v17924_v28 = vpop.xlane.xlu0 %6990  ;;  %v6904_v43 = vpop.xlane.xlu1 %6903 }
0x1650   : > { %13674 = vpow2.f32 %v6959_v5  ;;  %v6940_v34 = vsub.f32 %v6762_v2, %v6904_v43  ;;  %v12634_v5 = vpop.f32.mrf.mxu1 }
0x1651   : > { %v6920_v10 = vsel %vm2279_vm1, %v12634_v5, -inf }
0x1652   : > { %v6961_v41 = vmul.f32 1.442695, %v6940_v34  ;;  %v6859_v56 = vpop.f32.mrf.mxu1 }
0x1653   : > { %v6985_v6 = vpop.xlane.xlu0 %6984  ;;  %v17928_v48 = vpop.xlane.xlu1 %6993 }
0x1654   : > { %13676 = vpow2.f32 %v6961_v41 }
0x1655   : > { %13678 = vrcp.f32 %v6985_v6  ;;  %v12637_v6 = vpop.f32.mrf.mxu1 }
0x1657   : > { %v6988_v17 = vpop.xlane.xlu1 %6987 }
0x1658   : > { %13680 = vrcp.f32 %v6988_v17 }
0x1659   : > { %13682 = vpow2.f32 %v6965_v7  ;;  %v6929_v7 = vsel %vm2279_vm1, %v12637_v6, -inf }
0x165a   : > { %13684 = vpow2.f32 %v6963_v63 }
0x165d   : > { %v17930_v18 = vpop.eup %13674 }
0x165e   : > { %v6995_v2 = vsel %vm2279_vm1, %v17930_v18, 0.0 }
0x165f   : > { %6996 = vadd.xlane.f32.xlu0 %v6995_v2  ;;  %v6914_v2 = vsel %vm2279_vm1, %v6859_v56, -inf }
0x1661   : > { %v17934_v43 = vpop.eup %13676 }
0x1662   : > { %v6998_v17 = vsel %vm2279_vm1, %v17934_v43, 0.0  ;;  %v13679_v53 = vpop.eup %13678 }
0x1663   : > { %6918 = vmax.xlane.f32.xlu0 %v6917_v57  ;;  %6999 = vadd.xlane.f32.xlu1 %v6998_v17  ;;  %v7047_v34 = vmul.f32 %v13679_v53, %v13669_v42  ;;  %v6872_v57 = vpop.f32.mrf.mxu1 }
0x1664   : > { %v6923_v17 = vsel %vm2279_vm1, %v6872_v57, -inf }
0x1665   : > { %v13681_v11 = vpop.eup %13680 }
0x1666   : > { %v7048_v41 = vmul.f32 %v13681_v11, %v13673_v4  ;;  %v17944_v55 = vpop.eup %13682  ;;  %v17961_v11 = vpop.f32.mrf.mxu1 }
0x1667   : > { %6912 = vmax.xlane.f32.xlu0 %v6911_v13  ;;  %6921 = vmax.xlane.f32.xlu1 %v6920_v10  ;;  %v7004_v42 = vsel %vm2279_vm1, %v17944_v55, 0.0  ;;  %v17949_v4 = vpop.eup %13684  ;;  %v6932_v13 = vsel %vm2279_vm1, %v17961_v11, -inf }
0x1668   : > { %v7063_v63 = vpack.c.bf16 %v7048_v41, %v7047_v34  ;;  %v7001_v53 = vsel %vm2279_vm1, %v17949_v4, 0.0  ;;  %v17965_v10 = vpop.f32.mrf.mxu1 }
0x1669   : > { %v6926_v34 = vsel %vm2279_vm1, %v17965_v10, -inf }
0x166a   : > { %12647 = vmatprep.mubr.msk.bf16.mxu0 %vm2279_vm1, %v7063_v63 }
0x166b   : > { %6930 = vmax.xlane.f32.xlu0 %v6929_v7  ;;  %6915 = vmax.xlane.f32.xlu1 %v6914_v2 }
0x166f   : > { %6924 = vmax.xlane.f32.xlu0 %v6923_v17  ;;  %7005 = vadd.xlane.f32.xlu1 %v7004_v42 }
0x1673   : > { %7002 = vadd.xlane.f32.xlu0 %v7001_v53 }
0x1680   : > { %7079 = vrot.lane.b32.xlu1 %v17402_v36, %s14638_s13 }
0x1689   : > { %7081 = vrot.lane.b32.xlu0 %v17548_v14, %s14638_s13 }
0x168d   : > { %7077 = vrot.lane.b32.xlu0 %v17392_v1, %s14638_s13 }
0x1691   : > { %7075 = vrot.lane.b32.xlu0 %v17373_v38, %s14638_s13 }
0x16a4   : > { %6933 = vmax.xlane.f32.xlu1 %v6932_v13 }
0x16a8   : > { %6927 = vmax.xlane.f32.xlu1 %v6926_v34 }
0x16b9   : > { %7174 = vrot.lane.b32.xlu1 %v17573_v54, %s14638_s13 }
0x16bd   : > { %7172 = vrot.lane.b32.xlu1 %v17519_v0, %s14638_s13 }
0x16e8   : > { %v6997_v41 = vpop.xlane.xlu0 %6996 }
0x16ec   : > { %v6919_v63 = vpop.xlane.xlu0 %6918  ;;  %v7000_v7 = vpop.xlane.xlu1 %6999 }
0x16ed   : > { %v6945_v2 = vsub.f32 %v12633_v23, %v6919_v63 }
0x16ef   : > { %v6971_v17 = vmul.f32 1.442695, %v6945_v2 }
0x16f0   : > { %v6913_v42 = vpop.xlane.xlu0 %6912  ;;  %v6922_v53 = vpop.xlane.xlu1 %6921 }
0x16f1   : > { %13686 = vpow2.f32 %v6971_v17  ;;  %v6943_v38 = vsub.f32 %v6856_v33, %v6913_v42  ;;  %v6946_v13 = vsub.f32 %v12634_v5, %v6922_v53 }
0x16f3   : > { %v6967_v1 = vmul.f32 1.442695, %v6943_v38  ;;  %v6973_v36 = vmul.f32 1.442695, %v6946_v13 }
0x16f4   : > { %v6931_v20 = vpop.xlane.xlu0 %6930  ;;  %v6916_v34 = vpop.xlane.xlu1 %6915 }
0x16f5   : > { %13688 = vpow2.f32 %v6967_v1  ;;  %v6949_v39 = vsub.f32 %v12637_v6, %v6931_v20  ;;  %v6944_v54 = vsub.f32 %v6859_v56, %v6916_v34 }
0x16f6   : > { %13690 = vpow2.f32 %v6973_v36 }
0x16f7   : > { %v6979_v52 = vmul.f32 1.442695, %v6949_v39  ;;  %v6969_v0 = vmul.f32 1.442695, %v6944_v54  ;;  %13692 = vrcp.f32 %v17924_v28 }
0x16f8   : > { %v6925_v21 = vpop.xlane.xlu0 %6924  ;;  %v7006_v38 = vpop.xlane.xlu1 %7005 }
0x16f9   : > { %13694 = vpow2.f32 %v6979_v52  ;;  %v6947_v23 = vsub.f32 %v6872_v57, %v6925_v21 }
0x16fa   : > { %13696 = vrcp.f32 %v17928_v48 }
0x16fb   : > { %13698 = vpow2.f32 %v6969_v0  ;;  %v6975_v33 = vmul.f32 1.442695, %v6947_v23 }
0x16fc   : > { %13700 = vrcp.f32 %v7000_v7  ;;  %v7003_v5 = vpop.xlane.xlu0 %7002  ;;  %v7080_v39 = vpop.permute.xlu1 %7079 }
0x16fd   : > { %13702 = vpow2.f32 %v6975_v33 }
0x16fe   : > { %v17975_v63 = vpop.eup %13686  ;;  %13704 = vrcp.f32 %v6997_v41 }
0x16ff   : > { %v7013_v1 = vsel %vm2279_vm1, %v17975_v63, 0.0  ;;  %13706 = vrcp.f32 %v7003_v5 }
0x1700   : > { %v7082_v36 = vpop.permute.xlu0 %7081  ;;  %7014 = vadd.xlane.f32.xlu1 %v7013_v1  ;;  %13708 = vrcp.f32 %v7006_v38 }
0x1701   : > { %12639 = vmatprep.subr.bf16.mxu0 %v7082_v36 }
0x1702   : > { %v17979_v54 = vpop.eup %13688  ;;  %12640 = vmatpush3.bf16.msra.mxu0 %v7082_v36 }
0x1703   : > { %12641 = vmatprep.subr.bf16.mxu0 %v7080_v39  ;;  %v7007_v0 = vsel %vm2279_vm1, %v17979_v54, 0.0  ;;  %v17983_v52 = vpop.eup %13690 }
0x1704   : > { %v7078_v48 = vpop.permute.xlu0 %7077  ;;  %7008 = vadd.xlane.f32.xlu1 %v7007_v0  ;;  %v13693_v20 = vpop.eup %13692  ;;  %v7016_v6 = vsel %vm2279_vm1, %v17983_v52, 0.0 }
0x1705   : > { %v7049_v23 = vmul.f32 %v13693_v20, %v17903_v59 }
0x1706   : > { %v17985_v28 = vpop.eup %13694  ;;  %12642 = vmatpush3.bf16.msra.mxu0 %v7080_v39 }
0x1707   : > { %v13697_v21 = vpop.eup %13696  ;;  %12643 = vmatprep.subr.bf16.mxu0 %v7078_v48  ;;  %v7025_v56 = vsel %vm2279_vm1, %v17985_v28, 0.0 }
0x1708   : > { %v17991_v57 = vpop.eup %13698  ;;  %7026 = vadd.xlane.f32.xlu0 %v7025_v56  ;;  %7017 = vadd.xlane.f32.xlu1 %v7016_v6  ;;  %v7076_v2 = vpop.permute.xlu0 %7075  ;;  %v7050_v42 = vmul.f32 %v13697_v21, %v17908_v25 }
0x1709   : > { %v13701_v41 = vpop.eup %13700  ;;  %v7010_v13 = vsel %vm2279_vm1, %v17991_v57, 0.0 }
0x170a   : > { %v17993_v7 = vpop.eup %13702  ;;  %12644 = vmatpush3.bf16.msra.mxu0 %v7078_v48  ;;  %v7052_v34 = vmul.f32 %v13701_v41, %v17934_v43  ;;  %v7064_v38 = vpack.c.bf16 %v7050_v42, %v7049_v23  ;;  %v13222_v41 = vld [vmem:[%s15493_s19 + $0x18] sm:$0xff]  }
0x170b   : > { %v13705_v17 = vpop.eup %13704  ;;  %12645 = vmatprep.subr.bf16.mxu0 %v7076_v2  ;;  %v7019_v53 = vsel %vm2279_vm1, %v17993_v7, 0.0 }
0x170c   : > { %7020 = vadd.xlane.f32.xlu0 %v7019_v53  ;;  %7011 = vadd.xlane.f32.xlu1 %v7010_v13  ;;  %v7051_v33 = vmul.f32 %v13705_v17, %v17930_v18  ;;  %v13707_v5 = vpop.eup %13706 }
0x170d   : > { %v13709_v25 = vpop.eup %13708  ;;  %v7053_v36 = vmul.f32 %v13707_v5, %v17949_v4 }
0x170e   : > { %12646 = vmatpush3.bf16.msra.mxu0 %v7076_v2  ;;  %v7065_v1 = vpack.c.bf16 %v7052_v34, %v7051_v33  ;;  %v7054_v39 = vmul.f32 %v13709_v25, %v17944_v55  ;;  %v13223_v2 = vld [vmem:[%s15493_s19 + $0x10] sm:$0xff]  }
0x170f   : > { %12671 = vmatprep.subr.bf16.mxu0 %v13222_v41 }
0x1710   : > { %v7066_v0 = vpack.c.bf16 %v7054_v39, %v7053_v36 }
0x1711   : > { %12648 = vmatmul.mubr.msk.bf16.vlgmr.msra.gmra.mxu0 %vm2279_vm1, %v7064_v38 }
0x1712   : > { %12651 = vmatprep.mubr.msk.bf16.mxu0 %vm2279_vm1, %v7065_v1  ;;  %12672 = vmatpush3.bf16.msra.mxu0 %v13222_v41 }
0x1713   : > { %12673 = vmatprep.subr.bf16.mxu0 %v13223_v2 }
0x1716   : > { %12674 = vmatpush3.bf16.msra.mxu0 %v13223_v2 }
0x1719   : > { %12652 = vmatmul.mubr.msk.bf16.gmra.mxu0 %vm2279_vm1, %v7066_v0 }
0x172d   : > { %v6934_v43 = vpop.xlane.xlu1 %6933 }
0x172e   : > { %v6950_v59 = vsub.f32 %v17961_v11, %v6934_v43 }
0x1730   : > { %v6981_v48 = vmul.f32 1.442695, %v6950_v59 }
0x1731   : > { %v6928_v18 = vpop.xlane.xlu1 %6927 }
0x1732   : > { %13710 = vpow2.f32 %v6981_v48  ;;  %v6948_v20 = vsub.f32 %v17965_v10, %v6928_v18  ;;  %v13224_v48 = vld [vmem:[%s15493_s19 + $0x8] sm:$0xff]  }
0x1734   : > { %v6977_v21 = vmul.f32 1.442695, %v6948_v20 }
0x1735   : > { %v7175_v56 = vpop.permute.xlu1 %7174 }
0x1736   : > { %13712 = vpow2.f32 %v6977_v21  ;;  %12655 = vmatprep.subr.bf16.mxu1 %v7175_v56 }
0x1737   : > { %12656 = vmatpush3.bf16.msra.mxu1 %v7175_v56 }
0x1739   : > { %v7173_v4 = vpop.permute.xlu1 %7172 }
0x173a   : > { %12657 = vmatprep.subr.bf16.mxu1 %v7173_v4 }
0x173b   : > { %12658 = vmatpush3.bf16.msra.mxu1 %v7173_v4 }
0x173f   : > { %v18010_v55 = vpop.eup %13710 }
0x1740   : > { %v7028_v11 = vsel %vm2279_vm1, %v18010_v55, 0.0 }
0x1741   : > { %7029 = vadd.xlane.f32.xlu0 %v7028_v11 }
0x1743   : > { %v18014_v6 = vpop.eup %13712 }
0x1744   : > { %v7022_v10 = vsel %vm2279_vm1, %v18014_v6, 0.0 }
0x1745   : > { %7023 = vadd.xlane.f32.xlu1 %v7022_v10  ;;  %v13225_v10 = vld [vmem:[%s15493_s19] sm:$0xff]  }
0x1756   : > { %7168 = vrot.lane.b32.xlu1 %v17459_v24, %s14638_s13 }
0x1757   : > { %7170 = vrot.lane.b32.xlu0 %v17490_v40, %s14638_s13 }
0x175a   : > { %7543 = vrot.lane.b32.xlu1 %v17448_v16, %s14639_s6 }
0x175b   : > { %7545 = vrot.lane.b32.xlu0 %v17414_v62, %s14639_s6 }
0x175e   : > { %7650 = vrot.lane.b32.xlu1 %v17527_v15, %s14639_s6 }
0x175f   : > { %7541 = vrot.lane.b32.xlu0 %v17434_v27, %s14639_s6 }
0x1762   : > { %7648 = vrot.lane.b32.xlu1 %v17514_v45, %s14639_s6 }
0x1763   : > { %7539 = vrot.lane.b32.xlu0 %v17422_v49, %s14639_s6 }
0x1766   : > { %7533 = vrot.lane.b32.xlu1 %v17628_v61, %s14639_s6 }
0x1767   : > { %7531 = vrot.lane.b32.xlu0 %v17626_v35, %s14639_s6 }
0x176a   : > { %7535 = vrot.lane.b32.xlu1 %v17636_v37, %s14639_s6 }
0x176b   : > { %7646 = vrot.lane.b32.xlu0 %v17550_v32, %s14639_s6 }
0x176e   : > { %7644 = vrot.lane.b32.xlu1 %v17563_v12, %s14639_s6 }
0x176f   : > { %7537 = vrot.lane.b32.xlu0 %v17639_v30, %s14639_s6 }
0x1772   : > { %7638 = vrot.lane.b32.xlu1 %v17657_v19, %s14639_s6 }
0x1773   : > { %7636 = vrot.lane.b32.xlu0 %v17655_v9, %s14639_s6 }
0x1776   : > { %7642 = vrot.lane.b32.xlu1 %v17675_v47, %s14639_s6 }
0x1777   : > { %7640 = vrot.lane.b32.xlu0 %v17673_v26, %s14639_s6 }
0x177b   : > { %7931 = vrot.lane.b32.xlu0 %v17548_v14, %s14639_s6 }
0x1789   : > { %v7015_v17 = vpop.xlane.xlu1 %7014 }
0x178d   : > { %v7009_v42 = vpop.xlane.xlu1 %7008 }
0x178e   : > { %13714 = vrcp.f32 %v7009_v42 }
0x1791   : > { %v7018_v53 = vpop.xlane.xlu1 %7017  ;;  %v7027_v1 = vpop.xlane.xlu0 %7026 }
0x1795   : > { %v7012_v13 = vpop.xlane.xlu1 %7011  ;;  %v7021_v25 = vpop.xlane.xlu0 %7020 }
0x1796   : > { %13716 = vrcp.f32 %v7012_v13 }
0x1797   : > { %13718 = vrcp.f32 %v7018_v53 }
0x1798   : > { %13720 = vrcp.f32 %v7015_v17 }
0x179b   : > { %v13715_v34 = vpop.eup %13714 }
0x179c   : > { %v7055_v33 = vmul.f32 %v13715_v34, %v17979_v54 }
0x17a3   : > { %v13717_v23 = vpop.eup %13716 }
0x17a4   : > { %v7056_v38 = vmul.f32 %v13717_v23, %v17991_v57  ;;  %v13719_v39 = vpop.eup %13718 }
0x17a5   : > { %v13721_v54 = vpop.eup %13720  ;;  %v7058_v57 = vmul.f32 %v13719_v39, %v17983_v52 }
0x17a6   : > { %v7067_v5 = vpack.c.bf16 %v7056_v38, %v7055_v33  ;;  %v7057_v21 = vmul.f32 %v13721_v54, %v17975_v63 }
0x17a8   : > { %12663 = vmatprep.mubr.msk.bf16.mxu1 %vm2279_vm1, %v7067_v5  ;;  %v7068_v4 = vpack.c.bf16 %v7058_v57, %v7057_v21 }
0x17ca   : > { %v7030_v36 = vpop.xlane.xlu0 %7029 }
0x17cb   : > { %13722 = vrcp.f32 %v7030_v36 }
0x17cc   : > { %13724 = vrcp.f32 %v7021_v25 }
0x17cd   : > { %13726 = vrcp.f32 %v7027_v1 }
0x17ce   : > { %v7171_v0 = vpop.permute.xlu0 %7170  ;;  %v7024_v43 = vpop.xlane.xlu1 %7023 }
0x17cf   : > { %13728 = vrcp.f32 %v7024_v43  ;;  %12659 = vmatprep.subr.bf16.mxu1 %v7171_v0 }
0x17d0   : > { %12660 = vmatpush3.bf16.msra.mxu1 %v7171_v0 }
0x17d1   : > { %v12649_v59 = vpop.f32.mrf.mxu0 }
0x17d2   : > { %v7546_v18 = vpop.permute.xlu0 %7545  ;;  %v7169_v20 = vpop.permute.xlu1 %7168 }
0x17d3   : > { %v7133_v56 = vpop.f32.mrf.mxu0  ;;  %12661 = vmatprep.subr.bf16.mxu1 %v7169_v20  ;;  %12997 = vmatprep.subr.msk.bf16.mxu0 %vm2100_vm0, %v7546_v18  ;;  %v7569_v38 = vsel %vm2100_vm0, %v7546_v18, 0 }
0x17d4   : > { %12662 = vmatpush3.bf16.msra.mxu1 %v7169_v20 }
0x17d5   : > { %v12650_v11 = vpop.f32.mrf.mxu0  ;;  %12691 = vmatprep.subr.bf16.mxu1 %v13224_v48 }
0x17d6   : > { %v7542_v41 = vpop.permute.xlu0 %7541  ;;  %v7544_v2 = vpop.permute.xlu1 %7543  ;;  %v7258_v53 = vpack.c.bf16 %v12650_v11, %v12649_v59 }
0x17d7   : > { %v7136_v17 = vpop.f32.mrf.mxu0  ;;  %12664 = vmatmul.mubr.msk.bf16.vlgmr.msra.gmra.mxu1 %vm2279_vm1, %v7068_v4  ;;  %v7563_v11 = vsel %vm2100_vm0, %v7542_v41, 0 }
0x17d8   : > { %v7257_v52 = vpack.c.bf16 %v7136_v17, %v7133_v56  ;;  %12692 = vmatpush3.bf16.msra.mxu1 %v13224_v48  ;;  %v13723_v42 = vpop.eup %13722  ;;  %v19734_v56 = vpack.c.bf16 %v17859_v22, %v17855_v3  ;;  %v19735_v22 = vpack.c.bf16 %v17869_v50, %v17865_v58 }
0x17d9   : > { %v12653_v13 = vpop.f32.mrf.mxu0  ;;  %12693 = vmatprep.subr.bf16.mxu1 %v13225_v10  ;;  %v13725_v63 = vpop.eup %13724  ;;  %v7062_v25 = vmul.f32 %v13723_v42, %v18010_v55  ;;  %v6653_v55 = vpack.c.bf16 %v17863_v31, %v17857_v8  ;;  %v6655_v8 = vpack.c.bf16 %v17878_v60, %v17867_v44  ;;  %v19738_v42 = vld [vmem:[#allocation63_spill] sm:$0xff] }
0x17da   : > { %12675 = vmatprep.mubr.msk.bf16.mxu0 %vm2100_vm0, %v7257_v52  ;;  %v7540_v34 = vpop.permute.xlu0 %7539  ;;  %v13727_v23 = vpop.eup %13726  ;;  %v7059_v39 = vmul.f32 %v13725_v63, %v17993_v7  ;;  %v19737_v52 = vld [vmem:[#allocation64_spill] sm:$0xff] }
0x17db   : > { %v7149_v33 = vpop.f32.mrf.mxu0  ;;  %12676 = vmatmul.mubr.msk.bf16.vlgmr.msra.gmra.mxu0 %vm2100_vm0, %v7258_v53  ;;  %v7651_v1 = vpop.permute.xlu1 %7650  ;;  %v7061_v54 = vmul.f32 %v13727_v23, %v17985_v28  ;;  %v7566_v28 = vsel %vm2100_vm0, %v7544_v2, 0  ;;  %v19739_v58 = vpack.c.bf16 %v19737_v52, %v19738_v42  ;;  %v19741_v63 = vld [vmem:[#allocation92_spill] sm:$0xff] }
0x17dc   : > { %v13729_v5 = vpop.eup %13728  ;;  %12712 = vmatpush3.bf16.xpose.msra.mxu0 %v7569_v38  ;;  %12694 = vmatpush3.bf16.msra.mxu1 %v13225_v10  ;;  %v7674_v4 = vsel %vm2100_vm0, %v7651_v1, 0  ;;  %v6657_v10 = vpack.c.bf16 %v17913_v46, %v17894_v51  ;;  %v19736_v51 = vld [vmem:[#allocation66_spill] sm:$0xff] }
0x17dd   : > { %12998 = vmatprep.subr.msk.bf16.mxu0 %vm2100_vm0, %v7544_v2  ;;  %v12654_v36 = vpop.f32.mrf.mxu0  ;;  %13001 = vmatprep.subr.msk.bf16.mxu1 %vm2100_vm0, %v7651_v1  ;;  %v7060_v0 = vmul.f32 %v13729_v5, %v18014_v6  ;;  %v7070_v18 = vpack.c.bf16 %v7062_v25, %v7061_v54  ;;  %v6659_v46 = vpack.c.bf16 %v19736_v51, %v17918_v29 }
0x17de   : > { %v18075_v43 = vpop.permute.xlu0 %7531  ;;  %v7260_v20 = vpack.c.bf16 %v12654_v36, %v12653_v13  ;;  %v19740_v13 = vld [vmem:[#allocation86_spill] sm:$0xff] }
0x17df   : > { %v7152_v57 = vpop.f32.mrf.mxu0  ;;  %v7069_v59 = vpack.c.bf16 %v7060_v0, %v7059_v39  ;;  %v7649_v31 = vpop.permute.xlu1 %7648 }
0x17e0   : > { %v7259_v48 = vpack.c.bf16 %v7152_v57, %v7149_v33  ;;  %v7671_v2 = vsel %vm2100_vm0, %v7649_v31, 0 }
0x17e1   : > { %12667 = vmatprep.mubr.msk.bf16.mxu1 %vm2279_vm1, %v7069_v59 }
0x17e2   : > { %12679 = vmatprep.mubr.msk.bf16.mxu0 %vm2100_vm0, %v7259_v48  ;;  %v7647_v21 = vpop.permute.xlu0 %7646  ;;  %12668 = vmatmul.mubr.msk.bf16.gmra.mxu1 %vm2279_vm1, %v7070_v18 }
0x17e3   : > { %12680 = vmatmul.mubr.msk.bf16.gmra.mxu0 %vm2100_vm0, %v7260_v20  ;;  %12695 = vmatprep.mubr.msk.bf16.mxu1 %vm2100_vm0, %v6653_v55  ;;  %v7534_v60 = vpop.permute.xlu1 %7533  ;;  %v7668_v50 = vsel %vm2100_vm0, %v7647_v21, 0 }
0x17e4   : > { %12714 = vmatpush3.bf16.xpose.msra.mxu0 %v7566_v28 }
0x17e5   : > { %12999 = vmatprep.subr.msk.bf16.mxu0 %vm2100_vm0, %v7542_v41  ;;  %v7560_v41 = vsel %vm2100_vm0, %v7540_v34, 0 }
0x17e6   : > { %v18087_v7 = vpop.permute.xlu0 %7537 }
0x17e7   : > { %v7536_v17 = vpop.permute.xlu1 %7535 }
0x17ea   : > { %v7637_v6 = vpop.permute.xlu0 %7636  ;;  %12696 = vmatmul.mubr.msk.bf16.vlgmr.msra.gmra.mxu1 %vm2100_vm0, %v19734_v56 }
0x17eb   : > { %12728 = vmatpush3.bf16.xpose.msra.mxu1 %v7674_v4  ;;  %12699 = vmatprep.mubr.msk.bf16.mxu1 %vm2100_vm0, %v6655_v8  ;;  %v7645_v53 = vpop.permute.xlu1 %7644 }
0x17ec   : > { %12716 = vmatpush3.bf16.xpose.msra.mxu0 %v7563_v11  ;;  %13002 = vmatprep.subr.msk.bf16.mxu1 %vm2100_vm0, %v7649_v31  ;;  %v7665_v29 = vsel %vm2100_vm0, %v7645_v53, 0 }
0x17ed   : > { %13000 = vmatprep.subr.msk.bf16.mxu0 %vm2100_vm0, %v7540_v34  ;;  %v19742_v34 = vpack.c.bf16 %v19740_v13, %v19741_v63 }
0x17ee   : > { %v7641_v44 = vpop.permute.xlu0 %7640 }
0x17ef   : > { %v7639_v23 = vpop.permute.xlu1 %7638 }
0x17f2   : > { %v7932_v3 = vpop.permute.xlu0 %7931  ;;  %12700 = vmatmul.mubr.msk.bf16.gmra.mxu1 %vm2100_vm0, %v19735_v22 }
0x17f3   : > { %12730 = vmatpush3.bf16.xpose.msra.mxu1 %v7671_v2  ;;  %12703 = vmatprep.mubr.msk.bf16.mxu1 %vm2100_vm0, %v6657_v10  ;;  %v7643_v33 = vpop.permute.xlu1 %7642 }
0x17f4   : > { %12718 = vmatpush3.bf16.xpose.msra.mxu0 %v7560_v41  ;;  %13003 = vmatprep.subr.msk.bf16.mxu1 %vm2100_vm0, %v7647_v21 }
0x17f5   : > { %12743 = vmatprep.subr.bf16.mxu0 %v7932_v3 }
0x17fa   : > { %12704 = vmatmul.mubr.msk.bf16.gmra.mxu1 %vm2100_vm0, %v19739_v58 }
0x17fb   : > { %12732 = vmatpush3.bf16.xpose.msra.mxu1 %v7668_v50  ;;  %12707 = vmatprep.mubr.msk.bf16.mxu1 %vm2100_vm0, %v6659_v46 }
0x17fc   : > { %13004 = vmatprep.subr.msk.bf16.mxu1 %vm2100_vm0, %v7645_v53 }
0x1802   : > { %12708 = vmatmul.mubr.msk.bf16.gmra.mxu1 %vm2100_vm0, %v19742_v34 }
0x1803   : > { %12734 = vmatpush3.bf16.xpose.msra.mxu1 %v7665_v29  ;;  %12735 = vmatprep.mubr.msk.bf16.mxu1 %vm2100_vm0, %v7637_v6 }
0x180a   : > { %12736 = vmatmul.mubr.msk.bf16.vlgmr.msra.gmra.mxu1 %vm2100_vm0, %v7639_v23 }
0x180b   : > { %12739 = vmatprep.mubr.msk.bf16.mxu1 %vm2100_vm0, %v7641_v44 }
0x1812   : > { %12740 = vmatmul.mubr.msk.bf16.gmra.mxu1 %vm2100_vm0, %v7643_v33 }
0x1897   : > { %v12665_v38 = vpop.f32.mrf.mxu1 }
0x1899   : > { %v7226_v5 = vpop.f32.mrf.mxu1 }
0x189b   : > { %v12666_v1 = vpop.f32.mrf.mxu1  ;;  %v12677_v36 = vpop.f32.mrf.mxu0 }
0x189c   : > { %v7262_v0 = vpack.c.bf16 %v12666_v1, %v12665_v38 }
0x189d   : > { %v7229_v25 = vpop.f32.mrf.mxu1  ;;  %v7335_v54 = vpop.f32.mrf.mxu0 }
0x189e   : > { %v7261_v39 = vpack.c.bf16 %v7229_v25, %v7226_v5 }
0x189f   : > { %v12678_v48 = vpop.f32.mrf.mxu0 }
0x18a0   : > { %12683 = vmatprep.mubr.msk.bf16.mxu0 %vm2100_vm0, %v7261_v39 }
0x18a1   : > { %12684 = vmatmul.mubr.msk.bf16.gmra.mxu0 %vm2100_vm0, %v7262_v0  ;;  %v18130_v21 = vpop.f32.mrf.mxu0 }
0x18a2   : > { %v12669_v57 = vpop.f32.mrf.mxu1  ;;  %19743 = vst [vmem:[#allocation68_spill] sm:$0xff] %v18130_v21 }
0x18a3   : > { %v12681_v4 = vpop.f32.mrf.mxu0 }
0x18a4   : > { %v7242_v59 = vpop.f32.mrf.mxu1 }
0x18a5   : > { %v7351_v22 = vpop.f32.mrf.mxu0 }
0x18a6   : > { %v12670_v18 = vpop.f32.mrf.mxu1 }
0x18a7   : > { %v7264_v28 = vpack.c.bf16 %v12670_v18, %v12669_v57  ;;  %v12682_v52 = vpop.f32.mrf.mxu0 }
0x18a8   : > { %v7245_v55 = vpop.f32.mrf.mxu1 }
0x18a9   : > { %v7263_v20 = vpack.c.bf16 %v7245_v55, %v7242_v59 }
0x18aa   : > { %v12697_v8 = vpop.f32.mrf.mxu1 }
0x18ab   : > { %v18132_v31 = vadd.f32 %v12697_v8, %v12677_v36  ;;  %12687 = vmatprep.mubr.msk.bf16.mxu0 %vm2100_vm0, %v7263_v20 }
0x18ac   : > { %12688 = vmatmul.mubr.msk.bf16.gmra.mxu0 %vm2100_vm0, %v7264_v28  ;;  %v7468_v6 = vpop.f32.mrf.mxu1 }
0x18ad   : > { %v18136_v56 = vadd.f32 %v7468_v6, %v7335_v54  ;;  %12719 = vmatprep.mubr.msk.bf16.mxu0 %vm2100_vm0, %v18075_v43 }
0x18ae   : > { %v12698_v11 = vpop.f32.mrf.mxu1 }
0x18af   : > { %v18140_v44 = vadd.f32 %v12698_v11, %v12678_v48 }
0x18b0   : > { %v18142_v10 = vpop.f32.mrf.mxu1 }
0x18b1   : > { %19744 = vst [vmem:[#allocation67_spill] sm:$0xff] %v18142_v10 }
0x18b2   : > { %v12701_v2 = vpop.f32.mrf.mxu1 }
0x18b3   : > { %v18144_v41 = vadd.f32 %v12701_v2, %v12681_v4 }
0x18b4   : > { %v7484_v51 = vpop.f32.mrf.mxu1  ;;  %12720 = vmatmul.mubr.msk.bf16.vlgmr.msra.gmra.mxu0 %vm2100_vm0, %v7534_v60 }
0x18b5   : > { %v18147_v46 = vadd.f32 %v7484_v51, %v7351_v22  ;;  %12744 = vmatpush3.bf16.msra.mxu0 %v7932_v3  ;;  %12723 = vmatprep.mubr.msk.bf16.mxu0 %vm2100_vm0, %v7536_v17 }
0x18b6   : > { %v12702_v43 = vpop.f32.mrf.mxu1 }
0x18b7   : > { %v18150_v42 = vadd.f32 %v12702_v43, %v12682_v52  ;;  %v18192_v43 = vpop.f32.mrf.mxu0 }
0x18b8   : > { %v18152_v58 = vpop.f32.mrf.mxu1  ;;  %19751 = vst [vmem:[#allocation73_spill] sm:$0xff] %v18192_v43 }
0x18b9   : > { %19745 = vst [vmem:[#allocation96_spill] sm:$0xff] %v18152_v58  ;;  %v19758_v58 = vld [vmem:[#allocation93_spill] sm:$0xff] }
0x18ba   : > { %v18154_v50 = vpop.f32.mrf.mxu1 }
0x18bc   : > { %v18156_v53 = vpop.f32.mrf.mxu1  ;;  %12724 = vmatmul.mubr.msk.bf16.gmra.mxu0 %vm2100_vm0, %v18087_v7 }
0x18be   : > { %v18160_v13 = vpop.f32.mrf.mxu1 }
0x18c0   : > { %v18162_v60 = vpop.f32.mrf.mxu1 }
0x18c1   : > { %19746 = vst [vmem:[#allocation90_spill] sm:$0xff] %v18162_v60 }
0x18c2   : > { %v18164_v3 = vpop.f32.mrf.mxu1 }
0x18c3   : > { %19747 = vst [vmem:[#allocation69_spill] sm:$0xff] %v18164_v3 }
0x18c4   : > { %v18166_v17 = vpop.f32.mrf.mxu1 }
0x18c5   : > { %19748 = vst [vmem:[#allocation70_spill] sm:$0xff] %v18166_v17 }
0x18c6   : > { %v18168_v63 = vpop.f32.mrf.mxu1 }
0x18c7   : > { %19749 = vst [vmem:[#allocation72_spill] sm:$0xff] %v18168_v63 }
0x18c8   : > { %v18170_v34 = vpop.f32.mrf.mxu1 }
0x18c9   : > { %19750 = vst [vmem:[#allocation71_spill] sm:$0xff] %v18170_v34 }
0x18ca   : > { %v12737_v29 = vpop.f32.mrf.mxu1 }
0x18cb   : > { %v7771_v23 = vsel %vm2279_vm1, %v12737_v29, -inf }
0x18cc   : > { %7772 = vmax.xlane.f32.xlu0 %v7771_v23  ;;  %v7710_v33 = vpop.f32.mrf.mxu1 }
0x18cd   : > { %v7765_v7 = vsel %vm2279_vm1, %v7710_v33, -inf }
0x18ce   : > { %v12738_v38 = vpop.f32.mrf.mxu1 }
0x18cf   : > { %v7774_v5 = vsel %vm2279_vm1, %v12738_v38, -inf }
0x18d0   : > { %7766 = vmax.xlane.f32.xlu0 %v7765_v7  ;;  %7775 = vmax.xlane.f32.xlu1 %v7774_v5  ;;  %v7713_v1 = vpop.f32.mrf.mxu1 }
0x18d1   : > { %v7768_v36 = vsel %vm2279_vm1, %v7713_v1, -inf }
0x18d2   : > { %v18175_v25 = vpop.f32.mrf.mxu1 }
0x18d3   : > { %v7783_v39 = vsel %vm2279_vm1, %v18175_v25, -inf }
0x18d4   : > { %7769 = vmax.xlane.f32.xlu1 %v7768_v36  ;;  %7784 = vmax.xlane.f32.xlu0 %v7783_v39  ;;  %v18180_v0 = vpop.f32.mrf.mxu1 }
0x18d5   : > { %v7777_v57 = vsel %vm2279_vm1, %v18180_v0, -inf }
0x18d6   : > { %v18182_v54 = vpop.f32.mrf.mxu1 }
0x18d7   : > { %v7786_v59 = vsel %vm2279_vm1, %v18182_v54, -inf }
0x18d8   : > { %7778 = vmax.xlane.f32.xlu0 %v7777_v57  ;;  %7787 = vmax.xlane.f32.xlu1 %v7786_v59  ;;  %v18188_v48 = vpop.f32.mrf.mxu1 }
0x18d9   : > { %v7780_v18 = vsel %vm2279_vm1, %v18188_v48, -inf }
0x18dc   : > { %7781 = vmax.xlane.f32.xlu1 %v7780_v18 }
0x1955   : > { %v7773_v55 = vpop.xlane.xlu0 %7772 }
0x1956   : > { %v7799_v20 = vsub.f32 %v12737_v29, %v7773_v55 }
0x1958   : > { %v7825_v28 = vmul.f32 1.442695, %v7799_v20 }
0x1959   : > { %v7767_v8 = vpop.xlane.xlu0 %7766  ;;  %v7776_v6 = vpop.xlane.xlu1 %7775 }
0x195a   : > { %13730 = vpow2.f32 %v7825_v28  ;;  %v7797_v4 = vsub.f32 %v7710_v33, %v7767_v8  ;;  %v7800_v11 = vsub.f32 %v12738_v38, %v7776_v6 }
0x195c   : > { %v7821_v22 = vmul.f32 1.442695, %v7797_v4  ;;  %v7827_v2 = vmul.f32 1.442695, %v7800_v11 }
0x195d   : > { %v7770_v51 = vpop.xlane.xlu1 %7769  ;;  %v7785_v60 = vpop.xlane.xlu0 %7784 }
0x195e   : > { %13732 = vpow2.f32 %v7821_v22  ;;  %v7798_v52 = vsub.f32 %v7713_v1, %v7770_v51  ;;  %v7803_v14 = vsub.f32 %v18175_v25, %v7785_v60  ;;  %v19759_v25 = vld [vmem:[#allocation85_spill] sm:$0xff] }
0x195f   : > { %13734 = vpow2.f32 %v7827_v2 }
0x1960   : > { %v7823_v23 = vmul.f32 1.442695, %v7798_v52 }
0x1961   : > { %v18194_v7 = vpop.f32.mrf.mxu0  ;;  %v7779_v43 = vpop.xlane.xlu0 %7778 }
0x1962   : > { %13736 = vpow2.f32 %v7823_v23 }
0x1963   : > { %v18196_v5 = vpop.f32.mrf.mxu0 }
0x1965   : > { %v18198_v29 = vpop.f32.mrf.mxu0 }
0x1967   : > { %v18200_v36 = vpop.eup %13730  ;;  %v18204_v38 = vpop.f32.mrf.mxu0 }
0x1968   : > { %v7867_v33 = vsel %vm2279_vm1, %v18200_v36, 0.0  ;;  %19752 = vst [vmem:[#allocation66_spill] sm:$0xff] %v18204_v38  ;;  %v7788_v38 = vpop.xlane.xlu1 %7787 }
0x1969   : > { %7868 = vadd.xlane.f32.xlu1 %v7867_v33 }
0x196b   : > { %v18206_v1 = vpop.eup %13732 }
0x196c   : > { %v18208_v39 = vpop.f32.mrf.mxu0  ;;  %v7861_v57 = vsel %vm2279_vm1, %v18206_v1, 0.0  ;;  %v18212_v59 = vpop.eup %13734 }
0x196d   : > { %19753 = vst [vmem:[#allocation64_spill] sm:$0xff] %v18208_v39  ;;  %7862 = vadd.xlane.f32.xlu1 %v7861_v57  ;;  %v7870_v20 = vsel %vm2279_vm1, %v18212_v59, 0.0  ;;  %v7782_v10 = vpop.xlane.xlu1 %7781 }
0x196e   : > { %v18214_v18 = vpop.f32.mrf.mxu0 }
0x196f   : > { %19754 = vst [vmem:[#allocation63_spill] sm:$0xff] %v18214_v18  ;;  %v18220_v28 = vpop.eup %13736 }
0x1970   : > { %v18216_v55 = vpop.f32.mrf.mxu0  ;;  %v7864_v4 = vsel %vm2279_vm1, %v18220_v28, 0.0 }
0x1971   : > { %19755 = vst [vmem:[#allocation86_spill] sm:$0xff] %v18216_v55  ;;  %7871 = vadd.xlane.f32.xlu1 %v7870_v20 }
0x1972   : > { %v18222_v8 = vpop.f32.mrf.mxu0 }
0x1973   : > { %19756 = vst [vmem:[#allocation92_spill] sm:$0xff] %v18222_v8 }
0x1974   : > { %v18224_v6 = vpop.f32.mrf.mxu0 }
0x1975   : > { %7865 = vadd.xlane.f32.xlu1 %v7864_v4  ;;  %v7747_v11 = vsel %vm2279_vm1, %v18224_v6, -inf }
0x1976   : > { %v18230_v22 = vpop.f32.mrf.mxu0  ;;  %7748 = vmax.xlane.f32.xlu0 %v7747_v11 }
0x1977   : > { %v7741_v51 = vsel %vm2279_vm1, %v18230_v22, -inf }
0x1978   : > { %v18232_v2 = vpop.f32.mrf.mxu0 }
0x1979   : > { %v7750_v57 = vsel %vm2279_vm1, %v18232_v2, -inf }
0x197a   : > { %v18236_v52 = vpop.f32.mrf.mxu0  ;;  %7742 = vmax.xlane.f32.xlu0 %v7741_v51 }
0x197b   : > { %v7744_v23 = vsel %vm2279_vm1, %v18236_v52, -inf }
0x197c   : > { %v18240_v33 = vpop.f32.mrf.mxu0  ;;  %7745 = vmax.xlane.f32.xlu1 %v7744_v23 }
0x197d   : > { %v7759_v11 = vsel %vm2279_vm1, %v18240_v33, -inf }
0x197e   : > { %v18244_v20 = vpop.f32.mrf.mxu0  ;;  %7751 = vmax.xlane.f32.xlu0 %v7750_v57  ;;  %v19757_v57 = vld [vmem:[#allocation87_spill] sm:$0xff] }
0x197f   : > { %v7753_v23 = vsel %vm2279_vm1, %v18244_v20, -inf }
0x1980   : > { %v18246_v4 = vpop.f32.mrf.mxu0 }
0x1981   : > { %v7762_v51 = vsel %vm2279_vm1, %v18246_v4, -inf }
0x1982   : > { %v18252_v34 = vpop.f32.mrf.mxu0  ;;  %7760 = vmax.xlane.f32.xlu0 %v7759_v11  ;;  %7763 = vmax.xlane.f32.xlu1 %v7762_v51  ;;  %v7801_v11 = vsub.f32 %v18180_v0, %v7779_v43  ;;  %v7802_v51 = vsub.f32 %v18188_v48, %v7782_v10  ;;  %v19761_v48 = vld [vmem:[#allocation78_spill] sm:$0xff] }
0x1983   : > { %v7756_v8 = vsel %vm2279_vm1, %v18252_v34, -inf }
0x1984   : > { %v7829_v21 = vmul.f32 1.442695, %v7801_v11  ;;  %v7831_v63 = vmul.f32 1.442695, %v7802_v51 }
0x1986   : > { %7754 = vmax.xlane.f32.xlu0 %v7753_v23  ;;  %7757 = vmax.xlane.f32.xlu1 %v7756_v8  ;;  %13738 = vpow2.f32 %v7829_v21  ;;  %v7833_v8 = vmul.f32 1.442695, %v7803_v14  ;;  %v7804_v23 = vsub.f32 %v18182_v54, %v7788_v38  ;;  %v19760_v54 = vld [vmem:[#allocation81_spill] sm:$0xff] }
0x1987   : > { %13740 = vpow2.f32 %v7831_v63 }
0x1988   : > { %13742 = vpow2.f32 %v7833_v8 }
0x1993   : > { %v18266_v55 = vpop.eup %13738 }
0x1994   : > { %v7873_v0 = vsel %vm2279_vm1, %v18266_v55, 0.0 }
0x1997   : > { %7929 = vrot.lane.b32.xlu1 %v19757_v57, %s14639_s6  ;;  %v7835_v57 = vmul.f32 1.442695, %v7804_v23 }
0x1999   : > { %13744 = vpow2.f32 %v7835_v57 }
0x199c   : > { %7927 = vrot.lane.b32.xlu0 %v19758_v58, %s14639_s6  ;;  %v18268_v58 = vpop.eup %13740 }
0x199d   : > { %v7876_v10 = vsel %vm2279_vm1, %v18268_v58, 0.0  ;;  %v18274_v60 = vpop.eup %13742 }
0x199e   : > { %v7879_v14 = vsel %vm2279_vm1, %v18274_v60, 0.0 }
0x19a6   : > { %v18278_v21 = vpop.eup %13744 }
0x19a7   : > { %v7882_v63 = vsel %vm2279_vm1, %v18278_v21, 0.0 }
0x19bb   : > { %7874 = vadd.xlane.f32.xlu0 %v7873_v0  ;;  %7877 = vadd.xlane.f32.xlu1 %v7876_v10 }
0x19bf   : > { %7880 = vadd.xlane.f32.xlu0 %v7879_v14 }
0x19c3   : > { %7883 = vadd.xlane.f32.xlu0 %v7882_v63 }
0x19cc   : > { %8020 = vrot.lane.b32.xlu1 %v19759_v25, %s14639_s6 }
0x19d0   : > { %8018 = vrot.lane.b32.xlu1 %v19760_v54, %s14639_s6 }
0x19d9   : > { %7925 = vrot.lane.b32.xlu0 %v19761_v48, %s14639_s6 }
0x19f2   : > { %v18288_v43 = vpop.xlane.xlu1 %7868 }
0x19f6   : > { %v7863_v38 = vpop.xlane.xlu1 %7862 }
0x19f7   : > { %13746 = vrcp.f32 %v7863_v38 }
0x19fa   : > { %v18290_v57 = vpop.xlane.xlu1 %7871 }
0x19fe   : > { %v7866_v11 = vpop.xlane.xlu1 %7865 }
0x19ff   : > { %13748 = vrcp.f32 %v7866_v11  ;;  %v7749_v51 = vpop.xlane.xlu0 %7748 }
0x1a00   : > { %v7791_v8 = vsub.f32 %v18224_v6, %v7749_v51 }
0x1a02   : > { %v7809_v23 = vmul.f32 1.442695, %v7791_v8 }
0x1a03   : > { %v7743_v0 = vpop.xlane.xlu0 %7742 }
0x1a04   : > { %13750 = vpow2.f32 %v7809_v23  ;;  %v7789_v10 = vsub.f32 %v18230_v22, %v7743_v0  ;;  %v13747_v17 = vpop.eup %13746 }
0x1a05   : > { %v7746_v14 = vpop.xlane.xlu1 %7745  ;;  %v7909_v22 = vmul.f32 %v13747_v17, %v18206_v1 }
0x1a06   : > { %v7805_v63 = vmul.f32 1.442695, %v7789_v10  ;;  %v7790_v54 = vsub.f32 %v18236_v52, %v7746_v14 }
0x1a07   : > { %v7752_v25 = vpop.xlane.xlu0 %7751 }
0x1a08   : > { %13752 = vpow2.f32 %v7805_v63  ;;  %v7792_v48 = vsub.f32 %v18232_v2, %v7752_v25  ;;  %v7807_v38 = vmul.f32 1.442695, %v7790_v54 }
0x1a0a   : > { %v7811_v18 = vmul.f32 1.442695, %v7792_v48 }
0x1a0b   : > { %v7761_v11 = vpop.xlane.xlu0 %7760  ;;  %v7764_v3 = vpop.xlane.xlu1 %7763 }
0x1a0c   : > { %v13749_v39 = vpop.eup %13748  ;;  %13754 = vpow2.f32 %v7811_v18  ;;  %v7795_v6 = vsub.f32 %v18240_v33, %v7761_v11  ;;  %v7796_v51 = vsub.f32 %v18246_v4, %v7764_v3 }
0x1a0d   : > { %v7910_v8 = vmul.f32 %v13749_v39, %v18220_v28  ;;  %13756 = vpow2.f32 %v7807_v38 }
0x1a0e   : > { %v7817_v52 = vmul.f32 1.442695, %v7795_v6  ;;  %v7819_v23 = vmul.f32 1.442695, %v7796_v51 }
0x1a0f   : > { %v7755_v0 = vpop.xlane.xlu0 %7754  ;;  %v7758_v2 = vpop.xlane.xlu1 %7757  ;;  %v7921_v25 = vpack.c.bf16 %v7910_v8, %v7909_v22 }
0x1a10   : > { %13758 = vpow2.f32 %v7817_v52  ;;  %v7793_v54 = vsub.f32 %v18244_v20, %v7755_v0  ;;  %v7794_v48 = vsub.f32 %v18252_v34, %v7758_v2 }
0x1a11   : > { %v18302_v18 = vpop.eup %13750  ;;  %12767 = vmatprep.mubr.msk.bf16.mxu1 %vm2279_vm1, %v7921_v25  ;;  %13760 = vpow2.f32 %v7819_v23 }
0x1a12   : > { %v7813_v3 = vmul.f32 1.442695, %v7793_v54  ;;  %v7815_v17 = vmul.f32 1.442695, %v7794_v48  ;;  %v7843_v1 = vsel %vm2279_vm1, %v18302_v18, 0.0 }
0x1a13   : > { %7844 = vadd.xlane.f32.xlu0 %v7843_v1  ;;  %v7930_v39 = vpop.permute.xlu1 %7929  ;;  %v7928_v33 = vpop.permute.xlu0 %7927 }
0x1a14   : > { %13762 = vpow2.f32 %v7813_v3  ;;  %12745 = vmatprep.subr.bf16.mxu0 %v7930_v39 }
0x1a15   : > { %v18307_v28 = vpop.eup %13752  ;;  %12746 = vmatpush3.bf16.msra.mxu0 %v7930_v39  ;;  %13764 = vpow2.f32 %v7815_v17 }
0x1a16   : > { %12747 = vmatprep.subr.bf16.mxu0 %v7928_v33  ;;  %v7837_v34 = vsel %vm2279_vm1, %v18307_v28, 0.0  ;;  %13766 = vrcp.f32 %v18290_v57 }
0x1a17   : > { %7838 = vadd.xlane.f32.xlu0 %v7837_v34 }
0x1a19   : > { %v18311_v20 = vpop.eup %13754  ;;  %12748 = vmatpush3.bf16.msra.mxu0 %v7928_v33 }
0x1a1a   : > { %v7846_v4 = vsel %vm2279_vm1, %v18311_v20, 0.0  ;;  %v18315_v10 = vpop.eup %13756 }
0x1a1b   : > { %7847 = vadd.xlane.f32.xlu1 %v7846_v4  ;;  %v7840_v38 = vsel %vm2279_vm1, %v18315_v10, 0.0 }
0x1a1d   : > { %v18317_v14 = vpop.eup %13758 }
0x1a1e   : > { %v7855_v63 = vsel %vm2279_vm1, %v18317_v14, 0.0  ;;  %v18323_v11 = vpop.eup %13760 }
0x1a1f   : > { %7856 = vadd.xlane.f32.xlu0 %v7855_v63  ;;  %7841 = vadd.xlane.f32.xlu1 %v7840_v38  ;;  %v7858_v22 = vsel %vm2279_vm1, %v18323_v11, 0.0 }
0x1a21   : > { %v18325_v6 = vpop.eup %13762 }
0x1a22   : > { %v7849_v51 = vsel %vm2279_vm1, %v18325_v6, 0.0  ;;  %v18331_v8 = vpop.eup %13764 }
0x1a23   : > { %7850 = vadd.xlane.f32.xlu0 %v7849_v51  ;;  %7859 = vadd.xlane.f32.xlu1 %v7858_v22  ;;  %v7852_v52 = vsel %vm2279_vm1, %v18331_v8, 0.0 }
0x1a27   : > { %7853 = vadd.xlane.f32.xlu1 %v7852_v52 }
0x1a38   : > { %8014 = vrot.lane.b32.xlu1 %v17459_v24, %s14639_s6 }
0x1a39   : > { %8016 = vrot.lane.b32.xlu0 %v17490_v40, %s14639_s6  ;;  %s19846_s6 = sld [smem:[#allocation122_spill]] (!%p11552_p3) }
0x1a3c   : > { %8272 = vrot.lane.b32.xlu1 %v17448_v16, %s14640_s0  ;;  %v18360_v16 = vld [vmem:[%s15493_s19 + $0x28] sm:$0xff]  }
0x1a3d   : > { %8274 = vrot.lane.b32.xlu0 %v17414_v62, %s14640_s0 }
0x1a40   : > { %8268 = vrot.lane.b32.xlu1 %v17422_v49, %s14640_s0 }
0x1a41   : > { %8270 = vrot.lane.b32.xlu0 %v17434_v27, %s14640_s0 }
0x1a44   : > { %v7875_v23 = vpop.xlane.xlu0 %7874  ;;  %8262 = vrot.lane.b32.xlu1 %v17628_v61, %s14640_s0  ;;  %v7878_v0 = vpop.xlane.xlu1 %7877 }
0x1a45   : > { %8260 = vrot.lane.b32.xlu0 %v17626_v35, %s14640_s0  ;;  %13768 = vrcp.f32 %v7875_v23 }
0x1a46   : > { %13770 = vrcp.f32 %v7878_v0 }
0x1a47   : > { %13772 = vrcp.f32 %v18288_v43 }
0x1a48   : > { %v7881_v2 = vpop.xlane.xlu0 %7880  ;;  %8377 = vrot.lane.b32.xlu1 %v17514_v45, %s14640_s0  ;;  %v8021_v62 = vpop.permute.xlu1 %8020 }
0x1a49   : > { %8379 = vrot.lane.b32.xlu0 %v17527_v15, %s14640_s0  ;;  %12759 = vmatprep.subr.bf16.mxu1 %v8021_v62 }
0x1a4a   : > { %12760 = vmatpush3.bf16.msra.mxu1 %v8021_v62 }
0x1a4c   : > { %v7884_v49 = vpop.xlane.xlu0 %7883  ;;  %8266 = vrot.lane.b32.xlu1 %v17639_v30, %s14640_s0  ;;  %v8019_v27 = vpop.permute.xlu1 %8018 }
0x1a4d   : > { %8264 = vrot.lane.b32.xlu0 %v17636_v37, %s14640_s0  ;;  %12761 = vmatprep.subr.bf16.mxu1 %v8019_v27 }
0x1a4e   : > { %12762 = vmatpush3.bf16.msra.mxu1 %v8019_v27 }
0x1a50   : > { %v7926_v35 = vpop.permute.xlu0 %7925  ;;  %8373 = vrot.lane.b32.xlu1 %v17563_v12, %s14640_s0 }
0x1a51   : > { %8375 = vrot.lane.b32.xlu0 %v17550_v32, %s14640_s0  ;;  %12749 = vmatprep.subr.bf16.mxu0 %v7926_v35 }
0x1a52   : > { %12750 = vmatpush3.bf16.msra.mxu0 %v7926_v35 }
0x1a53   : > { %12775 = vmatprep.subr.bf16.mxu0 %v18360_v16 }
0x1a54   : > { %8367 = vrot.lane.b32.xlu1 %v17657_v19, %s14640_s0 }
0x1a55   : > { %8365 = vrot.lane.b32.xlu0 %v17655_v9, %s14640_s0  ;;  %v13767_v9 = vpop.eup %13766 }
0x1a56   : > { %v13769_v19 = vpop.eup %13768  ;;  %v7912_v25 = vmul.f32 %v13767_v9, %v18212_v59 }
0x1a57   : > { %v13771_v57 = vpop.eup %13770  ;;  %v7913_v17 = vmul.f32 %v13769_v19, %v18266_v55 }
0x1a58   : > { %8371 = vrot.lane.b32.xlu1 %v17675_v47, %s14640_s0  ;;  %v13773_v43 = vpop.eup %13772  ;;  %v7914_v1 = vmul.f32 %v13771_v57, %v18268_v58 }
0x1a59   : > { %8369 = vrot.lane.b32.xlu0 %v17673_v26, %s14640_s0  ;;  %v7911_v33 = vmul.f32 %v13773_v43, %v18200_v36 }
0x1a5a   : > { %v7923_v22 = vpack.c.bf16 %v7914_v1, %v7913_v17 }
0x1a5b   : > { %v7922_v63 = vpack.c.bf16 %v7912_v25, %v7911_v33 }
0x1a9c   : > { %v7845_v45 = vpop.xlane.xlu0 %7844 }
0x1aa0   : > { %v7839_v15 = vpop.xlane.xlu0 %7838 }
0x1aa4   : > { %v7848_v32 = vpop.xlane.xlu1 %7847 }
0x1aa5   : > { %13774 = vrcp.f32 %v7848_v32 }
0x1aa6   : > { %13776 = vrcp.f32 %v7839_v15 }
0x1aa7   : > { %13778 = vrcp.f32 %v7845_v45 }
0x1aa8   : > { %v7857_v12 = vpop.xlane.xlu0 %7856  ;;  %v7842_v61 = vpop.xlane.xlu1 %7841 }
0x1aa9   : > { %13780 = vrcp.f32 %v7842_v61 }
0x1aaa   : > { %13782 = vrcp.f32 %v7884_v49  ;;  %v13227_v49 = vld [vmem:[%s15493_s19 + $0x20] sm:$0xff]  }
0x1aab   : > { %13784 = vrcp.f32 %v7881_v2 }
0x1aac   : > { %v7851_v37 = vpop.xlane.xlu0 %7850  ;;  %v7860_v30 = vpop.xlane.xlu1 %7859 }
0x1aad   : > { %13786 = vrcp.f32 %v7851_v37 }
0x1aae   : > { %13788 = vrcp.f32 %v7860_v30 }
0x1aaf   : > { %13790 = vrcp.f32 %v7857_v12 }
0x1ab0   : > { %v8017_v26 = vpop.permute.xlu0 %8016  ;;  %v7854_v47 = vpop.xlane.xlu1 %7853 }
0x1ab1   : > { %13792 = vrcp.f32 %v7854_v47  ;;  %12763 = vmatprep.subr.bf16.mxu1 %v8017_v26 }
0x1ab2   : > { %12764 = vmatpush3.bf16.msra.mxu1 %v8017_v26  ;;  %v13775_v54 = vpop.eup %13774 }
0x1ab3   : > { %v13777_v39 = vpop.eup %13776  ;;  %v7904_v38 = vmul.f32 %v13775_v54, %v18311_v20 }
0x1ab4   : > { %v8275_v48 = vpop.permute.xlu0 %8274  ;;  %v8015_v3 = vpop.permute.xlu1 %8014  ;;  %v7901_v55 = vmul.f32 %v13777_v39, %v18307_v28 }
0x1ab5   : > { %12765 = vmatprep.subr.bf16.mxu1 %v8015_v3  ;;  %v13779_v34 = vpop.eup %13778  ;;  %v8298_v36 = vsel %vm2100_vm0, %v8275_v48, 0 }
0x1ab6   : > { %12766 = vmatpush3.bf16.msra.mxu1 %v8015_v3  ;;  %v13781_v4 = vpop.eup %13780  ;;  %v7903_v52 = vmul.f32 %v13779_v34, %v18302_v18 }
0x1ab7   : > { %13005 = vmatprep.subr.msk.bf16.mxu1 %vm2100_vm0, %v8275_v48  ;;  %v13783_v59 = vpop.eup %13782  ;;  %v7902_v58 = vmul.f32 %v13781_v4, %v18315_v10 }
0x1ab8   : > { %v8271_v51 = vpop.permute.xlu0 %8270  ;;  %v13785_v23 = vpop.eup %13784  ;;  %v7918_v62 = vpack.c.bf16 %v7904_v38, %v7903_v52  ;;  %v7916_v28 = vmul.f32 %v13783_v59, %v18278_v21 }
0x1ab9   : > { %12768 = vmatmul.mubr.msk.bf16.vlgmr.msra.gmra.mxu1 %vm2279_vm1, %v7922_v63  ;;  %v8273_v0 = vpop.permute.xlu1 %8272  ;;  %v7917_v20 = vpack.c.bf16 %v7902_v58, %v7901_v55  ;;  %v7915_v35 = vmul.f32 %v13785_v23, %v18274_v60 }
0x1aba   : > { %12771 = vmatprep.mubr.msk.bf16.mxu1 %vm2279_vm1, %v7923_v22  ;;  %12796 = vmatpush3.bf16.xpose.msra.mxu1 %v8298_v36  ;;  %v13787_v2 = vpop.eup %13786  ;;  %v8295_v37 = vsel %vm2100_vm0, %v8273_v0, 0 }
0x1abb   : > { %13006 = vmatprep.subr.msk.bf16.mxu1 %vm2100_vm0, %v8273_v0  ;;  %v13789_v10 = vpop.eup %13788  ;;  %12751 = vmatprep.mubr.msk.bf16.mxu0 %vm2279_vm1, %v7917_v20  ;;  %v7924_v15 = vpack.c.bf16 %v7916_v28, %v7915_v35  ;;  %v7905_v32 = vmul.f32 %v13787_v2, %v18325_v6 }
0x1abc   : > { %v8261_v18 = vpop.permute.xlu0 %8260  ;;  %v13791_v27 = vpop.eup %13790  ;;  %12752 = vmatmul.mubr.msk.bf16.vlgmr.msra.gmra.mxu0 %vm2279_vm1, %v7918_v62  ;;  %v7908_v21 = vmul.f32 %v13789_v10, %v18323_v11  ;;  %v8292_v11 = vsel %vm2100_vm0, %v8271_v51, 0 }
0x1abd   : > { %12776 = vmatpush3.bf16.msra.mxu0 %v18360_v16  ;;  %v7907_v9 = vmul.f32 %v13791_v27, %v18317_v14  ;;  %v8269_v6 = vpop.permute.xlu1 %8268 }
0x1abe   : > { %v13793_v45 = vpop.eup %13792  ;;  %12777 = vmatprep.subr.bf16.mxu0 %v13227_v49  ;;  %v8289_v14 = vsel %vm2100_vm0, %v8269_v6, 0 }
0x1abf   : > { %v7906_v12 = vmul.f32 %v13793_v45, %v18331_v8  ;;  %v7920_v60 = vpack.c.bf16 %v7908_v21, %v7907_v9 }
0x1ac0   : > { %v8380_v61 = vpop.permute.xlu0 %8379 }
0x1ac1   : > { %12772 = vmatmul.mubr.msk.bf16.gmra.mxu1 %vm2279_vm1, %v7924_v15  ;;  %v7919_v30 = vpack.c.bf16 %v7906_v12, %v7905_v32  ;;  %12778 = vmatpush3.bf16.msra.mxu0 %v13227_v49  ;;  %v8263_v8 = vpop.permute.xlu1 %8262  ;;  %v8403_v63 = vsel %vm2100_vm0, %v8380_v61, 0 }
0x1ac2   : > { %12798 = vmatpush3.bf16.xpose.msra.mxu1 %v8295_v37  ;;  %13009 = vmatprep.subr.msk.bf16.mxu0 %vm2100_vm0, %v8380_v61 }
0x1ac3   : > { %12803 = vmatprep.mubr.msk.bf16.mxu1 %vm2100_vm0, %v8261_v18  ;;  %12755 = vmatprep.mubr.msk.bf16.mxu0 %vm2279_vm1, %v7919_v30 }
0x1ac4   : > { %13007 = vmatprep.subr.msk.bf16.mxu1 %vm2100_vm0, %v8271_v51  ;;  %12756 = vmatmul.mubr.msk.bf16.gmra.mxu0 %vm2279_vm1, %v7920_v60  ;;  %v8265_v16 = vpop.permute.xlu0 %8264 }
0x1ac5   : > { %v8378_v19 = vpop.permute.xlu1 %8377 }
0x1ac6   : > { %v8400_v36 = vsel %vm2100_vm0, %v8378_v19, 0 }
0x1ac8   : > { %v8376_v23 = vpop.permute.xlu0 %8375 }
0x1ac9   : > { %v8267_v26 = vpop.permute.xlu1 %8266  ;;  %v8397_v62 = vsel %vm2100_vm0, %v8376_v23, 0 }
0x1aca   : > { %12800 = vmatpush3.bf16.xpose.msra.mxu1 %v8292_v11 }
0x1acb   : > { %13008 = vmatprep.subr.msk.bf16.mxu1 %vm2100_vm0, %v8269_v6 }
0x1acc   : > { %v8366_v15 = vpop.permute.xlu0 %8365 }
0x1acd   : > { %v8374_v49 = vpop.permute.xlu1 %8373 }
0x1ace   : > { %v8394_v32 = vsel %vm2100_vm0, %v8374_v49, 0 }
0x1ad1   : > { %v8368_v60 = vpop.permute.xlu1 %8367 }
0x1ad2   : > { %12802 = vmatpush3.bf16.xpose.msra.mxu1 %v8289_v14  ;;  %v8370_v14 = vpop.permute.xlu0 %8369 }
0x1ad9   : > { %12804 = vmatmul.mubr.msk.bf16.vlgmr.msra.gmra.mxu1 %vm2100_vm0, %v8263_v8 }
0x1ada   : > { %12807 = vmatprep.mubr.msk.bf16.mxu1 %vm2100_vm0, %v8265_v16 }
0x1ae1   : > { %12808 = vmatmul.mubr.msk.bf16.gmra.mxu1 %vm2100_vm0, %v8267_v26  ;;  %v8372_v26 = vpop.permute.xlu1 %8371 }
0x1b79   : > { %v12769_v47 = vpop.f32.mrf.mxu1 }
0x1b7b   : > { %v8072_v57 = vpop.f32.mrf.mxu1 }
0x1b7c   : > { %v12753_v43 = vpop.f32.mrf.mxu0 }
0x1b7d   : > { %v12770_v25 = vpop.f32.mrf.mxu1 }
0x1b7e   : > { %v7983_v54 = vpop.f32.mrf.mxu0  ;;  %v8108_v20 = vpack.c.bf16 %v12770_v25, %v12769_v47 }
0x1b7f   : > { %v8075_v3 = vpop.f32.mrf.mxu1 }
0x1b80   : > { %v12754_v48 = vpop.f32.mrf.mxu0  ;;  %v8107_v58 = vpack.c.bf16 %v8075_v3, %v8072_v57 }
0x1b81   : > { %v8104_v39 = vpack.c.bf16 %v12754_v48, %v12753_v43  ;;  %v12773_v34 = vpop.f32.mrf.mxu1 }
0x1b82   : > { %v7986_v17 = vpop.f32.mrf.mxu0 }
0x1b83   : > { %v8103_v1 = vpack.c.bf16 %v7986_v17, %v7983_v54  ;;  %v8088_v59 = vpop.f32.mrf.mxu1 }
0x1b84   : > { %v12757_v33 = vpop.f32.mrf.mxu0 }
0x1b85   : > { %12779 = vmatprep.mubr.msk.bf16.mxu0 %vm2100_vm0, %v8103_v1  ;;  %v12774_v52 = vpop.f32.mrf.mxu1 }
0x1b86   : > { %v7999_v4 = vpop.f32.mrf.mxu0  ;;  %12780 = vmatmul.mubr.msk.bf16.vlgmr.msra.gmra.mxu0 %vm2100_vm0, %v8104_v39  ;;  %v8110_v27 = vpack.c.bf16 %v12774_v52, %v12773_v34 }
0x1b87   : > { %12812 = vmatpush3.bf16.xpose.msra.mxu0 %v8403_v63  ;;  %v8091_v0 = vpop.f32.mrf.mxu1 }
0x1b88   : > { %13010 = vmatprep.subr.msk.bf16.mxu0 %vm2100_vm0, %v8378_v19  ;;  %v12758_v38 = vpop.f32.mrf.mxu0  ;;  %v8109_v2 = vpack.c.bf16 %v8091_v0, %v8088_v59 }
0x1b89   : > { %v8106_v55 = vpack.c.bf16 %v12758_v38, %v12757_v33 }
0x1b8a   : > { %v8002_v51 = vpop.f32.mrf.mxu0 }
0x1b8b   : > { %v8105_v22 = vpack.c.bf16 %v8002_v51, %v7999_v4 }
0x1b8d   : > { %12783 = vmatprep.mubr.msk.bf16.mxu0 %vm2100_vm0, %v8105_v22 }
0x1b8e   : > { %12784 = vmatmul.mubr.msk.bf16.gmra.mxu0 %vm2100_vm0, %v8106_v55 }
0x1b8f   : > { %12814 = vmatpush3.bf16.xpose.msra.mxu0 %v8400_v36  ;;  %12787 = vmatprep.mubr.msk.bf16.mxu0 %vm2100_vm0, %v8107_v58 }
0x1b90   : > { %13011 = vmatprep.subr.msk.bf16.mxu0 %vm2100_vm0, %v8376_v23 }
0x1b96   : > { %12788 = vmatmul.mubr.msk.bf16.gmra.mxu0 %vm2100_vm0, %v8108_v20 }
0x1b97   : > { %12816 = vmatpush3.bf16.xpose.msra.mxu0 %v8397_v62  ;;  %12791 = vmatprep.mubr.msk.bf16.mxu0 %vm2100_vm0, %v8109_v2 }
0x1b98   : > { %13012 = vmatprep.subr.msk.bf16.mxu0 %vm2100_vm0, %v8374_v49 }
0x1b99   : > { %v12805_v28 = vpop.f32.mrf.mxu1 }
0x1b9a   : > { %v8476_v10 = vsel %vm2279_vm1, %v12805_v28, -inf }
0x1b9b   : > { %8477 = vmax.xlane.f32.xlu0 %v8476_v10  ;;  %v8334_v18 = vpop.f32.mrf.mxu1 }
0x1b9c   : > { %v8470_v45 = vsel %vm2279_vm1, %v8334_v18, -inf }
0x1b9d   : > { %v12806_v35 = vpop.f32.mrf.mxu1 }
0x1b9e   : > { %12792 = vmatmul.mubr.msk.bf16.gmra.mxu0 %vm2100_vm0, %v8110_v27  ;;  %v8479_v37 = vsel %vm2279_vm1, %v12806_v35, -inf }
0x1b9f   : > { %8471 = vmax.xlane.f32.xlu0 %v8470_v45  ;;  %v8337_v12 = vpop.f32.mrf.mxu1  ;;  %12818 = vmatpush3.bf16.xpose.msra.mxu0 %v8394_v32 }
0x1ba0   : > { %12819 = vmatprep.mubr.msk.bf16.mxu0 %vm2100_vm0, %v8366_v15  ;;  %v8473_v21 = vsel %vm2279_vm1, %v8337_v12, -inf }
0x1ba1   : > { %8474 = vmax.xlane.f32.xlu1 %v8473_v21  ;;  %v12809_v61 = vpop.f32.mrf.mxu1 }
0x1ba2   : > { %v8488_v11 = vsel %vm2279_vm1, %v12809_v61, -inf }
0x1ba3   : > { %8480 = vmax.xlane.f32.xlu0 %v8479_v37  ;;  %v8350_v30 = vpop.f32.mrf.mxu1 }
0x1ba4   : > { %v8482_v16 = vsel %vm2279_vm1, %v8350_v30, -inf }
0x1ba5   : > { %v12810_v9 = vpop.f32.mrf.mxu1 }
0x1ba6   : > { %v8491_v6 = vsel %vm2279_vm1, %v12810_v9, -inf  ;;  %12820 = vmatmul.mubr.msk.bf16.vlgmr.msra.gmra.mxu0 %vm2100_vm0, %v8368_v60 }
0x1ba7   : > { %8489 = vmax.xlane.f32.xlu0 %v8488_v11  ;;  %8492 = vmax.xlane.f32.xlu1 %v8491_v6  ;;  %v8353_v8 = vpop.f32.mrf.mxu1 }
0x1ba8   : > { %12823 = vmatprep.mubr.msk.bf16.mxu0 %vm2100_vm0, %v8370_v14  ;;  %v8485_v19 = vsel %vm2279_vm1, %v8353_v8, -inf }
0x1bab   : > { %8483 = vmax.xlane.f32.xlu0 %v8482_v16  ;;  %8486 = vmax.xlane.f32.xlu1 %v8485_v19 }
0x1bae   : > { %12824 = vmatmul.mubr.msk.bf16.gmra.mxu0 %vm2100_vm0, %v8372_v26 }
0x1c24   : > { %v8478_v47 = vpop.xlane.xlu0 %8477 }
0x1c25   : > { %v8520_v57 = vsub.f32 %v12805_v28, %v8478_v47 }
0x1c27   : > { %v8538_v43 = vmul.f32 1.442695, %v8520_v57  ;;  %v7509_v57 = vadd.f32 %v18154_v50, %v18194_v7 }
0x1c28   : > { %v8472_v25 = vpop.xlane.xlu0 %8471 }
0x1c29   : > { %13794 = vpow2.f32 %v8538_v43  ;;  %v8518_v54 = vsub.f32 %v8334_v18, %v8472_v25  ;;  %v7501_v43 = vadd.f32 %v18156_v53, %v18196_v5 }
0x1c2a   : > { %v8475_v48 = vpop.xlane.xlu1 %8474 }
0x1c2b   : > { %v8534_v3 = vmul.f32 1.442695, %v8518_v54  ;;  %v8519_v17 = vsub.f32 %v8337_v12, %v8475_v48  ;;  %v7512_v54 = vadd.f32 %v18160_v13, %v18198_v29 }
0x1c2c   : > { %v8481_v1 = vpop.xlane.xlu0 %8480 }
0x1c2d   : > { %13796 = vpow2.f32 %v8534_v3  ;;  %v8521_v39 = vsub.f32 %v12806_v35, %v8481_v1  ;;  %v8536_v33 = vmul.f32 1.442695, %v8519_v17  ;;  %v19762_v1 = vld [vmem:[#allocation64_spill] sm:$0xff] }
0x1c2f   : > { %v8540_v34 = vmul.f32 1.442695, %v8521_v39  ;;  %v19763_v39 = vld [vmem:[#allocation69_spill] sm:$0xff] }
0x1c30   : > { %v8490_v4 = vpop.xlane.xlu0 %8489  ;;  %v8493_v63 = vpop.xlane.xlu1 %8492  ;;  %v7525_v50 = vadd.f32 %v19763_v39, %v19762_v1 }
0x1c31   : > { %13798 = vpow2.f32 %v8540_v34  ;;  %v8524_v58 = vsub.f32 %v12809_v61, %v8490_v4  ;;  %v8525_v2 = vsub.f32 %v12810_v9, %v8493_v63  ;;  %v19765_v34 = vld [vmem:[#allocation70_spill] sm:$0xff] }
0x1c32   : > { %13800 = vpow2.f32 %v8536_v33  ;;  %v19764_v33 = vld [vmem:[#allocation63_spill] sm:$0xff]  ;;  %v19766_v63 = vld [vmem:[#allocation86_spill] sm:$0xff] }
0x1c33   : > { %v8546_v20 = vmul.f32 1.442695, %v8524_v58  ;;  %v8548_v28 = vmul.f32 1.442695, %v8525_v2  ;;  %v7517_v53 = vadd.f32 %v19765_v34, %v19764_v33 }
0x1c34   : > { %v8484_v38 = vpop.xlane.xlu0 %8483  ;;  %v8487_v51 = vpop.xlane.xlu1 %8486 }
0x1c35   : > { %v8522_v59 = vsub.f32 %v8350_v30, %v8484_v38  ;;  %v8523_v55 = vsub.f32 %v8353_v8, %v8487_v51  ;;  %v19767_v38 = vld [vmem:[#allocation72_spill] sm:$0xff] }
0x1c36   : > { %v18440_v22 = vpop.eup %13794  ;;  %v7528_v13 = vadd.f32 %v19767_v38, %v19766_v63 }
0x1c37   : > { %v8542_v52 = vmul.f32 1.442695, %v8522_v59  ;;  %v8572_v36 = vsel %vm2279_vm1, %v18440_v22, 0.0  ;;  %v8544_v23 = vmul.f32 1.442695, %v8523_v55 }
0x1c38   : > { %8573 = vadd.xlane.f32.xlu0 %v8572_v36 }
0x1c39   : > { %13802 = vpow2.f32 %v8542_v52 }
0x1c3a   : > { %v18444_v0 = vpop.eup %13796  ;;  %13804 = vpow2.f32 %v8544_v23 }
0x1c3b   : > { %v8566_v62 = vsel %vm2279_vm1, %v18444_v0, 0.0  ;;  %13806 = vpow2.f32 %v8546_v20 }
0x1c3c   : > { %8567 = vadd.xlane.f32.xlu0 %v8566_v62  ;;  %13808 = vpow2.f32 %v8548_v28 }
0x1c3e   : > { %v18448_v49 = vpop.eup %13798 }
0x1c3f   : > { %v8575_v10 = vsel %vm2279_vm1, %v18448_v49, 0.0  ;;  %v18452_v18 = vpop.eup %13800 }
0x1c40   : > { %8576 = vadd.xlane.f32.xlu1 %v8575_v10  ;;  %v8569_v27 = vsel %vm2279_vm1, %v18452_v18, 0.0 }
0x1c44   : > { %8570 = vadd.xlane.f32.xlu1 %v8569_v27 }
0x1c46   : > { %v18456_v35 = vpop.eup %13802  ;;  %v12781_v45 = vpop.f32.mrf.mxu0 }
0x1c47   : > { %v8578_v15 = vsel %vm2279_vm1, %v18456_v35, 0.0  ;;  %v18460_v32 = vpop.eup %13804  ;;  %v18463_v12 = vadd.f32 %v12781_v45, %v18132_v31 }
0x1c48   : > { %8579 = vadd.xlane.f32.xlu1 %v8578_v15  ;;  %v8181_v21 = vpop.f32.mrf.mxu0  ;;  %v8581_v30 = vsel %vm2279_vm1, %v18460_v32, 0.0  ;;  %v18470_v9 = vpop.eup %13806 }
0x1c49   : > { %v18466_v61 = vadd.f32 %v8181_v21, %v18136_v56  ;;  %v8584_v31 = vsel %vm2279_vm1, %v18470_v9, 0.0  ;;  %v18479_v14 = vpop.eup %13808 }
0x1c4a   : > { %v12782_v37 = vpop.f32.mrf.mxu0 }
0x1c4b   : > { %v18473_v60 = vadd.f32 %v12782_v37, %v18140_v44  ;;  %v8587_v44 = vsel %vm2279_vm1, %v18479_v14, 0.0 }
0x1c4c   : > { %8582 = vadd.xlane.f32.xlu1 %v8581_v30  ;;  %v18475_v11 = vpop.f32.mrf.mxu0  ;;  %v19768_v30 = vld [vmem:[#allocation83_spill] sm:$0xff] }
0x1c4e   : > { %v12785_v6 = vpop.f32.mrf.mxu0 }
0x1c4f   : > { %v18482_v56 = vadd.f32 %v12785_v6, %v18144_v41  ;;  %v19769_v6 = vld [vmem:[#allocation87_spill] sm:$0xff] }
0x1c50   : > { %8585 = vadd.xlane.f32.xlu1 %v8584_v31  ;;  %v8197_v8 = vpop.f32.mrf.mxu0 }
0x1c51   : > { %v18485_v16 = vadd.f32 %v8197_v8, %v18147_v46 }
0x1c52   : > { %v12786_v19 = vpop.f32.mrf.mxu0 }
0x1c53   : > { %v18490_v26 = vadd.f32 %v12786_v19, %v18150_v42  ;;  %v19770_v19 = vld [vmem:[#allocation93_spill] sm:$0xff] }
0x1c54   : > { %8588 = vadd.xlane.f32.xlu1 %v8587_v44  ;;  %v18492_v47 = vpop.f32.mrf.mxu0  ;;  %v19771_v44 = vld [vmem:[#allocation78_spill] sm:$0xff] }
0x1c56   : > { %v12789_v41 = vpop.f32.mrf.mxu0 }
0x1c57   : > { %v18498_v25 = vadd.f32 %v12789_v41, %v7509_v57  ;;  %v19772_v41 = vld [vmem:[#allocation85_spill] sm:$0xff] }
0x1c58   : > { %v8213_v46 = vpop.f32.mrf.mxu0 }
0x1c59   : > { %v18502_v48 = vadd.f32 %v8213_v46, %v7501_v43 }
0x1c5a   : > { %v12790_v42 = vpop.f32.mrf.mxu0 }
0x1c5b   : > { %v18504_v3 = vadd.f32 %v12790_v42, %v7512_v54 }
0x1c5c   : > { %v18506_v17 = vpop.f32.mrf.mxu0 }
0x1c5e   : > { %v12793_v7 = vpop.f32.mrf.mxu0 }
0x1c5f   : > { %v18512_v5 = vadd.f32 %v12793_v7, %v7525_v50 }
0x1c60   : > { %v8229_v4 = vpop.f32.mrf.mxu0 }
0x1c61   : > { %v18516_v29 = vadd.f32 %v8229_v4, %v7517_v53 }
0x1c62   : > { %v12794_v59 = vpop.f32.mrf.mxu0 }
0x1c63   : > { %v18518_v51 = vadd.f32 %v12794_v59, %v7528_v13 }
0x1c64   : > { %v18520_v55 = vpop.f32.mrf.mxu0 }
0x1c66   : > { %v12821_v58 = vpop.f32.mrf.mxu0 }
0x1c67   : > { %v8500_v52 = vsel %vm2279_vm1, %v12821_v58, -inf }
0x1c68   : > { %8501 = vmax.xlane.f32.xlu0 %v8500_v52  ;;  %v18523_v36 = vpop.f32.mrf.mxu0 }
0x1c69   : > { %v8494_v20 = vsel %vm2279_vm1, %v18523_v36, -inf }
0x1c6a   : > { %v18525_v23 = vpop.f32.mrf.mxu0 }
0x1c6b   : > { %v8503_v2 = vsel %vm2279_vm1, %v18525_v23, -inf }
0x1c6c   : > { %8495 = vmax.xlane.f32.xlu0 %v8494_v20  ;;  %v18531_v62 = vpop.f32.mrf.mxu0  ;;  %8504 = vmax.xlane.f32.xlu1 %v8503_v2 }
0x1c6d   : > { %v8497_v10 = vsel %vm2279_vm1, %v18531_v62, -inf }
0x1c6e   : > { %v18533_v28 = vpop.f32.mrf.mxu0 }
0x1c6f   : > { %v8512_v31 = vsel %vm2279_vm1, %v18533_v28, -inf }
0x1c70   : > { %v18537_v27 = vpop.f32.mrf.mxu0  ;;  %8498 = vmax.xlane.f32.xlu1 %v8497_v10 }
0x1c71   : > { %v8506_v8 = vsel %vm2279_vm1, %v18537_v27, -inf }
0x1c72   : > { %v18539_v45 = vpop.f32.mrf.mxu0 }
0x1c73   : > { %v8515_v15 = vsel %vm2279_vm1, %v18539_v45, -inf }
0x1c74   : > { %v18543_v21 = vpop.f32.mrf.mxu0  ;;  %8516 = vmax.xlane.f32.xlu1 %v8515_v15 }
0x1c75   : > { %v8509_v37 = vsel %vm2279_vm1, %v18543_v21, -inf }
0x1c78   : > { %8510 = vmax.xlane.f32.xlu1 %v8509_v37 }
0x1c82   : > { %8660 = vrot.lane.b32.xlu0 %v19768_v30, %s14640_s0 }
0x1c89   : > { %8658 = vrot.lane.b32.xlu1 %v19769_v6, %s14640_s0 }
0x1ca1   : > { %8513 = vmax.xlane.f32.xlu0 %v8512_v31 }
0x1ca5   : > { %8507 = vmax.xlane.f32.xlu0 %v8506_v8 }
0x1cbb   : > { %8656 = vrot.lane.b32.xlu0 %v19770_v19, %s14640_s0 }
0x1cbf   : > { %8654 = vrot.lane.b32.xlu0 %v19771_v44, %s14640_s0 }
0x1cc1   : > { %v8574_v57 = vpop.xlane.xlu0 %8573 }
0x1cc2   : > { %13810 = vrcp.f32 %v8574_v57 }
0x1cc3   : > { %8749 = vrot.lane.b32.xlu0 %v19772_v41, %s14640_s0 }
0x1cc5   : > { %v8568_v43 = vpop.xlane.xlu0 %8567 }
0x1cc9   : > { %v8577_v46 = vpop.xlane.xlu1 %8576 }
0x1cca   : > { %13812 = vrcp.f32 %v8577_v46 }
0x1ccb   : > { %13814 = vrcp.f32 %v8568_v43 }
0x1ccd   : > { %v8571_v54 = vpop.xlane.xlu1 %8570 }
0x1cce   : > { %13816 = vrcp.f32 %v8571_v54 }
0x1ccf   : > { %v13811_v1 = vpop.eup %13810 }
0x1cd0   : > { %v18562_v7 = vmul.f32 %v13811_v1, %v18440_v22 }
0x1cd1   : > { %v8580_v42 = vpop.xlane.xlu1 %8579 }
0x1cd2   : > { %13818 = vrcp.f32 %v8580_v42 }
0x1cd5   : > { %v8583_v39 = vpop.xlane.xlu1 %8582 }
0x1cd6   : > { %13820 = vrcp.f32 %v8583_v39 }
0x1cd7   : > { %v13813_v50 = vpop.eup %13812 }
0x1cd8   : > { %v18565_v33 = vmul.f32 %v13813_v50, %v18448_v49  ;;  %v13815_v34 = vpop.eup %13814 }
0x1cd9   : > { %v8630_v63 = vmul.f32 %v13815_v34, %v18444_v0  ;;  %v8586_v2 = vpop.xlane.xlu1 %8585 }
0x1cda   : > { %v8647_v53 = vpack.c.bf16 %v18565_v33, %v18562_v7 }
0x1cdb   : > { %v13817_v4 = vpop.eup %13816 }
0x1cdc   : > { %v8631_v38 = vmul.f32 %v13817_v4, %v18452_v18 }
0x1cdd   : > { %v8589_v10 = vpop.xlane.xlu1 %8588 }
0x1cde   : > { %v8646_v13 = vpack.c.bf16 %v8631_v38, %v8630_v63 }
0x1cdf   : > { %v13819_v59 = vpop.eup %13818 }
0x1ce0   : > { %12835 = vmatprep.mubr.msk.bf16.mxu1 %vm2279_vm1, %v8646_v13  ;;  %v18573_v22 = vmul.f32 %v13819_v59, %v18456_v35 }
0x1ce3   : > { %v13821_v52 = vpop.eup %13820 }
0x1ce4   : > { %v18576_v49 = vmul.f32 %v13821_v52, %v18460_v32 }
0x1ce6   : > { %v8648_v20 = vpack.c.bf16 %v18576_v49, %v18573_v22 }
0x1cf1   : > { %v8502_v15 = vpop.xlane.xlu0 %8501 }
0x1cf2   : > { %v8528_v0 = vsub.f32 %v12821_v58, %v8502_v15 }
0x1cf4   : > { %v8554_v37 = vmul.f32 1.442695, %v8528_v0 }
0x1cf5   : > { %v8496_v18 = vpop.xlane.xlu0 %8495  ;;  %v8505_v30 = vpop.xlane.xlu1 %8504 }
0x1cf6   : > { %13822 = vpow2.f32 %v8554_v37  ;;  %v8526_v6 = vsub.f32 %v18523_v36, %v8496_v18  ;;  %v8529_v31 = vsub.f32 %v18525_v23, %v8505_v30  ;;  %v13229_v30 = vld [vmem:[%s15493_s19 + $0x30] sm:$0xff]  }
0x1cf8   : > { %v8550_v35 = vmul.f32 1.442695, %v8526_v6  ;;  %v8556_v8 = vmul.f32 1.442695, %v8529_v31 }
0x1cf9   : > { %v8661_v19 = vpop.permute.xlu0 %8660  ;;  %v8499_v32 = vpop.xlane.xlu1 %8498 }
0x1cfa   : > { %13824 = vpow2.f32 %v8550_v35  ;;  %v8527_v44 = vsub.f32 %v18531_v62, %v8499_v32  ;;  %12827 = vmatprep.subr.bf16.mxu1 %v8661_v19 }
0x1cfb   : > { %12828 = vmatpush3.bf16.msra.mxu1 %v8661_v19  ;;  %13826 = vpow2.f32 %v8556_v8 }
0x1cfc   : > { %v8552_v57 = vmul.f32 1.442695, %v8527_v44 }
0x1cfd   : > { %v8517_v58 = vpop.xlane.xlu1 %8516 }
0x1cfe   : > { %13828 = vpow2.f32 %v8552_v57  ;;  %v8533_v4 = vsub.f32 %v18539_v45, %v8517_v58 }
0x1cff   : > { %13830 = vrcp.f32 %v8589_v10 }
0x1d00   : > { %13832 = vrcp.f32 %v8586_v2  ;;  %v8564_v59 = vmul.f32 1.442695, %v8533_v4 }
0x1d01   : > { %v8511_v41 = vpop.xlane.xlu1 %8510 }
0x1d02   : > { %v8531_v52 = vsub.f32 %v18543_v21, %v8511_v41 }
0x1d03   : > { %v18583_v43 = vpop.eup %13822 }
0x1d04   : > { %v8596_v36 = vsel %vm2279_vm1, %v18583_v43, 0.0 }
0x1d05   : > { %8597 = vadd.xlane.f32.xlu0 %v8596_v36  ;;  %v8659_v23 = vpop.permute.xlu1 %8658 }
0x1d06   : > { %12829 = vmatprep.subr.bf16.mxu1 %v8659_v23 }
0x1d07   : > { %v18587_v46 = vpop.eup %13824  ;;  %12830 = vmatpush3.bf16.msra.mxu1 %v8659_v23 }
0x1d08   : > { %v8590_v62 = vsel %vm2279_vm1, %v18587_v46, 0.0  ;;  %v18591_v54 = vpop.eup %13826 }
0x1d09   : > { %8591 = vadd.xlane.f32.xlu0 %v8590_v62  ;;  %v8599_v1 = vsel %vm2279_vm1, %v18591_v54, 0.0 }
0x1d0b   : > { %v18593_v42 = vpop.eup %13828 }
0x1d0c   : > { %v8593_v39 = vsel %vm2279_vm1, %v18593_v42, 0.0  ;;  %v13831_v45 = vpop.eup %13830 }
0x1d0d   : > { %8600 = vadd.xlane.f32.xlu0 %v8599_v1  ;;  %8594 = vadd.xlane.f32.xlu1 %v8593_v39  ;;  %v13833_v10 = vpop.eup %13832  ;;  %v8637_v0 = vmul.f32 %v13831_v45, %v18479_v14  ;;  %v19773_v14 = vld [vmem:[#allocation81_spill] sm:$0xff] }
0x1d0e   : > { %v8636_v7 = vmul.f32 %v13833_v10, %v18470_v9  ;;  %v13228_v9 = vld [vmem:[%s15493_s19 + $0x38] sm:$0xff]  }
0x1d10   : > { %v8649_v37 = vpack.c.bf16 %v8637_v0, %v8636_v7 }
0x1d23   : > { %8745 = vrot.lane.b32.xlu0 %v17490_v40, %s14640_s0 }
0x1d27   : > { %8743 = vrot.lane.b32.xlu0 %v17459_v24, %s14640_s0  ;;  %v8560_v24 = vmul.f32 1.442695, %v8531_v52 }
0x1d2a   : > { %v8514_v50 = vpop.xlane.xlu0 %8513 }
0x1d2b   : > { %v8532_v34 = vsub.f32 %v18533_v28, %v8514_v50 }
0x1d2d   : > { %v8562_v63 = vmul.f32 1.442695, %v8532_v34 }
0x1d2e   : > { %v8508_v38 = vpop.xlane.xlu0 %8507 }
0x1d2f   : > { %13834 = vpow2.f32 %v8562_v63  ;;  %v8530_v13 = vsub.f32 %v18537_v27, %v8508_v38 }
0x1d31   : > { %v8558_v15 = vmul.f32 1.442695, %v8530_v13 }
0x1d32   : > { %v8657_v40 = vpop.permute.xlu0 %8656 }
0x1d33   : > { %13836 = vpow2.f32 %v8558_v15  ;;  %12831 = vmatprep.subr.bf16.mxu1 %v8657_v40 }
0x1d34   : > { %12832 = vmatpush3.bf16.msra.mxu1 %v8657_v40  ;;  %13838 = vpow2.f32 %v8564_v59 }
0x1d35   : > { %13840 = vpow2.f32 %v8560_v24 }
0x1d36   : > { %v8655_v28 = vpop.permute.xlu0 %8654 }
0x1d37   : > { %12833 = vmatprep.subr.bf16.mxu1 %v8655_v28 }
0x1d38   : > { %12834 = vmatpush3.bf16.msra.mxu1 %v8655_v28 }
0x1d39   : > { %12859 = vmatprep.subr.bf16.mxu1 %v13228_v9 }
0x1d3a   : > { %v8750_v2 = vpop.permute.xlu0 %8749 }
0x1d3b   : > { %12836 = vmatmul.mubr.msk.bf16.vlgmr.msra.gmra.mxu1 %vm2279_vm1, %v8647_v53  ;;  %12843 = vmatprep.subr.bf16.mxu0 %v8750_v2 }
0x1d3c   : > { %v18611_v27 = vpop.eup %13834  ;;  %12839 = vmatprep.mubr.msk.bf16.mxu1 %vm2279_vm1, %v8648_v20  ;;  %12844 = vmatpush3.bf16.msra.mxu0 %v8750_v2  ;;  %v19774_v2 = vmov 0  }
0x1d3d   : > { %v8608_v21 = vsel %vm2279_vm1, %v18611_v27, 0.0  ;;  %12860 = vmatpush3.bf16.msra.mxu1 %v13228_v9 }
0x1d3e   : > { %8609 = vadd.xlane.f32.xlu1 %v8608_v21  ;;  %12861 = vmatprep.subr.bf16.mxu1 %v13229_v30 }
0x1d40   : > { %v13837_v33 = vpop.eup %13836 }
0x1d41   : > { %v8602_v53 = vsel %vm2279_vm1, %v13837_v33, 0.0  ;;  %v13839_v18 = vpop.eup %13838  ;;  %12862 = vmatpush3.bf16.msra.mxu1 %v13229_v30 }
0x1d42   : > { %8603 = vadd.xlane.f32.xlu1 %v8602_v53  ;;  %v8611_v22 = vsel %vm2279_vm1, %v13839_v18, 0.0  ;;  %v13841_v49 = vpop.eup %13840 }
0x1d43   : > { %12840 = vmatmul.mubr.msk.bf16.gmra.mxu1 %vm2279_vm1, %v8649_v37  ;;  %v8605_v20 = vsel %vm2279_vm1, %v13841_v49, 0.0 }
0x1d46   : > { %8612 = vadd.xlane.f32.xlu1 %v8611_v22 }
0x1d4a   : > { %8606 = vadd.xlane.f32.xlu1 %v8605_v20 }
0x1d5b   : > { %8747 = vrot.lane.b32.xlu1 %v19773_v14, %s14640_s0 }
0x1d8e   : > { %v8598_v6 = vpop.xlane.xlu0 %8597 }
0x1d92   : > { %v8592_v31 = vpop.xlane.xlu0 %8591 }
0x1d93   : > { %13842 = vrcp.f32 %v8592_v31 }
0x1d96   : > { %v8595_v35 = vpop.xlane.xlu1 %8594  ;;  %v8601_v41 = vpop.xlane.xlu0 %8600 }
0x1d97   : > { %13844 = vrcp.f32 %v8595_v35 }
0x1d98   : > { %13846 = vrcp.f32 %v8601_v41 }
0x1d99   : > { %13848 = vrcp.f32 %v8598_v6 }
0x1d9a   : > { %v8746_v1 = vpop.permute.xlu0 %8745 }
0x1d9e   : > { %v8744_v50 = vpop.permute.xlu0 %8743 }
0x1da0   : > { %v13843_v8 = vpop.eup %13842 }
0x1da1   : > { %v8638_v32 = vmul.f32 %v13843_v8, %v18587_v46 }
0x1da4   : > { %v13845_v19 = vpop.eup %13844 }
0x1da5   : > { %v8639_v44 = vmul.f32 %v13845_v19, %v18593_v42  ;;  %v13847_v46 = vpop.eup %13846 }
0x1da6   : > { %v13849_v42 = vpop.eup %13848  ;;  %v8641_v34 = vmul.f32 %v13847_v46, %v18591_v54  ;;  %v18654_v46 = vld [vmem:[%s19777_s28] ss:$0 sm:$0xff] }
0x1da7   : > { %v8650_v57 = vpack.c.bf16 %v8639_v44, %v8638_v32  ;;  %v8640_v63 = vmul.f32 %v13849_v42, %v18583_v43 }
0x1da9   : > { %12851 = vmatprep.mubr.msk.bf16.mxu0 %vm2279_vm1, %v8650_v57  ;;  %v8651_v13 = vpack.c.bf16 %v8641_v34, %v8640_v63 }
0x1dc7   : > { %v8610_v58 = vpop.xlane.xlu1 %8609 }
0x1dcb   : > { %v8604_v36 = vpop.xlane.xlu1 %8603 }
0x1dcc   : > { %13850 = vrcp.f32 %v8604_v36  ;;  %v19775_v36 = vld [vmem:[#allocation68_spill] sm:$0xff] }
0x1dcf   : > { %v8613_v23 = vpop.xlane.xlu1 %8612 }
0x1dd3   : > { %v8607_v62 = vpop.xlane.xlu1 %8606 }
0x1dd4   : > { %13852 = vrcp.f32 %v8607_v62 }
0x1dd5   : > { %13854 = vrcp.f32 %v8613_v23  ;;  %v19776_v23 = vld [vmem:[#allocation67_spill] sm:$0xff] }
0x1dd6   : > { %13856 = vrcp.f32 %v8610_v58  ;;  %v7472_v62 = vadd.f32 %v19776_v23, %v19775_v36 }
0x1dd7   : > { %v8748_v39 = vpop.permute.xlu1 %8747 }
0x1dd8   : > { %12845 = vmatprep.subr.bf16.mxu0 %v8748_v39 }
0x1dd9   : > { %12846 = vmatpush3.bf16.msra.mxu0 %v8748_v39  ;;  %v13851_v4 = vpop.eup %13850 }
0x1dda   : > { %12847 = vmatprep.subr.bf16.mxu0 %v8746_v1  ;;  %v8642_v59 = vmul.f32 %v13851_v4, %v13837_v33 }
0x1ddd   : > { %12848 = vmatpush3.bf16.msra.mxu0 %v8746_v1 }
0x1dde   : > { %12849 = vmatprep.subr.bf16.mxu0 %v8744_v50 }
0x1de1   : > { %v13853_v38 = vpop.eup %13852  ;;  %12850 = vmatpush3.bf16.msra.mxu0 %v8744_v50  ;;  %v8245_v50 = vadd.f32 %v18475_v11, %v7472_v62 }
0x1de2   : > { %v8643_v52 = vmul.f32 %v13853_v38, %v13841_v49  ;;  %v13855_v15 = vpop.eup %13854 }
0x1de3   : > { %v13857_v24 = vpop.eup %13856  ;;  %v8645_v28 = vmul.f32 %v13855_v15, %v13839_v18  ;;  %v19779_v15 = vld [vmem:[#allocation73_spill] sm:$0xff] }
0x1de4   : > { %12852 = vmatmul.mubr.msk.bf16.vlgmr.msra.gmra.mxu0 %vm2279_vm1, %v8651_v13  ;;  %v8652_v40 = vpack.c.bf16 %v8643_v52, %v8642_v59  ;;  %v8644_v45 = vmul.f32 %v13857_v24, %v18611_v27  ;;  %v19778_v59 = vld [vmem:[#allocation94_spill] sm:$0xff] }
0x1de6   : > { %12855 = vmatprep.mubr.msk.bf16.mxu0 %vm2279_vm1, %v8652_v40  ;;  %v8653_v54 = vpack.c.bf16 %v8645_v28, %v8644_v45  ;;  %v19780_v40 = vld [vmem:[#allocation96_spill] sm:$0xff] }
0x1de7   : > { %v7488_v24 = vadd.f32 %v19780_v40, %v19779_v15  ;;  %v19793_v15 = vld [vmem:[#allocation84_spill] sm:$0xff] }
0x1dec   : > { %12856 = vmatmul.mubr.msk.bf16.gmra.mxu0 %vm2279_vm1, %v8653_v54  ;;  %v19781_v54 = vld [vmem:[#allocation95_spill] sm:$0xff] }
0x1ded   : > { %9504 = vmatprep.mubr.bf16.mxu0 %v19774_v2 }
0x1dfb   : > { %v12837_v43 = vpop.f32.mrf.mxu1 }
0x1dfd   : > { %v8712_v10 = vpop.f32.mrf.mxu1 }
0x1dff   : > { %v12838_v21 = vpop.f32.mrf.mxu1 }
0x1e00   : > { %v8833_v33 = vpack.c.bf16 %v12838_v21, %v12837_v43 }
0x1e01   : > { %v8715_v0 = vpop.f32.mrf.mxu1 }
0x1e02   : > { %v8832_v7 = vpack.c.bf16 %v8715_v0, %v8712_v10  ;;  %v8249_v0 = vadd.f32 %v18492_v47, %v7488_v24  ;;  %v19794_v24 = vld [vmem:[#allocation91_spill] sm:$0xff] }
0x1e03   : > { %v12841_v53 = vpop.f32.mrf.mxu1 }
0x1e04   : > { %12863 = vmatprep.mubr.msk.bf16.mxu1 %vm2100_vm0, %v8832_v7 }
0x1e05   : > { %v8728_v37 = vpop.f32.mrf.mxu1  ;;  %12864 = vmatmul.mubr.msk.bf16.vlgmr.msra.gmra.mxu1 %vm2100_vm0, %v8833_v33 }
0x1e07   : > { %v12842_v18 = vpop.f32.mrf.mxu1 }
0x1e08   : > { %v8835_v49 = vpack.c.bf16 %v12842_v18, %v12841_v53  ;;  %v19783_v18 = vld [vmem:[#allocation89_spill] sm:$0xff] }
0x1e09   : > { %v8731_v22 = vpop.f32.mrf.mxu1 }
0x1e0a   : > { %v8834_v27 = vpack.c.bf16 %v8731_v22, %v8728_v37 }
0x1e0c   : > { %12867 = vmatprep.mubr.msk.bf16.mxu1 %vm2100_vm0, %v8834_v27 }
0x1e0d   : > { %12868 = vmatmul.mubr.msk.bf16.gmra.mxu1 %vm2100_vm0, %v8835_v49 }
0x1ea4   : > { %v12853_v20 = vpop.f32.mrf.mxu0 }
0x1ea6   : > { %v8801_v14 = vpop.f32.mrf.mxu0 }
0x1ea8   : > { %v12854_v9 = vpop.f32.mrf.mxu0 }
0x1ea9   : > { %v8837_v31 = vpack.c.bf16 %v12854_v9, %v12853_v20  ;;  %v19784_v20 = vld [vmem:[#allocation77_spill] sm:$0xff] }
0x1eaa   : > { %v8804_v30 = vpop.f32.mrf.mxu0 }
0x1eab   : > { %v8836_v6 = vpack.c.bf16 %v8804_v30, %v8801_v14 }
0x1eac   : > { %v12857_v35 = vpop.f32.mrf.mxu0 }
0x1ead   : > { %12871 = vmatprep.mubr.msk.bf16.mxu1 %vm2100_vm0, %v8836_v6  ;;  %v19787_v6 = vld [vmem:[#allocation80_spill] sm:$0xff] }
0x1eae   : > { %v8817_v8 = vpop.f32.mrf.mxu0  ;;  %12872 = vmatmul.mubr.msk.bf16.gmra.mxu1 %vm2100_vm0, %v8837_v31 }
0x1eb0   : > { %v12858_v19 = vpop.f32.mrf.mxu0 }
0x1eb1   : > { %v8839_v57 = vpack.c.bf16 %v12858_v19, %v12857_v35 }
0x1eb2   : > { %v8820_v32 = vpop.f32.mrf.mxu0 }
0x1eb3   : > { %v8838_v44 = vpack.c.bf16 %v8820_v32, %v8817_v8  ;;  %v19788_v32 = vld [vmem:[#allocation66_spill] sm:$0xff] }
0x1eb5   : > { %12875 = vmatprep.mubr.msk.bf16.mxu1 %vm2100_vm0, %v8838_v44  ;;  %v19789_v44 = vld [vmem:[#allocation90_spill] sm:$0xff] }
0x1eb6   : > { %12876 = vmatmul.mubr.msk.bf16.gmra.mxu1 %vm2100_vm0, %v8839_v57  ;;  %v7504_v57 = vadd.f32 %v19789_v44, %v19788_v32 }
0x1eb7   : > { %9617 = vmatprep.mubr.bf16.mxu1 %v19774_v2 }
0x1eb8   : > { %v8253_v23 = vadd.f32 %v18506_v17, %v7504_v57  ;;  %v19799_v57 = vld [vmem:[#allocation62_spill] sm:$0xff] }
0x1ec5   : > { %v12865_v58 = vpop.f32.mrf.mxu1 }
0x1ec6   : > { %v8975_v1 = vadd.f32 %v12865_v58, %v18463_v12 }
0x1ec7   : > { %v8910_v41 = vpop.f32.mrf.mxu1 }
0x1ec8   : > { %v8973_v39 = vadd.f32 %v8910_v41, %v18466_v61  ;;  %v8998_v63 = vadd.f32 %v18654_v46, %v8975_v1 }
0x1ec9   : > { %v12866_v42 = vpop.f32.mrf.mxu1 }
0x1eca   : > { %v8996_v34 = vadd.f32 %v18654_v46, %v8973_v39  ;;  %v8976_v38 = vadd.f32 %v12866_v42, %v18473_v60  ;;  %v18670_v43 = vadd.f32 %v8998_v63, %v19781_v54  ;;  %v19782_v60 = vld [vmem:[#allocation88_spill] sm:$0xff] }
0x1ecb   : > { %v8913_v4 = vpop.f32.mrf.mxu1 }
0x1ecc   : > { %v8974_v13 = vadd.f32 %v8913_v4, %v8245_v50  ;;  %v18661_v52 = vadd.f32 %v8996_v34, %v19778_v59  ;;  %v8999_v28 = vadd.f32 %v18654_v46, %v8976_v38  ;;  %v19790_v4 = vld [vmem:[#allocation58_spill] sm:$0xff] }
0x1ecd   : > { %v12869_v12 = vpop.f32.mrf.mxu1 }
0x1ece   : > { %v8997_v61 = vadd.f32 %v18654_v46, %v8974_v13  ;;  %9030 = vadd.xlane.f32.xlu0 %v18661_v52  ;;  %v8979_v7 = vadd.f32 %v12869_v12, %v18482_v56  ;;  %v18682_v22 = vadd.f32 %v8999_v28, %v19783_v18  ;;  %v19785_v56 = vld [vmem:[#allocation82_spill] sm:$0xff]  ;;  %v19792_v13 = vld [vmem:[#allocation71_spill] sm:$0xff] }
0x1ecf   : > { %v8926_v11 = vpop.f32.mrf.mxu1 }
0x1ed0   : > { %v8977_v45 = vadd.f32 %v8926_v11, %v18485_v16  ;;  %v18673_v10 = vadd.f32 %v8997_v61, %v19782_v60  ;;  %v9002_v47 = vadd.f32 %v18654_v46, %v8979_v7 }
0x1ed1   : > { %v12870_v21 = vpop.f32.mrf.mxu1 }
0x1ed2   : > { %9034 = vadd.xlane.f32.xlu0 %v18670_v43  ;;  %9032 = vadd.xlane.f32.xlu1 %v18673_v10  ;;  %v9000_v53 = vadd.f32 %v18654_v46, %v8977_v45  ;;  %v8980_v16 = vadd.f32 %v12870_v21, %v18490_v26  ;;  %v19786_v26 = vld [vmem:[#allocation79_spill] sm:$0xff] }
0x1ed3   : > { %v8929_v33 = vpop.f32.mrf.mxu1  ;;  %v18697_v30 = vadd.f32 %v9002_v47, %v19786_v26 }
0x1ed4   : > { %v8978_v37 = vadd.f32 %v8929_v33, %v8249_v0  ;;  %v9003_v49 = vadd.f32 %v18654_v46, %v8980_v16  ;;  %v18689_v14 = vadd.f32 %v9000_v53, %v19784_v20  ;;  %v19795_v0 = vld [vmem:[#allocation60_spill] sm:$0xff]  ;;  %v19796_v16 = vld [vmem:[#allocation59_spill] sm:$0xff] }
0x1ed6   : > { %v9001_v27 = vadd.f32 %v18654_v46, %v8978_v37  ;;  %9036 = vadd.xlane.f32.xlu0 %v18682_v22  ;;  %v18700_v31 = vadd.f32 %v9003_v49, %v19787_v6  ;;  %v19798_v6 = vld [vmem:[#allocation61_spill] sm:$0xff] }
0x1ed8   : > { %v18692_v9 = vadd.f32 %v9001_v27, %v19785_v56 }
0x1eda   : > { %9038 = vadd.xlane.f32.xlu0 %v18689_v14  ;;  %9040 = vadd.xlane.f32.xlu1 %v18692_v9 }
0x1ede   : > { %9042 = vadd.xlane.f32.xlu0 %v18697_v30  ;;  %9044 = vadd.xlane.f32.xlu1 %v18700_v31 }
0x1f57   : > { %v9031_v35 = vpop.xlane.xlu0 %9030 }
0x1f58   : > { %v9062_v21 = vmul.f32 0.0078125, %v9031_v35 }
0x1f5a   : > { %v18744_v27 = vsub.f32 %v18661_v52, %v9062_v21  ;;  %v13251_v21 = vld [vmem:[%s15509_s3 + $0x88] ss:$16 sps:$4 sm:$0xff]  }
0x1f5b   : > { %v9035_v1 = vpop.xlane.xlu0 %9034 }
0x1f5c   : > { %v9064_v47 = vmul.f32 0.0078125, %v9035_v1 }
0x1f5f   : > { %v9037_v28 = vpop.xlane.xlu0 %9036 }
0x1f60   : > { %v9065_v52 = vmul.f32 0.0078125, %v9037_v28  ;;  %v13245_v28 = vld [vmem:[%s15509_s3 + $0xa8] ss:$16 sps:$4 sm:$0xff]  }
0x1f63   : > { %v9039_v49 = vpop.xlane.xlu0 %9038 }
0x1f64   : > { %v9066_v44 = vmul.f32 0.0078125, %v9039_v49  ;;  %v13271_v49 = vld [vmem:[%s15509_s3 + $0x2c] ss:$16 sps:$4 sm:$0xff]  }
0x1f6e   : > { %v12873_v8 = vpop.f32.mrf.mxu1 }
0x1f6f   : > { %v8983_v58 = vadd.f32 %v12873_v8, %v18498_v25  ;;  %v18756_v8 = vsub.f32 %v18670_v43, %v9064_v47  ;;  %v13268_v47 = vld [vmem:[%s15509_s3 + $0x24] ss:$16 sps:$4 sm:$0xff]  }
0x1f70   : > { %v8942_v19 = vpop.f32.mrf.mxu1 }
0x1f71   : > { %v8981_v41 = vadd.f32 %v8942_v19, %v18502_v48  ;;  %v9006_v50 = vadd.f32 %v18654_v46, %v8983_v58  ;;  %v19791_v48 = vld [vmem:[#allocation92_spill] sm:$0xff]  ;;  %v9096_v43 = vmul.f32 %v18756_v8, %v18756_v8 }
0x1f72   : > { %v12874_v36 = vpop.f32.mrf.mxu1  ;;  %v7520_v17 = vadd.f32 %v19792_v13, %v19791_v48  ;;  %v13235_v48 = vld [vmem:[%s15509_s3 + $0xec] ss:$16 sps:$4 sm:$0xff]  }
0x1f73   : > { %v9004_v62 = vadd.f32 %v18654_v46, %v8981_v41  ;;  %v8984_v39 = vadd.f32 %v12874_v36, %v18504_v3  ;;  %v18723_v40 = vadd.f32 %v9006_v50, %v19793_v15  ;;  %v9043_v41 = vpop.xlane.xlu0 %9042  ;;  %v18768_v36 = vsub.f32 %v18682_v22, %v9065_v52  ;;  %9585 = vmatprep.subr.bf16.mxu1 %v13235_v48  ;;  %v13247_v15 = vld [vmem:[%s15509_s3 + $0xac] ss:$16 sps:$4 sm:$0xff]  }
0x1f74   : > { %v8945_v42 = vpop.f32.mrf.mxu1  ;;  %v8257_v54 = vadd.f32 %v18520_v55, %v7520_v17  ;;  %v9033_v55 = vpop.xlane.xlu1 %9032  ;;  %v13238_v17 = vld [vmem:[%s15509_s3 + $0xc4] ss:$16 sps:$4 sm:$0xff]   ;;  %v13277_v52 = vld [vmem:[%s15509_s3 + $0xc] ss:$16 sps:$4 sm:$0xff]  }
0x1f75   : > { %v8982_v34 = vadd.f32 %v8945_v42, %v8253_v23  ;;  %v18713_v63 = vadd.f32 %v9004_v62, %v19790_v4  ;;  %v9007_v59 = vadd.f32 %v18654_v46, %v8984_v39  ;;  %v9063_v20 = vmul.f32 0.0078125, %v9033_v55  ;;  %v13230_v4 = vld [vmem:[%s15509_s3 + $0xe0] ss:$16 sps:$4 sm:$0xff]  }
0x1f76   : > { %v12877_v38 = vpop.f32.mrf.mxu1  ;;  %v9068_v62 = vmul.f32 0.0078125, %v9043_v41  ;;  %v9097_v22 = vmul.f32 %v18768_v36, %v18768_v36  ;;  %v13260_v55 = vld [vmem:[%s15509_s3 + $0x40] ss:$16 sps:$4 sm:$0xff]  }
0x1f77   : > { %v9005_v25 = vadd.f32 %v18654_v46, %v8982_v34  ;;  %9046 = vadd.xlane.f32.xlu0 %v18713_v63  ;;  %v8987_v3 = vadd.f32 %v12877_v38, %v18512_v5  ;;  %v18759_v32 = vsub.f32 %v18673_v10, %v9063_v20  ;;  %v18773_v10 = vsub.f32 %v18689_v14, %v9066_v44  ;;  %v13232_v38 = vld [vmem:[%s15509_s3 + $0xe4] ss:$16 sps:$4 sm:$0xff]   ;;  %v13266_v20 = vld [vmem:[%s15509_s3 + $0x20] ss:$16 sps:$4 sm:$0xff]  }
0x1f78   : > { %v8958_v12 = vpop.f32.mrf.mxu1  ;;  %v9041_v19 = vpop.xlane.xlu1 %9040  ;;  %v18783_v50 = vsub.f32 %v18697_v30, %v9068_v62  ;;  %9472 = vmatprep.subr.bf16.mxu0 %v13232_v38 }
0x1f79   : > { %v8985_v61 = vadd.f32 %v8958_v12, %v18516_v29  ;;  %v18726_v11 = vadd.f32 %v9005_v25, %v19794_v24  ;;  %v18733_v29 = vadd.f32 %v9007_v59, %v19795_v0  ;;  %v9010_v7 = vadd.f32 %v18654_v46, %v8987_v3  ;;  %v13233_v25 = vld [vmem:[%s15509_s3 + $0xe8] ss:$16 sps:$4 sm:$0xff]   ;;  %9473 = vmatpush1.bf16.msra.mxu0 %v13230_v4  ;;  %v13241_v59 = vld [vmem:[%s15509_s3 + $0xcc] ss:$16 sps:$4 sm:$0xff]   ;;  %v13242_v24 = vld [vmem:[%s15509_s3 + $0xa0] ss:$16 sps:$4 sm:$0xff]  }
0x1f7a   : > { %v12878_v45 = vpop.f32.mrf.mxu1  ;;  %v9067_v23 = vmul.f32 0.0078125, %v9041_v19  ;;  %v9095_v1 = vmul.f32 %v18759_v32, %v18759_v32  ;;  %v9098_v34 = vmul.f32 %v18773_v10, %v18773_v10  ;;  %v9100_v30 = vmul.f32 %v18783_v50, %v18783_v50  ;;  %9586 = vmatpush1.bf16.msra.mxu1 %v13233_v25  ;;  %v13239_v12 = vld [vmem:[%s15509_s3 + $0xc8] ss:$16 sps:$4 sm:$0xff]   ;;  %9474 = vmatprep.subr.bf16.mxu0 %v13238_v17  ;;  %v13259_v0 = vld [vmem:[%s15509_s3 + $0x6c] ss:$16 sps:$4 sm:$0xff]  }
0x1f7b   : > { %v9008_v60 = vadd.f32 %v18654_v46, %v8985_v61  ;;  %9050 = vadd.xlane.f32.xlu0 %v18723_v40  ;;  %9048 = vadd.xlane.f32.xlu1 %v18726_v11  ;;  %v8988_v33 = vadd.f32 %v12878_v45, %v18518_v51  ;;  %v19797_v51 = vld [vmem:[#allocation65_spill] sm:$0xff]  ;;  %v13275_v19 = vld [vmem:[%s15509_s3 + $0x8] ss:$16 sps:$4 sm:$0xff]  }
0x1f7c   : > { %v8961_v5 = vpop.f32.mrf.mxu1  ;;  %v18748_v26 = vadd.f32 %v9010_v7, %v19797_v51  ;;  %v9045_v39 = vpop.xlane.xlu1 %9044  ;;  %v18780_v42 = vsub.f32 %v18692_v9, %v9067_v23  ;;  %9587 = vmatprep.subr.bf16.mxu1 %v13241_v59  ;;  %v13244_v61 = vld [vmem:[%s15509_s3 + $0xa4] ss:$16 sps:$4 sm:$0xff]   ;;  %v13254_v7 = vld [vmem:[%s15509_s3 + $0x60] ss:$16 sps:$4 sm:$0xff]  }
0x1f7d   : > { %v8986_v53 = vadd.f32 %v8961_v5, %v8257_v54  ;;  %v18738_v37 = vadd.f32 %v9008_v60, %v19796_v16  ;;  %v9011_v56 = vadd.f32 %v18654_v46, %v8988_v33  ;;  %v9069_v14 = vmul.f32 0.0078125, %v9045_v39  ;;  %v13250_v45 = vld [vmem:[%s15509_s3 + $0x84] ss:$16 sps:$4 sm:$0xff]   ;;  %v13253_v54 = vld [vmem:[%s15509_s3 + $0x8c] ss:$16 sps:$4 sm:$0xff]  }
0x1f7e   : > { %v9099_v13 = vmul.f32 %v18780_v42, %v18780_v42  ;;  %9588 = vmatpush1.bf16.msra.mxu1 %v13239_v12  ;;  %v13248_v60 = vld [vmem:[%s15509_s3 + $0x80] ss:$16 sps:$4 sm:$0xff]   ;;  %v13256_v5 = vld [vmem:[%s15509_s3 + $0x64] ss:$16 sps:$4 sm:$0xff]   ;;  %v13257_v33 = vld [vmem:[%s15509_s3 + $0x68] ss:$16 sps:$4 sm:$0xff]  }
0x1f7f   : > { %v9009_v18 = vadd.f32 %v18654_v46, %v8986_v53  ;;  %9052 = vadd.xlane.f32.xlu1 %v18733_v29  ;;  %9054 = vadd.xlane.f32.xlu0 %v18738_v37  ;;  %v9094_v46 = vmul.f32 %v18744_v27, %v18744_v27  ;;  %v18764_v58 = vadd.f32 %v9011_v56, %v19799_v57  ;;  %v13262_v53 = vld [vmem:[%s15509_s3 + $0x44] ss:$16 sps:$4 sm:$0xff]   ;;  %v13265_v16 = vld [vmem:[%s15509_s3 + $0x4c] ss:$16 sps:$4 sm:$0xff]   ;;  %v13269_v56 = vld [vmem:[%s15509_s3 + $0x28] ss:$16 sps:$4 sm:$0xff]  }
0x1f80   : > { %v18792_v9 = vsub.f32 %v18700_v31, %v9069_v14  ;;  %v13236_v31 = vld [vmem:[%s15509_s3 + $0xc0] ss:$16 sps:$4 sm:$0xff]   ;;  %9589 = vmatprep.subr.bf16.mxu1 %v13247_v15 }
0x1f81   : > { %v18751_v35 = vadd.f32 %v9009_v18, %v19798_v6  ;;  %9475 = vmatpush1.bf16.msra.mxu0 %v13236_v31  ;;  %v13263_v18 = vld [vmem:[%s15509_s3 + $0x48] ss:$16 sps:$4 sm:$0xff]   ;;  %v13272_v51 = vld [vmem:[%s15509_s3] ss:$16 sps:$4 sm:$0xff]   ;;  %v13274_v6 = vld [vmem:[%s15509_s3 + $0x4] ss:$16 sps:$4 sm:$0xff]  }
0x1f82   : > { %v9101_v3 = vmul.f32 %v18792_v9, %v18792_v9  ;;  %9476 = vmatprep.subr.bf16.mxu0 %v13244_v61  ;;  %9590 = vmatpush1.bf16.msra.mxu1 %v13245_v28  ;;  %s19842_s3 = scalar_lea.vmem [#allocation34], %s15445_s5 }
0x1f83   : > { %9058 = vadd.xlane.f32.xlu0 %v18748_v26  ;;  %9056 = vadd.xlane.f32.xlu1 %v18751_v35 }
0x1f84   : > { %9591 = vmatprep.subr.bf16.mxu1 %v13253_v54 }
0x1f85   : > { %9477 = vmatpush1.bf16.msra.mxu0 %v13242_v24 }
0x1f86   : > { %9478 = vmatprep.subr.bf16.mxu0 %v13250_v45  ;;  %9592 = vmatpush1.bf16.msra.mxu1 %v13251_v21 }
0x1f87   : > { %9110 = vadd.xlane.f32.xlu0 %v9094_v46  ;;  %9060 = vadd.xlane.f32.xlu1 %v18764_v58 }
0x1f88   : > { %9593 = vmatprep.subr.bf16.mxu1 %v13259_v0 }
0x1f89   : > { %9479 = vmatpush1.bf16.msra.mxu0 %v13248_v60 }
0x1f8a   : > { %9480 = vmatprep.subr.bf16.mxu0 %v13256_v5  ;;  %9594 = vmatpush1.bf16.msra.mxu1 %v13257_v33 }
0x1f8b   : > { %9114 = vadd.xlane.f32.xlu0 %v9096_v43  ;;  %9112 = vadd.xlane.f32.xlu1 %v9095_v1 }
0x1f8c   : > { %9595 = vmatprep.subr.bf16.mxu1 %v13265_v16 }
0x1f8d   : > { %9481 = vmatpush1.bf16.msra.mxu0 %v13254_v7 }
0x1f8e   : > { %9482 = vmatprep.subr.bf16.mxu0 %v13262_v53  ;;  %9596 = vmatpush1.bf16.msra.mxu1 %v13263_v18 }
0x1f8f   : > { %9118 = vadd.xlane.f32.xlu0 %v9098_v34  ;;  %9116 = vadd.xlane.f32.xlu1 %v9097_v22 }
0x1f90   : > { %9597 = vmatprep.subr.bf16.mxu1 %v13271_v49 }
0x1f91   : > { %9483 = vmatpush1.bf16.msra.mxu0 %v13260_v55 }
0x1f92   : > { %9484 = vmatprep.subr.bf16.mxu0 %v13268_v47  ;;  %9598 = vmatpush1.bf16.msra.mxu1 %v13269_v56 }
0x1f93   : > { %9122 = vadd.xlane.f32.xlu0 %v9100_v30  ;;  %9120 = vadd.xlane.f32.xlu1 %v9099_v13 }
0x1f94   : > { %9599 = vmatprep.subr.bf16.mxu1 %v13277_v52 }
0x1f95   : > { %9485 = vmatpush1.bf16.msra.mxu0 %v13266_v20 }
0x1f96   : > { %9486 = vmatprep.subr.bf16.mxu0 %v13274_v6  ;;  %9600 = vmatpush1.bf16.msra.mxu1 %v13275_v19 }
0x1f97   : > { %9124 = vadd.xlane.f32.xlu1 %v9101_v3 }
0x1f99   : > { %9487 = vmatpush1.bf16.msra.mxu0 %v13272_v51 }
0x2000   : > { %v9047_v44 = vpop.xlane.xlu0 %9046 }
0x2001   : > { %v9070_v46 = vmul.f32 0.0078125, %v9047_v44 }
0x2003   : > { %v18829_v57 = vsub.f32 %v18713_v63, %v9070_v46  ;;  %v18871_v46 = vld [vmem:[%s19800_s4] ss:$0 sm:$0xff] }
0x2004   : > { %v9051_v41 = vpop.xlane.xlu0 %9050  ;;  %v9049_v43 = vpop.xlane.xlu1 %9048 }
0x2005   : > { %v9072_v23 = vmul.f32 0.0078125, %v9051_v41  ;;  %v9071_v62 = vmul.f32 0.0078125, %v9049_v43  ;;  %v9102_v1 = vmul.f32 %v18829_v57, %v18829_v57 }
0x2007   : > { %v18834_v39 = vsub.f32 %v18723_v40, %v9072_v23  ;;  %v18837_v22 = vsub.f32 %v18726_v11, %v9071_v62  ;;  %9126 = vadd.xlane.f32.xlu0 %v9102_v1 }
0x2008   : > { %v9055_v14 = vpop.xlane.xlu0 %9054  ;;  %v9053_v34 = vpop.xlane.xlu1 %9052 }
0x2009   : > { %v9074_v4 = vmul.f32 0.0078125, %v9055_v14  ;;  %v9073_v38 = vmul.f32 0.0078125, %v9053_v34  ;;  %v9104_v63 = vmul.f32 %v18834_v39, %v18834_v39  ;;  %v9103_v25 = vmul.f32 %v18837_v22, %v18837_v22  ;;  %v18877_v34 = vld [vmem:[%s19801_s29] ss:$0 sm:$0xff] }
0x200b   : > { %v18844_v48 = vsub.f32 %v18738_v37, %v9074_v4  ;;  %v18847_v40 = vsub.f32 %v18733_v29, %v9073_v38  ;;  %9130 = vadd.xlane.f32.xlu0 %v9104_v63  ;;  %9128 = vadd.xlane.f32.xlu1 %v9103_v25 }
0x200c   : > { %v9059_v11 = vpop.xlane.xlu0 %9058  ;;  %v9057_v30 = vpop.xlane.xlu1 %9056 }
0x200d   : > { %v9076_v13 = vmul.f32 0.0078125, %v9059_v11  ;;  %v9075_v17 = vmul.f32 0.0078125, %v9057_v30  ;;  %v9106_v59 = vmul.f32 %v18844_v48, %v18844_v48  ;;  %v9105_v31 = vmul.f32 %v18847_v40, %v18847_v40 }
0x200f   : > { %v18854_v12 = vsub.f32 %v18748_v26, %v9076_v13  ;;  %v18857_v37 = vsub.f32 %v18751_v35, %v9075_v17  ;;  %9134 = vadd.xlane.f32.xlu0 %v9106_v59  ;;  %9132 = vadd.xlane.f32.xlu1 %v9105_v31 }
0x2010   : > { %v9111_v29 = vpop.xlane.xlu0 %9110  ;;  %v9061_v3 = vpop.xlane.xlu1 %9060 }
0x2011   : > { %v9142_v61 = vmul.f32 0.0078125, %v9111_v29  ;;  %v9077_v15 = vmul.f32 0.0078125, %v9061_v3  ;;  %v9108_v24 = vmul.f32 %v18854_v12, %v18854_v12  ;;  %v9107_v28 = vmul.f32 %v18857_v37, %v18857_v37 }
0x2013   : > { %v9158_v45 = vadd.f32 1e-06, %v9142_v61  ;;  %v18864_v54 = vsub.f32 %v18764_v58, %v9077_v15  ;;  %9138 = vadd.xlane.f32.xlu0 %v9108_v24  ;;  %9136 = vadd.xlane.f32.xlu1 %v9107_v28 }
0x2014   : > { %v9115_v26 = vpop.xlane.xlu0 %9114  ;;  %v9113_v35 = vpop.xlane.xlu1 %9112 }
0x2015   : > { %13858 = vrsqrt.f32 %v9158_v45  ;;  %v9144_v60 = vmul.f32 0.0078125, %v9115_v26  ;;  %v9143_v21 = vmul.f32 0.0078125, %v9113_v35  ;;  %v9109_v5 = vmul.f32 %v18864_v54, %v18864_v54 }
0x2017   : > { %v9159_v0 = vadd.f32 1e-06, %v9143_v21  ;;  %9140 = vadd.xlane.f32.xlu1 %v9109_v5  ;;  %v9160_v7 = vadd.f32 1e-06, %v9144_v60 }
0x2018   : > { %v9117_v33 = vpop.xlane.xlu1 %9116  ;;  %v9119_v53 = vpop.xlane.xlu0 %9118 }
0x2019   : > { %v9145_v16 = vmul.f32 0.0078125, %v9117_v33  ;;  %13860 = vrsqrt.f32 %v9159_v0  ;;  %v9146_v58 = vmul.f32 0.0078125, %v9119_v53  ;;  %v13278_v0 = vld [vmem:[%s15515_s10 + $0x78] sm:$0xff]  }
0x201a   : > { %13862 = vrsqrt.f32 %v9160_v7  ;;  %v13279_v7 = vld [vmem:[%s15515_s10 + $0xf8] sm:$0xff]   ;;  %11947 = vmatprep.subr.bf16.mxu0 %v13278_v0 }
0x201b   : > { %v9161_v55 = vadd.f32 1e-06, %v9145_v16  ;;  %v9162_v20 = vadd.f32 1e-06, %v9146_v58  ;;  %v13280_v33 = vld [vmem:[%s15515_s10 + $0x38] sm:$0xff]   ;;  %v13282_v16 = vld [vmem:[%s15515_s10 + $0x70] sm:$0xff]   ;;  %12011 = vmatprep.subr.bf16.mxu1 %v13279_v7 }
0x201c   : > { %v9121_v18 = vpop.xlane.xlu1 %9120  ;;  %v9123_v56 = vpop.xlane.xlu0 %9122  ;;  %v13281_v53 = vld [vmem:[%s15515_s10 + $0xb8] sm:$0xff]   ;;  %v13284_v58 = vld [vmem:[%s15515_s10 + $0x30] sm:$0xff]  }
0x201d   : > { %v9147_v47 = vmul.f32 0.0078125, %v9121_v18  ;;  %13864 = vrsqrt.f32 %v9161_v55  ;;  %v9148_v19 = vmul.f32 0.0078125, %v9123_v56  ;;  %v13283_v55 = vld [vmem:[%s15515_s10 + $0xf0] sm:$0xff]   ;;  %v13289_v56 = vld [vmem:[%s15515_s10 + $0xa8] sm:$0xff]  }
0x201e   : > { %v13285_v18 = vld [vmem:[%s15515_s10 + $0xb0] sm:$0xff]  }
0x201f   : > { %v9163_v49 = vadd.f32 1e-06, %v9147_v47  ;;  %v9164_v23 = vadd.f32 1e-06, %v9148_v19  ;;  %v13286_v47 = vld [vmem:[%s15515_s10 + $0x68] sm:$0xff]   ;;  %v13293_v19 = vld [vmem:[%s15515_s10 + $0xa0] sm:$0xff]  }
0x2020   : > { %v9125_v51 = vpop.xlane.xlu1 %9124 }
0x2021   : > { %13866 = vrsqrt.f32 %v9163_v49  ;;  %v9149_v52 = vmul.f32 0.0078125, %v9125_v51  ;;  %v13287_v49 = vld [vmem:[%s15515_s10 + $0xe8] sm:$0xff]   ;;  %v13290_v51 = vld [vmem:[%s15515_s10 + $0x60] sm:$0xff]  }
0x2022   : > { %v13859_v6 = vpop.eup %13858  ;;  %13868 = vrsqrt.f32 %v9162_v20  ;;  %v13288_v20 = vld [vmem:[%s15515_s10 + $0x28] sm:$0xff]  }
0x2023   : > { %v9190_v44 = vmul.f32 %v13859_v6, %v18744_v27  ;;  %v9165_v41 = vadd.f32 1e-06, %v9149_v52  ;;  %v13291_v6 = vld [vmem:[%s15515_s10 + $0xe0] sm:$0xff]  }
0x2024   : > { %v13292_v52 = vld [vmem:[%s15515_s10 + $0x20] sm:$0xff]  }
0x2025   : > { %v9212_v62 = vmul.f32 %v18871_v46, %v9190_v44  ;;  %13870 = vrsqrt.f32 %v9165_v41  ;;  %v13294_v44 = vld [vmem:[%s15515_s10 + $0x58] sm:$0xff]  }
0x2026   : > { %v13861_v43 = vpop.eup %13860  ;;  %13872 = vrsqrt.f32 %v9164_v23  ;;  %v13295_v41 = vld [vmem:[%s15515_s10 + $0xd8] sm:$0xff]  }
0x2027   : > { %v9191_v1 = vmul.f32 %v13861_v43, %v18759_v32  ;;  %v13863_v14 = vpop.eup %13862  ;;  %v18881_v27 = vadd.f32 %v18877_v34, %v9212_v62  ;;  %v13296_v43 = vld [vmem:[%s15515_s10 + $0x18] sm:$0xff]   ;;  %v13298_v62 = vld [vmem:[%s15515_s10 + $0x50] sm:$0xff]  }
0x2028   : > { %v9192_v25 = vmul.f32 %v13863_v14, %v18756_v8  ;;  %v13297_v23 = vld [vmem:[%s15515_s10 + $0x98] sm:$0xff]   ;;  %v13300_v14 = vld [vmem:[%s15515_s10 + $0x10] sm:$0xff]  }
0x2029   : > { %v9213_v4 = vmul.f32 %v18871_v46, %v9191_v1  ;;  %19802 = vst [vmem:[#allocation64_spill] sm:$0xff] %v18881_v27  ;;  %v13299_v1 = vld [vmem:[%s15515_s10 + $0xd0] sm:$0xff]  }
0x202a   : > { %v13865_v38 = vpop.eup %13864  ;;  %v9214_v17 = vmul.f32 %v18871_v46, %v9192_v25  ;;  %v13303_v25 = vld [vmem:[%s15515_s10 + $0xc8] sm:$0xff]  }
0x202b   : > { %v18884_v63 = vadd.f32 %v18877_v34, %v9213_v4  ;;  %v9193_v11 = vmul.f32 %v13865_v38, %v18768_v36  ;;  %v13301_v4 = vld [vmem:[%s15515_s10 + $0x90] sm:$0xff]   ;;  %v13302_v38 = vld [vmem:[%s15515_s10 + $0x48] sm:$0xff]  }
0x202c   : > { %v18899_v36 = vadd.f32 %v18877_v34, %v9214_v17  ;;  %v13308_v17 = vld [vmem:[%s15515_s10] sm:$0xff]  }
0x202d   : > { %19803 = vst [vmem:[#allocation69_spill] sm:$0xff] %v18884_v63  ;;  %v9282_v32 = vpack.c.bf16 %v18884_v63, %v18881_v27  ;;  %v9215_v30 = vmul.f32 %v18871_v46, %v9193_v11  ;;  %v13304_v11 = vld [vmem:[%s15515_s10 + $0x8] sm:$0xff]  }
0x202e   : > { %v13867_v13 = vpop.eup %13866  ;;  %19805 = vst [vmem:[#allocation70_spill] sm:$0xff] %v18899_v36 }
0x202f   : > { %9505 = vmatmul.mubr.bf16.vlgmr.msra.gmra.mxu0 %v9282_v32  ;;  %9618 = vmatmul.mubr.bf16.vlgmr.msra.gmra.mxu1 %v9282_v32  ;;  %v13869_v59 = vpop.eup %13868  ;;  %v18895_v31 = vadd.f32 %v18877_v34, %v9215_v30  ;;  %v9195_v8 = vmul.f32 %v13867_v13, %v18780_v42  ;;  %v13305_v32 = vld [vmem:[%s15515_s10 + $0x88] sm:$0xff]   ;;  %v13306_v30 = vld [vmem:[%s15515_s10 + $0x40] sm:$0xff]  }
0x2030   : > { %9514 = vmatprep.mubr.bf16.mxu0 %v19774_v2  ;;  %9627 = vmatprep.mubr.bf16.mxu1 %v19774_v2  ;;  %v9194_v29 = vmul.f32 %v13869_v59, %v18773_v10  ;;  %v13307_v13 = vld [vmem:[%s15515_s10 + $0xc0] sm:$0xff]  }
0x2031   : > { %19804 = vst [vmem:[#allocation63_spill] sm:$0xff] %v18895_v31  ;;  %v9283_v3 = vpack.c.bf16 %v18895_v31, %v18899_v36  ;;  %v9217_v61 = vmul.f32 %v18871_v46, %v9195_v8  ;;  %11948 = vmatpush3.bf16.msra.mxu0 %v13280_v33  ;;  %12012 = vmatpush3.bf16.msra.mxu1 %v13281_v53  ;;  %v13309_v59 = vld [vmem:[%s15515_s10 + $0x80] sm:$0xff]   ;;  %s19843_s10 = scalar_lea.vmem [#allocation35], %s15445_s5 }
0x2032   : > { %v13871_v15 = vpop.eup %13870  ;;  %v9216_v28 = vmul.f32 %v18871_v46, %v9194_v29  ;;  %11949 = vmatprep.subr.bf16.mxu0 %v13282_v16  ;;  %12013 = vmatprep.subr.bf16.mxu1 %v13283_v55 }
0x2033   : > { %v13873_v24 = vpop.eup %13872  ;;  %v18909_v42 = vadd.f32 %v18877_v34, %v9217_v61  ;;  %v9197_v10 = vmul.f32 %v13871_v15, %v18792_v9 }
0x2034   : > { %v18913_v45 = vadd.f32 %v18877_v34, %v9216_v28  ;;  %v9196_v26 = vmul.f32 %v13873_v24, %v18783_v50 }
0x2035   : > { %19806 = vst [vmem:[#allocation86_spill] sm:$0xff] %v18909_v42  ;;  %v9219_v60 = vmul.f32 %v18871_v46, %v9197_v10  ;;  %11950 = vmatpush3.bf16.msra.mxu0 %v13284_v58  ;;  %12014 = vmatpush3.bf16.msra.mxu1 %v13285_v18 }
0x2036   : > { %19807 = vst [vmem:[#allocation72_spill] sm:$0xff] %v18913_v45  ;;  %v9284_v35 = vpack.c.bf16 %v18909_v42, %v18913_v45  ;;  %v9218_v21 = vmul.f32 %v18871_v46, %v9196_v26  ;;  %11951 = vmatprep.subr.bf16.mxu0 %v13286_v47  ;;  %12015 = vmatprep.subr.bf16.mxu1 %v13287_v49 }
0x2037   : > { %9515 = vmatmul.mubr.bf16.gmra.mxu0 %v9283_v3  ;;  %9628 = vmatmul.mubr.bf16.gmra.mxu1 %v9283_v3  ;;  %v18923_v9 = vadd.f32 %v18877_v34, %v9219_v60 }
0x2038   : > { %9524 = vmatprep.mubr.bf16.mxu0 %v19774_v2  ;;  %9637 = vmatprep.mubr.bf16.mxu1 %v19774_v2  ;;  %v18926_v50 = vadd.f32 %v18877_v34, %v9218_v21 }
0x2039   : > { %19808 = vst [vmem:[#allocation83_spill] sm:$0xff] %v18923_v9  ;;  %11952 = vmatpush3.bf16.msra.mxu0 %v13288_v20  ;;  %12016 = vmatpush3.bf16.msra.mxu1 %v13289_v56 }
0x203a   : > { %19809 = vst [vmem:[#allocation87_spill] sm:$0xff] %v18926_v50  ;;  %v9285_v5 = vpack.c.bf16 %v18923_v9, %v18926_v50  ;;  %11953 = vmatprep.subr.bf16.mxu0 %v13290_v51  ;;  %12017 = vmatprep.subr.bf16.mxu1 %v13291_v6 }
0x203d   : > { %11954 = vmatpush3.bf16.msra.mxu0 %v13292_v52  ;;  %12018 = vmatpush3.bf16.msra.mxu1 %v13293_v19 }
0x203e   : > { %11955 = vmatprep.subr.bf16.mxu0 %v13294_v44  ;;  %12019 = vmatprep.subr.bf16.mxu1 %v13295_v41 }
0x203f   : > { %9525 = vmatmul.mubr.bf16.gmra.mxu0 %v9284_v35  ;;  %9638 = vmatmul.mubr.bf16.gmra.mxu1 %v9284_v35 }
0x2040   : > { %9534 = vmatprep.mubr.bf16.mxu0 %v19774_v2  ;;  %9647 = vmatprep.mubr.bf16.mxu1 %v19774_v2 }
0x2041   : > { %11956 = vmatpush3.bf16.msra.mxu0 %v13296_v43  ;;  %12020 = vmatpush3.bf16.msra.mxu1 %v13297_v23 }
0x2042   : > { %11957 = vmatprep.subr.bf16.mxu0 %v13298_v62  ;;  %12021 = vmatprep.subr.bf16.mxu1 %v13299_v1 }
0x2045   : > { %11958 = vmatpush3.bf16.msra.mxu0 %v13300_v14  ;;  %12022 = vmatpush3.bf16.msra.mxu1 %v13301_v4 }
0x2046   : > { %11959 = vmatprep.subr.bf16.mxu0 %v13302_v38  ;;  %12023 = vmatprep.subr.bf16.mxu1 %v13303_v25 }
0x2047   : > { %9535 = vmatmul.mubr.bf16.gmra.mxu0 %v9285_v5  ;;  %9648 = vmatmul.mubr.bf16.gmra.mxu1 %v9285_v5 }
0x2048   : > { %9544 = vmatprep.mubr.bf16.mxu0 %v19774_v2  ;;  %9657 = vmatprep.mubr.bf16.mxu1 %v19774_v2 }
0x2049   : > { %11960 = vmatpush3.bf16.msra.mxu0 %v13304_v11  ;;  %12024 = vmatpush3.bf16.msra.mxu1 %v13305_v32 }
0x204a   : > { %11961 = vmatprep.subr.bf16.mxu0 %v13306_v30  ;;  %12025 = vmatprep.subr.bf16.mxu1 %v13307_v13 }
0x204d   : > { %11962 = vmatpush3.bf16.msra.mxu0 %v13308_v17  ;;  %12026 = vmatpush3.bf16.msra.mxu1 %v13309_v59 }
0x2090   : > { %v9127_v8 = vpop.xlane.xlu0 %9126 }
0x2091   : > { %v9150_v29 = vmul.f32 0.0078125, %v9127_v8 }
0x2093   : > { %v9166_v3 = vadd.f32 1e-06, %v9150_v29 }
0x2094   : > { %v9131_v61 = vpop.xlane.xlu0 %9130  ;;  %v9129_v15 = vpop.xlane.xlu1 %9128 }
0x2095   : > { %13874 = vrsqrt.f32 %v9166_v3  ;;  %v9152_v24 = vmul.f32 0.0078125, %v9131_v61  ;;  %v9151_v28 = vmul.f32 0.0078125, %v9129_v15 }
0x2097   : > { %v9167_v10 = vadd.f32 1e-06, %v9151_v28  ;;  %v9168_v26 = vadd.f32 1e-06, %v9152_v24 }
0x2098   : > { %v9133_v35 = vpop.xlane.xlu1 %9132  ;;  %v9135_v60 = vpop.xlane.xlu0 %9134 }
0x2099   : > { %v9153_v21 = vmul.f32 0.0078125, %v9133_v35  ;;  %13876 = vrsqrt.f32 %v9167_v10  ;;  %v9154_v0 = vmul.f32 0.0078125, %v9135_v60  ;;  %v19811_v10 = vld [vmem:[#allocation74_spill] sm:$0xff]  ;;  %v9290_v35 = vld [vmem:[%s15552_s14] sm:$0xf]  ;;  %s19815_s14 = scalar_lea.vmem [#allocation32], %s15445_s5 }
0x209a   : > { %13878 = vrsqrt.f32 %v9168_v26  ;;  %v9306_v26 = vsub.s32 3, %v19811_v10 }
0x209b   : > { %v9169_v5 = vadd.f32 1e-06, %v9153_v21  ;;  %v9170_v16 = vadd.f32 1e-06, %v9154_v0  ;;  %v19812_v21 = vld [vmem:[#allocation76_spill] sm:$0xff]  ;;  %v19813_v0 = vld [vmem:[#allocation75_spill] sm:$0xff] }
0x209c   : > { %v9137_v7 = vpop.xlane.xlu1 %9136  ;;  %v9139_v55 = vpop.xlane.xlu0 %9138 }
0x209d   : > { %v9155_v33 = vmul.f32 0.0078125, %v9137_v7  ;;  %13880 = vrsqrt.f32 %v9169_v5  ;;  %v9156_v49 = vmul.f32 0.0078125, %v9139_v55  ;;  %v19021_v5 = vrot.slane %v9290_v35, %v19812_v21 }
0x209e   : > { %v19026_v7 = vrot.slane %v9290_v35, %v19813_v0 }
0x209f   : > { %v9171_v53 = vadd.f32 1e-06, %v9155_v33  ;;  %v9172_v6 = vadd.f32 1e-06, %v9156_v49 }
0x20a0   : > { %v9141_v58 = vpop.xlane.xlu1 %9140 }
0x20a1   : > { %13882 = vrsqrt.f32 %v9171_v53  ;;  %v9157_v47 = vmul.f32 0.0078125, %v9141_v58 }
0x20a2   : > { %v13875_v18 = vpop.eup %13874  ;;  %13884 = vrsqrt.f32 %v9170_v16 }
0x20a3   : > { %v9198_v20 = vmul.f32 %v13875_v18, %v18829_v57  ;;  %v9173_v56 = vadd.f32 1e-06, %v9157_v47 }
0x20a5   : > { %v9220_v19 = vmul.f32 %v18871_v46, %v9198_v20  ;;  %13886 = vrsqrt.f32 %v9173_v56 }
0x20a6   : > { %v13877_v51 = vpop.eup %13876  ;;  %13888 = vrsqrt.f32 %v9172_v6 }
0x20a7   : > { %v9199_v52 = vmul.f32 %v13877_v51, %v18837_v22  ;;  %v13879_v44 = vpop.eup %13878  ;;  %v18969_v23 = vadd.f32 %v18877_v34, %v9220_v19 }
0x20a8   : > { %v9200_v57 = vmul.f32 %v13879_v44, %v18834_v39 }
0x20a9   : > { %v9221_v41 = vmul.f32 %v18871_v46, %v9199_v52 }
0x20aa   : > { %v13881_v43 = vpop.eup %13880  ;;  %v9222_v38 = vmul.f32 %v18871_v46, %v9200_v57 }
0x20ab   : > { %v18972_v62 = vadd.f32 %v18877_v34, %v9221_v41  ;;  %v9201_v1 = vmul.f32 %v13881_v43, %v18847_v40 }
0x20ac   : > { %v18987_v40 = vadd.f32 %v18877_v34, %v9222_v38 }
0x20ad   : > { %19810 = vst [vmem:[#allocation93_spill] sm:$0xff] %v18972_v62  ;;  %v9286_v22 = vpack.c.bf16 %v18972_v62, %v18969_v23  ;;  %v9223_v14 = vmul.f32 %v18871_v46, %v9201_v1 }
0x20ae   : > { %v13883_v4 = vpop.eup %13882 }
0x20af   : > { %9545 = vmatmul.mubr.bf16.gmra.mxu0 %v9286_v22  ;;  %9658 = vmatmul.mubr.bf16.gmra.mxu1 %v9286_v22  ;;  %v13885_v25 = vpop.eup %13884  ;;  %v18983_v11 = vadd.f32 %v18877_v34, %v9223_v14  ;;  %v9203_v39 = vmul.f32 %v13883_v4, %v18857_v37 }
0x20b0   : > { %9554 = vmatprep.mubr.bf16.mxu0 %v19774_v2  ;;  %9667 = vmatprep.mubr.bf16.mxu1 %v19774_v2  ;;  %v9202_v32 = vmul.f32 %v13885_v25, %v18844_v48 }
0x20b1   : > { %v9287_v30 = vpack.c.bf16 %v18983_v11, %v18987_v40  ;;  %v9225_v13 = vmul.f32 %v18871_v46, %v9203_v39 }
0x20b2   : > { %v13887_v17 = vpop.eup %13886  ;;  %v9224_v8 = vmul.f32 %v18871_v46, %v9202_v32 }
0x20b3   : > { %v13889_v59 = vpop.eup %13888  ;;  %v18997_v37 = vadd.f32 %v18877_v34, %v9225_v13  ;;  %v9205_v48 = vmul.f32 %v13887_v17, %v18864_v54 }
0x20b4   : > { %v19001_v29 = vadd.f32 %v18877_v34, %v9224_v8  ;;  %v9204_v3 = vmul.f32 %v13889_v59, %v18854_v12 }
0x20b5   : > { %v9227_v15 = vmul.f32 %v18871_v46, %v9205_v48 }
0x20b6   : > { %v9288_v61 = vpack.c.bf16 %v18997_v37, %v19001_v29  ;;  %v9226_v24 = vmul.f32 %v18871_v46, %v9204_v3 }
0x20b7   : > { %9555 = vmatmul.mubr.bf16.gmra.mxu0 %v9287_v30  ;;  %9668 = vmatmul.mubr.bf16.gmra.mxu1 %v9287_v30  ;;  %v19011_v54 = vadd.f32 %v18877_v34, %v9227_v15 }
0x20b8   : > { %9564 = vmatprep.mubr.bf16.mxu0 %v19774_v2  ;;  %9677 = vmatprep.mubr.bf16.mxu1 %v19774_v2  ;;  %v19014_v28 = vadd.f32 %v18877_v34, %v9226_v24  ;;  %v19814_v34 = vsub.s32 2, %v19811_v10 }
0x20ba   : > { %v9289_v12 = vpack.c.bf16 %v19011_v54, %v19014_v28  ;;  %v19030_v33 = vrot.slane %v9290_v35, %v19814_v34 }
0x20bf   : > { %9565 = vmatmul.mubr.bf16.gmra.mxu0 %v9288_v61  ;;  %9678 = vmatmul.mubr.bf16.gmra.mxu1 %v9288_v61 }
0x20c0   : > { %9574 = vmatprep.mubr.bf16.mxu0 %v19774_v2  ;;  %9687 = vmatprep.mubr.bf16.mxu1 %v19774_v2  ;;  %v19023_v2 = vrot.slane %v9290_v35, %v9306_v26 }
0x20c7   : > { %9575 = vmatmul.mubr.bf16.gmra.mxu0 %v9289_v12  ;;  %9688 = vmatmul.mubr.bf16.gmra.mxu1 %v9289_v12 }
0x20ef   : > { %v9506_v60 = vpop.f32.mrf.mxu0  ;;  %v9619_v46 = vpop.f32.mrf.mxu1 }
0x20f0   : > { %v9507_v56 = vadd.f32 %v9506_v60, %v19026_v7  ;;  %v9620_v51 = vadd.f32 %v9619_v46, %v19030_v33 }
0x20f1   : > { %v9508_v53 = vpop.f32.mrf.mxu0  ;;  %v9621_v16 = vpop.f32.mrf.mxu1 }
0x20f2   : > { %v9509_v18 = vadd.f32 %v9508_v53, %v19021_v5  ;;  %v9622_v47 = vadd.f32 %v9621_v16, %v19023_v2  ;;  %v9698_v25 = vmax.f32 %v9507_v56, 0.0  ;;  %v9700_v39 = vmax.f32 %v9620_v51, 0.0 }
0x20f3   : > { %v9510_v55 = vpop.f32.mrf.mxu0  ;;  %v9623_v58 = vpop.f32.mrf.mxu1 }
0x20f4   : > { %v9511_v49 = vadd.f32 %v9510_v55, %v19026_v7  ;;  %v9624_v20 = vadd.f32 %v9623_v58, %v19030_v33  ;;  %v9699_v22 = vmax.f32 %v9509_v18, 0.0  ;;  %v9701_v14 = vmax.f32 %v9622_v47, 0.0 }
0x20f5   : > { %v9512_v6 = vpop.f32.mrf.mxu0  ;;  %v9625_v52 = vpop.f32.mrf.mxu1 }
0x20f6   : > { %v9513_v19 = vadd.f32 %v9512_v6, %v19021_v5  ;;  %v9626_v44 = vadd.f32 %v9625_v52, %v19023_v2  ;;  %v9702_v41 = vmax.f32 %v9511_v49, 0.0  ;;  %v9704_v43 = vmax.f32 %v9624_v20, 0.0 }
0x20f7   : > { %v9516_v57 = vpop.f32.mrf.mxu0  ;;  %v9629_v1 = vpop.f32.mrf.mxu1 }
0x20f8   : > { %v9703_v4 = vmax.f32 %v9513_v19, 0.0  ;;  %v9705_v38 = vmax.f32 %v9626_v44, 0.0  ;;  %v9826_v59 = vpack.c.bf16 %v9702_v41, %v9698_v25  ;;  %v9828_v8 = vpack.c.bf16 %v9704_v43, %v9700_v39 }
0x20f9   : > { %v9518_v32 = vpop.f32.mrf.mxu0  ;;  %v9631_v30 = vpop.f32.mrf.mxu1  ;;  %v9517_v10 = vadd.f32 %v9516_v57, %v19026_v7  ;;  %v9630_v26 = vadd.f32 %v9629_v1, %v19030_v33 }
0x20fa   : > { %v9827_v13 = vpack.c.bf16 %v9703_v4, %v9699_v22  ;;  %v9829_v17 = vpack.c.bf16 %v9705_v38, %v9701_v14  ;;  %v9519_v48 = vadd.f32 %v9518_v32, %v19021_v5  ;;  %v9632_v15 = vadd.f32 %v9631_v30, %v19023_v2 }
0x20fb   : > { %v9520_v3 = vpop.f32.mrf.mxu0  ;;  %v9633_v61 = vpop.f32.mrf.mxu1  ;;  %v9706_v49 = vmax.f32 %v9517_v10, 0.0  ;;  %v9708_v20 = vmax.f32 %v9630_v26, 0.0 }
0x20fc   : > { %v9521_v24 = vadd.f32 %v9520_v3, %v19026_v7  ;;  %v9634_v12 = vadd.f32 %v9633_v61, %v19030_v33  ;;  %10089 = vmatprep.mubr.bf16.mxu0 %v9827_v13  ;;  %10186 = vmatprep.mubr.bf16.mxu1 %v9829_v17  ;;  %v9707_v55 = vmax.f32 %v9519_v48, 0.0  ;;  %v9709_v58 = vmax.f32 %v9632_v15, 0.0 }
0x20fd   : > { %v9522_v35 = vpop.f32.mrf.mxu0  ;;  %v9635_v60 = vpop.f32.mrf.mxu1  ;;  %10090 = vmatmul.mubr.bf16.vlgmr.msra.gmra.mxu0 %v9826_v59  ;;  %10187 = vmatmul.mubr.bf16.vlgmr.msra.gmra.mxu1 %v9828_v8 }
0x20fe   : > { %v9523_v46 = vadd.f32 %v9522_v35, %v19021_v5  ;;  %v9636_v21 = vadd.f32 %v9635_v60, %v19023_v2  ;;  %v9710_v0 = vmax.f32 %v9521_v24, 0.0  ;;  %v9712_v34 = vmax.f32 %v9634_v12, 0.0 }
0x20ff   : > { %v9526_v53 = vpop.f32.mrf.mxu0  ;;  %v9639_v16 = vpop.f32.mrf.mxu1 }
0x2100   : > { %v9711_v18 = vmax.f32 %v9523_v46, 0.0  ;;  %v9713_v47 = vmax.f32 %v9636_v21, 0.0  ;;  %v9830_v19 = vpack.c.bf16 %v9710_v0, %v9706_v49  ;;  %v9832_v44 = vpack.c.bf16 %v9712_v34, %v9708_v20 }
0x2101   : > { %v9528_v56 = vpop.f32.mrf.mxu0  ;;  %v9641_v51 = vpop.f32.mrf.mxu1  ;;  %v9527_v4 = vadd.f32 %v9526_v53, %v19026_v7  ;;  %v9640_v38 = vadd.f32 %v9639_v16, %v19030_v33 }
0x2102   : > { %v9831_v6 = vpack.c.bf16 %v9711_v18, %v9707_v55  ;;  %v9833_v52 = vpack.c.bf16 %v9713_v47, %v9709_v58  ;;  %v9529_v41 = vadd.f32 %v9528_v56, %v19021_v5  ;;  %v9642_v1 = vadd.f32 %v9641_v51, %v19023_v2 }
0x2103   : > { %v9530_v43 = vpop.f32.mrf.mxu0  ;;  %v9643_v57 = vpop.f32.mrf.mxu1  ;;  %v9714_v24 = vmax.f32 %v9527_v4, 0.0  ;;  %v9716_v12 = vmax.f32 %v9640_v38, 0.0 }
0x2104   : > { %v9531_v22 = vadd.f32 %v9530_v43, %v19026_v7  ;;  %v9644_v14 = vadd.f32 %v9643_v57, %v19030_v33  ;;  %10097 = vmatprep.mubr.bf16.mxu0 %v9831_v6  ;;  %10194 = vmatprep.mubr.bf16.mxu1 %v9833_v52  ;;  %v9715_v48 = vmax.f32 %v9529_v41, 0.0  ;;  %v9717_v3 = vmax.f32 %v9642_v1, 0.0 }
0x2105   : > { %v9532_v25 = vpop.f32.mrf.mxu0  ;;  %v9645_v39 = vpop.f32.mrf.mxu1  ;;  %10098 = vmatmul.mubr.bf16.gmra.mxu0 %v9830_v19  ;;  %10195 = vmatmul.mubr.bf16.gmra.mxu1 %v9832_v44 }
0x2106   : > { %v9533_v32 = vadd.f32 %v9532_v25, %v19021_v5  ;;  %v9646_v30 = vadd.f32 %v9645_v39, %v19023_v2  ;;  %v9718_v13 = vmax.f32 %v9531_v22, 0.0  ;;  %v9720_v17 = vmax.f32 %v9644_v14, 0.0 }
0x2107   : > { %v9536_v59 = vpop.f32.mrf.mxu0  ;;  %v9649_v8 = vpop.f32.mrf.mxu1 }
0x2108   : > { %v9719_v61 = vmax.f32 %v9533_v32, 0.0  ;;  %v9721_v15 = vmax.f32 %v9646_v30, 0.0  ;;  %v9834_v46 = vpack.c.bf16 %v9718_v13, %v9714_v24  ;;  %v9836_v21 = vpack.c.bf16 %v9720_v17, %v9716_v12 }
0x2109   : > { %v9538_v10 = vpop.f32.mrf.mxu0  ;;  %v9651_v26 = vpop.f32.mrf.mxu1  ;;  %v9537_v18 = vadd.f32 %v9536_v59, %v19026_v7  ;;  %v9650_v47 = vadd.f32 %v9649_v8, %v19030_v33 }
0x210a   : > { %v9835_v35 = vpack.c.bf16 %v9719_v61, %v9715_v48  ;;  %v9837_v60 = vpack.c.bf16 %v9721_v15, %v9717_v3  ;;  %v9539_v0 = vadd.f32 %v9538_v10, %v19021_v5  ;;  %v9652_v16 = vadd.f32 %v9651_v26, %v19023_v2 }
0x210b   : > { %v9540_v34 = vpop.f32.mrf.mxu0  ;;  %v9653_v53 = vpop.f32.mrf.mxu1  ;;  %v9722_v57 = vmax.f32 %v9537_v18, 0.0  ;;  %v9724_v1 = vmax.f32 %v9650_v47, 0.0 }
0x210c   : > { %v9541_v55 = vadd.f32 %v9540_v34, %v19026_v7  ;;  %v9654_v58 = vadd.f32 %v9653_v53, %v19030_v33  ;;  %10105 = vmatprep.mubr.bf16.mxu0 %v9835_v35  ;;  %10202 = vmatprep.mubr.bf16.mxu1 %v9837_v60  ;;  %v9723_v19 = vmax.f32 %v9539_v0, 0.0  ;;  %v9725_v44 = vmax.f32 %v9652_v16, 0.0 }
0x210d   : > { %v9542_v49 = vpop.f32.mrf.mxu0  ;;  %v9655_v20 = vpop.f32.mrf.mxu1  ;;  %10106 = vmatmul.mubr.bf16.gmra.mxu0 %v9834_v46  ;;  %10203 = vmatmul.mubr.bf16.gmra.mxu1 %v9836_v21 }
0x210e   : > { %v9543_v56 = vadd.f32 %v9542_v49, %v19021_v5  ;;  %v9656_v51 = vadd.f32 %v9655_v20, %v19023_v2  ;;  %v9726_v6 = vmax.f32 %v9541_v55, 0.0  ;;  %v9728_v52 = vmax.f32 %v9654_v58, 0.0 }
0x2110   : > { %v9727_v41 = vmax.f32 %v9543_v56, 0.0  ;;  %v9729_v43 = vmax.f32 %v9656_v51, 0.0  ;;  %v9838_v4 = vpack.c.bf16 %v9726_v6, %v9722_v57  ;;  %v9840_v38 = vpack.c.bf16 %v9728_v52, %v9724_v1 }
0x2112   : > { %v9839_v22 = vpack.c.bf16 %v9727_v41, %v9723_v19  ;;  %v9841_v14 = vpack.c.bf16 %v9729_v43, %v9725_v44 }
0x2114   : > { %10113 = vmatprep.mubr.bf16.mxu0 %v9839_v22  ;;  %10210 = vmatprep.mubr.bf16.mxu1 %v9841_v14 }
0x2115   : > { %10114 = vmatmul.mubr.bf16.gmra.mxu0 %v9838_v4  ;;  %10211 = vmatmul.mubr.bf16.gmra.mxu1 %v9840_v38 }
0x216f   : > { %v9546_v25 = vpop.f32.mrf.mxu0  ;;  %v9659_v39 = vpop.f32.mrf.mxu1 }
0x2170   : > { %v9547_v61 = vadd.f32 %v9546_v25, %v19026_v7  ;;  %v9660_v15 = vadd.f32 %v9659_v39, %v19030_v33 }
0x2171   : > { %v9548_v32 = vpop.f32.mrf.mxu0  ;;  %v9661_v30 = vpop.f32.mrf.mxu1 }
0x2172   : > { %v9549_v59 = vadd.f32 %v9548_v32, %v19021_v5  ;;  %v9662_v8 = vadd.f32 %v9661_v30, %v19023_v2  ;;  %v9730_v55 = vmax.f32 %v9547_v61, 0.0  ;;  %v9732_v58 = vmax.f32 %v9660_v15, 0.0 }
0x2173   : > { %v9550_v13 = vpop.f32.mrf.mxu0  ;;  %v9663_v17 = vpop.f32.mrf.mxu1 }
0x2174   : > { %v9551_v48 = vadd.f32 %v9550_v13, %v19026_v7  ;;  %v9664_v3 = vadd.f32 %v9663_v17, %v19030_v33  ;;  %v9731_v0 = vmax.f32 %v9549_v59, 0.0  ;;  %v9733_v34 = vmax.f32 %v9662_v8, 0.0 }
0x2175   : > { %v9552_v24 = vpop.f32.mrf.mxu0  ;;  %v9665_v12 = vpop.f32.mrf.mxu1 }
0x2176   : > { %v9553_v10 = vadd.f32 %v9552_v24, %v19021_v5  ;;  %v9666_v26 = vadd.f32 %v9665_v12, %v19023_v2  ;;  %v9734_v35 = vmax.f32 %v9551_v48, 0.0  ;;  %v9736_v60 = vmax.f32 %v9664_v3, 0.0 }
0x2177   : > { %v9556_v46 = vpop.f32.mrf.mxu0  ;;  %v9669_v21 = vpop.f32.mrf.mxu1 }
0x2178   : > { %v9735_v53 = vmax.f32 %v9553_v10, 0.0  ;;  %v9737_v16 = vmax.f32 %v9666_v26, 0.0  ;;  %v9842_v56 = vpack.c.bf16 %v9734_v35, %v9730_v55  ;;  %v9844_v51 = vpack.c.bf16 %v9736_v60, %v9732_v58 }
0x2179   : > { %v9558_v18 = vpop.f32.mrf.mxu0  ;;  %v9671_v47 = vpop.f32.mrf.mxu1  ;;  %v9557_v57 = vadd.f32 %v9556_v46, %v19026_v7  ;;  %v9670_v1 = vadd.f32 %v9669_v21, %v19030_v33 }
0x217a   : > { %v9843_v49 = vpack.c.bf16 %v9735_v53, %v9731_v0  ;;  %v9845_v20 = vpack.c.bf16 %v9737_v16, %v9733_v34  ;;  %v9559_v6 = vadd.f32 %v9558_v18, %v19021_v5  ;;  %v9672_v44 = vadd.f32 %v9671_v47, %v19023_v2 }
0x217b   : > { %v9560_v52 = vpop.f32.mrf.mxu0  ;;  %v9673_v19 = vpop.f32.mrf.mxu1  ;;  %v9738_v48 = vmax.f32 %v9557_v57, 0.0  ;;  %v9740_v3 = vmax.f32 %v9670_v1, 0.0 }
0x217c   : > { %v9561_v41 = vadd.f32 %v9560_v52, %v19026_v7  ;;  %v9674_v43 = vadd.f32 %v9673_v19, %v19030_v33  ;;  %10121 = vmatprep.mubr.bf16.mxu0 %v9843_v49  ;;  %10218 = vmatprep.mubr.bf16.mxu1 %v9845_v20  ;;  %v9739_v13 = vmax.f32 %v9559_v6, 0.0  ;;  %v9741_v17 = vmax.f32 %v9672_v44, 0.0 }
0x217d   : > { %v9562_v22 = vpop.f32.mrf.mxu0  ;;  %v9675_v14 = vpop.f32.mrf.mxu1  ;;  %10122 = vmatmul.mubr.bf16.gmra.mxu0 %v9842_v56  ;;  %10219 = vmatmul.mubr.bf16.gmra.mxu1 %v9844_v51 }
0x217e   : > { %v9563_v4 = vadd.f32 %v9562_v22, %v19021_v5  ;;  %v9676_v38 = vadd.f32 %v9675_v14, %v19023_v2  ;;  %v9742_v25 = vmax.f32 %v9561_v41, 0.0  ;;  %v9744_v39 = vmax.f32 %v9674_v43, 0.0 }
0x217f   : > { %v9566_v32 = vpop.f32.mrf.mxu0  ;;  %v9679_v30 = vpop.f32.mrf.mxu1 }
0x2180   : > { %v9743_v59 = vmax.f32 %v9563_v4, 0.0  ;;  %v9745_v8 = vmax.f32 %v9676_v38, 0.0  ;;  %v9846_v10 = vpack.c.bf16 %v9742_v25, %v9738_v48  ;;  %v9848_v26 = vpack.c.bf16 %v9744_v39, %v9740_v3 }
0x2181   : > { %v9568_v61 = vpop.f32.mrf.mxu0  ;;  %v9681_v15 = vpop.f32.mrf.mxu1  ;;  %v9567_v53 = vadd.f32 %v9566_v32, %v19026_v7  ;;  %v9680_v16 = vadd.f32 %v9679_v30, %v19030_v33 }
0x2182   : > { %v9847_v24 = vpack.c.bf16 %v9743_v59, %v9739_v13  ;;  %v9849_v12 = vpack.c.bf16 %v9745_v8, %v9741_v17  ;;  %v9569_v35 = vadd.f32 %v9568_v61, %v19021_v5  ;;  %v9682_v21 = vadd.f32 %v9681_v15, %v19023_v2 }
0x2183   : > { %v9570_v60 = vpop.f32.mrf.mxu0  ;;  %v9683_v46 = vpop.f32.mrf.mxu1  ;;  %v9746_v41 = vmax.f32 %v9567_v53, 0.0  ;;  %v9748_v43 = vmax.f32 %v9680_v16, 0.0 }
0x2184   : > { %v9571_v0 = vadd.f32 %v9570_v60, %v19026_v7  ;;  %v9684_v34 = vadd.f32 %v9683_v46, %v19030_v33  ;;  %10129 = vmatprep.mubr.bf16.mxu0 %v9847_v24  ;;  %10226 = vmatprep.mubr.bf16.mxu1 %v9849_v12  ;;  %v9747_v6 = vmax.f32 %v9569_v35, 0.0  ;;  %v9749_v52 = vmax.f32 %v9682_v21, 0.0 }
0x2185   : > { %v9572_v55 = vpop.f32.mrf.mxu0  ;;  %v9685_v58 = vpop.f32.mrf.mxu1  ;;  %10130 = vmatmul.mubr.bf16.gmra.mxu0 %v9846_v10  ;;  %10227 = vmatmul.mubr.bf16.gmra.mxu1 %v9848_v26 }
0x2186   : > { %v9573_v18 = vadd.f32 %v9572_v55, %v19021_v5  ;;  %v9686_v47 = vadd.f32 %v9685_v58, %v19023_v2  ;;  %v9750_v49 = vmax.f32 %v9571_v0, 0.0  ;;  %v9752_v20 = vmax.f32 %v9684_v34, 0.0 }
0x2187   : > { %v9576_v56 = vpop.f32.mrf.mxu0  ;;  %v9689_v51 = vpop.f32.mrf.mxu1 }
0x2188   : > { %v9751_v19 = vmax.f32 %v9573_v18, 0.0  ;;  %v9753_v44 = vmax.f32 %v9686_v47, 0.0  ;;  %v9850_v4 = vpack.c.bf16 %v9750_v49, %v9746_v41  ;;  %v9852_v38 = vpack.c.bf16 %v9752_v20, %v9748_v43 }
0x2189   : > { %v9578_v57 = vpop.f32.mrf.mxu0  ;;  %v9691_v1 = vpop.f32.mrf.mxu1  ;;  %v9577_v59 = vadd.f32 %v9576_v56, %v19026_v7  ;;  %v9690_v8 = vadd.f32 %v9689_v51, %v19030_v33 }
0x218a   : > { %v9851_v22 = vpack.c.bf16 %v9751_v19, %v9747_v6  ;;  %v9853_v14 = vpack.c.bf16 %v9753_v44, %v9749_v52  ;;  %v9579_v25 = vadd.f32 %v9578_v57, %v19021_v5  ;;  %v9692_v30 = vadd.f32 %v9691_v1, %v19023_v2 }
0x218b   : > { %v9580_v39 = vpop.f32.mrf.mxu0  ;;  %v9693_v32 = vpop.f32.mrf.mxu1  ;;  %v9754_v46 = vmax.f32 %v9577_v59, 0.0  ;;  %v9756_v21 = vmax.f32 %v9690_v8, 0.0 }
0x218c   : > { %v9581_v13 = vadd.f32 %v9580_v39, %v19026_v7  ;;  %v9694_v17 = vadd.f32 %v9693_v32, %v19030_v33  ;;  %10137 = vmatprep.mubr.bf16.mxu0 %v9851_v22  ;;  %10234 = vmatprep.mubr.bf16.mxu1 %v9853_v14  ;;  %v9755_v10 = vmax.f32 %v9579_v25, 0.0  ;;  %v9757_v26 = vmax.f32 %v9692_v30, 0.0 }
0x218d   : > { %v9582_v48 = vpop.f32.mrf.mxu0  ;;  %v9695_v3 = vpop.f32.mrf.mxu1  ;;  %10138 = vmatmul.mubr.bf16.gmra.mxu0 %v9850_v4  ;;  %10235 = vmatmul.mubr.bf16.gmra.mxu1 %v9852_v38 }
0x218e   : > { %v9583_v61 = vadd.f32 %v9582_v48, %v19021_v5  ;;  %v9696_v15 = vadd.f32 %v9695_v3, %v19023_v2  ;;  %v9758_v24 = vmax.f32 %v9581_v13, 0.0  ;;  %v9760_v12 = vmax.f32 %v9694_v17, 0.0  ;;  %v19098_v2 = vld [vmem:[%s19815_s14] ss:$0 sm:$0xff] }
0x2190   : > { %v9759_v35 = vmax.f32 %v9583_v61, 0.0  ;;  %v9761_v60 = vmax.f32 %v9696_v15, 0.0  ;;  %v9854_v33 = vpack.c.bf16 %v9758_v24, %v9754_v46  ;;  %v9856_v34 = vpack.c.bf16 %v9760_v12, %v9756_v21 }
0x2192   : > { %v9855_v7 = vpack.c.bf16 %v9759_v35, %v9755_v10  ;;  %v9857_v0 = vpack.c.bf16 %v9761_v60, %v9757_v26 }
0x2194   : > { %10145 = vmatprep.mubr.bf16.mxu0 %v9855_v7  ;;  %10242 = vmatprep.mubr.bf16.mxu1 %v9857_v0 }
0x2195   : > { %10146 = vmatmul.mubr.bf16.gmra.mxu0 %v9854_v33  ;;  %10243 = vmatmul.mubr.bf16.gmra.mxu1 %v9856_v34 }
0x21bd   : > { %v11963_v5 = vpop.f32.mrf.mxu0  ;;  %v12027_v53 = vpop.f32.mrf.mxu1 }
0x21bf   : > { %v11964_v16 = vpop.f32.mrf.mxu0  ;;  %v12028_v55 = vpop.f32.mrf.mxu1 }
0x21c0   : > { %v11965_v58 = vadd.f32 %v11964_v16, %v11963_v5  ;;  %v12029_v18 = vadd.f32 %v12028_v55, %v12027_v53 }
0x21c1   : > { %v11966_v47 = vpop.f32.mrf.mxu0  ;;  %v12030_v49 = vpop.f32.mrf.mxu1 }
0x21c2   : > { %v10092_v20 = vadd.f32 %v11965_v58, %v19098_v2 }
0x21c3   : > { %v11967_v56 = vpop.f32.mrf.mxu0  ;;  %v12031_v51 = vpop.f32.mrf.mxu1 }
0x21c4   : > { %v19101_v6 = vadd.f32 %v12029_v18, %v10092_v20  ;;  %v11968_v52 = vadd.f32 %v11967_v56, %v11966_v47  ;;  %v12032_v19 = vadd.f32 %v12031_v51, %v12030_v49 }
0x21c5   : > { %v11969_v44 = vpop.f32.mrf.mxu0  ;;  %v12033_v41 = vpop.f32.mrf.mxu1 }
0x21c6   : > { %19816 = vst [vmem:[#allocation78_spill] sm:$0xff] %v19101_v6  ;;  %v10095_v43 = vadd.f32 %v11968_v52, %v19098_v2 }
0x21c7   : > { %v11970_v57 = vpop.f32.mrf.mxu0  ;;  %v12034_v1 = vpop.f32.mrf.mxu1 }
0x21c8   : > { %v19104_v22 = vadd.f32 %v12032_v19, %v10095_v43  ;;  %v11971_v14 = vadd.f32 %v11970_v57, %v11969_v44  ;;  %v12035_v4 = vadd.f32 %v12034_v1, %v12033_v41 }
0x21c9   : > { %v11972_v38 = vpop.f32.mrf.mxu0  ;;  %v12036_v25 = vpop.f32.mrf.mxu1 }
0x21ca   : > { %19817 = vst [vmem:[#allocation85_spill] sm:$0xff] %v19104_v22  ;;  %v10100_v39 = vadd.f32 %v11971_v14, %v19098_v2 }
0x21cb   : > { %v11973_v32 = vpop.f32.mrf.mxu0  ;;  %v12037_v30 = vpop.f32.mrf.mxu1 }
0x21cc   : > { %v19107_v13 = vadd.f32 %v12035_v4, %v10100_v39  ;;  %v11974_v17 = vadd.f32 %v11973_v32, %v11972_v38  ;;  %v12038_v59 = vadd.f32 %v12037_v30, %v12036_v25 }
0x21cd   : > { %v19112_v3 = vpop.f32.mrf.mxu0  ;;  %v19114_v61 = vpop.f32.mrf.mxu1 }
0x21ce   : > { %19818 = vst [vmem:[#allocation81_spill] sm:$0xff] %v19107_v13  ;;  %v10103_v8 = vadd.f32 %v11974_v17, %v19098_v2 }
0x21cf   : > { %v19116_v15 = vpop.f32.mrf.mxu0  ;;  %v19118_v24 = vpop.f32.mrf.mxu1 }
0x21d0   : > { %v19110_v48 = vadd.f32 %v12038_v59, %v10103_v8 }
0x21d1   : > { %v19120_v12 = vpop.f32.mrf.mxu0  ;;  %v19122_v10 = vpop.f32.mrf.mxu1 }
0x21d2   : > { %19819 = vst [vmem:[#allocation68_spill] sm:$0xff] %v19110_v48  ;;  %19820 = vst [vmem:[#allocation67_spill] sm:$0xff] %v19122_v10 }
0x21d3   : > { %v19124_v26 = vpop.f32.mrf.mxu0  ;;  %v19126_v35 = vpop.f32.mrf.mxu1 }
0x21d4   : > { %19821 = vst [vmem:[#allocation94_spill] sm:$0xff] %v19126_v35 }
0x21d5   : > { %v11981_v60 = vpop.f32.mrf.mxu0  ;;  %v19128_v46 = vpop.f32.mrf.mxu1 }
0x21d7   : > { %v11982_v21 = vpop.f32.mrf.mxu0  ;;  %v19130_v7 = vpop.f32.mrf.mxu1 }
0x21d9   : > { %v19132_v0 = vpop.f32.mrf.mxu0  ;;  %v19134_v33 = vpop.f32.mrf.mxu1 }
0x21da   : > { %19822 = vst [vmem:[#allocation73_spill] sm:$0xff] %v19134_v33 }
0x21db   : > { %v19136_v34 = vpop.f32.mrf.mxu0  ;;  %v19138_v5 = vpop.f32.mrf.mxu1 }
0x21dc   : > { %19823 = vst [vmem:[#allocation96_spill] sm:$0xff] %v19138_v5 }
0x223d   : > { %v11987_v53 = vpop.f32.mrf.mxu0  ;;  %v12051_v16 = vpop.f32.mrf.mxu1 }
0x223f   : > { %v11988_v55 = vpop.f32.mrf.mxu0  ;;  %v12052_v58 = vpop.f32.mrf.mxu1 }
0x2241   : > { %v11990_v18 = vpop.f32.mrf.mxu0  ;;  %v19140_v47 = vpop.f32.mrf.mxu1 }
0x2243   : > { %v11991_v49 = vpop.f32.mrf.mxu0  ;;  %v19142_v20 = vpop.f32.mrf.mxu1 }
0x2245   : > { %v11993_v56 = vpop.f32.mrf.mxu0  ;;  %v12057_v51 = vpop.f32.mrf.mxu1 }
0x2247   : > { %v11994_v52 = vpop.f32.mrf.mxu0  ;;  %v12058_v19 = vpop.f32.mrf.mxu1 }
0x2248   : > { %v11995_v27 = vadd.f32 %v11994_v52, %v11993_v56 }
0x2249   : > { %v11996_v44 = vpop.f32.mrf.mxu0  ;;  %v12060_v41 = vpop.f32.mrf.mxu1 }
0x224b   : > { %v11997_v43 = vpop.f32.mrf.mxu0  ;;  %v12061_v57 = vpop.f32.mrf.mxu1 }
0x224c   : > { %v11998_v5 = vadd.f32 %v11997_v43, %v11996_v44 }
0x224d   : > { %v11999_v1 = vpop.f32.mrf.mxu0  ;;  %v12063_v14 = vpop.f32.mrf.mxu1 }
0x224f   : > { %v12000_v4 = vpop.f32.mrf.mxu0  ;;  %v12064_v38 = vpop.f32.mrf.mxu1 }
0x2250   : > { %v12001_v17 = vadd.f32 %v12000_v4, %v11999_v1  ;;  %v12065_v9 = vadd.f32 %v12064_v38, %v12063_v14  ;;  %v11989_v1 = vadd.f32 %v11988_v55, %v11987_v53  ;;  %v10132_v4 = vadd.f32 %v11995_v27, %v19098_v2  ;;  %v19825_v55 = vld [vmem:[#allocation96_spill] sm:$0xff] }
0x2251   : > { %v12002_v25 = vpop.f32.mrf.mxu0  ;;  %v12066_v39 = vpop.f32.mrf.mxu1  ;;  %v12056_v53 = vadd.f32 %v19142_v20, %v19140_v47  ;;  %v19827_v20 = vld [vmem:[#allocation87_spill] sm:$0xff] }
0x2252   : > { %v10140_v48 = vadd.f32 %v12001_v17, %v19098_v2  ;;  %v19836_v17 = vld [vmem:[#allocation68_spill] sm:$0xff] }
0x2253   : > { %v12003_v32 = vpop.f32.mrf.mxu0  ;;  %v12067_v30 = vpop.f32.mrf.mxu1 }
0x2254   : > { %v12004_v36 = vadd.f32 %v12003_v32, %v12002_v25  ;;  %v10237_v33 = vadd.f32 %v12065_v9, %v10140_v48  ;;  %v10135_v9 = vadd.f32 %v11998_v5, %v19098_v2 }
0x2255   : > { %v12005_v59 = vpop.f32.mrf.mxu0  ;;  %v12069_v8 = vpop.f32.mrf.mxu1 }
0x2257   : > { %v12006_v22 = vpop.f32.mrf.mxu0  ;;  %v12070_v63 = vpop.f32.mrf.mxu1 }
0x2258   : > { %v12007_v6 = vadd.f32 %v12006_v22, %v12005_v59  ;;  %v12071_v45 = vadd.f32 %v12070_v63, %v12069_v8  ;;  %v10143_v22 = vadd.f32 %v12004_v36, %v19098_v2  ;;  %v12068_v63 = vadd.f32 %v12067_v30, %v12066_v39  ;;  %v19834_v39 = vld [vmem:[#allocation81_spill] sm:$0xff]  ;;  %v19835_v30 = vld [vmem:[#allocation63_spill] sm:$0xff]  ;;  %v19837_v8 = vld [vmem:[#allocation64_spill] sm:$0xff] }
0x2259   : > { %v12008_v31 = vpop.f32.mrf.mxu0  ;;  %v12072_v13 = vpop.f32.mrf.mxu1  ;;  %v19197_v59 = vadd.f32 %v19836_v17, %v19835_v30 }
0x225a   : > { %v10148_v42 = vadd.f32 %v12007_v6, %v19098_v2  ;;  %v12059_v6 = vadd.f32 %v12058_v19, %v12057_v51  ;;  %v10240_v48 = vadd.f32 %v12068_v63, %v10143_v22  ;;  %v19828_v19 = vld [vmem:[#allocation67_spill] sm:$0xff]  ;;  %v19839_v22 = vld [vmem:[#allocation69_spill] sm:$0xff] }
0x225b   : > { %v12009_v35 = vpop.f32.mrf.mxu0  ;;  %v12073_v10 = vpop.f32.mrf.mxu1 }
0x225c   : > { %v10245_v50 = vadd.f32 %v12071_v45, %v10148_v42  ;;  %v12010_v62 = vadd.f32 %v12009_v35, %v12008_v31  ;;  %v12074_v52 = vadd.f32 %v12073_v10, %v12072_v13  ;;  %v11983_v42 = vadd.f32 %v11982_v21, %v11981_v60 }
0x225d   : > { %v10124_v31 = vadd.f32 %v11989_v1, %v19098_v2  ;;  %v11992_v45 = vadd.f32 %v11991_v49, %v11990_v18  ;;  %v10229_v27 = vadd.f32 %v12059_v6, %v10132_v4  ;;  %v12053_v13 = vadd.f32 %v12052_v58, %v12051_v16  ;;  %v19838_v1 = vld [vmem:[#allocation78_spill] sm:$0xff] }
0x225e   : > { %v10151_v56 = vadd.f32 %v12010_v62, %v19098_v2  ;;  %v19150_v25 = vadd.f32 %v10245_v50, %v19014_v28  ;;  %v10263_v62 = vadd.f32 %v10237_v33, %v19001_v29  ;;  %v12062_v50 = vadd.f32 %v12061_v57, %v12060_v41  ;;  %v19831_v41 = vld [vmem:[#allocation72_spill] sm:$0xff]  ;;  %v19832_v57 = vld [vmem:[#allocation86_spill] sm:$0xff] }
0x225f   : > { %v11977_v28 = vadd.f32 %v19116_v15, %v19112_v3  ;;  %v10116_v10 = vadd.f32 %v11983_v42, %v19098_v2  ;;  %v11986_v35 = vadd.f32 %v19136_v34, %v19132_v0  ;;  %v10221_v60 = vadd.f32 %v12053_v13, %v10124_v31 }
0x2260   : > { %v10248_v14 = vadd.f32 %v12074_v52, %v10151_v56  ;;  %10297 = vadd.xlane.f32.xlu1 %v19150_v25  ;;  %v10127_v21 = vadd.f32 %v11992_v45, %v19098_v2  ;;  %v10232_v5 = vadd.f32 %v12062_v50, %v10135_v9  ;;  %v10261_v29 = vadd.f32 %v10229_v27, %v18987_v40  ;;  %v19840_v56 = vld [vmem:[#allocation85_spill] sm:$0xff] }
0x2261   : > { %v12047_v33 = vadd.f32 %v19130_v7, %v19128_v46  ;;  %v10108_v3 = vadd.f32 %v11977_v28, %v19098_v2  ;;  %v11980_v15 = vadd.f32 %v19124_v26, %v19120_v12  ;;  %v10119_v34 = vadd.f32 %v11986_v35, %v19098_v2  ;;  %v19824_v7 = vld [vmem:[#allocation73_spill] sm:$0xff] }
0x2262   : > { %v10266_v36 = vadd.f32 %v10248_v14, %v19011_v54  ;;  %v10264_v54 = vadd.f32 %v10240_v48, %v18997_v37  ;;  %v10224_v16 = vadd.f32 %v12056_v53, %v10127_v21  ;;  %v10262_v37 = vadd.f32 %v10232_v5, %v18983_v11  ;;  %v19826_v26 = vld [vmem:[#allocation93_spill] sm:$0xff]  ;;  %v19829_v11 = vld [vmem:[#allocation94_spill] sm:$0xff] }
0x2263   : > { %v10213_v0 = vadd.f32 %v12047_v33, %v10116_v10  ;;  %v10259_v40 = vadd.f32 %v10221_v60, %v18969_v23  ;;  %v12041_v46 = vadd.f32 %v19118_v24, %v19114_v61  ;;  %v12050_v58 = vadd.f32 %v19825_v55, %v19824_v7  ;;  %v19830_v61 = vld [vmem:[#allocation83_spill] sm:$0xff] }
0x2264   : > { %10299 = vadd.xlane.f32.xlu0 %v10266_v36  ;;  %10293 = vadd.xlane.f32.xlu1 %v10263_v62  ;;  %v10111_v47 = vadd.f32 %v11980_v15, %v19098_v2  ;;  %v10260_v49 = vadd.f32 %v10224_v16, %v19826_v26  ;;  %v12044_v44 = vadd.f32 %v19829_v11, %v19828_v19  ;;  %v19833_v2 = vld [vmem:[#allocation70_spill] sm:$0xff] }
0x2265   : > { %v10205_v18 = vadd.f32 %v12041_v46, %v10108_v3  ;;  %v10216_v12 = vadd.f32 %v12050_v58, %v10119_v34  ;;  %v10257_v51 = vadd.f32 %v10213_v0, %v19827_v20  ;;  %v19191_v32 = vadd.f32 %v19834_v39, %v19833_v2 }
0x2266   : > { %v10208_v23 = vadd.f32 %v12044_v44, %v10111_v47  ;;  %v19201_v4 = vadd.f32 %v19838_v1, %v19837_v8  ;;  %v19207_v52 = vadd.f32 %v19840_v56, %v19839_v22 }
0x2267   : > { %v10258_v24 = vadd.f32 %v10216_v12, %v19830_v61  ;;  %v10255_v43 = vadd.f32 %v10205_v18, %v19831_v41 }
0x2268   : > { %10295 = vadd.xlane.f32.xlu0 %v10264_v54  ;;  %10289 = vadd.xlane.f32.xlu1 %v10261_v29  ;;  %v19187_v38 = vadd.f32 %v10208_v23, %v19832_v57 }
0x226c   : > { %10291 = vadd.xlane.f32.xlu0 %v10262_v37  ;;  %10285 = vadd.xlane.f32.xlu1 %v10259_v40 }
0x2270   : > { %10287 = vadd.xlane.f32.xlu0 %v10260_v49  ;;  %10281 = vadd.xlane.f32.xlu1 %v10257_v51 }
0x2274   : > { %10283 = vadd.xlane.f32.xlu0 %v10258_v24  ;;  %10277 = vadd.xlane.f32.xlu1 %v10255_v43 }
0x2278   : > { %10279 = vadd.xlane.f32.xlu0 %v19187_v38  ;;  %10273 = vadd.xlane.f32.xlu1 %v19191_v32 }
0x227c   : > { %10275 = vadd.xlane.f32.xlu0 %v19197_v59  ;;  %10269 = vadd.xlane.f32.xlu1 %v19201_v4 }
0x2280   : > { %10271 = vadd.xlane.f32.xlu0 %v19207_v52 }
0x22e9   : > { %v10298_v6 = vpop.xlane.xlu1 %10297 }
0x22ea   : > { %v10315_v63 = vmul.f32 0.0078125, %v10298_v6 }
0x22ec   : > { %v19211_v14 = vsub.f32 %v19150_v25, %v10315_v63 }
0x22ed   : > { %v10300_v42 = vpop.xlane.xlu0 %10299  ;;  %v10294_v31 = vpop.xlane.xlu1 %10293 }
0x22ee   : > { %v10316_v45 = vmul.f32 0.0078125, %v10300_v42  ;;  %v10313_v27 = vmul.f32 0.0078125, %v10294_v31  ;;  %v10347_v9 = vmul.f32 %v19211_v14, %v19211_v14  ;;  %v10597_v42 = vld [vmem:[#allocation37 + $0x78] sm:$0xff]  ;;  %v10596_v31 = vld [vmem:[#allocation37 + $0x70] sm:$0xff] }
0x22ef   : > { %12914 = vmatprep.subr.mxu1 %v10597_v42 }
0x22f0   : > { %v19215_v48 = vsub.f32 %v10266_v36, %v10316_v45  ;;  %v19217_v13 = vsub.f32 %v10263_v62, %v10313_v27  ;;  %10377 = vadd.xlane.f32.xlu1 %v10347_v9  ;;  %12915 = vmatpush3.msra.mxu1 %v10597_v42  ;;  %v10595_v45 = vld [vmem:[#allocation37 + $0x68] sm:$0xff]  ;;  %v10593_v27 = vld [vmem:[#allocation37 + $0x58] sm:$0xff]  ;;  %v10592_v9 = vld [vmem:[#allocation37 + $0x50] sm:$0xff] }
0x22f1   : > { %v10296_v50 = vpop.xlane.xlu0 %10295  ;;  %v10290_v28 = vpop.xlane.xlu1 %10289  ;;  %12916 = vmatprep.subr.mxu1 %v10596_v31 }
0x22f2   : > { %v10314_v10 = vmul.f32 0.0078125, %v10296_v50  ;;  %v10311_v35 = vmul.f32 0.0078125, %v10290_v28  ;;  %v10348_v25 = vmul.f32 %v19215_v48, %v19215_v48  ;;  %v10345_v60 = vmul.f32 %v19217_v13, %v19217_v13  ;;  %12917 = vmatpush3.msra.mxu1 %v10596_v31  ;;  %v10591_v50 = vld [vmem:[#allocation37 + $0x48] sm:$0xff]  ;;  %v10590_v28 = vld [vmem:[#allocation37 + $0x40] sm:$0xff] }
0x22f3   : > { %12918 = vmatprep.subr.mxu1 %v10595_v45 }
0x22f4   : > { %v19223_v21 = vsub.f32 %v10264_v54, %v10314_v10  ;;  %v19225_v5 = vsub.f32 %v10261_v29, %v10311_v35  ;;  %10379 = vadd.xlane.f32.xlu0 %v10348_v25  ;;  %10373 = vadd.xlane.f32.xlu1 %v10345_v60  ;;  %v10589_v10 = vld [vmem:[#allocation37 + $0x38] sm:$0xff]  ;;  %v10588_v35 = vld [vmem:[#allocation37 + $0x30] sm:$0xff]  ;;  %v10587_v25 = vld [vmem:[#allocation37 + $0x28] sm:$0xff] }
0x22f5   : > { %v10292_v36 = vpop.xlane.xlu0 %10291  ;;  %v10286_v62 = vpop.xlane.xlu1 %10285  ;;  %12919 = vmatpush3.msra.mxu1 %v10595_v45  ;;  %v10586_v60 = vld [vmem:[#allocation37 + $0x20] sm:$0xff] }
0x22f6   : > { %v10312_v33 = vmul.f32 0.0078125, %v10292_v36  ;;  %v10309_v53 = vmul.f32 0.0078125, %v10286_v62  ;;  %v10346_v3 = vmul.f32 %v19223_v21, %v19223_v21  ;;  %v10343_v15 = vmul.f32 %v19225_v5, %v19225_v5  ;;  %v10585_v36 = vld [vmem:[#allocation37 + $0x18] sm:$0xff]  ;;  %v10584_v62 = vld [vmem:[#allocation37 + $0x10] sm:$0xff] }
0x22f8   : > { %v19231_v0 = vsub.f32 %v10262_v37, %v10312_v33  ;;  %v19233_v34 = vsub.f32 %v10259_v40, %v10309_v53  ;;  %10375 = vadd.xlane.f32.xlu0 %v10346_v3  ;;  %10369 = vadd.xlane.f32.xlu1 %v10343_v15 }
0x22f9   : > { %v10288_v54 = vpop.xlane.xlu0 %10287  ;;  %v10282_v29 = vpop.xlane.xlu1 %10281 }
0x22fa   : > { %v10310_v16 = vmul.f32 0.0078125, %v10288_v54  ;;  %v10307_v46 = vmul.f32 0.0078125, %v10282_v29  ;;  %v10344_v7 = vmul.f32 %v19231_v0, %v19231_v0  ;;  %v10341_v55 = vmul.f32 %v19233_v34, %v19233_v34 }
0x22fc   : > { %v19239_v58 = vsub.f32 %v10260_v49, %v10310_v16  ;;  %v19241_v18 = vsub.f32 %v10257_v51, %v10307_v46  ;;  %10371 = vadd.xlane.f32.xlu0 %v10344_v7  ;;  %10365 = vadd.xlane.f32.xlu1 %v10341_v55 }
0x22fd   : > { %v10284_v37 = vpop.xlane.xlu0 %10283  ;;  %v10278_v40 = vpop.xlane.xlu1 %10277 }
0x22fe   : > { %v10308_v47 = vmul.f32 0.0078125, %v10284_v37  ;;  %v10305_v12 = vmul.f32 0.0078125, %v10278_v40  ;;  %v10342_v26 = vmul.f32 %v19239_v58, %v19239_v58  ;;  %v10339_v20 = vmul.f32 %v19241_v18, %v19241_v18 }
0x2300   : > { %v19247_v19 = vsub.f32 %v10258_v24, %v10308_v47  ;;  %v19249_v11 = vsub.f32 %v10255_v43, %v10305_v12  ;;  %10367 = vadd.xlane.f32.xlu0 %v10342_v26  ;;  %10361 = vadd.xlane.f32.xlu1 %v10339_v20 }
0x2301   : > { %v10280_v49 = vpop.xlane.xlu0 %10279  ;;  %v10274_v51 = vpop.xlane.xlu1 %10273 }
0x2302   : > { %v10306_v44 = vmul.f32 0.0078125, %v10280_v49  ;;  %v10303_v23 = vmul.f32 0.0078125, %v10274_v51  ;;  %v10340_v61 = vmul.f32 %v19247_v19, %v19247_v19  ;;  %v10337_v41 = vmul.f32 %v19249_v11, %v19249_v11 }
0x2304   : > { %v19256_v57 = vsub.f32 %v19187_v38, %v10306_v44  ;;  %v19259_v24 = vsub.f32 %v19191_v32, %v10303_v23  ;;  %10363 = vadd.xlane.f32.xlu0 %v10340_v61  ;;  %10357 = vadd.xlane.f32.xlu1 %v10337_v41 }
0x2305   : > { %v10276_v43 = vpop.xlane.xlu0 %10275  ;;  %v10270_v2 = vpop.xlane.xlu1 %10269 }
0x2306   : > { %v10304_v39 = vmul.f32 0.0078125, %v10276_v43  ;;  %v10301_v30 = vmul.f32 0.0078125, %v10270_v2  ;;  %v10338_v17 = vmul.f32 %v19256_v57, %v19256_v57  ;;  %v10335_v8 = vmul.f32 %v19259_v24, %v19259_v24 }
0x2308   : > { %v19266_v1 = vsub.f32 %v19197_v59, %v10304_v39  ;;  %v19269_v38 = vsub.f32 %v19201_v4, %v10301_v30  ;;  %10359 = vadd.xlane.f32.xlu0 %v10338_v17  ;;  %10353 = vadd.xlane.f32.xlu1 %v10335_v8  ;;  %v10505_v4 = vld [vmem:[%s19841_s1] sm:$0xff] }
0x2309   : > { %v10272_v32 = vpop.xlane.xlu0 %10271  ;;  %12911 = vmatprep.mubr.f32.mxu0 %v10505_v4  ;;  %v19285_v17 = vld [vmem:[%s19842_s3] ss:$0 sm:$0xff] }
0x230a   : > { %v10302_v22 = vmul.f32 0.0078125, %v10272_v32  ;;  %v10336_v56 = vmul.f32 %v19266_v1, %v19266_v1  ;;  %v10333_v6 = vmul.f32 %v19269_v38, %v19269_v38 }
0x230c   : > { %v19276_v63 = vsub.f32 %v19207_v52, %v10302_v22  ;;  %10355 = vadd.xlane.f32.xlu0 %v10336_v56  ;;  %10349 = vadd.xlane.f32.xlu1 %v10333_v6  ;;  %v10594_v52 = vld [vmem:[#allocation37 + $0x60] sm:$0xff] }
0x230d   : > { %12920 = vmatprep.subr.mxu1 %v10594_v52 }
0x230e   : > { %v10334_v59 = vmul.f32 %v19276_v63, %v19276_v63  ;;  %12921 = vmatpush3.msra.mxu1 %v10594_v52 }
0x230f   : > { %12922 = vmatprep.subr.mxu1 %v10593_v27 }
0x2310   : > { %10351 = vadd.xlane.f32.xlu0 %v10334_v59  ;;  %12923 = vmatpush3.msra.mxu1 %v10593_v27  ;;  %v19290_v59 = vld [vmem:[%s19843_s10] ss:$0 sm:$0xff] }
0x2311   : > { %12924 = vmatprep.subr.mxu1 %v10592_v9 }
0x2312   : > { %12925 = vmatpush3.msra.mxu1 %v10592_v9 }
0x2313   : > { %12926 = vmatprep.subr.mxu1 %v10591_v50 }
0x2314   : > { %12927 = vmatpush3.msra.mxu1 %v10591_v50 }
0x2315   : > { %12928 = vmatprep.subr.mxu1 %v10590_v28 }
0x2316   : > { %12929 = vmatpush3.msra.mxu1 %v10590_v28 }
0x2317   : > { %12930 = vmatprep.subr.mxu1 %v10589_v10 }
0x2318   : > { %12931 = vmatpush3.msra.mxu1 %v10589_v10 }
0x2319   : > { %12932 = vmatprep.subr.mxu1 %v10588_v35 }
0x231a   : > { %12933 = vmatpush3.msra.mxu1 %v10588_v35 }
0x231b   : > { %12934 = vmatprep.subr.mxu1 %v10587_v25 }
0x231c   : > { %12935 = vmatpush3.msra.mxu1 %v10587_v25 }
0x231d   : > { %12936 = vmatprep.subr.mxu1 %v10586_v60 }
0x231e   : > { %12937 = vmatpush3.msra.mxu1 %v10586_v60 }
0x231f   : > { %12938 = vmatprep.subr.mxu1 %v10585_v36 }
0x2320   : > { %12939 = vmatpush3.msra.mxu1 %v10585_v36 }
0x2321   : > { %12940 = vmatprep.subr.mxu1 %v10584_v62 }
0x2322   : > { %12941 = vmatpush3.msra.mxu1 %v10584_v62 }
0x2379   : > { %v10378_v33 = vpop.xlane.xlu1 %10377 }
0x237a   : > { %v10395_v53 = vmul.f32 0.0078125, %v10378_v33 }
0x237c   : > { %v10411_v3 = vadd.f32 1e-06, %v10395_v53 }
0x237d   : > { %v10380_v15 = vpop.xlane.xlu0 %10379  ;;  %v10374_v54 = vpop.xlane.xlu1 %10373 }
0x237e   : > { %13890 = vrsqrt.f32 %v10411_v3  ;;  %v10396_v29 = vmul.f32 0.0078125, %v10380_v15  ;;  %v10393_v16 = vmul.f32 0.0078125, %v10374_v54 }
0x2380   : > { %v10412_v46 = vadd.f32 1e-06, %v10396_v29  ;;  %v10409_v7 = vadd.f32 1e-06, %v10393_v16 }
0x2381   : > { %v10376_v55 = vpop.xlane.xlu0 %10375  ;;  %v10370_v37 = vpop.xlane.xlu1 %10369 }
0x2382   : > { %13892 = vrsqrt.f32 %v10412_v46  ;;  %v10394_v40 = vmul.f32 0.0078125, %v10376_v55  ;;  %v10391_v47 = vmul.f32 0.0078125, %v10370_v37 }
0x2383   : > { %13894 = vrsqrt.f32 %v10409_v7 }
0x2384   : > { %v10410_v12 = vadd.f32 1e-06, %v10394_v40  ;;  %v10407_v26 = vadd.f32 1e-06, %v10391_v47 }
0x2385   : > { %v10372_v20 = vpop.xlane.xlu0 %10371  ;;  %v10366_v49 = vpop.xlane.xlu1 %10365 }
0x2386   : > { %13896 = vrsqrt.f32 %v10410_v12  ;;  %v10392_v51 = vmul.f32 0.0078125, %v10372_v20  ;;  %v10389_v44 = vmul.f32 0.0078125, %v10366_v49 }
0x2387   : > { %13898 = vrsqrt.f32 %v10407_v26 }
0x2388   : > { %v10408_v23 = vadd.f32 1e-06, %v10392_v51  ;;  %v10405_v61 = vadd.f32 1e-06, %v10389_v44 }
0x2389   : > { %v10368_v41 = vpop.xlane.xlu0 %10367  ;;  %v10362_v43 = vpop.xlane.xlu1 %10361 }
0x238a   : > { %13900 = vrsqrt.f32 %v10408_v23  ;;  %v10390_v2 = vmul.f32 0.0078125, %v10368_v41  ;;  %v10387_v39 = vmul.f32 0.0078125, %v10362_v43 }
0x238b   : > { %v13891_v30 = vpop.eup %13890  ;;  %13902 = vrsqrt.f32 %v10405_v61 }
0x238c   : > { %v10406_v8 = vadd.f32 1e-06, %v10390_v2  ;;  %v10403_v32 = vadd.f32 1e-06, %v10387_v39  ;;  %v10443_v22 = vmul.f32 %v13891_v30, %v19211_v14 }
0x238d   : > { %v10364_v56 = vpop.xlane.xlu0 %10363  ;;  %v10358_v6 = vpop.xlane.xlu1 %10357 }
0x238e   : > { %13904 = vrsqrt.f32 %v10406_v8  ;;  %v10388_v4 = vmul.f32 0.0078125, %v10364_v56  ;;  %v10385_v42 = vmul.f32 0.0078125, %v10358_v6  ;;  %v10465_v31 = vmul.f32 %v19285_v17, %v10443_v22 }
0x238f   : > { %v13893_v45 = vpop.eup %13892  ;;  %13906 = vrsqrt.f32 %v10403_v32 }
0x2390   : > { %v13895_v52 = vpop.eup %13894  ;;  %v10404_v27 = vadd.f32 1e-06, %v10388_v4  ;;  %v10401_v9 = vadd.f32 1e-06, %v10385_v42  ;;  %v10444_v50 = vmul.f32 %v13893_v45, %v19215_v48  ;;  %v10487_v28 = vadd.f32 %v19290_v59, %v10465_v31 }
0x2391   : > { %v10360_v14 = vpop.xlane.xlu0 %10359  ;;  %v10354_v10 = vpop.xlane.xlu1 %10353  ;;  %v10441_v35 = vmul.f32 %v13895_v52, %v19217_v13 }
0x2392   : > { %13908 = vrsqrt.f32 %v10404_v27  ;;  %v10386_v25 = vmul.f32 0.0078125, %v10360_v14  ;;  %v10383_v60 = vmul.f32 0.0078125, %v10354_v10  ;;  %v10466_v36 = vmul.f32 %v19285_v17, %v10444_v50  ;;  %10503 = vst [vmem:[#allocation2 + $0x78] sm:$0xff] %v10487_v28 }
0x2393   : > { %v13897_v62 = vpop.eup %13896  ;;  %13910 = vrsqrt.f32 %v10401_v9  ;;  %v10463_v33 = vmul.f32 %v19285_v17, %v10441_v35 }
0x2394   : > { %v13899_v53 = vpop.eup %13898  ;;  %v10402_v3 = vadd.f32 1e-06, %v10386_v25  ;;  %v10399_v15 = vadd.f32 1e-06, %v10383_v60  ;;  %v10488_v48 = vadd.f32 %v19290_v59, %v10466_v36  ;;  %v10442_v54 = vmul.f32 %v13897_v62, %v19223_v21 }
0x2395   : > { %v10356_v29 = vpop.xlane.xlu0 %10355  ;;  %v10350_v16 = vpop.xlane.xlu1 %10349  ;;  %v10485_v13 = vadd.f32 %v19290_v59, %v10463_v33  ;;  %v10439_v46 = vmul.f32 %v13899_v53, %v19225_v5 }
0x2396   : > { %13912 = vrsqrt.f32 %v10402_v3  ;;  %v10384_v7 = vmul.f32 0.0078125, %v10356_v29  ;;  %v10381_v55 = vmul.f32 0.0078125, %v10350_v16  ;;  %10504 = vst [vmem:[#allocation2 + $0x28] sm:$0xff] %v10488_v48  ;;  %12879 = vmatprep.subr.mxu0 %v10488_v48  ;;  %v10464_v37 = vmul.f32 %v19285_v17, %v10442_v54 }
0x2397   : > { %v13901_v40 = vpop.eup %13900  ;;  %13914 = vrsqrt.f32 %v10399_v15  ;;  %12880 = vmatpush3.msra.mxu0 %v10488_v48  ;;  %10501 = vst [vmem:[#allocation2 + $0x60] sm:$0xff] %v10485_v13  ;;  %v10461_v47 = vmul.f32 %v19285_v17, %v10439_v46  ;;  %v10583_v48 = vld [vmem:[#allocation37 + $0x8] sm:$0xff] }
0x2398   : > { %v13903_v21 = vpop.eup %13902  ;;  %v10400_v12 = vadd.f32 1e-06, %v10384_v7  ;;  %v10397_v26 = vadd.f32 1e-06, %v10381_v55  ;;  %12881 = vmatprep.subr.mxu0 %v10487_v28  ;;  %v10486_v20 = vadd.f32 %v19290_v59, %v10464_v37  ;;  %v10440_v5 = vmul.f32 %v13901_v40, %v19231_v0  ;;  %12942 = vmatprep.subr.mxu1 %v10583_v48 }
0x2399   : > { %v10352_v49 = vpop.xlane.xlu0 %10351  ;;  %12882 = vmatpush3.msra.mxu0 %v10487_v28  ;;  %v10483_v51 = vadd.f32 %v19290_v59, %v10461_v47  ;;  %v10437_v44 = vmul.f32 %v13903_v21, %v19233_v34  ;;  %12943 = vmatpush3.msra.mxu1 %v10583_v48 }
0x239a   : > { %13916 = vrsqrt.f32 %v10400_v12  ;;  %v10382_v23 = vmul.f32 0.0078125, %v10352_v49  ;;  %10502 = vst [vmem:[#allocation2 + $0x70] sm:$0xff] %v10486_v20  ;;  %12883 = vmatprep.subr.mxu0 %v10486_v20  ;;  %v10462_v61 = vmul.f32 %v19285_v17, %v10440_v5 }
0x239b   : > { %v13905_v41 = vpop.eup %13904  ;;  %13918 = vrsqrt.f32 %v10397_v26  ;;  %12884 = vmatpush3.msra.mxu0 %v10486_v20  ;;  %10499 = vst [vmem:[#allocation2 + $0x10] sm:$0xff] %v10483_v51  ;;  %v10459_v43 = vmul.f32 %v19285_v17, %v10437_v44 }
0x239c   : > { %v13907_v2 = vpop.eup %13906  ;;  %v10398_v0 = vadd.f32 1e-06, %v10382_v23  ;;  %12885 = vmatprep.subr.mxu0 %v10485_v13  ;;  %v10484_v39 = vadd.f32 %v19290_v59, %v10462_v61  ;;  %v10438_v30 = vmul.f32 %v13905_v41, %v19239_v58 }
0x239d   : > { %12886 = vmatpush3.msra.mxu0 %v10485_v13  ;;  %v10481_v34 = vadd.f32 %v19290_v59, %v10459_v43  ;;  %v10435_v8 = vmul.f32 %v13907_v2, %v19241_v18 }
0x239e   : > { %13920 = vrsqrt.f32 %v10398_v0  ;;  %10500 = vst [vmem:[#allocation2 + $0x38] sm:$0xff] %v10484_v39  ;;  %12887 = vmatprep.subr.mxu0 %v10484_v39  ;;  %v10460_v32 = vmul.f32 %v19285_v17, %v10438_v30 }
0x239f   : > { %v13909_v22 = vpop.eup %13908  ;;  %12888 = vmatpush3.msra.mxu0 %v10484_v39  ;;  %10497 = vst [vmem:[#allocation2 + $0x40] sm:$0xff] %v10481_v34  ;;  %v10457_v56 = vmul.f32 %v19285_v17, %v10435_v8 }
0x23a0   : > { %v13911_v6 = vpop.eup %13910  ;;  %12889 = vmatprep.subr.mxu0 %v10483_v51  ;;  %v10482_v4 = vadd.f32 %v19290_v59, %v10460_v32  ;;  %v10436_v58 = vmul.f32 %v13909_v22, %v19247_v19 }
0x23a1   : > { %12890 = vmatpush3.msra.mxu0 %v10483_v51  ;;  %v10479_v42 = vadd.f32 %v19290_v59, %v10457_v56  ;;  %v10433_v18 = vmul.f32 %v13911_v6, %v19249_v11 }
0x23a2   : > { %10498 = vst [vmem:[#allocation2 + $0x20] sm:$0xff] %v10482_v4  ;;  %12891 = vmatprep.subr.mxu0 %v10482_v4  ;;  %v10458_v31 = vmul.f32 %v19285_v17, %v10436_v58 }
0x23a3   : > { %v13913_v45 = vpop.eup %13912  ;;  %12892 = vmatpush3.msra.mxu0 %v10482_v4  ;;  %10495 = vst [vmem:[#allocation2 + $0x8] sm:$0xff] %v10479_v42  ;;  %v10455_v52 = vmul.f32 %v19285_v17, %v10433_v18 }
0x23a4   : > { %v13915_v27 = vpop.eup %13914  ;;  %12893 = vmatprep.subr.mxu0 %v10481_v34  ;;  %v10480_v9 = vadd.f32 %v19290_v59, %v10458_v31  ;;  %v10434_v19 = vmul.f32 %v13913_v45, %v19256_v57 }
0x23a5   : > { %12894 = vmatpush3.msra.mxu0 %v10481_v34  ;;  %v10477_v50 = vadd.f32 %v19290_v59, %v10455_v52  ;;  %v10431_v11 = vmul.f32 %v13915_v27, %v19259_v24 }
0x23a6   : > { %10496 = vst [vmem:[#allocation2 + $0x48] sm:$0xff] %v10480_v9  ;;  %12895 = vmatprep.subr.mxu0 %v10480_v9  ;;  %v10456_v28 = vmul.f32 %v19285_v17, %v10434_v19 }
0x23a7   : > { %v13917_v14 = vpop.eup %13916  ;;  %12896 = vmatpush3.msra.mxu0 %v10480_v9  ;;  %10493 = vst [vmem:[#allocation2 + $0x50] sm:$0xff] %v10477_v50  ;;  %v10453_v10 = vmul.f32 %v19285_v17, %v10431_v11 }
0x23a8   : > { %v13919_v35 = vpop.eup %13918  ;;  %12897 = vmatprep.subr.mxu0 %v10479_v42  ;;  %v10478_v25 = vadd.f32 %v19290_v59, %v10456_v28  ;;  %v10432_v57 = vmul.f32 %v13917_v14, %v19266_v1 }
0x23a9   : > { %12898 = vmatpush3.msra.mxu0 %v10479_v42  ;;  %v10475_v60 = vadd.f32 %v19290_v59, %v10453_v10  ;;  %v10429_v24 = vmul.f32 %v13919_v35, %v19269_v38 }
0x23aa   : > { %10494 = vst [vmem:[#allocation2 + $0x68] sm:$0xff] %v10478_v25  ;;  %12899 = vmatprep.subr.mxu0 %v10478_v25  ;;  %v10454_v36 = vmul.f32 %v19285_v17, %v10432_v57 }
0x23ab   : > { %v13921_v62 = vpop.eup %13920  ;;  %12900 = vmatpush3.msra.mxu0 %v10478_v25  ;;  %10491 = vst [vmem:[#allocation2 + $0x58] sm:$0xff] %v10475_v60  ;;  %v10451_v33 = vmul.f32 %v19285_v17, %v10429_v24 }
0x23ac   : > { %12901 = vmatprep.subr.mxu0 %v10477_v50  ;;  %v10476_v53 = vadd.f32 %v19290_v59, %v10454_v36  ;;  %v10430_v3 = vmul.f32 %v13921_v62, %v19276_v63  ;;  %v10506_v63 = vld [vmem:[%s19841_s1 + $0x8] sm:$0xff] }
0x23ad   : > { %12902 = vmatpush3.msra.mxu0 %v10477_v50  ;;  %v10473_v1 = vadd.f32 %v19290_v59, %v10451_v33 }
0x23ae   : > { %10492 = vst [vmem:[#allocation2 + $0x18] sm:$0xff] %v10476_v53  ;;  %12903 = vmatprep.subr.mxu0 %v10476_v53  ;;  %v10452_v38 = vmul.f32 %v19285_v17, %v10430_v3  ;;  %v10582_v17 = vld [vmem:[#allocation37] sm:$0xff] }
0x23af   : > { %12904 = vmatpush3.msra.mxu0 %v10476_v53  ;;  %10489 = vst [vmem:[#allocation2 + $0x30] sm:$0xff] %v10473_v1  ;;  %12944 = vmatprep.subr.mxu1 %v10582_v17 }
0x23b0   : > { %12905 = vmatprep.subr.mxu0 %v10475_v60  ;;  %v10474_v15 = vadd.f32 %v19290_v59, %v10452_v38  ;;  %12945 = vmatpush3.msra.mxu1 %v10582_v17  ;;  %v11551_v59 = vld [vmem:[%s19844_s24] ss:$0 sm:$0xff] }
0x23b1   : > { %12906 = vmatpush3.msra.mxu0 %v10475_v60 }
0x23b2   : > { %10490 = vst [vmem:[#allocation2] sm:$0xff] %v10474_v15  ;;  %12907 = vmatprep.subr.mxu0 %v10474_v15 }
0x23b3   : > { %12908 = vmatpush3.msra.mxu0 %v10474_v15 }
0x23b4   : > { %12909 = vmatprep.subr.mxu0 %v10473_v1 }
0x23b5   : > { %12910 = vmatpush3.msra.mxu0 %v10473_v1 }
0x23b6   : > { %12912 = vmatmul.mubr.f32.vlgmr.msra.gmra.mxu0 %v10506_v63 }
0x2476   : > { %v12913_v54 = vpop.f32.mrf.mxu0 }
0x2478   : > { %v10573_v29 = vpop.f32.mrf.mxu0 }
0x2479   : > { %12946 = vmatprep.mubr.f32.mxu1 %v10573_v29 }
0x247a   : > { %12947 = vmatmul.mubr.f32.vlgmr.msra.gmra.mxu1 %v12913_v54 }
0x2539   : > { %10683 = sbr.rel (%p11552_p3) target bundleno = 9536 (0x2540), region = 232 }
0x253a   : > { %v12948_v16 = vpop.f32.mrf.mxu1 }
0x253b   : > { %v10677_v13 = vadd.f32 %v12948_v16, %v11551_v59 }
0x253c   : > { %v10671_v46 = vpop.f32.mrf.mxu1 }
0x253d   : > { %v10672_v7 = vadd.f32 %v11551_v59, %v10671_v46 }
0x253e   : > { %10685 = vst [vmem:[%s19846_s6 + $0x8] sm:$0xff] %v10677_v13 }
0x253f   : > { %10684 = vst [vmem:[%s19846_s6] sm:$0xff] %v10672_v7 }
0x2540 PF: > { %s19847_s30 = sld [smem:[#allocation54_spill]] }
0x2541   : > { %s19848_s8 = sld [smem:[#allocation51_spill]] }
0x2542   : > { %s19849_s5 = sld [smem:[#allocation52_spill]] }
0x2543   : > { %s19850_s9 = sld [smem:[#allocation55_spill]] }
0x2546   : > { %p67_p6 = scmp.ge.s32.totalorder %s19847_s30, 4  }
0x2548   :  { %69 = sbr.rel (!%p67_p6) target bundleno = 50 (0x32), region = 418 }
0x254d   :  { %10697 = vsyncpa [#allocation4], 1 }
0x254e   :  { %10699 = vsyncpa [#allocation4 + $0x1], 1 }
0x254f   :  { %10700 = vsyncpa [#allocation6], 1 }
0x2550   :  { %10701 = vsyncpa [#allocation9], 1 }
0x2551   :  { %10703 = vsyncpa [#allocation9 + $0x1], 1 }
0x2552   :  { %10704 = vsyncpa [#allocation12], 1 }
0x2553   :  { %10706 = vsyncpa [#allocation12 + $0x1], 1 }
0x2554   :  { %10707 = vsyncpa [#allocation15], 1 }
0x2555   :  { %10709 = vsyncpa [#allocation15 + $0x1], 1 }
0x2556   :  { %10710 = vsyncpa [#allocation18], 1 }
0x2557   :  { %10712 = vsyncpa [#allocation18 + $0x1], 1 }
0x2558   :  { %10713 = vsyncpa [#allocation21], 1 }
0x2559   :  { %10715 = vsyncpa [#allocation21 + $0x1], 1 }
0x255a   :  { %10716 = vsyncpa [#allocation24], 1 }
0x255b   :  { %10718 = vsyncpa [#allocation24 + $0x1], 1 }
0x255c   :  { %10719 = vsyncpa [#allocation27], 1 }
0x255d   :  { %10721 = vsyncpa [#allocation27 + $0x1], 1 }
0x255e   :  { %10722 = vsyncpa [#allocation30], 1 }
0x255f   :  { %10724 = vsyncpa [#allocation30 + $0x1], 1 }
0x2560   :  { %10725 = vsyncpa [#allocation33], 1 }
0x2561   :  { %10727 = vsyncpa [#allocation33 + $0x1], 1 }
0x2562   :  { %10728 = vsyncpa [#allocation36], 1 }
0x2563   :  { %10730 = vsyncpa [#allocation36 + $0x1], 1 }

</bundles_post_ra>
